<compile_context>
chip_gen: v7x
topology: tpu7x:2x2x1
jax: 0.10.0
libtpu: 0.0.40
codegen_flags: <defaults>
</compile_context>

<pallas_src>
import jax
import jax.numpy as jnp
from jax.experimental import pallas as pl
from jax.experimental.pallas import tpu as pltpu

# ---- hyperparameters (small, consistent with the module's __init__) ----------
NODE_INDIM = 7      # node_indim
EDGE_INDIM = 4      # edge_indim
H_DIM = 5           # h_dim
E_DIM = 4           # e_dim
H_OUTDIM = 2        # h_outdim
HIDDEN_DIM = 32     # hidden_dim (default 40, kept small)
L_HC = 3            # message passing depth
ALPHA_HC = 0.5      # residual strength in ResIN
EC_HIDDEN = 32      # hidden dim of the synthetic pre-trained edge classifier
EC_THRESHOLD = 0.5  # ec_threshold
EPS = 1e-6

BATCH = 8           # total graphs
N_NODES = 32        # nodes per graph
N_EDGES = 64        # edges per graph
# Graphs stacked per grid step.  G=4 -> 128-row node matmuls / 256-row edge
# matmuls and a 2-long parallel grid (both v7x TCs busy).  Use G~8 (with a
# larger batch) to hit the 256-row target on v6e/v7x.
GRAPHS_PER_STEP = 4

LANES = 128
OUT_LANES = 8       # narrow output slab: [W, B, H0, H1, 0, 0, 0, 0]
ROW_ALIGN = 16      # bf16 sublane tile height (slab row alignment)
LANE_COL = 32       # narrow slab lane-column width


# ---- dense bf16 parameter-slab layout -----------------------------------------
def _wide_specs():
    # Fused first-layer weights used by the project-then-gather matmuls.
    s = [("ec_w1_ds", NODE_INDIM, 2 * EC_HIDDEN)]          # [W_dst | W_src]
    for l in range(L_HC):
        s.append((f"rin1_{l}", H_DIM, 3 * HIDDEN_DIM))     # [rw1_i | rw1_j | ow1_h]
    return s


def _narrow_specs():
    s = [("ec_w1_ea", EDGE_INDIM, EC_HIDDEN), ("ec_b1", 1, EC_HIDDEN),
         ("ec_w2", EC_HIDDEN, EC_HIDDEN), ("ec_b2", 1, EC_HIDDEN),
         ("ec_w3", EC_HIDDEN, 1), ("ec_b3", 1, 1),
         # hc_node_encoder: ResFCNN(depth=1, alpha=0, bias=False)
         ("ne_w1", NODE_INDIM, HIDDEN_DIM), ("ne_w2", HIDDEN_DIM, H_DIM),
         # hc_edge_encoder: MLP(L=2, bias=False)
         ("ee_w1", EDGE_INDIM, HIDDEN_DIM), ("ee_w2", HIDDEN_DIM, E_DIM)]
    # ResIN interaction networks (relational / object MLPs, L=3, bias=True)
    for l in range(L_HC):
        s += [(f"rw1_e_{l}", E_DIM, HIDDEN_DIM), (f"rb1_{l}", 1, HIDDEN_DIM),
              (f"rw2_{l}", HIDDEN_DIM, HIDDEN_DIM), (f"rb2_{l}", 1, HIDDEN_DIM),
              (f"rw3_{l}", HIDDEN_DIM, E_DIM), (f"rb3_{l}", 1, E_DIM),
              (f"ow1_a_{l}", E_DIM, HIDDEN_DIM), (f"ob1_{l}", 1, HIDDEN_DIM),
              (f"ow2_{l}", HIDDEN_DIM, HIDDEN_DIM), (f"ob2_{l}", 1, HIDDEN_DIM),
              (f"ow3_{l}", HIDDEN_DIM, H_DIM), (f"ob3_{l}", 1, H_DIM)]
    # p_beta / p_cluster heads (L=3, bias=True)
    s += [("pb_w1", H_DIM, HIDDEN_DIM), ("pb_b1", 1, HIDDEN_DIM),
          ("pb_w2", HIDDEN_DIM, HIDDEN_DIM), ("pb_b2", 1, HIDDEN_DIM),
          ("pb_w3", HIDDEN_DIM, 1), ("pb_b3", 1, 1),
          ("pc_w1", H_DIM, HIDDEN_DIM), ("pc_b1", 1, HIDDEN_DIM),
          ("pc_w2", HIDDEN_DIM, HIDDEN_DIM), ("pc_b2", 1, HIDDEN_DIM),
          ("pc_w3", HIDDEN_DIM, H_OUTDIM), ("pc_b3", 1, H_OUTDIM)]
    return s


def _round_up(v, a):
    return ((v + a - 1) // a) * a


def _build_layout():
    """name -> (row_off, col_off, rows, cols); 16-row aligned, 4 lane columns."""
    layout = {}
    row = 0
    for name, r, c in _wide_specs():        # wide (64/96-lane) fused weights, lane 0
        layout[name] = (row, 0, r, c)
        row += _round_up(r, ROW_ALIGN)
    ncols = LANES // LANE_COL               # 4 lane columns of 32
    col_rows = [row] * ncols
    for name, r, c in _narrow_specs():      # greedy balance across lane columns
        j = min(range(ncols), key=lambda k: col_rows[k])
        layout[name] = (col_rows[j], j * LANE_COL, r, c)
        col_rows[j] += _round_up(r, ROW_ALIGN)
    return layout, _round_up(max(col_rows), ROW_ALIGN)


_LAYOUT, SLAB_ROWS = _build_layout()


def init_params(key):
    """Raw named parameters (weights (in,out), biases (1,out)) + latent_norm."""
    params = {}
    specs = _wide_specs() + _narrow_specs()
    keys = jax.random.split(key, len(specs))
    for k, (name, r, c) in zip(keys, specs):
        if r == 1:  # bias row
            params[name] = 0.01 * jax.random.normal(k, (r, c), jnp.float32)
        else:
            params[name] = (jax.random.normal(k, (r, c), jnp.float32)
                            / jnp.sqrt(jnp.float32(r)))
    params["latent_norm"] = jnp.ones((1, 1), jnp.float32)
    return params


def pack_params(params):
    """Pack all parameters into one dense bf16 (SLAB_ROWS, 128) slab.

    latent_normalization is folded into the p_cluster output layer here.
    """
    slab = jnp.zeros((SLAB_ROWS, LANES), jnp.float32)
    ln = params["latent_norm"]
    for name, (ro, co, r, c) in _LAYOUT.items():
        val = params[name]
        if name in ("pc_w3", "pc_b3"):
            val = val * ln
        slab = slab.at[ro:ro + r, co:co + c].set(val)
    return slab.astype(jnp.bfloat16)


# ---- kernel -------------------------------------------------------------------
def _gtcn_kernel(x_ref, ea_ref, ids_ref, slab_ref, out_ref):
    x = x_ref[0]       # (GN, node_indim) f32 — G graphs' nodes stacked
    ea = ea_ref[0]     # (GE, edge_indim) f32 — G graphs' edges stacked
    ids = ids_ref[0]   # (2GE, 1) int32: rows [0:GE]=dst (target i), [GE:2GE]=src (source j)
    gn = x.shape[0]
    ge = ea.shape[0]
    hd = HIDDEN_DIM
    bf = jnp.bfloat16

    def p(name):       # static slice into the packed bf16 parameter slab
        ro, co, r, c = _LAYOUT[name]
        return slab_ref[pl.ds(ro, r), pl.ds(co, c)]

    def dot(a, b):     # bf16 MXU operands, f32 accumulation
        return jnp.dot(a.astype(bf), b.astype(bf),
                       preferred_element_type=jnp.float32)

    def relu(v):
        return jnp.maximum(v, 0.0)

    # Block-diagonal one-hot gather selector (node ids already carry per-graph
    # offsets, added in the wrapper): sel_g[k, n] = 1 iff n == ids[k].
    iota_g = jax.lax.broadcasted_iota(jnp.int32, (2 * ge, gn), 1)
    onehot = iota_g == ids                              # (2GE, GN) bool
    sel_g = onehot.astype(jnp.float32).astype(bf)       # cast once; reused by all gathers

    # --- pre-trained edge classifier (project-then-gather) ---------------------
    # TODO(synk): the actual pre-trained EC module is external; a per-edge MLP on
    # [x_src, x_dst, edge_attr] is used as a stand-in producing W in (0,1).
    proj_x = dot(x, p("ec_w1_ds"))                      # (GN, 64): lanes 0:32 via W_dst, 32:64 via W_src
    gx = dot(sel_g, proj_x)                             # (2GE, 64) fused dst/src endpoint gather
    t = relu(gx[:ge, 0:EC_HIDDEN] + gx[ge:, EC_HIDDEN:2 * EC_HIDDEN]
             + dot(ea, p("ec_w1_ea")) + p("ec_b1"))
    t = relu(dot(t, p("ec_w2")) + p("ec_b2"))
    w = jax.nn.sigmoid(dot(t, p("ec_w3")) + p("ec_b3"))  # (GE, 1)
    emask = (w > EC_THRESHOLD).astype(jnp.float32)       # edge_subgraph mask

    # Masked scatter-add selector built ONCE (edge mask folded in).  It is the
    # transpose of the dst half of the gather selector -> no extra index input
    # and no per-layer message masking.
    sel_scat = jnp.transpose(
        onehot[:ge].astype(jnp.float32) * emask).astype(bf)   # (GN, GE)

    # --- encoders ---------------------------------------------------------------
    h_hc = relu(dot(relu(dot(x, p("ne_w1"))), p("ne_w2")))    # (GN, H_DIM)
    e_hc = relu(dot(relu(dot(ea, p("ee_w1"))), p("ee_w2")))   # (GE, E_DIM)

    # --- ResIN: L_HC interaction networks with residual node updates -----------
    # edge_subgraph(edge_mask) reproduced by masking messages in the scatter
    # selector (node results identical).
    for l in range(L_HC):
        # One fused node-side projection: [rw1_i | rw1_j | ow1_h]  -> (GN, 96)
        proj = dot(h_hc, p(f"rin1_{l}"))
        gh = dot(sel_g, proj)                            # (2GE, 96) endpoint gather
        t = relu(gh[:ge, 0:hd] + gh[ge:, hd:2 * hd]      # h_i@rw1_i + h_j@rw1_j
                 + dot(e_hc, p(f"rw1_e_{l}")) + p(f"rb1_{l}"))
        t = relu(dot(t, p(f"rw2_{l}")) + p(f"rb2_{l}"))
        e_new = dot(t, p(f"rw3_{l}")) + p(f"rb3_{l}")    # (GE, E_DIM)
        agg = dot(sel_scat, e_new)                       # (GN, E_DIM) masked sum -> target nodes
        t = relu(proj[:, 2 * hd:3 * hd]                  # h @ ow1_h (precomputed)
                 + dot(agg, p(f"ow1_a_{l}")) + p(f"ob1_{l}"))
        t = relu(dot(t, p(f"ow2_{l}")) + p(f"ob2_{l}"))
        delta = dot(t, p(f"ow3_{l}")) + p(f"ob3_{l}")    # (GN, H_DIM)
        # TODO(synk): ResIN residual assumed as alpha*h + (1-alpha)*relu(dh).
        h_hc = ALPHA_HC * h_hc + (1.0 - ALPHA_HC) * relu(delta)
        e_hc = e_new   # NOTE: unmasked edge latents carried forward (node outputs unaffected)

    # --- condensation heads ------------------------------------------------------
    t = relu(dot(h_hc, p("pb_w1")) + p("pb_b1"))
    t = relu(dot(t, p("pb_w2")) + p("pb_b2"))
    beta = jax.nn.sigmoid(dot(t, p("pb_w3")) + p("pb_b3"))
    beta = EPS + (1.0 - 2.0 * EPS) * beta                 # (GN, 1)

    t = relu(dot(h_hc, p("pc_w1")) + p("pc_b1"))
    t = relu(dot(t, p("pc_w2")) + p("pc_b2"))
    h_out = dot(t, p("pc_w3")) + p("pc_b3")               # (GN, H_OUTDIM), latent_norm folded

    # --- narrow (8-lane) output store --------------------------------------------
    # lanes: 0 = W (per edge), 1 = B (per node), 2:2+H_OUTDIM = H (per node), rest 0
    rows = out_ref.shape[1]
    node_cols = jnp.concatenate([beta, h_out], axis=1)    # (GN, 1+H_OUTDIM)
    if rows > gn:
        node_cols = jnp.concatenate(
            [node_cols, jnp.zeros((rows - gn, 1 + H_OUTDIM), jnp.float32)], axis=0)
    w_col = w
    if rows > ge:
        w_col = jnp.concatenate(
            [w_col, jnp.zeros((rows - ge, 1), jnp.float32)], axis=0)
    pad = jnp.zeros((rows, OUT_LANES - 2 - H_OUTDIM), jnp.float32)
    out_ref[0] = jnp.concatenate([w_col, node_cols, pad], axis=1)


# ---- wrapper -------------------------------------------------------------------
@jax.jit
def pretrained_ec_graph_tcn_forward(x, edge_index, edge_attr, slab):
    """x: (B, N, node_indim), edge_index: (B, 2, E) int32, edge_attr: (B, E, edge_indim)."""
    b, n, node_f = x.shape
    e = edge_attr.shape[1]
    edge_f = edge_attr.shape[2]
    g = GRAPHS_PER_STEP
    assert b % g == 0, "batch must be divisible by GRAPHS_PER_STEP"
    groups = b // g
    gn, ge = g * n, g * e
    r_out = max(gn, ge)

    src = edge_index[:, 0, :].astype(jnp.int32)            # source j
    dst = edge_index[:, 1, :].astype(jnp.int32)            # target i
    # Per-graph node-id offsets -> block-diagonal one-hot selectors in-kernel.
    off = (jnp.arange(b, dtype=jnp.int32) % g)[:, None] * n
    dst_g = (dst + off).reshape(groups, ge)
    src_g = (src + off).reshape(groups, ge)
    ids_col = jnp.concatenate([dst_g, src_g], axis=1)[..., None]   # (groups, 2GE, 1)

    xg = x.reshape(groups, gn, node_f)
    eag = edge_attr.reshape(groups, ge, edge_f)

    out = pl.pallas_call(
        _gtcn_kernel,
        out_shape=jax.ShapeDtypeStruct((groups, r_out, OUT_LANES), jnp.float32),
        grid=(groups,),
        in_specs=[
            pl.BlockSpec((1, gn, node_f), lambda i: (i, 0, 0)),
            pl.BlockSpec((1, ge, edge_f), lambda i: (i, 0, 0)),
            pl.BlockSpec((1, 2 * ge, 1), lambda i: (i, 0, 0)),
            pl.BlockSpec((SLAB_ROWS, LANES), lambda i: (0, 0)),   # shared weights
        ],
        out_specs=pl.BlockSpec((1, r_out, OUT_LANES), lambda i: (i, 0, 0)),
        compiler_params=pltpu.CompilerParams(
            dimension_semantics=("parallel",)),
    )(xg, eag, ids_col, slab)

    w = out[:, :ge, 0].reshape(b, e)                       # unmasked edge weights
    beta = out[:, :gn, 1].reshape(b, n)
    h = out[:, :gn, 2:2 + H_OUTDIM].reshape(b, n, H_OUTDIM)
    return {
        "W": w,
        "H": h,
        "B": beta,
        "ec_hit_mask": jnp.ones((b, n), dtype=bool),       # mask_orphan_nodes=False
        "ec_edge_mask": w > EC_THRESHOLD,
    }


if __name__ == "__main__":
    key = jax.random.PRNGKey(0)
    kx, ke, ki, kp = jax.random.split(key, 4)
    x = jax.random.normal(kx, (BATCH, N_NODES, NODE_INDIM), dtype=jnp.float32)
    edge_attr = jax.random.normal(ke, (BATCH, N_EDGES, EDGE_INDIM), dtype=jnp.float32)
    edge_index = jax.random.randint(ki, (BATCH, 2, N_EDGES), 0, N_NODES, dtype=jnp.int32)

    params = init_params(kp)
    slab = pack_params(params)

    out = pretrained_ec_graph_tcn_forward(x, edge_index, edge_attr, slab)
    jax.block_until_ready(out)

    assert out["W"].shape == (BATCH, N_EDGES)
    assert out["H"].shape == (BATCH, N_NODES, H_OUTDIM)
    assert out["B"].shape == (BATCH, N_NODES)
    assert out["ec_edge_mask"].shape == (BATCH, N_EDGES)
    assert out["ec_hit_mask"].shape == (BATCH, N_NODES)
    print("KERNEL_OK")
</pallas_src>

<mosaic_0001>
module attributes {stable_mosaic.version = 11 : i64} {
  func.func @_gtcn_kernel(%arg0: i32, %arg1: memref<1x128x7xf32, #tpu.memory_space<vmem>>, %arg2: memref<1x256x4xf32, #tpu.memory_space<vmem>>, %arg3: memref<1x512x1xi32, #tpu.memory_space<vmem>>, %arg4: memref<384x128xbf16, #tpu.memory_space<vmem>>, %arg5: memref<1x256x8xf32, #tpu.memory_space<vmem>>) attributes {dimension_semantics = [#tpu.dimension_semantics<parallel>], iteration_bounds = array<i64: 2>, scalar_prefetch = 0 : i64, scratch_operands = 0 : i64, tpu.core_type = #tpu.core_type<tc>, window_params = [{transform_indices = @transform_0, window_bounds = array<i64: 1, 128, 7>}, {transform_indices = @transform_1, window_bounds = array<i64: 1, 256, 4>}, {transform_indices = @transform_2, window_bounds = array<i64: 1, 512, 1>}, {pipeline_mode = #tpu.pipeline_mode<synchronous>, transform_indices = @transform_3, window_bounds = array<i64: 384, 128>}, {transform_indices = @transform_4, window_bounds = array<i64: 1, 256, 8>}]} {
    %c0 = arith.constant 0 : index
    %c0_0 = arith.constant 0 : index
    %c0_1 = arith.constant 0 : index
    %0 = vector.load %arg1[%c0, %c0_0, %c0_1] : memref<1x128x7xf32, #tpu.memory_space<vmem>>, vector<1x128x7xf32>
    %1 = vector.shape_cast %0 : vector<1x128x7xf32> to vector<128x7xf32>
    %c0_2 = arith.constant 0 : index
    %c0_3 = arith.constant 0 : index
    %c0_4 = arith.constant 0 : index
    %2 = vector.load %arg2[%c0_2, %c0_3, %c0_4] : memref<1x256x4xf32, #tpu.memory_space<vmem>>, vector<1x256x4xf32>
    %3 = vector.shape_cast %2 : vector<1x256x4xf32> to vector<256x4xf32>
    %c0_5 = arith.constant 0 : index
    %c0_6 = arith.constant 0 : index
    %c0_7 = arith.constant 0 : index
    %4 = vector.load %arg3[%c0_5, %c0_6, %c0_7] : memref<1x512x1xi32, #tpu.memory_space<vmem>>, vector<1x512x1xi32>
    %5 = vector.shape_cast %4 : vector<1x512x1xi32> to vector<512x1xi32>
    %6 = tpu.iota {dimensions = array<i32: 1>} : vector<512x128xi32>
    %7 = vector.broadcast %5 : vector<512x1xi32> to vector<512x128xi32>
    %8 = arith.cmpi eq, %6, %7 : vector<512x128xi32>
    %9 = arith.extui %8 : vector<512x128xi1> to vector<512x128xi32>
    %10 = arith.sitofp %9 : vector<512x128xi32> to vector<512x128xf32>
    %11 = arith.truncf %10 : vector<512x128xf32> to vector<512x128xbf16>
    %c0_8 = arith.constant 0 : index
    %c0_9 = arith.constant 0 : index
    %12 = vector.load %arg4[%c0_8, %c0_9] : memref<384x128xbf16, #tpu.memory_space<vmem>>, vector<7x64xbf16>
    %13 = arith.truncf %1 : vector<128x7xf32> to vector<128x7xbf16>
    %cst = arith.constant dense<0.000000e+00> : vector<128x64xf32>
    %14 = tpu.matmul %13, %12, %cst {dimension_numbers = #tpu.dot_dimension_numbers<[1], [0], [0], [1], [0, 0, 1, 1], [], []>} : vector<128x7xbf16>, vector<7x64xbf16>, vector<128x64xf32> -> vector<128x64xf32>
    %15 = arith.truncf %14 : vector<128x64xf32> to vector<128x64xbf16>
    %cst_10 = arith.constant dense<0.000000e+00> : vector<512x64xf32>
    %16 = tpu.matmul %11, %15, %cst_10 {dimension_numbers = #tpu.dot_dimension_numbers<[1], [0], [0], [1], [0, 0, 1, 1], [], []>} : vector<512x128xbf16>, vector<128x64xbf16>, vector<512x64xf32> -> vector<512x64xf32>
    %17 = vector.extract_strided_slice %16 {offsets = [0, 0], sizes = [256, 32], strides = [1, 1]} : vector<512x64xf32> to vector<256x32xf32>
    %18 = vector.extract_strided_slice %16 {offsets = [256, 32], sizes = [256, 32], strides = [1, 1]} : vector<512x64xf32> to vector<256x32xf32>
    %19 = arith.addf %17, %18 : vector<256x32xf32>
    %c64 = arith.constant 64 : index
    %c0_11 = arith.constant 0 : index
    %20 = vector.load %arg4[%c64, %c0_11] : memref<384x128xbf16, #tpu.memory_space<vmem>>, vector<4x32xbf16>
    %21 = arith.truncf %3 : vector<256x4xf32> to vector<256x4xbf16>
    %cst_12 = arith.constant dense<0.000000e+00> : vector<256x32xf32>
    %22 = tpu.matmul %21, %20, %cst_12 {dimension_numbers = #tpu.dot_dimension_numbers<[1], [0], [0], [1], [0, 0, 1, 1], [], []>} : vector<256x4xbf16>, vector<4x32xbf16>, vector<256x32xf32> -> vector<256x32xf32>
    %23 = arith.addf %19, %22 : vector<256x32xf32>
    %c64_13 = arith.constant 64 : index
    %c32 = arith.constant 32 : index
    %24 = vector.load %arg4[%c64_13, %c32] : memref<384x128xbf16, #tpu.memory_space<vmem>>, vector<1x32xbf16>
    %25 = arith.extf %24 : vector<1x32xbf16> to vector<1x32xf32>
    %26 = vector.broadcast %25 : vector<1x32xf32> to vector<256x32xf32>
    %27 = arith.addf %23, %26 : vector<256x32xf32>
    %cst_14 = arith.constant 0.000000e+00 : f32
    %28 = vector.broadcast %cst_14 : f32 to vector<256x32xf32>
    %29 = arith.maximumf %27, %28 : vector<256x32xf32>
    %c64_15 = arith.constant 64 : index
    %c64_16 = arith.constant 64 : index
    %30 = vector.load %arg4[%c64_15, %c64_16] : memref<384x128xbf16, #tpu.memory_space<vmem>>, vector<32x32xbf16>
    %31 = arith.truncf %29 : vector<256x32xf32> to vector<256x32xbf16>
    %cst_17 = arith.constant dense<0.000000e+00> : vector<256x32xf32>
    %32 = tpu.matmul %31, %30, %cst_17 {dimension_numbers = #tpu.dot_dimension_numbers<[1], [0], [0], [1], [0, 0, 1, 1], [], []>} : vector<256x32xbf16>, vector<32x32xbf16>, vector<256x32xf32> -> vector<256x32xf32>
    %c64_18 = arith.constant 64 : index
    %c96 = arith.constant 96 : index
    %33 = vector.load %arg4[%c64_18, %c96] : memref<384x128xbf16, #tpu.memory_space<vmem>>, vector<1x32xbf16>
    %34 = arith.extf %33 : vector<1x32xbf16> to vector<1x32xf32>
    %35 = vector.broadcast %34 : vector<1x32xf32> to vector<256x32xf32>
    %36 = arith.addf %32, %35 : vector<256x32xf32>
    %cst_19 = arith.constant 0.000000e+00 : f32
    %37 = vector.broadcast %cst_19 : f32 to vector<256x32xf32>
    %38 = arith.maximumf %36, %37 : vector<256x32xf32>
    %c80 = arith.constant 80 : index
    %c0_20 = arith.constant 0 : index
    %39 = vector.load %arg4[%c80, %c0_20] : memref<384x128xbf16, #tpu.memory_space<vmem>>, vector<32x1xbf16>
    %40 = arith.truncf %38 : vector<256x32xf32> to vector<256x32xbf16>
    %cst_21 = arith.constant dense<0.000000e+00> : vector<256x1xf32>
    %41 = tpu.matmul %40, %39, %cst_21 {dimension_numbers = #tpu.dot_dimension_numbers<[1], [0], [0], [1], [0, 0, 1, 1], [], []>} : vector<256x32xbf16>, vector<32x1xbf16>, vector<256x1xf32> -> vector<256x1xf32>
    %c80_22 = arith.constant 80 : index
    %c32_23 = arith.constant 32 : index
    %42 = vector.load %arg4[%c80_22, %c32_23] : memref<384x128xbf16, #tpu.memory_space<vmem>>, vector<1x1xbf16>
    %43 = arith.extf %42 : vector<1x1xbf16> to vector<1x1xf32>
    %44 = vector.broadcast %43 : vector<1x1xf32> to vector<256x1xf32>
    %45 = arith.addf %41, %44 : vector<256x1xf32>
    %46 = arith.negf %45 : vector<256x1xf32>
    %47 = math.exp %46 : vector<256x1xf32>
    %cst_24 = arith.constant 1.000000e+00 : f32
    %48 = vector.broadcast %cst_24 : f32 to vector<256x1xf32>
    %49 = arith.addf %48, %47 : vector<256x1xf32>
    %50 = arith.divf %48, %49 : vector<256x1xf32>
    %cst_25 = arith.constant 5.000000e-01 : f32
    %51 = vector.broadcast %cst_25 : f32 to vector<256x1xf32>
    %52 = arith.cmpf ogt, %50, %51 : vector<256x1xf32>
    %53 = arith.extui %52 : vector<256x1xi1> to vector<256x1xi32>
    %54 = arith.sitofp %53 : vector<256x1xi32> to vector<256x1xf32>
    %55 = vector.extract_strided_slice %8 {offsets = [0, 0], sizes = [256, 128], strides = [1, 1]} : vector<512x128xi1> to vector<256x128xi1>
    %56 = arith.extui %55 : vector<256x128xi1> to vector<256x128xi32>
    %57 = arith.sitofp %56 : vector<256x128xi32> to vector<256x128xf32>
    %58 = vector.broadcast %54 : vector<256x1xf32> to vector<256x128xf32>
    %59 = arith.mulf %57, %58 : vector<256x128xf32>
    %60 = tpu.transpose %59, [1, 0] : vector<256x128xf32> -> vector<128x256xf32>
    %61 = arith.truncf %60 : vector<128x256xf32> to vector<128x256xbf16>
    %c80_26 = arith.constant 80 : index
    %c96_27 = arith.constant 96 : index
    %62 = vector.load %arg4[%c80_26, %c96_27] : memref<384x128xbf16, #tpu.memory_space<vmem>>, vector<7x32xbf16>
    %63 = arith.truncf %1 : vector<128x7xf32> to vector<128x7xbf16>
    %cst_28 = arith.constant dense<0.000000e+00> : vector<128x32xf32>
    %64 = tpu.matmul %63, %62, %cst_28 {dimension_numbers = #tpu.dot_dimension_numbers<[1], [0], [0], [1], [0, 0, 1, 1], [], []>} : vector<128x7xbf16>, vector<7x32xbf16>, vector<128x32xf32> -> vector<128x32xf32>
    %cst_29 = arith.constant 0.000000e+00 : f32
    %65 = vector.broadcast %cst_29 : f32 to vector<128x32xf32>
    %66 = arith.maximumf %64, %65 : vector<128x32xf32>
    %c96_30 = arith.constant 96 : index
    %c32_31 = arith.constant 32 : index
    %67 = vector.load %arg4[%c96_30, %c32_31] : memref<384x128xbf16, #tpu.memory_space<vmem>>, vector<32x5xbf16>
    %68 = arith.truncf %66 : vector<128x32xf32> to vector<128x32xbf16>
    %cst_32 = arith.constant dense<0.000000e+00> : vector<128x5xf32>
    %69 = tpu.matmul %68, %67, %cst_32 {dimension_numbers = #tpu.dot_dimension_numbers<[1], [0], [0], [1], [0, 0, 1, 1], [], []>} : vector<128x32xbf16>, vector<32x5xbf16>, vector<128x5xf32> -> vector<128x5xf32>
    %cst_33 = arith.constant 0.000000e+00 : f32
    %70 = vector.broadcast %cst_33 : f32 to vector<128x5xf32>
    %71 = arith.maximumf %69, %70 : vector<128x5xf32>
    %c96_34 = arith.constant 96 : index
    %c64_35 = arith.constant 64 : index
    %72 = vector.load %arg4[%c96_34, %c64_35] : memref<384x128xbf16, #tpu.memory_space<vmem>>, vector<4x32xbf16>
    %73 = arith.truncf %3 : vector<256x4xf32> to vector<256x4xbf16>
    %cst_36 = arith.constant dense<0.000000e+00> : vector<256x32xf32>
    %74 = tpu.matmul %73, %72, %cst_36 {dimension_numbers = #tpu.dot_dimension_numbers<[1], [0], [0], [1], [0, 0, 1, 1], [], []>} : vector<256x4xbf16>, vector<4x32xbf16>, vector<256x32xf32> -> vector<256x32xf32>
    %cst_37 = arith.constant 0.000000e+00 : f32
    %75 = vector.broadcast %cst_37 : f32 to vector<256x32xf32>
    %76 = arith.maximumf %74, %75 : vector<256x32xf32>
    %c96_38 = arith.constant 96 : index
    %c96_39 = arith.constant 96 : index
    %77 = vector.load %arg4[%c96_38, %c96_39] : memref<384x128xbf16, #tpu.memory_space<vmem>>, vector<32x4xbf16>
    %78 = arith.truncf %76 : vector<256x32xf32> to vector<256x32xbf16>
    %cst_40 = arith.constant dense<0.000000e+00> : vector<256x4xf32>
    %79 = tpu.matmul %78, %77, %cst_40 {dimension_numbers = #tpu.dot_dimension_numbers<[1], [0], [0], [1], [0, 0, 1, 1], [], []>} : vector<256x32xbf16>, vector<32x4xbf16>, vector<256x4xf32> -> vector<256x4xf32>
    %cst_41 = arith.constant 0.000000e+00 : f32
    %80 = vector.broadcast %cst_41 : f32 to vector<256x4xf32>
    %81 = arith.maximumf %79, %80 : vector<256x4xf32>
    %c16 = arith.constant 16 : index
    %c0_42 = arith.constant 0 : index
    %82 = vector.load %arg4[%c16, %c0_42] : memref<384x128xbf16, #tpu.memory_space<vmem>>, vector<5x96xbf16>
    %83 = arith.truncf %71 : vector<128x5xf32> to vector<128x5xbf16>
    %cst_43 = arith.constant dense<0.000000e+00> : vector<128x96xf32>
    %84 = tpu.matmul %83, %82, %cst_43 {dimension_numbers = #tpu.dot_dimension_numbers<[1], [0], [0], [1], [0, 0, 1, 1], [], []>} : vector<128x5xbf16>, vector<5x96xbf16>, vector<128x96xf32> -> vector<128x96xf32>
    %85 = arith.truncf %84 : vector<128x96xf32> to vector<128x96xbf16>
    %cst_44 = arith.constant dense<0.000000e+00> : vector<512x96xf32>
    %86 = tpu.matmul %11, %85, %cst_44 {dimension_numbers = #tpu.dot_dimension_numbers<[1], [0], [0], [1], [0, 0, 1, 1], [], []>} : vector<512x128xbf16>, vector<128x96xbf16>, vector<512x96xf32> -> vector<512x96xf32>
    %87 = vector.extract_strided_slice %86 {offsets = [0, 0], sizes = [256, 32], strides = [1, 1]} : vector<512x96xf32> to vector<256x32xf32>
    %88 = vector.extract_strided_slice %86 {offsets = [256, 32], sizes = [256, 32], strides = [1, 1]} : vector<512x96xf32> to vector<256x32xf32>
    %89 = arith.addf %87, %88 : vector<256x32xf32>
    %c112 = arith.constant 112 : index
    %c0_45 = arith.constant 0 : index
    %90 = vector.load %arg4[%c112, %c0_45] : memref<384x128xbf16, #tpu.memory_space<vmem>>, vector<4x32xbf16>
    %91 = arith.truncf %81 : vector<256x4xf32> to vector<256x4xbf16>
    %cst_46 = arith.constant dense<0.000000e+00> : vector<256x32xf32>
    %92 = tpu.matmul %91, %90, %cst_46 {dimension_numbers = #tpu.dot_dimension_numbers<[1], [0], [0], [1], [0, 0, 1, 1], [], []>} : vector<256x4xbf16>, vector<4x32xbf16>, vector<256x32xf32> -> vector<256x32xf32>
    %93 = arith.addf %89, %92 : vector<256x32xf32>
    %c112_47 = arith.constant 112 : index
    %c64_48 = arith.constant 64 : index
    %94 = vector.load %arg4[%c112_47, %c64_48] : memref<384x128xbf16, #tpu.memory_space<vmem>>, vector<1x32xbf16>
    %95 = arith.extf %94 : vector<1x32xbf16> to vector<1x32xf32>
    %96 = vector.broadcast %95 : vector<1x32xf32> to vector<256x32xf32>
    %97 = arith.addf %93, %96 : vector<256x32xf32>
    %cst_49 = arith.constant 0.000000e+00 : f32
    %98 = vector.broadcast %cst_49 : f32 to vector<256x32xf32>
    %99 = arith.maximumf %97, %98 : vector<256x32xf32>
    %c128 = arith.constant 128 : index
    %c0_50 = arith.constant 0 : index
    %100 = vector.load %arg4[%c128, %c0_50] : memref<384x128xbf16, #tpu.memory_space<vmem>>, vector<32x32xbf16>
    %101 = arith.truncf %99 : vector<256x32xf32> to vector<256x32xbf16>
    %cst_51 = arith.constant dense<0.000000e+00> : vector<256x32xf32>
    %102 = tpu.matmul %101, %100, %cst_51 {dimension_numbers = #tpu.dot_dimension_numbers<[1], [0], [0], [1], [0, 0, 1, 1], [], []>} : vector<256x32xbf16>, vector<32x32xbf16>, vector<256x32xf32> -> vector<256x32xf32>
    %c128_52 = arith.constant 128 : index
    %c32_53 = arith.constant 32 : index
    %103 = vector.load %arg4[%c128_52, %c32_53] : memref<384x128xbf16, #tpu.memory_space<vmem>>, vector<1x32xbf16>
    %104 = arith.extf %103 : vector<1x32xbf16> to vector<1x32xf32>
    %105 = vector.broadcast %104 : vector<1x32xf32> to vector<256x32xf32>
    %106 = arith.addf %102, %105 : vector<256x32xf32>
    %cst_54 = arith.constant 0.000000e+00 : f32
    %107 = vector.broadcast %cst_54 : f32 to vector<256x32xf32>
    %108 = arith.maximumf %106, %107 : vector<256x32xf32>
    %c128_55 = arith.constant 128 : index
    %c64_56 = arith.constant 64 : index
    %109 = vector.load %arg4[%c128_55, %c64_56] : memref<384x128xbf16, #tpu.memory_space<vmem>>, vector<32x4xbf16>
    %110 = arith.truncf %108 : vector<256x32xf32> to vector<256x32xbf16>
    %cst_57 = arith.constant dense<0.000000e+00> : vector<256x4xf32>
    %111 = tpu.matmul %110, %109, %cst_57 {dimension_numbers = #tpu.dot_dimension_numbers<[1], [0], [0], [1], [0, 0, 1, 1], [], []>} : vector<256x32xbf16>, vector<32x4xbf16>, vector<256x4xf32> -> vector<256x4xf32>
    %c128_58 = arith.constant 128 : index
    %c96_59 = arith.constant 96 : index
    %112 = vector.load %arg4[%c128_58, %c96_59] : memref<384x128xbf16, #tpu.memory_space<vmem>>, vector<1x4xbf16>
    %113 = arith.extf %112 : vector<1x4xbf16> to vector<1x4xf32>
    %114 = vector.broadcast %113 : vector<1x4xf32> to vector<256x4xf32>
    %115 = arith.addf %111, %114 : vector<256x4xf32>
    %116 = arith.truncf %115 : vector<256x4xf32> to vector<256x4xbf16>
    %cst_60 = arith.constant dense<0.000000e+00> : vector<128x4xf32>
    %117 = tpu.matmul %61, %116, %cst_60 {dimension_numbers = #tpu.dot_dimension_numbers<[1], [0], [0], [1], [0, 0, 1, 1], [], []>} : vector<128x256xbf16>, vector<256x4xbf16>, vector<128x4xf32> -> vector<128x4xf32>
    %118 = vector.extract_strided_slice %84 {offsets = [0, 64], sizes = [128, 32], strides = [1, 1]} : vector<128x96xf32> to vector<128x32xf32>
    %c144 = arith.constant 144 : index
    %c32_61 = arith.constant 32 : index
    %119 = vector.load %arg4[%c144, %c32_61] : memref<384x128xbf16, #tpu.memory_space<vmem>>, vector<4x32xbf16>
    %120 = arith.truncf %117 : vector<128x4xf32> to vector<128x4xbf16>
    %cst_62 = arith.constant dense<0.000000e+00> : vector<128x32xf32>
    %121 = tpu.matmul %120, %119, %cst_62 {dimension_numbers = #tpu.dot_dimension_numbers<[1], [0], [0], [1], [0, 0, 1, 1], [], []>} : vector<128x4xbf16>, vector<4x32xbf16>, vector<128x32xf32> -> vector<128x32xf32>
    %122 = arith.addf %118, %121 : vector<128x32xf32>
    %c144_63 = arith.constant 144 : index
    %c96_64 = arith.constant 96 : index
    %123 = vector.load %arg4[%c144_63, %c96_64] : memref<384x128xbf16, #tpu.memory_space<vmem>>, vector<1x32xbf16>
    %124 = arith.extf %123 : vector<1x32xbf16> to vector<1x32xf32>
    %125 = vector.broadcast %124 : vector<1x32xf32> to vector<128x32xf32>
    %126 = arith.addf %122, %125 : vector<128x32xf32>
    %cst_65 = arith.constant 0.000000e+00 : f32
    %127 = vector.broadcast %cst_65 : f32 to vector<128x32xf32>
    %128 = arith.maximumf %126, %127 : vector<128x32xf32>
    %c160 = arith.constant 160 : index
    %c0_66 = arith.constant 0 : index
    %129 = vector.load %arg4[%c160, %c0_66] : memref<384x128xbf16, #tpu.memory_space<vmem>>, vector<32x32xbf16>
    %130 = arith.truncf %128 : vector<128x32xf32> to vector<128x32xbf16>
    %cst_67 = arith.constant dense<0.000000e+00> : vector<128x32xf32>
    %131 = tpu.matmul %130, %129, %cst_67 {dimension_numbers = #tpu.dot_dimension_numbers<[1], [0], [0], [1], [0, 0, 1, 1], [], []>} : vector<128x32xbf16>, vector<32x32xbf16>, vector<128x32xf32> -> vector<128x32xf32>
    %c160_68 = arith.constant 160 : index
    %c32_69 = arith.constant 32 : index
    %132 = vector.load %arg4[%c160_68, %c32_69] : memref<384x128xbf16, #tpu.memory_space<vmem>>, vector<1x32xbf16>
    %133 = arith.extf %132 : vector<1x32xbf16> to vector<1x32xf32>
    %134 = vector.broadcast %133 : vector<1x32xf32> to vector<128x32xf32>
    %135 = arith.addf %131, %134 : vector<128x32xf32>
    %cst_70 = arith.constant 0.000000e+00 : f32
    %136 = vector.broadcast %cst_70 : f32 to vector<128x32xf32>
    %137 = arith.maximumf %135, %136 : vector<128x32xf32>
    %c160_71 = arith.constant 160 : index
    %c64_72 = arith.constant 64 : index
    %138 = vector.load %arg4[%c160_71, %c64_72] : memref<384x128xbf16, #tpu.memory_space<vmem>>, vector<32x5xbf16>
    %139 = arith.truncf %137 : vector<128x32xf32> to vector<128x32xbf16>
    %cst_73 = arith.constant dense<0.000000e+00> : vector<128x5xf32>
    %140 = tpu.matmul %139, %138, %cst_73 {dimension_numbers = #tpu.dot_dimension_numbers<[1], [0], [0], [1], [0, 0, 1, 1], [], []>} : vector<128x32xbf16>, vector<32x5xbf16>, vector<128x5xf32> -> vector<128x5xf32>
    %c160_74 = arith.constant 160 : index
    %c96_75 = arith.constant 96 : index
    %141 = vector.load %arg4[%c160_74, %c96_75] : memref<384x128xbf16, #tpu.memory_space<vmem>>, vector<1x5xbf16>
    %142 = arith.extf %141 : vector<1x5xbf16> to vector<1x5xf32>
    %143 = vector.broadcast %142 : vector<1x5xf32> to vector<128x5xf32>
    %144 = arith.addf %140, %143 : vector<128x5xf32>
    %cst_76 = arith.constant 5.000000e-01 : f32
    %145 = vector.broadcast %cst_76 : f32 to vector<128x5xf32>
    %146 = arith.mulf %145, %71 : vector<128x5xf32>
    %cst_77 = arith.constant 0.000000e+00 : f32
    %147 = vector.broadcast %cst_77 : f32 to vector<128x5xf32>
    %148 = arith.maximumf %144, %147 : vector<128x5xf32>
    %cst_78 = arith.constant 5.000000e-01 : f32
    %149 = vector.broadcast %cst_78 : f32 to vector<128x5xf32>
    %150 = arith.mulf %149, %148 : vector<128x5xf32>
    %151 = arith.addf %146, %150 : vector<128x5xf32>
    %c32_79 = arith.constant 32 : index
    %c0_80 = arith.constant 0 : index
    %152 = vector.load %arg4[%c32_79, %c0_80] : memref<384x128xbf16, #tpu.memory_space<vmem>>, vector<5x96xbf16>
    %153 = arith.truncf %151 : vector<128x5xf32> to vector<128x5xbf16>
    %cst_81 = arith.constant dense<0.000000e+00> : vector<128x96xf32>
    %154 = tpu.matmul %153, %152, %cst_81 {dimension_numbers = #tpu.dot_dimension_numbers<[1], [0], [0], [1], [0, 0, 1, 1], [], []>} : vector<128x5xbf16>, vector<5x96xbf16>, vector<128x96xf32> -> vector<128x96xf32>
    %155 = arith.truncf %154 : vector<128x96xf32> to vector<128x96xbf16>
    %cst_82 = arith.constant dense<0.000000e+00> : vector<512x96xf32>
    %156 = tpu.matmul %11, %155, %cst_82 {dimension_numbers = #tpu.dot_dimension_numbers<[1], [0], [0], [1], [0, 0, 1, 1], [], []>} : vector<512x128xbf16>, vector<128x96xbf16>, vector<512x96xf32> -> vector<512x96xf32>
    %157 = vector.extract_strided_slice %156 {offsets = [0, 0], sizes = [256, 32], strides = [1, 1]} : vector<512x96xf32> to vector<256x32xf32>
    %158 = vector.extract_strided_slice %156 {offsets = [256, 32], sizes = [256, 32], strides = [1, 1]} : vector<512x96xf32> to vector<256x32xf32>
    %159 = arith.addf %157, %158 : vector<256x32xf32>
    %c176 = arith.constant 176 : index
    %c32_83 = arith.constant 32 : index
    %160 = vector.load %arg4[%c176, %c32_83] : memref<384x128xbf16, #tpu.memory_space<vmem>>, vector<4x32xbf16>
    %161 = arith.truncf %115 : vector<256x4xf32> to vector<256x4xbf16>
    %cst_84 = arith.constant dense<0.000000e+00> : vector<256x32xf32>
    %162 = tpu.matmul %161, %160, %cst_84 {dimension_numbers = #tpu.dot_dimension_numbers<[1], [0], [0], [1], [0, 0, 1, 1], [], []>} : vector<256x4xbf16>, vector<4x32xbf16>, vector<256x32xf32> -> vector<256x32xf32>
    %163 = arith.addf %159, %162 : vector<256x32xf32>
    %c176_85 = arith.constant 176 : index
    %c96_86 = arith.constant 96 : index
    %164 = vector.load %arg4[%c176_85, %c96_86] : memref<384x128xbf16, #tpu.memory_space<vmem>>, vector<1x32xbf16>
    %165 = arith.extf %164 : vector<1x32xbf16> to vector<1x32xf32>
    %166 = vector.broadcast %165 : vector<1x32xf32> to vector<256x32xf32>
    %167 = arith.addf %163, %166 : vector<256x32xf32>
    %cst_87 = arith.constant 0.000000e+00 : f32
    %168 = vector.broadcast %cst_87 : f32 to vector<256x32xf32>
    %169 = arith.maximumf %167, %168 : vector<256x32xf32>
    %c192 = arith.constant 192 : index
    %c0_88 = arith.constant 0 : index
    %170 = vector.load %arg4[%c192, %c0_88] : memref<384x128xbf16, #tpu.memory_space<vmem>>, vector<32x32xbf16>
    %171 = arith.truncf %169 : vector<256x32xf32> to vector<256x32xbf16>
    %cst_89 = arith.constant dense<0.000000e+00> : vector<256x32xf32>
    %172 = tpu.matmul %171, %170, %cst_89 {dimension_numbers = #tpu.dot_dimension_numbers<[1], [0], [0], [1], [0, 0, 1, 1], [], []>} : vector<256x32xbf16>, vector<32x32xbf16>, vector<256x32xf32> -> vector<256x32xf32>
    %c192_90 = arith.constant 192 : index
    %c32_91 = arith.constant 32 : index
    %173 = vector.load %arg4[%c192_90, %c32_91] : memref<384x128xbf16, #tpu.memory_space<vmem>>, vector<1x32xbf16>
    %174 = arith.extf %173 : vector<1x32xbf16> to vector<1x32xf32>
    %175 = vector.broadcast %174 : vector<1x32xf32> to vector<256x32xf32>
    %176 = arith.addf %172, %175 : vector<256x32xf32>
    %cst_92 = arith.constant 0.000000e+00 : f32
    %177 = vector.broadcast %cst_92 : f32 to vector<256x32xf32>
    %178 = arith.maximumf %176, %177 : vector<256x32xf32>
    %c192_93 = arith.constant 192 : index
    %c64_94 = arith.constant 64 : index
    %179 = vector.load %arg4[%c192_93, %c64_94] : memref<384x128xbf16, #tpu.memory_space<vmem>>, vector<32x4xbf16>
    %180 = arith.truncf %178 : vector<256x32xf32> to vector<256x32xbf16>
    %cst_95 = arith.constant dense<0.000000e+00> : vector<256x4xf32>
    %181 = tpu.matmul %180, %179, %cst_95 {dimension_numbers = #tpu.dot_dimension_numbers<[1], [0], [0], [1], [0, 0, 1, 1], [], []>} : vector<256x32xbf16>, vector<32x4xbf16>, vector<256x4xf32> -> vector<256x4xf32>
    %c192_96 = arith.constant 192 : index
    %c96_97 = arith.constant 96 : index
    %182 = vector.load %arg4[%c192_96, %c96_97] : memref<384x128xbf16, #tpu.memory_space<vmem>>, vector<1x4xbf16>
    %183 = arith.extf %182 : vector<1x4xbf16> to vector<1x4xf32>
    %184 = vector.broadcast %183 : vector<1x4xf32> to vector<256x4xf32>
    %185 = arith.addf %181, %184 : vector<256x4xf32>
    %186 = arith.truncf %185 : vector<256x4xf32> to vector<256x4xbf16>
    %cst_98 = arith.constant dense<0.000000e+00> : vector<128x4xf32>
    %187 = tpu.matmul %61, %186, %cst_98 {dimension_numbers = #tpu.dot_dimension_numbers<[1], [0], [0], [1], [0, 0, 1, 1], [], []>} : vector<128x256xbf16>, vector<256x4xbf16>, vector<128x4xf32> -> vector<128x4xf32>
    %188 = vector.extract_strided_slice %154 {offsets = [0, 64], sizes = [128, 32], strides = [1, 1]} : vector<128x96xf32> to vector<128x32xf32>
    %c208 = arith.constant 208 : index
    %c32_99 = arith.constant 32 : index
    %189 = vector.load %arg4[%c208, %c32_99] : memref<384x128xbf16, #tpu.memory_space<vmem>>, vector<4x32xbf16>
    %190 = arith.truncf %187 : vector<128x4xf32> to vector<128x4xbf16>
    %cst_100 = arith.constant dense<0.000000e+00> : vector<128x32xf32>
    %191 = tpu.matmul %190, %189, %cst_100 {dimension_numbers = #tpu.dot_dimension_numbers<[1], [0], [0], [1], [0, 0, 1, 1], [], []>} : vector<128x4xbf16>, vector<4x32xbf16>, vector<128x32xf32> -> vector<128x32xf32>
    %192 = arith.addf %188, %191 : vector<128x32xf32>
    %c208_101 = arith.constant 208 : index
    %c96_102 = arith.constant 96 : index
    %193 = vector.load %arg4[%c208_101, %c96_102] : memref<384x128xbf16, #tpu.memory_space<vmem>>, vector<1x32xbf16>
    %194 = arith.extf %193 : vector<1x32xbf16> to vector<1x32xf32>
    %195 = vector.broadcast %194 : vector<1x32xf32> to vector<128x32xf32>
    %196 = arith.addf %192, %195 : vector<128x32xf32>
    %cst_103 = arith.constant 0.000000e+00 : f32
    %197 = vector.broadcast %cst_103 : f32 to vector<128x32xf32>
    %198 = arith.maximumf %196, %197 : vector<128x32xf32>
    %c224 = arith.constant 224 : index
    %c0_104 = arith.constant 0 : index
    %199 = vector.load %arg4[%c224, %c0_104] : memref<384x128xbf16, #tpu.memory_space<vmem>>, vector<32x32xbf16>
    %200 = arith.truncf %198 : vector<128x32xf32> to vector<128x32xbf16>
    %cst_105 = arith.constant dense<0.000000e+00> : vector<128x32xf32>
    %201 = tpu.matmul %200, %199, %cst_105 {dimension_numbers = #tpu.dot_dimension_numbers<[1], [0], [0], [1], [0, 0, 1, 1], [], []>} : vector<128x32xbf16>, vector<32x32xbf16>, vector<128x32xf32> -> vector<128x32xf32>
    %c224_106 = arith.constant 224 : index
    %c32_107 = arith.constant 32 : index
    %202 = vector.load %arg4[%c224_106, %c32_107] : memref<384x128xbf16, #tpu.memory_space<vmem>>, vector<1x32xbf16>
    %203 = arith.extf %202 : vector<1x32xbf16> to vector<1x32xf32>
    %204 = vector.broadcast %203 : vector<1x32xf32> to vector<128x32xf32>
    %205 = arith.addf %201, %204 : vector<128x32xf32>
    %cst_108 = arith.constant 0.000000e+00 : f32
    %206 = vector.broadcast %cst_108 : f32 to vector<128x32xf32>
    %207 = arith.maximumf %205, %206 : vector<128x32xf32>
    %c224_109 = arith.constant 224 : index
    %c64_110 = arith.constant 64 : index
    %208 = vector.load %arg4[%c224_109, %c64_110] : memref<384x128xbf16, #tpu.memory_space<vmem>>, vector<32x5xbf16>
    %209 = arith.truncf %207 : vector<128x32xf32> to vector<128x32xbf16>
    %cst_111 = arith.constant dense<0.000000e+00> : vector<128x5xf32>
    %210 = tpu.matmul %209, %208, %cst_111 {dimension_numbers = #tpu.dot_dimension_numbers<[1], [0], [0], [1], [0, 0, 1, 1], [], []>} : vector<128x32xbf16>, vector<32x5xbf16>, vector<128x5xf32> -> vector<128x5xf32>
    %c224_112 = arith.constant 224 : index
    %c96_113 = arith.constant 96 : index
    %211 = vector.load %arg4[%c224_112, %c96_113] : memref<384x128xbf16, #tpu.memory_space<vmem>>, vector<1x5xbf16>
    %212 = arith.extf %211 : vector<1x5xbf16> to vector<1x5xf32>
    %213 = vector.broadcast %212 : vector<1x5xf32> to vector<128x5xf32>
    %214 = arith.addf %210, %213 : vector<128x5xf32>
    %cst_114 = arith.constant 5.000000e-01 : f32
    %215 = vector.broadcast %cst_114 : f32 to vector<128x5xf32>
    %216 = arith.mulf %215, %151 : vector<128x5xf32>
    %cst_115 = arith.constant 0.000000e+00 : f32
    %217 = vector.broadcast %cst_115 : f32 to vector<128x5xf32>
    %218 = arith.maximumf %214, %217 : vector<128x5xf32>
    %cst_116 = arith.constant 5.000000e-01 : f32
    %219 = vector.broadcast %cst_116 : f32 to vector<128x5xf32>
    %220 = arith.mulf %219, %218 : vector<128x5xf32>
    %221 = arith.addf %216, %220 : vector<128x5xf32>
    %c48 = arith.constant 48 : index
    %c0_117 = arith.constant 0 : index
    %222 = vector.load %arg4[%c48, %c0_117] : memref<384x128xbf16, #tpu.memory_space<vmem>>, vector<5x96xbf16>
    %223 = arith.truncf %221 : vector<128x5xf32> to vector<128x5xbf16>
    %cst_118 = arith.constant dense<0.000000e+00> : vector<128x96xf32>
    %224 = tpu.matmul %223, %222, %cst_118 {dimension_numbers = #tpu.dot_dimension_numbers<[1], [0], [0], [1], [0, 0, 1, 1], [], []>} : vector<128x5xbf16>, vector<5x96xbf16>, vector<128x96xf32> -> vector<128x96xf32>
    %225 = arith.truncf %224 : vector<128x96xf32> to vector<128x96xbf16>
    %cst_119 = arith.constant dense<0.000000e+00> : vector<512x96xf32>
    %226 = tpu.matmul %11, %225, %cst_119 {dimension_numbers = #tpu.dot_dimension_numbers<[1], [0], [0], [1], [0, 0, 1, 1], [], []>} : vector<512x128xbf16>, vector<128x96xbf16>, vector<512x96xf32> -> vector<512x96xf32>
    %227 = vector.extract_strided_slice %226 {offsets = [0, 0], sizes = [256, 32], strides = [1, 1]} : vector<512x96xf32> to vector<256x32xf32>
    %228 = vector.extract_strided_slice %226 {offsets = [256, 32], sizes = [256, 32], strides = [1, 1]} : vector<512x96xf32> to vector<256x32xf32>
    %229 = arith.addf %227, %228 : vector<256x32xf32>
    %c240 = arith.constant 240 : index
    %c32_120 = arith.constant 32 : index
    %230 = vector.load %arg4[%c240, %c32_120] : memref<384x128xbf16, #tpu.memory_space<vmem>>, vector<4x32xbf16>
    %231 = arith.truncf %185 : vector<256x4xf32> to vector<256x4xbf16>
    %cst_121 = arith.constant dense<0.000000e+00> : vector<256x32xf32>
    %232 = tpu.matmul %231, %230, %cst_121 {dimension_numbers = #tpu.dot_dimension_numbers<[1], [0], [0], [1], [0, 0, 1, 1], [], []>} : vector<256x4xbf16>, vector<4x32xbf16>, vector<256x32xf32> -> vector<256x32xf32>
    %233 = arith.addf %229, %232 : vector<256x32xf32>
    %c240_122 = arith.constant 240 : index
    %c96_123 = arith.constant 96 : index
    %234 = vector.load %arg4[%c240_122, %c96_123] : memref<384x128xbf16, #tpu.memory_space<vmem>>, vector<1x32xbf16>
    %235 = arith.extf %234 : vector<1x32xbf16> to vector<1x32xf32>
    %236 = vector.broadcast %235 : vector<1x32xf32> to vector<256x32xf32>
    %237 = arith.addf %233, %236 : vector<256x32xf32>
    %cst_124 = arith.constant 0.000000e+00 : f32
    %238 = vector.broadcast %cst_124 : f32 to vector<256x32xf32>
    %239 = arith.maximumf %237, %238 : vector<256x32xf32>
    %c256 = arith.constant 256 : index
    %c0_125 = arith.constant 0 : index
    %240 = vector.load %arg4[%c256, %c0_125] : memref<384x128xbf16, #tpu.memory_space<vmem>>, vector<32x32xbf16>
    %241 = arith.truncf %239 : vector<256x32xf32> to vector<256x32xbf16>
    %cst_126 = arith.constant dense<0.000000e+00> : vector<256x32xf32>
    %242 = tpu.matmul %241, %240, %cst_126 {dimension_numbers = #tpu.dot_dimension_numbers<[1], [0], [0], [1], [0, 0, 1, 1], [], []>} : vector<256x32xbf16>, vector<32x32xbf16>, vector<256x32xf32> -> vector<256x32xf32>
    %c256_127 = arith.constant 256 : index
    %c32_128 = arith.constant 32 : index
    %243 = vector.load %arg4[%c256_127, %c32_128] : memref<384x128xbf16, #tpu.memory_space<vmem>>, vector<1x32xbf16>
    %244 = arith.extf %243 : vector<1x32xbf16> to vector<1x32xf32>
    %245 = vector.broadcast %244 : vector<1x32xf32> to vector<256x32xf32>
    %246 = arith.addf %242, %245 : vector<256x32xf32>
    %cst_129 = arith.constant 0.000000e+00 : f32
    %247 = vector.broadcast %cst_129 : f32 to vector<256x32xf32>
    %248 = arith.maximumf %246, %247 : vector<256x32xf32>
    %c256_130 = arith.constant 256 : index
    %c64_131 = arith.constant 64 : index
    %249 = vector.load %arg4[%c256_130, %c64_131] : memref<384x128xbf16, #tpu.memory_space<vmem>>, vector<32x4xbf16>
    %250 = arith.truncf %248 : vector<256x32xf32> to vector<256x32xbf16>
    %cst_132 = arith.constant dense<0.000000e+00> : vector<256x4xf32>
    %251 = tpu.matmul %250, %249, %cst_132 {dimension_numbers = #tpu.dot_dimension_numbers<[1], [0], [0], [1], [0, 0, 1, 1], [], []>} : vector<256x32xbf16>, vector<32x4xbf16>, vector<256x4xf32> -> vector<256x4xf32>
    %c256_133 = arith.constant 256 : index
    %c96_134 = arith.constant 96 : index
    %252 = vector.load %arg4[%c256_133, %c96_134] : memref<384x128xbf16, #tpu.memory_space<vmem>>, vector<1x4xbf16>
    %253 = arith.extf %252 : vector<1x4xbf16> to vector<1x4xf32>
    %254 = vector.broadcast %253 : vector<1x4xf32> to vector<256x4xf32>
    %255 = arith.addf %251, %254 : vector<256x4xf32>
    %256 = arith.truncf %255 : vector<256x4xf32> to vector<256x4xbf16>
    %cst_135 = arith.constant dense<0.000000e+00> : vector<128x4xf32>
    %257 = tpu.matmul %61, %256, %cst_135 {dimension_numbers = #tpu.dot_dimension_numbers<[1], [0], [0], [1], [0, 0, 1, 1], [], []>} : vector<128x256xbf16>, vector<256x4xbf16>, vector<128x4xf32> -> vector<128x4xf32>
    %258 = vector.extract_strided_slice %224 {offsets = [0, 64], sizes = [128, 32], strides = [1, 1]} : vector<128x96xf32> to vector<128x32xf32>
    %c272 = arith.constant 272 : index
    %c32_136 = arith.constant 32 : index
    %259 = vector.load %arg4[%c272, %c32_136] : memref<384x128xbf16, #tpu.memory_space<vmem>>, vector<4x32xbf16>
    %260 = arith.truncf %257 : vector<128x4xf32> to vector<128x4xbf16>
    %cst_137 = arith.constant dense<0.000000e+00> : vector<128x32xf32>
    %261 = tpu.matmul %260, %259, %cst_137 {dimension_numbers = #tpu.dot_dimension_numbers<[1], [0], [0], [1], [0, 0, 1, 1], [], []>} : vector<128x4xbf16>, vector<4x32xbf16>, vector<128x32xf32> -> vector<128x32xf32>
    %262 = arith.addf %258, %261 : vector<128x32xf32>
    %c272_138 = arith.constant 272 : index
    %c96_139 = arith.constant 96 : index
    %263 = vector.load %arg4[%c272_138, %c96_139] : memref<384x128xbf16, #tpu.memory_space<vmem>>, vector<1x32xbf16>
    %264 = arith.extf %263 : vector<1x32xbf16> to vector<1x32xf32>
    %265 = vector.broadcast %264 : vector<1x32xf32> to vector<128x32xf32>
    %266 = arith.addf %262, %265 : vector<128x32xf32>
    %cst_140 = arith.constant 0.000000e+00 : f32
    %267 = vector.broadcast %cst_140 : f32 to vector<128x32xf32>
    %268 = arith.maximumf %266, %267 : vector<128x32xf32>
    %c288 = arith.constant 288 : index
    %c0_141 = arith.constant 0 : index
    %269 = vector.load %arg4[%c288, %c0_141] : memref<384x128xbf16, #tpu.memory_space<vmem>>, vector<32x32xbf16>
    %270 = arith.truncf %268 : vector<128x32xf32> to vector<128x32xbf16>
    %cst_142 = arith.constant dense<0.000000e+00> : vector<128x32xf32>
    %271 = tpu.matmul %270, %269, %cst_142 {dimension_numbers = #tpu.dot_dimension_numbers<[1], [0], [0], [1], [0, 0, 1, 1], [], []>} : vector<128x32xbf16>, vector<32x32xbf16>, vector<128x32xf32> -> vector<128x32xf32>
    %c288_143 = arith.constant 288 : index
    %c32_144 = arith.constant 32 : index
    %272 = vector.load %arg4[%c288_143, %c32_144] : memref<384x128xbf16, #tpu.memory_space<vmem>>, vector<1x32xbf16>
    %273 = arith.extf %272 : vector<1x32xbf16> to vector<1x32xf32>
    %274 = vector.broadcast %273 : vector<1x32xf32> to vector<128x32xf32>
    %275 = arith.addf %271, %274 : vector<128x32xf32>
    %cst_145 = arith.constant 0.000000e+00 : f32
    %276 = vector.broadcast %cst_145 : f32 to vector<128x32xf32>
    %277 = arith.maximumf %275, %276 : vector<128x32xf32>
    %c288_146 = arith.constant 288 : index
    %c64_147 = arith.constant 64 : index
    %278 = vector.load %arg4[%c288_146, %c64_147] : memref<384x128xbf16, #tpu.memory_space<vmem>>, vector<32x5xbf16>
    %279 = arith.truncf %277 : vector<128x32xf32> to vector<128x32xbf16>
    %cst_148 = arith.constant dense<0.000000e+00> : vector<128x5xf32>
    %280 = tpu.matmul %279, %278, %cst_148 {dimension_numbers = #tpu.dot_dimension_numbers<[1], [0], [0], [1], [0, 0, 1, 1], [], []>} : vector<128x32xbf16>, vector<32x5xbf16>, vector<128x5xf32> -> vector<128x5xf32>
    %c288_149 = arith.constant 288 : index
    %c96_150 = arith.constant 96 : index
    %281 = vector.load %arg4[%c288_149, %c96_150] : memref<384x128xbf16, #tpu.memory_space<vmem>>, vector<1x5xbf16>
    %282 = arith.extf %281 : vector<1x5xbf16> to vector<1x5xf32>
    %283 = vector.broadcast %282 : vector<1x5xf32> to vector<128x5xf32>
    %284 = arith.addf %280, %283 : vector<128x5xf32>
    %cst_151 = arith.constant 5.000000e-01 : f32
    %285 = vector.broadcast %cst_151 : f32 to vector<128x5xf32>
    %286 = arith.mulf %285, %221 : vector<128x5xf32>
    %cst_152 = arith.constant 0.000000e+00 : f32
    %287 = vector.broadcast %cst_152 : f32 to vector<128x5xf32>
    %288 = arith.maximumf %284, %287 : vector<128x5xf32>
    %cst_153 = arith.constant 5.000000e-01 : f32
    %289 = vector.broadcast %cst_153 : f32 to vector<128x5xf32>
    %290 = arith.mulf %289, %288 : vector<128x5xf32>
    %291 = arith.addf %286, %290 : vector<128x5xf32>
    %c304 = arith.constant 304 : index
    %c32_154 = arith.constant 32 : index
    %292 = vector.load %arg4[%c304, %c32_154] : memref<384x128xbf16, #tpu.memory_space<vmem>>, vector<5x32xbf16>
    %293 = arith.truncf %291 : vector<128x5xf32> to vector<128x5xbf16>
    %cst_155 = arith.constant dense<0.000000e+00> : vector<128x32xf32>
    %294 = tpu.matmul %293, %292, %cst_155 {dimension_numbers = #tpu.dot_dimension_numbers<[1], [0], [0], [1], [0, 0, 1, 1], [], []>} : vector<128x5xbf16>, vector<5x32xbf16>, vector<128x32xf32> -> vector<128x32xf32>
    %c304_156 = arith.constant 304 : index
    %c96_157 = arith.constant 96 : index
    %295 = vector.load %arg4[%c304_156, %c96_157] : memref<384x128xbf16, #tpu.memory_space<vmem>>, vector<1x32xbf16>
    %296 = arith.extf %295 : vector<1x32xbf16> to vector<1x32xf32>
    %297 = vector.broadcast %296 : vector<1x32xf32> to vector<128x32xf32>
    %298 = arith.addf %294, %297 : vector<128x32xf32>
    %cst_158 = arith.constant 0.000000e+00 : f32
    %299 = vector.broadcast %cst_158 : f32 to vector<128x32xf32>
    %300 = arith.maximumf %298, %299 : vector<128x32xf32>
    %c320 = arith.constant 320 : index
    %c0_159 = arith.constant 0 : index
    %301 = vector.load %arg4[%c320, %c0_159] : memref<384x128xbf16, #tpu.memory_space<vmem>>, vector<32x32xbf16>
    %302 = arith.truncf %300 : vector<128x32xf32> to vector<128x32xbf16>
    %cst_160 = arith.constant dense<0.000000e+00> : vector<128x32xf32>
    %303 = tpu.matmul %302, %301, %cst_160 {dimension_numbers = #tpu.dot_dimension_numbers<[1], [0], [0], [1], [0, 0, 1, 1], [], []>} : vector<128x32xbf16>, vector<32x32xbf16>, vector<128x32xf32> -> vector<128x32xf32>
    %c320_161 = arith.constant 320 : index
    %c32_162 = arith.constant 32 : index
    %304 = vector.load %arg4[%c320_161, %c32_162] : memref<384x128xbf16, #tpu.memory_space<vmem>>, vector<1x32xbf16>
    %305 = arith.extf %304 : vector<1x32xbf16> to vector<1x32xf32>
    %306 = vector.broadcast %305 : vector<1x32xf32> to vector<128x32xf32>
    %307 = arith.addf %303, %306 : vector<128x32xf32>
    %cst_163 = arith.constant 0.000000e+00 : f32
    %308 = vector.broadcast %cst_163 : f32 to vector<128x32xf32>
    %309 = arith.maximumf %307, %308 : vector<128x32xf32>
    %c320_164 = arith.constant 320 : index
    %c64_165 = arith.constant 64 : index
    %310 = vector.load %arg4[%c320_164, %c64_165] : memref<384x128xbf16, #tpu.memory_space<vmem>>, vector<32x1xbf16>
    %311 = arith.truncf %309 : vector<128x32xf32> to vector<128x32xbf16>
    %cst_166 = arith.constant dense<0.000000e+00> : vector<128x1xf32>
    %312 = tpu.matmul %311, %310, %cst_166 {dimension_numbers = #tpu.dot_dimension_numbers<[1], [0], [0], [1], [0, 0, 1, 1], [], []>} : vector<128x32xbf16>, vector<32x1xbf16>, vector<128x1xf32> -> vector<128x1xf32>
    %c320_167 = arith.constant 320 : index
    %c96_168 = arith.constant 96 : index
    %313 = vector.load %arg4[%c320_167, %c96_168] : memref<384x128xbf16, #tpu.memory_space<vmem>>, vector<1x1xbf16>
    %314 = arith.extf %313 : vector<1x1xbf16> to vector<1x1xf32>
    %315 = vector.broadcast %314 : vector<1x1xf32> to vector<128x1xf32>
    %316 = arith.addf %312, %315 : vector<128x1xf32>
    %317 = arith.negf %316 : vector<128x1xf32>
    %318 = math.exp %317 : vector<128x1xf32>
    %cst_169 = arith.constant 1.000000e+00 : f32
    %319 = vector.broadcast %cst_169 : f32 to vector<128x1xf32>
    %320 = arith.addf %319, %318 : vector<128x1xf32>
    %321 = arith.divf %319, %320 : vector<128x1xf32>
    %cst_170 = arith.constant 0.999997973 : f32
    %322 = vector.broadcast %cst_170 : f32 to vector<128x1xf32>
    %323 = arith.mulf %322, %321 : vector<128x1xf32>
    %cst_171 = arith.constant 9.99999997E-7 : f32
    %324 = vector.broadcast %cst_171 : f32 to vector<128x1xf32>
    %325 = arith.addf %324, %323 : vector<128x1xf32>
    %c336 = arith.constant 336 : index
    %c32_172 = arith.constant 32 : index
    %326 = vector.load %arg4[%c336, %c32_172] : memref<384x128xbf16, #tpu.memory_space<vmem>>, vector<5x32xbf16>
    %327 = arith.truncf %291 : vector<128x5xf32> to vector<128x5xbf16>
    %cst_173 = arith.constant dense<0.000000e+00> : vector<128x32xf32>
    %328 = tpu.matmul %327, %326, %cst_173 {dimension_numbers = #tpu.dot_dimension_numbers<[1], [0], [0], [1], [0, 0, 1, 1], [], []>} : vector<128x5xbf16>, vector<5x32xbf16>, vector<128x32xf32> -> vector<128x32xf32>
    %c336_174 = arith.constant 336 : index
    %c96_175 = arith.constant 96 : index
    %329 = vector.load %arg4[%c336_174, %c96_175] : memref<384x128xbf16, #tpu.memory_space<vmem>>, vector<1x32xbf16>
    %330 = arith.extf %329 : vector<1x32xbf16> to vector<1x32xf32>
    %331 = vector.broadcast %330 : vector<1x32xf32> to vector<128x32xf32>
    %332 = arith.addf %328, %331 : vector<128x32xf32>
    %cst_176 = arith.constant 0.000000e+00 : f32
    %333 = vector.broadcast %cst_176 : f32 to vector<128x32xf32>
    %334 = arith.maximumf %332, %333 : vector<128x32xf32>
    %c352 = arith.constant 352 : index
    %c0_177 = arith.constant 0 : index
    %335 = vector.load %arg4[%c352, %c0_177] : memref<384x128xbf16, #tpu.memory_space<vmem>>, vector<32x32xbf16>
    %336 = arith.truncf %334 : vector<128x32xf32> to vector<128x32xbf16>
    %cst_178 = arith.constant dense<0.000000e+00> : vector<128x32xf32>
    %337 = tpu.matmul %336, %335, %cst_178 {dimension_numbers = #tpu.dot_dimension_numbers<[1], [0], [0], [1], [0, 0, 1, 1], [], []>} : vector<128x32xbf16>, vector<32x32xbf16>, vector<128x32xf32> -> vector<128x32xf32>
    %c352_179 = arith.constant 352 : index
    %c32_180 = arith.constant 32 : index
    %338 = vector.load %arg4[%c352_179, %c32_180] : memref<384x128xbf16, #tpu.memory_space<vmem>>, vector<1x32xbf16>
    %339 = arith.extf %338 : vector<1x32xbf16> to vector<1x32xf32>
    %340 = vector.broadcast %339 : vector<1x32xf32> to vector<128x32xf32>
    %341 = arith.addf %337, %340 : vector<128x32xf32>
    %cst_181 = arith.constant 0.000000e+00 : f32
    %342 = vector.broadcast %cst_181 : f32 to vector<128x32xf32>
    %343 = arith.maximumf %341, %342 : vector<128x32xf32>
    %c352_182 = arith.constant 352 : index
    %c64_183 = arith.constant 64 : index
    %344 = vector.load %arg4[%c352_182, %c64_183] : memref<384x128xbf16, #tpu.memory_space<vmem>>, vector<32x2xbf16>
    %345 = arith.truncf %343 : vector<128x32xf32> to vector<128x32xbf16>
    %cst_184 = arith.constant dense<0.000000e+00> : vector<128x2xf32>
    %346 = tpu.matmul %345, %344, %cst_184 {dimension_numbers = #tpu.dot_dimension_numbers<[1], [0], [0], [1], [0, 0, 1, 1], [], []>} : vector<128x32xbf16>, vector<32x2xbf16>, vector<128x2xf32> -> vector<128x2xf32>
    %c352_185 = arith.constant 352 : index
    %c96_186 = arith.constant 96 : index
    %347 = vector.load %arg4[%c352_185, %c96_186] : memref<384x128xbf16, #tpu.memory_space<vmem>>, vector<1x2xbf16>
    %348 = arith.extf %347 : vector<1x2xbf16> to vector<1x2xf32>
    %349 = vector.broadcast %348 : vector<1x2xf32> to vector<128x2xf32>
    %350 = arith.addf %346, %349 : vector<128x2xf32>
    %351 = tpu.concatenate %325, %350 in 1 : vector<128x1xf32>, vector<128x2xf32> -> vector<128x3xf32>
    %cst_187 = arith.constant 0.000000e+00 : f32
    %352 = vector.broadcast %cst_187 : f32 to vector<128x3xf32>
    %353 = tpu.concatenate %351, %352 in 0 : vector<128x3xf32>, vector<128x3xf32> -> vector<256x3xf32>
    %cst_188 = arith.constant 0.000000e+00 : f32
    %354 = vector.broadcast %cst_188 : f32 to vector<256x4xf32>
    %355 = tpu.concatenate %50, %353, %354 in 1 : vector<256x1xf32>, vector<256x3xf32>, vector<256x4xf32> -> vector<256x8xf32>
    %c0_189 = arith.constant 0 : index
    %c0_190 = arith.constant 0 : index
    %c0_191 = arith.constant 0 : index
    %356 = vector.load %arg5[%c0_189, %c0_190, %c0_191] : memref<1x256x8xf32, #tpu.memory_space<vmem>>, vector<1x256x8xf32>
    %357 = vector.shape_cast %356 : vector<1x256x8xf32> to vector<256x8xf32>
    %358 = vector.shape_cast %355 : vector<256x8xf32> to vector<1x256x8xf32>
    tpu.vector_store %arg5[%c0_189, %c0_190, %c0_191], %358 {strides = array<i32>} : memref<1x256x8xf32, #tpu.memory_space<vmem>>, vector<1x256x8xf32>,
    return
  }
  func.func @transform_0(%arg0: i32) -> (i32, i32, i32) {
    %c0_i32 = arith.constant 0 : i32
    %c0_i32_0 = arith.constant 0 : i32
    %c0_i32_1 = arith.constant 0 : i32
    return %arg0, %c0_i32, %c0_i32_0 : i32, i32, i32
  }
  func.func @transform_1(%arg0: i32) -> (i32, i32, i32) {
    %c0_i32 = arith.constant 0 : i32
    %c0_i32_0 = arith.constant 0 : i32
    %c0_i32_1 = arith.constant 0 : i32
    return %arg0, %c0_i32, %c0_i32_0 : i32, i32, i32
  }
  func.func @transform_2(%arg0: i32) -> (i32, i32, i32) {
    %c0_i32 = arith.constant 0 : i32
    %c0_i32_0 = arith.constant 0 : i32
    %c0_i32_1 = arith.constant 0 : i32
    return %arg0, %c0_i32, %c0_i32_0 : i32, i32, i32
  }
  func.func @transform_3(%arg0: i32) -> (i32, i32) {
    %c0_i32 = arith.constant 0 : i32
    %c0_i32_0 = arith.constant 0 : i32
    %c0_i32_1 = arith.constant 0 : i32
    return %c0_i32, %c0_i32_0 : i32, i32
  }
  func.func @transform_4(%arg0: i32) -> (i32, i32, i32) {
    %c0_i32 = arith.constant 0 : i32
    %c0_i32_0 = arith.constant 0 : i32
    %c0_i32_1 = arith.constant 0 : i32
    return %arg0, %c0_i32, %c0_i32_0 : i32, i32, i32
  }
}

</mosaic_0001>

<bundles_post_ra>
// kernel: squeeze.6
= control target key start
LH: loop header
LB: loop body
LE: loop exit
PB: predicated region body
PF: predicated region fallthrough
CT: control target
= control target key end

     0   :  { %vm11_vm0 = vcmask 523264   ;;  %s54_s0 = inlined_call_operand.vmem [shape: f32[2,256], index: 0, kind: input, shape index: {}]   ;;  %s55_s1 = inlined_call_operand.vmem [shape: f32[8,64], index: 1, kind: output, shape index: {}]  }
   0x1   :  { %v24_v0 = vld [vmem:[%s54_s0 + $0x2] sm:$0x3]  ;;  %v8_v1 = vld [vmem:[%s54_s0] sm:$0x3]  ;;  %s28_s0 = smov 64  }
   0x2   :  { %7 = vst [vmem:[#allocation0 + $0x8] sm:$0x3] %v24_v0  ;;  %9 = vst [vmem:[#allocation0] sm:$0x3] %v8_v1 }
   0x9   :  { %v18_v2 = vld.sshfl [vmem:[#allocation0] sm:$0xff pattern:$0x99999180]  }
   0xa   :  { %v10_v3 = vld [vmem:[#allocation0] sm:$0x3]   ;;  %19 = vrot.lane.b32.xlu0 %v18_v2, %s28_s0  ;;  %v14_v4 = vld [vmem:[#allocation0 + $0x8] sm:$0x3]  }
   0xb   :  { %12 = vst.msk [vmem:[%s55_s1] ss:$4 sm:$0x3] %vm11_vm0, %v10_v3   ;;  %25 = vst.msk [vmem:[%s55_s1 + $0x2] ss:$4 sm:$0x3] %vm11_vm0, %v14_v4  }
  0x7c   :  { %v20_v5 = vpop.permute.xlu0 %19  }
  0x7d   :  { %26 = vst.msk [vmem:[%s55_s1 + $0x1] ss:$2 sm:$0xf] %vm11_vm0, %v20_v5  }

// kernel: squeeze.7
= control target key start
LH: loop header
LB: loop body
LE: loop exit
PB: predicated region body
PF: predicated region fallthrough
CT: control target
= control target key end

     0   :  { %s95_s0 = inlined_call_operand.vmem [shape: f32[2,128], index: 0, kind: input, shape index: {}]   ;;  %s96_s1 = inlined_call_operand.hbm [shape: f32[8,32], index: 1, kind: output, shape index: {}]  }
   0x1   :  { %v5_v0 = vld [vmem:[%s95_s0] sm:$0x3] }
   0x2   :  { %6 = vst [vmem:[#allocation2] sm:$0x3] %v5_v0 }
   0x3   :  { %2 = vsyncpa [#allocation1], 0  ;;  %s66_s0 = smov 96   ;;  %s67_s8 = smov 32   ;;  %vm8_vm0 = vcmask 261120  }
   0x4   :  { %s68_s9 = smov 64   ;;  %s69_s10 = smov [#allocation0]  }
   0x5   :  { %s32_s11 = sshll.u32 %s69_s10, 4  ;;  %s33_s11 = int_to_ptr.vmem [resolvable:$true] %s32_s11 }
   0x6   :  { %s42_s12 = scalar_lea.vmem %s33_s11, 128  ;;  %p47_p1 = scmp.lt.s32.totalorder %s33_s11, %s33_s11 }
   0x7   :  { %p43_p0 = scmp.ne.s32.totalorder %s33_s11, %s42_s12  ;;  %p48_p2 = scmp.lt.s32.totalorder %s42_s12, %s42_s12 }
   0x9   :  { %v10_v1 = vld [vmem:[#allocation2] sm:$0x3]   ;;  %p49_p3 = por %p48_p2, %p47_p1 }
   0xa   :  { %v22_v2 = vld [vmem:[#allocation2] sm:$0x3]   ;;  %11 = vrot.lane.b32.xlu0 %v10_v1, %s66_s0 }
   0xb   :  { %23 = vrot.lane.b32.xlu1 %v22_v2, %s67_s8  ;;  %v7_v3 = vld [vmem:[#allocation2] sm:$0x3]   ;;  %p50_p4 = pnand %p49_p3, %p43_p0 }
   0xc   :  { %v16_v4 = vld [vmem:[#allocation2] sm:$0x3]   ;;  %9 = vst.msk [vmem:[#allocation0] ss:$4 sm:$0x3] %vm8_vm0, %v7_v3  }
   0xe   :  { %17 = vrot.lane.b32.xlu0 %v16_v4, %s68_s9 }
  0x7c   :  { %v12_v5 = vpop.permute.xlu0 %11  }
  0x7d   :  { %v24_v6 = vpop.permute.xlu1 %23   ;;  %15 = vst.msk [vmem:[#allocation0 + $0x1] ss:$4 sm:$0x3] %vm8_vm0, %v12_v5  }
  0x7e   :  { %27 = vst.msk [vmem:[#allocation0 + $0x3] ss:$4 sm:$0x3] %vm8_vm0, %v24_v6  }
  0x80   :  { %v18_v7 = vpop.permute.xlu0 %17  }
  0x81   :  { %21 = vst.msk [vmem:[#allocation0 + $0x2] ss:$4 sm:$0x3] %vm8_vm0, %v18_v7  }
  0x82   :  { %53 = shalt.err (!%p50_p4)
}
  0x83   :  { %s54_s15 = scalar_lea.hbm %s96_s1, 128 }
  0x84   :  { %p55_p5 = scmp.ne.s32.totalorder %s96_s1, %s54_s15  ;;  %p58_p6 = scmp.lt.u32.totalorder %s54_s15, %s96_s1 }
  0x86   :  { %p60_p7 = pnand %p58_p6, %p55_p5 }
  0x88   :  { %63 = shalt.err (!%p60_p7)
}
  0x89   :  { %35 = dma.vmem_to_hbm [thread:$0]  %s33_s11, 128, %s96_s1, [#allocation1]  }
  0x8a   :  { %64 = dma.done.wait [#allocation1], 128  }
  0x8b   :  { %65 = vsyncadd [#allocation1], 4294967168 }
  0x8c   :  { %37 = vsyncpa [#allocation1], 1 }

// kernel: pretrained_ec_graph_tcn_forward.1
= control target key start
LH: loop header
LB: loop body
LE: loop exit
PB: predicated region body
PF: predicated region fallthrough
CT: control target
= control target key end

     0   :  { %s15122_s15 = smov 0   ;;  %s19377_s0 = inlined_call_operand.vmem [shape: f32[2,128,7], index: 0, kind: input, shape index: {}]   ;;  %s19378_s1 = inlined_call_operand.vmem [shape: f32[2,256,4], index: 1, kind: input, shape index: {}]   ;;  %s19379_s2 = inlined_call_operand.vmem [shape: s32[2,512,1], index: 2, kind: input, shape index: {}]   ;;  %s19380_s3 = inlined_call_operand.vmem [shape: bf16[384,128], index: 3, kind: input, shape index: {}]   ;;  %s19381_s4 = inlined_call_operand.vmem [shape: f32[2,256,8], index: 4, kind: output, shape index: {}]  }
   0x1 LB: > { %s11529_s16 = sadd.s32 4294967295, %s15087_s15   ;;  %p11533_p0 = scmp.ge.s32.totalorder %s15087_s15, 1  ;;  %s15087_s15 = sphi %s15122_s15, %s14_s15  }
   0x2   : > { %p182_p1 = scmp.lt.s32.totalorder %s15087_s15, 3 }
   0x4   : > { %p183_p2 = pnand %p11533_p0, %p182_p1 }
   0x6   : > { %186 = sbr.rel (%p183_p2) target bundleno = 9563 (0x255b), region = 36 }
   0xd   : > { %v769_v0 = vld [vmem:[%s19380_s3] sm:$0xf]  ;;  %vm803_vm0 = vcmask 1042432   ;;  %vm804_vm1 = vcmask 1043456   ;;  %vm19405_vm2 = vcmask 1041408   ;;  %v15089_v1 = vmov 65535  }
   0xe   : > { %v805_v2 = vsel %vm803_vm0, 4294967295, %v15089_v1  ;;  %v3579_v3 = vsel %vm19405_vm2, 4294967295, %v15089_v1  ;;  %p218_p3 = scmp.lt.s32.totalorder %s11529_s16, 1  ;;  %v15090_v6 = vmov 0   ;;  %vm19400_vm3 = vcmask 56320   ;;  %s15092_s5 = smov 64  }
   0xf   : > { %v15134_v4 = vsel %vm804_vm1, %v805_v2, 0  ;;  %v15136_v5 = vsel %vm803_vm0, %v3579_v3, 0  ;;  %14665 = vset.pattern.permute.xlu1 %v15090_v6  ;;  %14664 = vset.pattern.permute.xlu0 %v15090_v6  ;;  %s15093_s12 = smov 96  }
  0x10   : > { %19748 = vst [vmem:[#allocation2_spill] sm:$0xff] %v15136_v5  ;;  %v808_v7 = vand.u32 %v15134_v4, %v769_v0  ;;  %s20818_s16 = smov (!%p218_p3, %s11529_s16), 1 }
  0x11   : > { %s12369_s19 = sshll.u32 %s20818_s16, 9  ;;  %s12367_s20 = sshll.u32 %s20818_s16, 7 }
  0x12   : > { %13170 = vmatprep.subr.bf16.mxu0 %v808_v7  ;;  %s15146_s23 = scalar_lea.vmem %s19379_s2, %s12369_s19  ;;  %s15151_s26 = scalar_lea.vmem %s19377_s0, %s12367_s20 }
  0x13   : > { %13171 = vmatpush3.bf16.msra.mxu0 %v808_v7  ;;  %v289_v8 = vld [vmem:[%s15146_s23 + $0x10] sm:$0xff]  ;;  %v287_v9 = vld [vmem:[%s15146_s23] sm:$0xff]  ;;  %v240_v11 = vld [vmem:[%s15151_s26 + $0x8] sm:$0xff]  ;;  %s12368_s6 = sshll.u32 %s20818_s16, 8  ;;  %s15094_s19 = smov 32  }
  0x14   : > { %v239_v10 = vld [vmem:[%s15151_s26] sm:$0xff]  ;;  %360 = vperm.xlu1 %14665, %v289_v8   ;;  %354 = vperm.xlu0 %14664, %v287_v9   ;;  %v241_v12 = vld [vmem:[%s15151_s26 + $0x10] sm:$0xff]  ;;  %v242_v13 = vld [vmem:[%s15151_s26 + $0x18] sm:$0xff]  ;;  %s15744_s9 = scalar_lea.vmem %s19378_s1, %s12368_s6  ;;  %s19212_s17 = scalar_lea.vmem %s19381_s4, %s12368_s6 }
  0x15   : > { %v15159_v14 = vpack.c.bf16 %v240_v11, %v239_v10  ;;  %v15161_v15 = vpack.c.bf16 %v242_v13, %v241_v12  ;;  %v290_v16 = vld [vmem:[%s15146_s23 + $0x18] sm:$0xff]  ;;  %v288_v17 = vld [vmem:[%s15146_s23 + $0x8] sm:$0xff]  ;;  %v243_v18 = vld [vmem:[%s15151_s26 + $0x20] sm:$0xff] }
  0x16   : > { %v244_v19 = vld [vmem:[%s15151_s26 + $0x28] sm:$0xff]  ;;  %v245_v22 = vld [vmem:[%s15151_s26 + $0x30] sm:$0xff]  ;;  %v246_v23 = vld [vmem:[%s15151_s26 + $0x38] sm:$0xff] }
  0x17   : > { %19749 = vst [vmem:[#allocation3_spill] sm:$0xff] %v15159_v14  ;;  %19750 = vst [vmem:[#allocation4_spill] sm:$0xff] %v15161_v15  ;;  %13172 = vmatprep.mubr.msk.bf16.mxu0 %vm19400_vm3, %v15159_v14  ;;  %v15169_v20 = vpack.c.bf16 %v244_v19, %v243_v18  ;;  %v292_v21 = vld [vmem:[%s15146_s23 + $0x28] sm:$0xff]  ;;  %v291_v24 = vld [vmem:[%s15146_s23 + $0x20] sm:$0xff]  ;;  %v15181_v27 = vpack.c.bf16 %v246_v23, %v245_v22 }
  0x18   : > { %13173 = vmatmul.mubr.msk.bf16.vlgmr.msra.gmra.mrb[0].mxu0 %vm19400_vm3, %v15161_v15  ;;  %363 = vperm.xlu1 %14665, %v290_v16   ;;  %v247_v25 = vld [vmem:[%s15151_s26 + $0x40] sm:$0xff]  ;;  %v248_v26 = vld [vmem:[%s15151_s26 + $0x48] sm:$0xff]  ;;  %v294_v28 = vld [vmem:[%s15146_s23 + $0x38] sm:$0xff] }
  0x19   : > { %19751 = vst [vmem:[#allocation5_spill] sm:$0xff] %v15169_v20  ;;  %357 = vperm.xlu0 %14664, %v288_v17   ;;  %13176 = vmatprep.mubr.msk.bf16.mxu0 %vm19400_vm3, %v15169_v20  ;;  %19752 = vst [vmem:[#allocation6_spill] sm:$0xff] %v15181_v27  ;;  %v15184_v29 = vpack.c.bf16 %v248_v26, %v247_v25  ;;  %v293_v30 = vld [vmem:[%s15146_s23 + $0x30] sm:$0xff]  ;;  %v296_v31 = vld [vmem:[%s15146_s23 + $0x48] sm:$0xff] }
  0x1a   : > { %v249_v32 = vld [vmem:[%s15151_s26 + $0x50] sm:$0xff]  ;;  %v250_v33 = vld [vmem:[%s15151_s26 + $0x58] sm:$0xff]  ;;  %v295_v34 = vld [vmem:[%s15146_s23 + $0x40] sm:$0xff] }
  0x1b   : > { %19753 = vst [vmem:[#allocation7_spill] sm:$0xff] %v15184_v29  ;;  %v251_v35 = vld [vmem:[%s15151_s26 + $0x60] sm:$0xff]  ;;  %v252_v36 = vld [vmem:[%s15151_s26 + $0x68] sm:$0xff]  ;;  %v15197_v37 = vpack.c.bf16 %v250_v33, %v249_v32  ;;  %v298_v38 = vld [vmem:[%s15146_s23 + $0x58] sm:$0xff] }
  0x1c   : > { %369 = vperm.xlu1 %14665, %v292_v21   ;;  %v15200_v39 = vpack.c.bf16 %v252_v36, %v251_v35  ;;  %v297_v40 = vld [vmem:[%s15146_s23 + $0x50] sm:$0xff]  ;;  %v300_v41 = vld [vmem:[%s15146_s23 + $0x68] sm:$0xff]  ;;  %v254_v43 = vld [vmem:[%s15151_s26 + $0x78] sm:$0xff] }
  0x1d   : > { %366 = vperm.xlu0 %14664, %v291_v24   ;;  %19754 = vst [vmem:[#allocation8_spill] sm:$0xff] %v15197_v37  ;;  %v253_v42 = vld [vmem:[%s15151_s26 + $0x70] sm:$0xff]  ;;  %v299_v44 = vld [vmem:[%s15146_s23 + $0x60] sm:$0xff]  ;;  %v302_v46 = vld [vmem:[%s15146_s23 + $0x78] sm:$0xff] }
  0x1e   : > { %19755 = vst [vmem:[#allocation9_spill] sm:$0xff] %v15200_v39  ;;  %v15211_v45 = vpack.c.bf16 %v254_v43, %v253_v42  ;;  %v301_v47 = vld [vmem:[%s15146_s23 + $0x70] sm:$0xff]  ;;  %v304_v48 = vld [vmem:[%s15146_s23 + $0x88] sm:$0xff]  ;;  %v303_v49 = vld [vmem:[%s15146_s23 + $0x80] sm:$0xff] }
  0x1f   : > { %v306_v50 = vld [vmem:[%s15146_s23 + $0x98] sm:$0xff]  ;;  %v305_v51 = vld [vmem:[%s15146_s23 + $0x90] sm:$0xff]  ;;  %v308_v52 = vld [vmem:[%s15146_s23 + $0xa8] sm:$0xff] }
  0x20   : > { %13177 = vmatmul.mubr.msk.bf16.gmra.mrb[4].mxu0 %vm19400_vm3, %v15181_v27  ;;  %375 = vperm.xlu1 %14665, %v294_v28   ;;  %19756 = vst [vmem:[#allocation10_spill] sm:$0xff] %v15211_v45  ;;  %v307_v53 = vld [vmem:[%s15146_s23 + $0xa0] sm:$0xff]  ;;  %v310_v54 = vld [vmem:[%s15146_s23 + $0xb8] sm:$0xff]  ;;  %v309_v55 = vld [vmem:[%s15146_s23 + $0xb0] sm:$0xff] }
  0x21   : > { %372 = vperm.xlu0 %14664, %v293_v30   ;;  %13180 = vmatprep.mubr.msk.bf16.mxu0 %vm19400_vm3, %v15184_v29  ;;  %v312_v56 = vld [vmem:[%s15146_s23 + $0xc8] sm:$0xff]  ;;  %v311_v57 = vld [vmem:[%s15146_s23 + $0xc0] sm:$0xff]  ;;  %v314_v58 = vld [vmem:[%s15146_s23 + $0xd8] sm:$0xff] }
  0x22   : > { %v313_v59 = vld [vmem:[%s15146_s23 + $0xd0] sm:$0xff]  ;;  %v316_v60 = vld [vmem:[%s15146_s23 + $0xe8] sm:$0xff]  ;;  %v315_v61 = vld [vmem:[%s15146_s23 + $0xe0] sm:$0xff] }
  0x23   : > { %v318_v62 = vld [vmem:[%s15146_s23 + $0xf8] sm:$0xff]  ;;  %v317_v63 = vld [vmem:[%s15146_s23 + $0xf0] sm:$0xff]  ;;  %v320_v0 = vld [vmem:[%s15146_s23 + $0x108] sm:$0xff] }
  0x24   : > { %381 = vperm.xlu1 %14665, %v296_v31   ;;  %v319_v1 = vld [vmem:[%s15146_s23 + $0x100] sm:$0xff]  ;;  %v322_v2 = vld [vmem:[%s15146_s23 + $0x118] sm:$0xff]  ;;  %v321_v3 = vld [vmem:[%s15146_s23 + $0x110] sm:$0xff] }
  0x25   : > { %378 = vperm.xlu0 %14664, %v295_v34   ;;  %v324_v6 = vld [vmem:[%s15146_s23 + $0x128] sm:$0xff]  ;;  %v323_v7 = vld [vmem:[%s15146_s23 + $0x120] sm:$0xff]  ;;  %v326_v8 = vld [vmem:[%s15146_s23 + $0x138] sm:$0xff] }
  0x26   : > { %v325_v9 = vld [vmem:[%s15146_s23 + $0x130] sm:$0xff]  ;;  %v328_v10 = vld [vmem:[%s15146_s23 + $0x148] sm:$0xff]  ;;  %v327_v11 = vld [vmem:[%s15146_s23 + $0x140] sm:$0xff] }
  0x27   : > { %v330_v12 = vld [vmem:[%s15146_s23 + $0x158] sm:$0xff]  ;;  %v329_v13 = vld [vmem:[%s15146_s23 + $0x150] sm:$0xff]  ;;  %v332_v16 = vld [vmem:[%s15146_s23 + $0x168] sm:$0xff] }
  0x28   : > { %13181 = vmatmul.mubr.msk.bf16.gmra.mrb[8].mxu0 %vm19400_vm3, %v15197_v37  ;;  %387 = vperm.xlu1 %14665, %v298_v38   ;;  %v331_v17 = vld [vmem:[%s15146_s23 + $0x160] sm:$0xff]  ;;  %v334_v18 = vld [vmem:[%s15146_s23 + $0x178] sm:$0xff]  ;;  %v333_v19 = vld [vmem:[%s15146_s23 + $0x170] sm:$0xff] }
  0x29   : > { %384 = vperm.xlu0 %14664, %v297_v40   ;;  %13184 = vmatprep.mubr.msk.bf16.mxu0 %vm19400_vm3, %v15200_v39  ;;  %v336_v21 = vld [vmem:[%s15146_s23 + $0x188] sm:$0xff]  ;;  %v335_v22 = vld [vmem:[%s15146_s23 + $0x180] sm:$0xff]  ;;  %v338_v23 = vld [vmem:[%s15146_s23 + $0x198] sm:$0xff] }
  0x2a   : > { %v337_v24 = vld [vmem:[%s15146_s23 + $0x190] sm:$0xff]  ;;  %v340_v25 = vld [vmem:[%s15146_s23 + $0x1a8] sm:$0xff]  ;;  %v339_v26 = vld [vmem:[%s15146_s23 + $0x1a0] sm:$0xff] }
  0x2b   : > { %v342_v28 = vld [vmem:[%s15146_s23 + $0x1b8] sm:$0xff]  ;;  %v341_v30 = vld [vmem:[%s15146_s23 + $0x1b0] sm:$0xff]  ;;  %v344_v31 = vld [vmem:[%s15146_s23 + $0x1c8] sm:$0xff] }
  0x2c   : > { %393 = vperm.xlu1 %14665, %v300_v41   ;;  %v343_v32 = vld [vmem:[%s15146_s23 + $0x1c0] sm:$0xff]  ;;  %v346_v33 = vld [vmem:[%s15146_s23 + $0x1d8] sm:$0xff]  ;;  %v345_v34 = vld [vmem:[%s15146_s23 + $0x1d0] sm:$0xff]  ;;  %v19408_v41 = vlaneseq }
  0x2d   : > { %390 = vperm.xlu0 %14664, %v299_v44   ;;  %v348_v35 = vld [vmem:[%s15146_s23 + $0x1e8] sm:$0xff]  ;;  %v347_v36 = vld [vmem:[%s15146_s23 + $0x1e0] sm:$0xff]  ;;  %v350_v38 = vld [vmem:[%s15146_s23 + $0x1f8] sm:$0xff] }
  0x2e   : > { %v349_v40 = vld [vmem:[%s15146_s23 + $0x1f0] sm:$0xff]  ;;  %v15266_v42 = vand.u32 127, %v19408_v41 }
  0x30   : > { %13185 = vmatmul.mubr.msk.bf16.gmra.mrb[12].mxu0 %vm19400_vm3, %v15211_v45  ;;  %399 = vperm.xlu1 %14665, %v302_v46   ;;  %19757 = vst [vmem:[#allocation11_spill] sm:$0xff] %v15266_v42  ;;  %v19760_v46 = vmov 0 }
  0x31   : > { %396 = vperm.xlu0 %14664, %v301_v47   ;;  %v19409_v47 = vmov 1.0|1.0  }
  0x34   : > { %405 = vperm.xlu1 %14665, %v304_v48  }
  0x35   : > { %402 = vperm.xlu0 %14664, %v303_v49  }
  0x38   : > { %411 = vperm.xlu1 %14665, %v306_v50  }
  0x39   : > { %408 = vperm.xlu0 %14664, %v305_v51  }
  0x3c   : > { %417 = vperm.xlu1 %14665, %v308_v52  }
  0x3d   : > { %414 = vperm.xlu0 %14664, %v307_v53  }
  0x40   : > { %423 = vperm.xlu1 %14665, %v310_v54  }
  0x41   : > { %420 = vperm.xlu0 %14664, %v309_v55  }
  0x44   : > { %429 = vperm.xlu1 %14665, %v312_v56  }
  0x45   : > { %426 = vperm.xlu0 %14664, %v311_v57  }
  0x48   : > { %435 = vperm.xlu1 %14665, %v314_v58  }
  0x49   : > { %432 = vperm.xlu0 %14664, %v313_v59  }
  0x4c   : > { %441 = vperm.xlu1 %14665, %v316_v60  }
  0x4d   : > { %438 = vperm.xlu0 %14664, %v315_v61  }
  0x50   : > { %447 = vperm.xlu1 %14665, %v318_v62  }
  0x51   : > { %444 = vperm.xlu0 %14664, %v317_v63  }
  0x54   : > { %453 = vperm.xlu1 %14665, %v320_v0  }
  0x55   : > { %450 = vperm.xlu0 %14664, %v319_v1  }
  0x58   : > { %459 = vperm.xlu1 %14665, %v322_v2  }
  0x59   : > { %456 = vperm.xlu0 %14664, %v321_v3  }
  0x5c   : > { %465 = vperm.xlu1 %14665, %v324_v6  }
  0x5d   : > { %462 = vperm.xlu0 %14664, %v323_v7  }
  0x60   : > { %471 = vperm.xlu1 %14665, %v326_v8  }
  0x61   : > { %468 = vperm.xlu0 %14664, %v325_v9  }
  0x64   : > { %477 = vperm.xlu1 %14665, %v328_v10  }
  0x65   : > { %474 = vperm.xlu0 %14664, %v327_v11  }
  0x68   : > { %483 = vperm.xlu1 %14665, %v330_v12  }
  0x69   : > { %480 = vperm.xlu0 %14664, %v329_v13  }
  0x6c   : > { %489 = vperm.xlu1 %14665, %v332_v16  }
  0x6d   : > { %486 = vperm.xlu0 %14664, %v331_v17  }
  0x70   : > { %495 = vperm.xlu1 %14665, %v334_v18  }
  0x71   : > { %492 = vperm.xlu0 %14664, %v333_v19  }
  0x74   : > { %501 = vperm.xlu1 %14665, %v336_v21  }
  0x75   : > { %498 = vperm.xlu0 %14664, %v335_v22  }
  0x78   : > { %507 = vperm.xlu1 %14665, %v338_v23  }
  0x79   : > { %504 = vperm.xlu0 %14664, %v337_v24  }
  0x7c   : > { %513 = vperm.xlu1 %14665, %v340_v25  }
  0x7d   : > { %510 = vperm.xlu0 %14664, %v339_v26  }
  0x80   : > { %519 = vperm.xlu1 %14665, %v342_v28  }
  0x81   : > { %516 = vperm.xlu0 %14664, %v341_v30  }
  0x84   : > { %525 = vperm.xlu1 %14665, %v344_v31  }
  0x85   : > { %522 = vperm.xlu0 %14664, %v343_v32  }
  0x88   : > { %531 = vperm.xlu1 %14665, %v346_v33  }
  0x89   : > { %528 = vperm.xlu0 %14664, %v345_v34  }
  0x8c   : > { %537 = vperm.xlu1 %14665, %v348_v35  }
  0x8d   : > { %534 = vperm.xlu0 %14664, %v347_v36  }
  0x90   : > { %543 = vperm.xlu1 %14665, %v350_v38   ;;  %v1364_v38 = vld [vmem:[%s19380_s3 + $0x20] sm:$0x3] }
  0x91   : > { %540 = vperm.xlu0 %14664, %v349_v40  }
  0x93   : > { %v15268_v43 = vpop.permute.xlu0 %354  ;;  %v15289_v48 = vpop.permute.xlu1 %360 }
  0x94   : > { %19758 = vst [vmem:[#allocation12_spill] sm:$0xff] %v15268_v43  ;;  %vm19394_vm4 = vcmp.eq.s32.totalorder %v15266_v42, %v15268_v43  ;;  %19763 = vst [vmem:[#allocation15_spill] sm:$0xff] %v15289_v48  ;;  %vm19399_vm7 = vcmp.eq.s32.totalorder %v15266_v42, %v15289_v48  ;;  %v280_v43 = vld [vmem:[%s15744_s9 + $0xc8] sm:$0xff] }
  0x97   : > { %v15291_v49 = vpop.permute.xlu1 %363 }
  0x98   : > { %v15272_v44 = vpop.permute.xlu0 %357  ;;  %19764 = vst [vmem:[#allocation16_spill] sm:$0xff] %v15291_v49  ;;  %vm19393_vm8 = vcmp.eq.s32.totalorder %v15266_v42, %v15291_v49 }
  0x99   : > { %19759 = vst [vmem:[#allocation13_spill] sm:$0xff] %v15272_v44  ;;  %vm19388_vm5 = vcmp.eq.s32.totalorder %v15266_v42, %v15272_v44  ;;  %vm15356_vm11 = vmpackc.low %vm19393_vm8, %vm19399_vm7  ;;  %v276_v44 = vld [vmem:[%s15744_s9 + $0xa8] sm:$0xff] }
  0x9a   : > { %vm15282_vm6 = vmpackc.low %vm19388_vm5, %vm19394_vm4 }
  0x9b   : > { %v19761_v46 = vsel %vm15282_vm6, 4294967295, %v19760_v46  ;;  %13204 = vmatprep.mubr.msk.bf16.mxu1 %vm15282_vm6, %v19409_v47  ;;  %v15293_v50 = vpop.permute.xlu1 %369 }
  0x9c   : > { %19762 = vst [vmem:[#allocation14_spill] sm:$0xff] %v19761_v46  ;;  %19765 = vst [vmem:[#allocation17_spill] sm:$0xff] %v15293_v50  ;;  %v15295_v51 = vpop.permute.xlu0 %366  ;;  %vm19387_vm9 = vcmp.eq.s32.totalorder %v15266_v42, %v15293_v50 }
  0x9d   : > { %19766 = vst [vmem:[#allocation18_spill] sm:$0xff] %v15295_v51  ;;  %vm19382_vm10 = vcmp.eq.s32.totalorder %v15266_v42, %v15295_v51  ;;  %v272_v51 = vld [vmem:[%s15744_s9 + $0x88] sm:$0xff] }
  0x9e   : > { %vm15366_vm12 = vmpackc.low %vm19387_vm9, %vm19382_vm10 }
  0x9f   : > { %v15297_v52 = vpop.permute.xlu1 %375 }
  0xa0   : > { %19767 = vst [vmem:[#allocation19_spill] sm:$0xff] %v15297_v52  ;;  %v15299_v53 = vpop.permute.xlu0 %372  ;;  %vm19386_vm13 = vcmp.eq.s32.totalorder %v15266_v42, %v15297_v52  ;;  %v261_v52 = vld [vmem:[%s15744_s9 + $0x30] sm:$0xff] }
  0xa1   : > { %19768 = vst [vmem:[#allocation20_spill] sm:$0xff] %v15299_v53  ;;  %vm19383_vm14 = vcmp.eq.s32.totalorder %v15266_v42, %v15299_v53 }
  0xa2   : > { %vm15394_vm1 = vmpackc.low %vm19386_vm13, %vm19383_vm14 }
  0xa3   : > { %v15301_v54 = vpop.permute.xlu1 %381 }
  0xa4   : > { %19769 = vst [vmem:[#allocation21_spill] sm:$0xff] %v15301_v54  ;;  %v15303_v55 = vpop.permute.xlu0 %378  ;;  %vm19385_vm15 = vcmp.eq.s32.totalorder %v15266_v42, %v15301_v54  ;;  %v258_v54 = vld [vmem:[%s15744_s9 + $0x18] sm:$0xff] }
  0xa5   : > { %19770 = vst [vmem:[#allocation22_spill] sm:$0xff] %v15303_v55  ;;  %vm19384_vm0 = vcmp.eq.s32.totalorder %v15266_v42, %v15303_v55  ;;  %v19884_v55 = vmov 0 }
  0xa6   : > { %vm15404_vm10 = vmpackc.low %vm19385_vm15, %vm19384_vm0 }
  0xa7   : > { %v15305_v56 = vpop.permute.xlu1 %387 }
  0xa8   : > { %19771 = vst [vmem:[#allocation23_spill] sm:$0xff] %v15305_v56  ;;  %v15307_v57 = vpop.permute.xlu0 %384  ;;  %vm19392_vm14 = vcmp.eq.s32.totalorder %v15266_v42, %v15305_v56 }
  0xa9   : > { %19772 = vst [vmem:[#allocation24_spill] sm:$0xff] %v15307_v57  ;;  %vm19389_vm0 = vcmp.eq.s32.totalorder %v15266_v42, %v15307_v57 }
  0xaa   : > { %vm15432_vm9 = vmpackc.low %vm19392_vm14, %vm19389_vm0 }
  0xab   : > { %v15309_v58 = vpop.permute.xlu1 %393 }
  0xac   : > { %19773 = vst [vmem:[#allocation25_spill] sm:$0xff] %v15309_v58  ;;  %v15311_v59 = vpop.permute.xlu0 %390  ;;  %vm19391_vm15 = vcmp.eq.s32.totalorder %v15266_v42, %v15309_v58  ;;  %v19830_v58 = vmov 0 }
  0xad   : > { %19774 = vst [vmem:[#allocation26_spill] sm:$0xff] %v15311_v59  ;;  %vm19390_vm13 = vcmp.eq.s32.totalorder %v15266_v42, %v15311_v59 }
  0xae   : > { %vm15442_vm5 = vmpackc.low %vm19391_vm15, %vm19390_vm13 }
  0xaf   : > { %v15313_v2 = vpop.permute.xlu1 %399 }
  0xb0   : > { %19775 = vst [vmem:[#allocation27_spill] sm:$0xff] %v15313_v2  ;;  %v15315_v3 = vpop.permute.xlu0 %396  ;;  %vm19396_vm0 = vcmp.eq.s32.totalorder %v15266_v42, %v15313_v2 }
  0xb1   : > { %19776 = vst [vmem:[#allocation28_spill] sm:$0xff] %v15315_v3  ;;  %vm19395_vm13 = vcmp.eq.s32.totalorder %v15266_v42, %v15315_v3  ;;  %v19829_v3 = vmov 1.0|1.0  }
  0xb2   : > { %vm15470_vm8 = vmpackc.low %vm19396_vm0, %vm19395_vm13 }
  0xb3   : > { %v15317_v9 = vpop.permute.xlu1 %405 }
  0xb4   : > { %19777 = vst [vmem:[#allocation29_spill] sm:$0xff] %v15317_v9  ;;  %v15319_v12 = vpop.permute.xlu0 %402  ;;  %vm19398_vm15 = vcmp.eq.s32.totalorder %v15266_v42, %v15317_v9 }
  0xb5   : > { %19778 = vst [vmem:[#allocation30_spill] sm:$0xff] %v15319_v12  ;;  %vm19397_vm14 = vcmp.eq.s32.totalorder %v15266_v42, %v15319_v12  ;;  %v268_v12 = vld [vmem:[%s15744_s9 + $0x68] sm:$0xff] }
  0xb6   : > { %vm15480_vm4 = vmpackc.low %vm19398_vm15, %vm19397_vm14 }
  0xb7   : > { %v15321_v17 = vpop.permute.xlu1 %411 }
  0xb8   : > { %19779 = vst [vmem:[#allocation31_spill] sm:$0xff] %v15321_v17  ;;  %v15323_v19 = vpop.permute.xlu0 %408  ;;  %vm19402_vm13 = vcmp.eq.s32.totalorder %v15266_v42, %v15321_v17 }
  0xb9   : > { %19780 = vst [vmem:[#allocation32_spill] sm:$0xff] %v15323_v19  ;;  %vm19401_vm0 = vcmp.eq.s32.totalorder %v15266_v42, %v15323_v19  ;;  %v264_v19 = vld [vmem:[%s15744_s9 + $0x48] sm:$0xff] }
  0xba   : > { %vm15504_vm7 = vmpackc.low %vm19402_vm13, %vm19401_vm0 }
  0xbb   : > { %v15325_v25 = vpop.permute.xlu1 %417 }
  0xbc   : > { %19781 = vst [vmem:[#allocation33_spill] sm:$0xff] %v15325_v25  ;;  %v15327_v26 = vpop.permute.xlu0 %414  ;;  %vm19404_vm14 = vcmp.eq.s32.totalorder %v15266_v42, %v15325_v25  ;;  %v263_v25 = vld [vmem:[%s15744_s9 + $0x40] sm:$0xff] }
  0xbd   : > { %19782 = vst [vmem:[#allocation34_spill] sm:$0xff] %v15327_v26  ;;  %vm19403_vm15 = vcmp.eq.s32.totalorder %v15266_v42, %v15327_v26  ;;  %v262_v26 = vld [vmem:[%s15744_s9 + $0x38] sm:$0xff] }
  0xbe   : > { %vm15514_vm3 = vmpackc.low %vm19404_vm14, %vm19403_vm15  ;;  %v15787_v17 = vpack.c.bf16 %v262_v26, %v261_v52  ;;  %v271_v26 = vld [vmem:[%s15744_s9 + $0x80] sm:$0xff] }
  0xbf   : > { %v15329_v35 = vpop.permute.xlu1 %423 }
  0xc0   : > { %19783 = vst [vmem:[#allocation35_spill] sm:$0xff] %v15329_v35  ;;  %v15331_v36 = vpop.permute.xlu0 %420  ;;  %vm19413_vm0 = vcmp.eq.s32.totalorder %v15266_v42, %v15329_v35 }
  0xc1   : > { %19784 = vst [vmem:[#allocation36_spill] sm:$0xff] %v15331_v36  ;;  %vm19412_vm13 = vcmp.eq.s32.totalorder %v15266_v42, %v15331_v36 }
  0xc3   : > { %v15344_v40 = vpop.permute.xlu1 %429 }
  0xc4   : > { %19785 = vst [vmem:[#allocation37_spill] sm:$0xff] %v15344_v40  ;;  %vm19415_vm15 = vcmp.eq.s32.totalorder %v15266_v42, %v15344_v40  ;;  %v19845_v40 = vmov 0 }
  0xeb   : > { %v13174_v60 = vpop.f32.mrb[0].mxu0 }
  0xec   : > { %v844_v61 = vpop.f32.mrb[1].mxu0 }
  0xed   : > { %v13175_v62 = vpop.f32.mrb[2].mxu0 }
  0xee   : > { %v847_v63 = vpop.f32.mrb[3].mxu0  ;;  %v908_v0 = vpack.c.bf16 %v13175_v62, %v13174_v60  ;;  %v15346_v60 = vpop.permute.xlu0 %426  ;;  %v19787_v62 = vmov 0 }
  0xef   : > { %v907_v1 = vpack.c.bf16 %v847_v63, %v844_v61  ;;  %19786 = vst [vmem:[#allocation38_spill] sm:$0xff] %v15346_v60  ;;  %v1432_v61 = vsel %vm19405_vm2, %v1364_v38, 0  ;;  %v19788_v62 = vsel %vm15356_vm11, 4294967295, %v19787_v62  ;;  %v19790_v63 = vmov 0 }
  0xf0   : > { %19789 = vst [vmem:[#allocation39_spill] sm:$0xff] %v19788_v62  ;;  %v19791_v63 = vsel %vm15366_vm12, 4294967295, %v19790_v63  ;;  %vm19414_vm14 = vcmp.eq.s32.totalorder %v15266_v42, %v15346_v60  ;;  %v19833_v60 = vmov 0  ;;  %v14861_v62 = vld [vmem:[%s19380_s3 + $0x28] sm:$0xff]  }
  0xf1   : > { %13188 = vmatprep.subr.bf16.mxu1 %v907_v1  ;;  %19792 = vst [vmem:[#allocation40_spill] sm:$0xff] %v19791_v63 }
  0xf2   : > { %13189 = vmatpush3.bf16.msra.mxu1 %v907_v1  ;;  %v15382_v1 = vpop.permute.xlu0 %432 }
  0xf3   : > { %v13178_v6 = vpop.f32.mrb[4].mxu0  ;;  %13190 = vmatprep.subr.bf16.mxu1 %v908_v0  ;;  %19794 = vst [vmem:[#allocation42_spill] sm:$0xff] %v15382_v1 }
  0xf4   : > { %v860_v7 = vpop.f32.mrb[5].mxu0 }
  0xf5   : > { %v13179_v8 = vpop.f32.mrb[6].mxu0 }
  0xf6   : > { %v863_v10 = vpop.f32.mrb[7].mxu0  ;;  %13191 = vmatpush3.bf16.msra.mxu1 %v908_v0  ;;  %v910_v11 = vpack.c.bf16 %v13179_v8, %v13178_v6  ;;  %v15380_v0 = vpop.permute.xlu1 %435  ;;  %v19795_v6 = vmov 0 }
  0xf7   : > { %v909_v13 = vpack.c.bf16 %v863_v10, %v860_v7  ;;  %19793 = vst [vmem:[#allocation41_spill] sm:$0xff] %v15380_v0  ;;  %v19796_v6 = vsel %vm15394_vm1, 4294967295, %v19795_v6  ;;  %v19798_v7 = vmov 0  ;;  %v15416_v10 = vpop.permute.xlu0 %438 }
  0xf8   : > { %19797 = vst [vmem:[#allocation43_spill] sm:$0xff] %v19796_v6  ;;  %v19799_v7 = vsel %vm15404_vm10, 4294967295, %v19798_v7  ;;  %19802 = vst [vmem:[#allocation46_spill] sm:$0xff] %v15416_v10 }
  0xf9   : > { %13192 = vmatprep.subr.bf16.mxu1 %v909_v13  ;;  %19800 = vst [vmem:[#allocation44_spill] sm:$0xff] %v19799_v7 }
  0xfa   : > { %13193 = vmatpush3.bf16.msra.mxu1 %v909_v13  ;;  %v15414_v8 = vpop.permute.xlu1 %441  ;;  %v19806_v13 = vmov 0 }
  0xfb   : > { %v13182_v16 = vpop.f32.mrb[8].mxu0  ;;  %13194 = vmatprep.subr.bf16.mxu1 %v910_v11  ;;  %19801 = vst [vmem:[#allocation45_spill] sm:$0xff] %v15414_v8  ;;  %v19807_v13 = vsel %vm15442_vm5, 4294967295, %v19806_v13 }
  0xfc   : > { %v876_v18 = vpop.f32.mrb[9].mxu0  ;;  %19808 = vst [vmem:[#allocation48_spill] sm:$0xff] %v19807_v13 }
  0xfd   : > { %v13183_v21 = vpop.f32.mrb[10].mxu0 }
  0xfe   : > { %v879_v22 = vpop.f32.mrb[11].mxu0  ;;  %13195 = vmatpush3.bf16.msra.mxu1 %v910_v11  ;;  %v912_v23 = vpack.c.bf16 %v13183_v21, %v13182_v16  ;;  %v19803_v11 = vmov 0  ;;  %v15446_v16 = vpop.permute.xlu1 %447 }
  0xff   : > { %v911_v24 = vpack.c.bf16 %v879_v22, %v876_v18  ;;  %v19804_v11 = vsel %vm15432_vm9, 4294967295, %v19803_v11  ;;  %19809 = vst [vmem:[#allocation49_spill] sm:$0xff] %v15446_v16  ;;  %v15448_v18 = vpop.permute.xlu0 %444 }
 0x100   : > { %19805 = vst [vmem:[#allocation47_spill] sm:$0xff] %v19804_v11  ;;  %19810 = vst [vmem:[#allocation50_spill] sm:$0xff] %v15448_v18 }
 0x101   : > { %13196 = vmatprep.subr.bf16.mxu1 %v911_v24 }
 0x102   : > { %13197 = vmatpush3.bf16.msra.mxu1 %v911_v24  ;;  %v454_v21 = vpop.permute.xlu1 %453  ;;  %v19814_v24 = vmov 0 }
 0x103   : > { %v13186_v28 = vpop.f32.mrb[12].mxu0  ;;  %13198 = vmatprep.subr.bf16.mxu1 %v912_v23  ;;  %v451_v22 = vpop.permute.xlu0 %450  ;;  %v19815_v24 = vsel %vm15480_vm4, 4294967295, %v19814_v24 }
 0x104   : > { %v892_v30 = vpop.f32.mrb[13].mxu0  ;;  %19816 = vst [vmem:[#allocation52_spill] sm:$0xff] %v19815_v24 }
 0x105   : > { %v13187_v31 = vpop.f32.mrb[14].mxu0 }
 0x106   : > { %v895_v32 = vpop.f32.mrb[15].mxu0  ;;  %13199 = vmatpush3.bf16.msra.mxu1 %v912_v23  ;;  %v914_v33 = vpack.c.bf16 %v13187_v31, %v13186_v28  ;;  %v19811_v23 = vmov 0  ;;  %v460_v28 = vpop.permute.xlu1 %459  ;;  %v19817_v31 = vmov 0 }
 0x107   : > { %v913_v34 = vpack.c.bf16 %v895_v32, %v892_v30  ;;  %v19812_v23 = vsel %vm15470_vm8, 4294967295, %v19811_v23  ;;  %v457_v30 = vpop.permute.xlu0 %456  ;;  %v19818_v31 = vsel %vm15504_vm7, 4294967295, %v19817_v31  ;;  %v19820_v32 = vmov 0 }
 0x108   : > { %19813 = vst [vmem:[#allocation51_spill] sm:$0xff] %v19812_v23  ;;  %19819 = vst [vmem:[#allocation53_spill] sm:$0xff] %v19818_v31  ;;  %v19821_v32 = vsel %vm15514_vm3, 4294967295, %v19820_v32 }
 0x109   : > { %13200 = vmatprep.subr.bf16.mxu1 %v913_v34  ;;  %19822 = vst [vmem:[#allocation54_spill] sm:$0xff] %v19821_v32 }
 0x10a   : > { %13201 = vmatpush3.bf16.msra.mxu1 %v913_v34 }
 0x10b   : > { %13202 = vmatprep.subr.bf16.mxu1 %v914_v33  ;;  %v463_v34 = vpop.permute.xlu0 %462 }
 0x10e   : > { %13203 = vmatpush3.bf16.msra.mxu1 %v914_v33  ;;  %v466_v33 = vpop.permute.xlu1 %465 }
 0x10f   : > { %14640 = vmatprep.subr.msk.bf16.mxu1 %vm19405_vm2, %v1364_v38  ;;  %vm15538_vm2 = vmpackc.low %vm19413_vm0, %vm19412_vm13  ;;  %v19823_v38 = vmov 0  ;;  %vm19425_vm13 = vcmp.eq.s32.totalorder %v15266_v42, %v15380_v0  ;;  %vm19424_vm0 = vcmp.eq.s32.totalorder %v15266_v42, %v15382_v1  ;;  %v19836_v1 = vmov 0 }
 0x110   : > { %v19824_v38 = vsel %vm15538_vm2, 4294967295, %v19823_v38  ;;  %v19839_v0 = vmov 0 }
 0x111   : > { %13205 = vmatmul.mubr.msk.bf16.vlgmr.msra.gmra.mrb[0].mxu1 %vm15356_vm11, %v19409_v47  ;;  %19825 = vst [vmem:[#allocation55_spill] sm:$0xff] %v19824_v38 }
 0x112   : > { %13208 = vmatprep.mubr.msk.bf16.mxu1 %vm15366_vm12, %v19409_v47  ;;  %13269 = vmatpush3.bf16.msra.mxu1 %v1432_v61  ;;  %v19826_v61 = vmov 0  ;;  %v472_v41 = vpop.permute.xlu1 %471 }
 0x116   : > { %v478_v2 = vpop.permute.xlu1 %477 }
 0x119   : > { %13209 = vmatmul.mubr.msk.bf16.gmra.mrb[4].mxu1 %vm15394_vm1, %v19409_v47 }
 0x11a   : > { %13212 = vmatprep.mubr.msk.bf16.mxu1 %vm15404_vm10, %v19409_v47 }
 0x121   : > { %13213 = vmatmul.mubr.msk.bf16.gmra.mrb[8].mxu1 %vm15432_vm9, %v19409_v47 }
 0x122   : > { %13216 = vmatprep.mubr.msk.bf16.mxu1 %vm15442_vm5, %v19409_v47 }
 0x129   : > { %13217 = vmatmul.mubr.msk.bf16.gmra.mrb[12].mxu1 %vm15470_vm8, %v19409_v47 }
 0x12a   : > { %13220 = vmatprep.mubr.msk.bf16.mxu1 %vm15480_vm4, %v19409_v47 }
 0x131   : > { %13221 = vmatmul.mubr.msk.bf16.gmra.mrb[16].mxu1 %vm15504_vm7, %v19409_v47 }
 0x132   : > { %13224 = vmatprep.mubr.msk.bf16.mxu1 %vm15514_vm3, %v19409_v47  ;;  %vm15548_vm3 = vmpackc.low %vm19415_vm15, %vm19414_vm14  ;;  %v469_v47 = vpop.permute.xlu0 %468  ;;  %vm19429_vm14 = vcmp.eq.s32.totalorder %v15266_v42, %v15414_v8  ;;  %vm19428_vm15 = vcmp.eq.s32.totalorder %v15266_v42, %v15416_v10  ;;  %v484_v10 = vpop.permute.xlu1 %483 }
 0x133   : > { %v19827_v61 = vsel %vm15548_vm3, 4294967295, %v19826_v61 }
 0x134   : > { %19828 = vst [vmem:[#allocation56_spill] sm:$0xff] %v19827_v61 }
 0x136   : > { %v475_v59 = vpop.permute.xlu0 %474 }
 0x139   : > { %13225 = vmatmul.mubr.msk.bf16.gmra.mrb[20].mxu1 %vm15538_vm2, %v19829_v3  ;;  %vm15582_vm2 = vmpackc.low %vm19429_vm14, %vm19428_vm15  ;;  %vm578_vm15 = vcmp.eq.s32.totalorder %v15266_v42, %v454_v21  ;;  %vm577_vm14 = vcmp.eq.s32.totalorder %v15266_v42, %v451_v22  ;;  %v14858_v21 = vld [vmem:[%s19380_s3 + $0x20] sm:$0xff]   ;;  %v490_v22 = vpop.permute.xlu1 %489 }
 0x13a   : > { %13228 = vmatprep.mubr.msk.bf16.mxu1 %vm15548_vm3, %v19829_v3  ;;  %vm15572_vm3 = vmpackc.low %vm19425_vm13, %vm19424_vm0  ;;  %v19834_v60 = vsel %vm15582_vm2, 4294967295, %v19833_v60  ;;  %vm19438_vm0 = vcmp.eq.s32.totalorder %v15266_v42, %v15446_v16  ;;  %vm19437_vm13 = vcmp.eq.s32.totalorder %v15266_v42, %v15448_v18  ;;  %v481_v8 = vpop.permute.xlu0 %480  ;;  %1731 = vrot.lane.b32.xlu0 %v14858_v21, %s15092_s5  ;;  %v19842_v16 = vmov 0 }
 0x13b   : > { %v19831_v58 = vsel %vm15572_vm3, 4294967295, %v19830_v58  ;;  %19835 = vst [vmem:[#allocation58_spill] sm:$0xff] %v19834_v60  ;;  %v19863_v21 = vmov 0 }
 0x13c   : > { %19832 = vst [vmem:[#allocation57_spill] sm:$0xff] %v19831_v58 }
 0x13d   : > { %v496_v36 = vpop.permute.xlu1 %495 }
 0x13e   : > { %v487_v18 = vpop.permute.xlu0 %486 }
 0x141   : > { %13229 = vmatmul.mubr.msk.bf16.gmra.mrb[24].mxu1 %vm15572_vm3, %v19829_v3  ;;  %vm15604_vm3 = vmpackc.low %vm19438_vm0, %vm19437_vm13  ;;  %vm582_vm13 = vcmp.eq.s32.totalorder %v15266_v42, %v466_v33  ;;  %vm581_vm0 = vcmp.eq.s32.totalorder %v15266_v42, %v463_v34  ;;  %v19848_v33 = vmov 0  ;;  %v19851_v34 = vmov 0 }
 0x142   : > { %13232 = vmatprep.mubr.msk.bf16.mxu1 %vm15582_vm2, %v19829_v3  ;;  %v19837_v1 = vsel %vm15604_vm3, 4294967295, %v19836_v1  ;;  %vm15608_vm2 = vmpackc.low %vm578_vm15, %vm577_vm14  ;;  %vm580_vm14 = vcmp.eq.s32.totalorder %v15266_v42, %v460_v28  ;;  %vm579_vm15 = vcmp.eq.s32.totalorder %v15266_v42, %v457_v30  ;;  %v493_v57 = vpop.permute.xlu0 %492  ;;  %v502_v28 = vpop.permute.xlu1 %501 }
 0x143   : > { %19838 = vst [vmem:[#allocation59_spill] sm:$0xff] %v19837_v1  ;;  %v19840_v0 = vsel %vm15608_vm2, 4294967295, %v19839_v0  ;;  %vm15630_vm7 = vmpackc.low %vm582_vm13, %vm581_vm0  ;;  %vm585_vm13 = vcmp.eq.s32.totalorder %v15266_v42, %v475_v59  ;;  %v19854_v59 = vmov 0 }
 0x144   : > { %19841 = vst [vmem:[#allocation60_spill] sm:$0xff] %v19840_v0  ;;  %v19846_v40 = vsel %vm15630_vm7, 4294967295, %v19845_v40 }
 0x145   : > { %19847 = vst [vmem:[#allocation62_spill] sm:$0xff] %v19846_v40 }
 0x146   : > { %v499_v30 = vpop.permute.xlu0 %498 }
 0x149   : > { %13233 = vmatmul.mubr.msk.bf16.gmra.mrb[28].mxu1 %vm15604_vm3, %v19829_v3  ;;  %vm15626_vm3 = vmpackc.low %vm580_vm14, %vm579_vm15  ;;  %vm583_vm14 = vcmp.eq.s32.totalorder %v15266_v42, %v469_v47  ;;  %vm586_vm15 = vcmp.eq.s32.totalorder %v15266_v42, %v478_v2  ;;  %v19857_v2 = vmov 0 }
 0x14a   : > { %13236 = vmatprep.mubr.msk.bf16.mxu1 %vm15608_vm2, %v19829_v3  ;;  %v19843_v16 = vsel %vm15626_vm3, 4294967295, %v19842_v16  ;;  %vm584_vm2 = vcmp.eq.s32.totalorder %v15266_v42, %v472_v41  ;;  %vm15648_vm4 = vmpackc.low %vm586_vm15, %vm585_vm13  ;;  %v508_v41 = vpop.permute.xlu1 %507  ;;  %v505_v47 = vpop.permute.xlu0 %504 }
 0x14b   : > { %19844 = vst [vmem:[#allocation61_spill] sm:$0xff] %v19843_v16  ;;  %vm15644_vm0 = vmpackc.low %vm584_vm2, %vm583_vm14  ;;  %v19852_v34 = vsel %vm15648_vm4, 4294967295, %v19851_v34  ;;  %vm590_vm2 = vcmp.eq.s32.totalorder %v15266_v42, %v490_v22  ;;  %vm589_vm14 = vcmp.eq.s32.totalorder %v15266_v42, %v487_v18  ;;  %v19860_v18 = vmov 0 }
 0x14c   : > { %v19849_v33 = vsel %vm15644_vm0, 4294967295, %v19848_v33  ;;  %19853 = vst [vmem:[#allocation64_spill] sm:$0xff] %v19852_v34  ;;  %vm15666_vm13 = vmpackc.low %vm590_vm2, %vm589_vm14  ;;  %vm593_vm2 = vcmp.eq.s32.totalorder %v15266_v42, %v499_v30  ;;  %v19869_v30 = vmov 0 }
 0x14d   : > { %19850 = vst [vmem:[#allocation63_spill] sm:$0xff] %v19849_v33  ;;  %v19858_v2 = vsel %vm15666_vm13, 4294967295, %v19857_v2 }
 0x14e   : > { %19859 = vst [vmem:[#allocation66_spill] sm:$0xff] %v19858_v2 }
 0x151   : > { %13237 = vmatmul.mubr.msk.bf16.gmra.mrb[32].mxu1 %vm15626_vm3, %v19829_v3  ;;  %vm587_vm3 = vcmp.eq.s32.totalorder %v15266_v42, %v481_v8  ;;  %v514_v8 = vpop.permute.xlu1 %513 }
 0x152   : > { %13240 = vmatprep.mubr.msk.bf16.mxu1 %vm15630_vm7, %v19829_v3  ;;  %vm588_vm7 = vcmp.eq.s32.totalorder %v15266_v42, %v484_v10  ;;  %v511_v10 = vpop.permute.xlu0 %510 }
 0x153   : > { %vm15662_vm15 = vmpackc.low %vm588_vm7, %vm587_vm3  ;;  %vm591_vm3 = vcmp.eq.s32.totalorder %v15266_v42, %v493_v57  ;;  %vm594_vm7 = vcmp.eq.s32.totalorder %v15266_v42, %v502_v28  ;;  %v19866_v28 = vmov 0 }
 0x154   : > { %v19855_v59 = vsel %vm15662_vm15, 4294967295, %v19854_v59 }
 0x155   : > { %19856 = vst [vmem:[#allocation65_spill] sm:$0xff] %v19855_v59  ;;  %v520_v22 = vpop.permute.xlu1 %519 }
 0x156   : > { %v517_v56 = vpop.permute.xlu0 %516 }
 0x159   : > { %13241 = vmatmul.mubr.msk.bf16.gmra.mrb[36].mxu1 %vm15644_vm0, %v19829_v3  ;;  %vm15684_vm0 = vmpackc.low %vm594_vm7, %vm593_vm2  ;;  %vm597_vm7 = vcmp.eq.s32.totalorder %v15266_v42, %v511_v10  ;;  %v526_v57 = vpop.permute.xlu1 %525  ;;  %v19875_v10 = vmov 0 }
 0x15a   : > { %13244 = vmatprep.mubr.msk.bf16.mxu1 %vm15648_vm4, %v19829_v3  ;;  %vm592_vm4 = vcmp.eq.s32.totalorder %v15266_v42, %v496_v36  ;;  %v19864_v21 = vsel %vm15684_vm0, 4294967295, %v19863_v21  ;;  %v523_v36 = vpop.permute.xlu0 %522 }
 0x15b   : > { %vm15680_vm14 = vmpackc.low %vm592_vm4, %vm591_vm3  ;;  %19865 = vst [vmem:[#allocation68_spill] sm:$0xff] %v19864_v21  ;;  %vm595_vm4 = vcmp.eq.s32.totalorder %v15266_v42, %v505_v47  ;;  %vm598_vm3 = vcmp.eq.s32.totalorder %v15266_v42, %v514_v8  ;;  %v19872_v8 = vmov 0 }
 0x15c   : > { %v19861_v18 = vsel %vm15680_vm14, 4294967295, %v19860_v18 }
 0x15d   : > { %19862 = vst [vmem:[#allocation67_spill] sm:$0xff] %v19861_v18 }
 0x15e   : > { %v529_v47 = vpop.permute.xlu0 %528 }
 0x161   : > { %13245 = vmatmul.mubr.msk.bf16.gmra.mrb[40].mxu1 %vm15662_vm15, %v19829_v3  ;;  %vm15702_vm15 = vmpackc.low %vm598_vm3, %vm597_vm7  ;;  %vm601_vm3 = vcmp.eq.s32.totalorder %v15266_v42, %v523_v36  ;;  %v19881_v36 = vmov 0 }
 0x162   : > { %13248 = vmatprep.mubr.msk.bf16.mxu1 %vm15666_vm13, %v19829_v3  ;;  %vm596_vm13 = vcmp.eq.s32.totalorder %v15266_v42, %v508_v41  ;;  %v19870_v30 = vsel %vm15702_vm15, 4294967295, %v19869_v30  ;;  %v532_v41 = vpop.permute.xlu1 %531 }
 0x163   : > { %vm15698_vm2 = vmpackc.low %vm596_vm13, %vm595_vm4  ;;  %19871 = vst [vmem:[#allocation70_spill] sm:$0xff] %v19870_v30  ;;  %vm599_vm13 = vcmp.eq.s32.totalorder %v15266_v42, %v517_v56  ;;  %vm602_vm4 = vcmp.eq.s32.totalorder %v15266_v42, %v526_v57  ;;  %v19878_v57 = vmov 0 }
 0x164   : > { %v19867_v28 = vsel %vm15698_vm2, 4294967295, %v19866_v28 }
 0x165   : > { %19868 = vst [vmem:[#allocation69_spill] sm:$0xff] %v19867_v28 }
 0x166   : > { %v538_v56 = vpop.permute.xlu1 %537 }
 0x169   : > { %13249 = vmatmul.mubr.msk.bf16.gmra.mrb[44].mxu1 %vm15680_vm14, %v19829_v3 }
 0x16a   : > { %13252 = vmatprep.mubr.msk.bf16.mxu1 %vm15684_vm0, %v19829_v3  ;;  %vm600_vm0 = vcmp.eq.s32.totalorder %v15266_v42, %v520_v22  ;;  %v535_v22 = vpop.permute.xlu0 %534 }
 0x16b   : > { %vm15716_vm7 = vmpackc.low %vm600_vm0, %vm599_vm13  ;;  %vm603_vm0 = vcmp.eq.s32.totalorder %v15266_v42, %v529_v47  ;;  %vm606_vm13 = vcmp.eq.s32.totalorder %v15266_v42, %v538_v56  ;;  %v255_v56 = vld [vmem:[%s15744_s9] sm:$0xff] }
 0x16c   : > { %v19873_v8 = vsel %vm15716_vm7, 4294967295, %v19872_v8 }
 0x16d   : > { %19874 = vst [vmem:[#allocation71_spill] sm:$0xff] %v19873_v8 }
 0x16e   : > { %v541_v47 = vpop.permute.xlu0 %540 }
 0x171   : > { %13253 = vmatmul.mubr.msk.bf16.gmra.mrb[48].mxu1 %vm15698_vm2, %v19829_v3  ;;  %vm15720_vm2 = vmpackc.low %vm602_vm4, %vm601_vm3  ;;  %vm605_vm4 = vcmp.eq.s32.totalorder %v15266_v42, %v535_v22  ;;  %v256_v22 = vld [vmem:[%s15744_s9 + $0x8] sm:$0xff] }
 0x172   : > { %13256 = vmatprep.mubr.msk.bf16.mxu1 %vm15702_vm15, %v19829_v3  ;;  %v19876_v10 = vsel %vm15720_vm2, 4294967295, %v19875_v10  ;;  %vm604_vm15 = vcmp.eq.s32.totalorder %v15266_v42, %v532_v41  ;;  %v544_v41 = vpop.permute.xlu1 %543  ;;  %v15760_v35 = vpack.c.bf16 %v256_v22, %v255_v56  ;;  %v260_v56 = vld [vmem:[%s15744_s9 + $0x28] sm:$0xff] }
 0x173   : > { %19877 = vst [vmem:[#allocation72_spill] sm:$0xff] %v19876_v10  ;;  %vm15735_vm3 = vmpackc.low %vm604_vm15, %vm603_vm0  ;;  %vm608_vm15 = vcmp.eq.s32.totalorder %v15266_v42, %v544_v41  ;;  %vm607_vm0 = vcmp.eq.s32.totalorder %v15266_v42, %v541_v47  ;;  %v257_v41 = vld [vmem:[%s15744_s9 + $0x10] sm:$0xff]  ;;  %v259_v47 = vld [vmem:[%s15744_s9 + $0x20] sm:$0xff] }
 0x174   : > { %v19879_v57 = vsel %vm15735_vm3, 4294967295, %v19878_v57  ;;  %v15775_v22 = vpack.c.bf16 %v258_v54, %v257_v41  ;;  %v15777_v53 = vpack.c.bf16 %v260_v56, %v259_v47  ;;  %v15789_v54 = vpack.c.bf16 %v264_v19, %v263_v25  ;;  %v265_v41 = vld [vmem:[%s15744_s9 + $0x50] sm:$0xff]  ;;  %v266_v47 = vld [vmem:[%s15744_s9 + $0x58] sm:$0xff]  ;;  %v267_v56 = vld [vmem:[%s15744_s9 + $0x60] sm:$0xff] }
 0x175   : > { %19880 = vst [vmem:[#allocation73_spill] sm:$0xff] %v19879_v57  ;;  %v15799_v9 = vpack.c.bf16 %v266_v47, %v265_v41  ;;  %v15801_v52 = vpack.c.bf16 %v268_v12, %v267_v56  ;;  %v269_v19 = vld [vmem:[%s15744_s9 + $0x70] sm:$0xff]  ;;  %v270_v25 = vld [vmem:[%s15744_s9 + $0x78] sm:$0xff]  ;;  %v15813_v41 = vpack.c.bf16 %v272_v51, %v271_v26  ;;  %v275_v56 = vld [vmem:[%s15744_s9 + $0xa0] sm:$0xff] }
 0x176   : > { %v15811_v50 = vpack.c.bf16 %v270_v25, %v269_v19  ;;  %v273_v12 = vld [vmem:[%s15744_s9 + $0x90] sm:$0xff]  ;;  %v274_v47 = vld [vmem:[%s15744_s9 + $0x98] sm:$0xff]  ;;  %v15825_v19 = vpack.c.bf16 %v276_v44, %v275_v56  ;;  %v279_v26 = vld [vmem:[%s15744_s9 + $0xc0] sm:$0xff] }
 0x177   : > { %v15823_v49 = vpack.c.bf16 %v274_v47, %v273_v12  ;;  %v277_v51 = vld [vmem:[%s15744_s9 + $0xb0] sm:$0xff]  ;;  %v278_v25 = vld [vmem:[%s15744_s9 + $0xb8] sm:$0xff]  ;;  %v15837_v42 = vpack.c.bf16 %v280_v43, %v279_v26  ;;  %v283_v47 = vld [vmem:[%s15744_s9 + $0xe0] sm:$0xff] }
 0x178   : > { %v15835_v48 = vpack.c.bf16 %v278_v25, %v277_v51  ;;  %v281_v44 = vld [vmem:[%s15744_s9 + $0xd0] sm:$0xff]  ;;  %v282_v12 = vld [vmem:[%s15744_s9 + $0xd8] sm:$0xff]  ;;  %v284_v56 = vld [vmem:[%s15744_s9 + $0xe8] sm:$0xff] }
 0x179   : > { %13257 = vmatmul.mubr.msk.bf16.gmra.mrb[52].mxu1 %vm15716_vm7, %v19829_v3  ;;  %v285_v43 = vld [vmem:[%s15744_s9 + $0xf0] sm:$0xff]  ;;  %v286_v51 = vld [vmem:[%s15744_s9 + $0xf8] sm:$0xff] }
 0x17a   : > { %13260 = vmatprep.mubr.msk.bf16.mxu1 %vm15720_vm2, %v19829_v3  ;;  %vm15746_vm2 = vmpackc.low %vm606_vm13, %vm605_vm4  ;;  %vm19571_vm13 = vcmask 31744   ;;  %v15857_v25 = vpack.c.bf16 %v286_v51, %v285_v43 }
 0x17b   : > { %v19882_v36 = vsel %vm15746_vm2, 4294967295, %v19881_v36  ;;  %vm15762_vm4 = vmpackc.low %vm608_vm15, %vm607_vm0  ;;  %vm19570_vm15 = vcmask 261120   ;;  %vm19892_vm0 = vcmask 1041408  }
 0x17c   : > { %19883 = vst [vmem:[#allocation74_spill] sm:$0xff] %v19882_v36  ;;  %v19885_v55 = vsel %vm15762_vm4, 4294967295, %v19884_v55  ;;  %v15849_v36 = vpack.c.bf16 %v284_v56, %v283_v47  ;;  %19889 = vst [vmem:[#allocation78_spill] sm:$0xff] %v15857_v25  ;;  %v1627_v56 = vld [vmem:[%s19380_s3 + $0x20] sm:$0x1] }
 0x17d   : > { %19886 = vst [vmem:[#allocation75_spill] sm:$0xff] %v19885_v55  ;;  %v15847_v55 = vpack.c.bf16 %v282_v12, %v281_v44  ;;  %v19890_v44 = vlaneseq  ;;  %v1628_v10 = vunpack.c.l.bf16 %v1627_v56 }
 0x17e   : > { %19888 = vst [vmem:[#allocation77_spill] sm:$0xff] %v15849_v36 }
 0x17f   : > { %19887 = vst [vmem:[#allocation76_spill] sm:$0xff] %v15847_v55  ;;  %v1630_v12 = vshrl.u32 %v19890_v44, 7 }
 0x181   : > { %13261 = vmatmul.mubr.msk.bf16.gmra.mrb[56].mxu1 %vm15735_vm3, %v19829_v3 }
 0x182   : > { %13264 = vmatprep.mubr.msk.bf16.mxu1 %vm15746_vm2, %v19829_v3  ;;  %vm19908_vm2 = vcmask 56320  }
 0x189   : > { %13265 = vmatmul.mubr.msk.bf16.gmra.mrb[60].mxu1 %vm15762_vm4, %v19829_v3 }
 0x18a   : > { %13270 = vmatprep.mubr.msk.bf16.mxu1 %vm19571_vm13, %v15760_v35 }
 0x191   : > { %13271 = vmatmul.mubr.msk.bf16.vlgmr.msra.gmra.mrb[0].mxu1 %vm19571_vm13, %v15775_v22 }
 0x192   : > { %13274 = vmatprep.mubr.msk.bf16.mxu1 %vm19571_vm13, %v15777_v53 }
 0x199   : > { %13275 = vmatmul.mubr.msk.bf16.gmra.mrb[4].mxu1 %vm19571_vm13, %v15787_v17 }
 0x19a   : > { %13278 = vmatprep.mubr.msk.bf16.mxu1 %vm19571_vm13, %v15789_v54 }
 0x1a1   : > { %13279 = vmatmul.mubr.msk.bf16.gmra.mrb[8].mxu1 %vm19571_vm13, %v15799_v9 }
 0x1a2   : > { %13282 = vmatprep.mubr.msk.bf16.mxu1 %vm19571_vm13, %v15801_v52 }
 0x1a9   : > { %13283 = vmatmul.mubr.msk.bf16.gmra.mrb[12].mxu1 %vm19571_vm13, %v15811_v50 }
 0x1aa   : > { %13286 = vmatprep.mubr.msk.bf16.mxu1 %vm19571_vm13, %v15813_v41 }
 0x1ac   : > { %v1732_v26 = vpop.permute.xlu0 %1731 }
 0x1ad   : > { %13302 = vmatprep.subr.bf16.mxu0 %v1732_v26 }
 0x1ae   : > { %13303 = vmatpush3.bf16.msra.mxu0 %v1732_v26  ;;  %v14859_v26 = vld [vmem:[%s19380_s3 + $0x28] sm:$0xff]  }
 0x1b1   : > { %13287 = vmatmul.mubr.msk.bf16.gmra.mrb[16].mxu1 %vm19571_vm13, %v15823_v49 }
 0x1b2   : > { %13290 = vmatprep.mubr.msk.bf16.mxu1 %vm19571_vm13, %v15825_v19 }
 0x1b9   : > { %13291 = vmatmul.mubr.msk.bf16.gmra.mrb[20].mxu1 %vm19571_vm13, %v15835_v48 }
 0x1ba   : > { %13294 = vmatprep.mubr.msk.bf16.mxu1 %vm19571_vm13, %v15837_v42 }
 0x1c1   : > { %13295 = vmatmul.mubr.msk.bf16.gmra.mrb[24].mxu1 %vm19571_vm13, %v15847_v55 }
 0x1c2   : > { %13298 = vmatprep.mubr.msk.bf16.mxu1 %vm19571_vm13, %v15849_v36 }
 0x1c9   : > { %13299 = vmatmul.mubr.msk.bf16.gmra.mrb[28].mxu1 %vm19571_vm13, %v15857_v25 }
 0x1ca   : > { %13414 = vmatprep.mubr.msk.bf16.mxu1 %vm19571_vm13, %v15760_v35  ;;  %v15869_v35 = vsub.s32 0, %v1630_v12 }
 0x1cc   : > { %19891 = vst [vmem:[#allocation79_spill] sm:$0xff] %v15869_v35  ;;  %v15877_v44 = vrot.slane %v1628_v10, %v15869_v35 }
 0x224   : > { %v13238_v47 = vpop.f32.mrb[32].mxu1 }
 0x225   : > { %1240 = vrot.lane.b32.xlu0 %v13238_v47, %s15093_s12  ;;  %v1077_v43 = vpop.f32.mrb[33].mxu1 }
 0x226   : > { %v13239_v51 = vpop.f32.mrb[34].mxu1 }
 0x227   : > { %1242 = vrot.lane.b32.xlu1 %v13239_v51, %s15093_s12  ;;  %v1080_v57 = vpop.f32.mrb[35].mxu1 }
 0x229   : > { %1236 = vrot.lane.b32.xlu0 %v1077_v43, %s15093_s12 }
 0x22b   : > { %1238 = vrot.lane.b32.xlu1 %v1080_v57, %s15093_s12 }
 0x22c   : > { %v13242_v47 = vpop.f32.mrb[36].mxu1 }
 0x22d   : > { %1733 = vrot.lane.b32.xlu0 %v14859_v26, %s15092_s5  ;;  %v1093_v8 = vpop.f32.mrb[37].mxu1 }
 0x22e   : > { %v13243_v51 = vpop.f32.mrb[38].mxu1 }
 0x22f   : > { %1634 = vrot.lane.b32.xlu1 %v15877_v44, %s15093_s12  ;;  %v1096_v12 = vpop.f32.mrb[39].mxu1 }
 0x231   : > { %1246 = vrot.lane.b32.xlu0 %v1096_v12, %s15093_s12 }
 0x233   : > { %1244 = vrot.lane.b32.xlu1 %v1093_v8, %s15093_s12 }
 0x234   : > { %v13246_v56 = vpop.f32.mrb[40].mxu1 }
 0x235   : > { %1250 = vrot.lane.b32.xlu0 %v13243_v51, %s15093_s12  ;;  %v1109_v57 = vpop.f32.mrb[41].mxu1 }
 0x236   : > { %v13247_v43 = vpop.f32.mrb[42].mxu1 }
 0x237   : > { %1248 = vrot.lane.b32.xlu1 %v13242_v47, %s15093_s12  ;;  %v1112_v10 = vpop.f32.mrb[43].mxu1 }
 0x239   : > { %1254 = vrot.lane.b32.xlu0 %v1112_v10, %s15093_s12 }
 0x23b   : > { %1252 = vrot.lane.b32.xlu1 %v1109_v57, %s15093_s12 }
 0x23c   : > { %v13250_v26 = vpop.f32.mrb[44].mxu1 }
 0x23d   : > { %1258 = vrot.lane.b32.xlu0 %v13247_v43, %s15093_s12  ;;  %v1125_v35 = vpop.f32.mrb[45].mxu1 }
 0x23e   : > { %v13251_v30 = vpop.f32.mrb[46].mxu1 }
 0x23f   : > { %1256 = vrot.lane.b32.xlu1 %v13246_v56, %s15093_s12  ;;  %v1128_v8 = vpop.f32.mrb[47].mxu1 }
 0x241   : > { %1262 = vrot.lane.b32.xlu0 %v1128_v8, %s15093_s12 }
 0x243   : > { %1260 = vrot.lane.b32.xlu1 %v1125_v35, %s15093_s12 }
 0x244   : > { %v13254_v51 = vpop.f32.mrb[48].mxu1 }
 0x245   : > { %1266 = vrot.lane.b32.xlu0 %v13251_v30, %s15093_s12  ;;  %v1141_v47 = vpop.f32.mrb[49].mxu1 }
 0x246   : > { %v13255_v12 = vpop.f32.mrb[50].mxu1 }
 0x247   : > { %1264 = vrot.lane.b32.xlu1 %v13250_v26, %s15093_s12  ;;  %v1144_v57 = vpop.f32.mrb[51].mxu1 }
 0x249   : > { %1270 = vrot.lane.b32.xlu0 %v1144_v57, %s15093_s12 }
 0x24b   : > { %1268 = vrot.lane.b32.xlu1 %v1141_v47, %s15093_s12 }
 0x24c   : > { %v13258_v43 = vpop.f32.mrb[52].mxu1 }
 0x24d   : > { %1274 = vrot.lane.b32.xlu0 %v13255_v12, %s15093_s12  ;;  %v1157_v56 = vpop.f32.mrb[53].mxu1 }
 0x24e   : > { %v13259_v10 = vpop.f32.mrb[54].mxu1 }
 0x24f   : > { %1272 = vrot.lane.b32.xlu1 %v13254_v51, %s15093_s12  ;;  %v1160_v35 = vpop.f32.mrb[55].mxu1 }
 0x251   : > { %1278 = vrot.lane.b32.xlu0 %v1160_v35, %s15093_s12  ;;  %v14860_v35 = vld [vmem:[%s19380_s3 + $0x28] ss:$0 sps:$4 sm:$0xff]  }
 0x253   : > { %1276 = vrot.lane.b32.xlu1 %v1157_v56, %s15093_s12 }
 0x254   : > { %v13262_v30 = vpop.f32.mrb[56].mxu1 }
 0x255   : > { %1282 = vrot.lane.b32.xlu0 %v13259_v10, %s15093_s12  ;;  %v1173_v26 = vpop.f32.mrb[57].mxu1 }
 0x256   : > { %v13263_v8 = vpop.f32.mrb[58].mxu1 }
 0x257   : > { %1280 = vrot.lane.b32.xlu1 %v13258_v43, %s15093_s12  ;;  %v1176_v47 = vpop.f32.mrb[59].mxu1 }
 0x259   : > { %1286 = vrot.lane.b32.xlu0 %v1176_v47, %s15093_s12 }
 0x25b   : > { %1284 = vrot.lane.b32.xlu1 %v1173_v26, %s15093_s12 }
 0x25c   : > { %v13266_v12 = vpop.f32.mrb[60].mxu1 }
 0x25d   : > { %1290 = vrot.lane.b32.xlu0 %v13263_v8, %s15093_s12  ;;  %v1189_v51 = vpop.f32.mrb[61].mxu1 }
 0x25e   : > { %v13267_v57 = vpop.f32.mrb[62].mxu1 }
 0x25f   : > { %1288 = vrot.lane.b32.xlu1 %v13262_v30, %s15093_s12  ;;  %v1192_v56 = vpop.f32.mrb[63].mxu1  ;;  %v15919_v30 = vld [vmem:[%s19380_s3 + $0x30] sm:$0xff]  }
 0x261   : > { %1294 = vrot.lane.b32.xlu0 %v1192_v56, %s15093_s12 }
 0x263   : > { %1292 = vrot.lane.b32.xlu1 %v1189_v51, %s15093_s12 }
 0x264   : > { %v13272_v10 = vpop.f32.mrb[0].mxu1 }
 0x265   : > { %1298 = vrot.lane.b32.xlu0 %v13267_v57, %s15093_s12  ;;  %v1468_v43 = vpop.f32.mrb[1].mxu1 }
 0x266   : > { %v13273_v26 = vpop.f32.mrb[2].mxu1 }
 0x267   : > { %1296 = vrot.lane.b32.xlu1 %v13266_v12, %s15093_s12  ;;  %v1471_v8 = vpop.f32.mrb[3].mxu1  ;;  %v14863_v12 = vld [vmem:[%s19380_s3 + $0x30] ss:$0 sps:$4 sm:$0x33]  }
 0x269   : > { %2797 = vrot.lane.b32.xlu0 %v14860_v35, %s15094_s19 }
 0x26b   : > { %1737 = vrot.lane.b32.xlu1 %v15877_v44, %s15094_s19 }
 0x26c   : > { %v15921_v47 = vpop.f32.mrb[4].mxu1 }
 0x26d   : > { %v1484_v51 = vpop.f32.mrb[5].mxu1 }
 0x26e   : > { %v13277_v57 = vpop.f32.mrb[6].mxu1 }
 0x26f   : > { %v1487_v56 = vpop.f32.mrb[7].mxu1  ;;  %2937 = vrot.lane.b32.xlu1 %v15919_v30, %s15093_s12 }
 0x273   : > { %3084 = vrot.lane.b32.xlu1 %v14863_v12, %s15092_s5 }
 0x274   : > { %v15929_v44 = vpop.f32.mrb[8].mxu1 }
 0x275   : > { %v15931_v35 = vpop.f32.mrb[9].mxu1 }
 0x276   : > { %v15933_v28 = vpop.f32.mrb[10].mxu1 }
 0x277   : > { %v15935_v21 = vpop.f32.mrb[11].mxu1 }
 0x27c   : > { %v15937_v18 = vpop.f32.mrb[12].mxu1 }
 0x27d   : > { %v15939_v2 = vpop.f32.mrb[13].mxu1 }
 0x27e   : > { %v15941_v59 = vpop.f32.mrb[14].mxu1 }
 0x27f   : > { %v15943_v34 = vpop.f32.mrb[15].mxu1 }
 0x284   : > { %v15945_v33 = vpop.f32.mrb[16].mxu1 }
 0x285   : > { %v15947_v40 = vpop.f32.mrb[17].mxu1 }
 0x286   : > { %v15949_v12 = vpop.f32.mrb[18].mxu1 }
 0x287   : > { %v15951_v16 = vpop.f32.mrb[19].mxu1 }
 0x28c   : > { %v15953_v0 = vpop.f32.mrb[20].mxu1 }
 0x28d   : > { %v15955_v1 = vpop.f32.mrb[21].mxu1 }
 0x28e   : > { %v15957_v60 = vpop.f32.mrb[22].mxu1 }
 0x28f   : > { %v15959_v58 = vpop.f32.mrb[23].mxu1 }
 0x294   : > { %v15961_v61 = vpop.f32.mrb[24].mxu1 }
 0x295   : > { %v15963_v38 = vpop.f32.mrb[25].mxu1 }
 0x296   : > { %v15965_v32 = vpop.f32.mrb[26].mxu1 }
 0x297   : > { %v1241_v31 = vpop.permute.xlu0 %1240  ;;  %v15967_v24 = vpop.f32.mrb[27].mxu1 }
 0x298   : > { %v14384_v5 = vadd.f32 %v13272_v10, %v1241_v31 }
 0x299   : > { %v1243_v23 = vpop.permute.xlu1 %1242 }
 0x29a   : > { %v14386_v45 = vadd.f32 %v13273_v26, %v1243_v23 }
 0x29b   : > { %v1237_v13 = vpop.permute.xlu0 %1236 }
 0x29c   : > { %v15969_v11 = vpop.f32.mrb[28].mxu1  ;;  %v14385_v39 = vadd.f32 %v1468_v43, %v1237_v13 }
 0x29d   : > { %v1239_v7 = vpop.permute.xlu1 %1238  ;;  %v15971_v6 = vpop.f32.mrb[29].mxu1 }
 0x29e   : > { %v15973_v63 = vpop.f32.mrb[30].mxu1  ;;  %v14387_v37 = vadd.f32 %v1471_v8, %v1239_v7 }
 0x29f   : > { %v1734_v46 = vpop.permute.xlu0 %1733  ;;  %v15978_v3 = vpop.f32.mrb[31].mxu1 }
 0x2a0   : > { %13304 = vmatprep.subr.bf16.mxu0 %v1734_v46 }
 0x2a1   : > { %v15980_v29 = vpop.permute.xlu1 %1634  ;;  %13305 = vmatpush3.bf16.msra.mxu0 %v1734_v46 }
 0x2a2   : > { %v1637_v27 = vadd.f32 %v14385_v39, %v15980_v29  ;;  %v1638_v20 = vadd.f32 %v14387_v37, %v15980_v29  ;;  %v1639_v15 = vadd.f32 %v14384_v5, %v15980_v29  ;;  %v1640_v14 = vadd.f32 %v14386_v45, %v15980_v29  ;;  %13338 = vmatprep.subr.bf16.mxu0 %v14861_v62 }
 0x2a3   : > { %v1247_v25 = vpop.permute.xlu0 %1246 }
 0x2a4   : > { %v14391_v36 = vadd.f32 %v1487_v56, %v1247_v25  ;;  %v1669_v55 = vmax.f32 %v1637_v27, 0.0  ;;  %v1670_v31 = vmax.f32 %v1638_v20, 0.0  ;;  %v1671_v23 = vmax.f32 %v1639_v15, 0.0 }
 0x2a5   : > { %v1245_v13 = vpop.permute.xlu1 %1244  ;;  %v1672_v7 = vmax.f32 %v1640_v14, 0.0 }
 0x2a6   : > { %v1642_v10 = vadd.f32 %v14391_v36, %v15980_v29  ;;  %v14389_v46 = vadd.f32 %v1484_v51, %v1245_v13  ;;  %v1705_v43 = vpack.c.bf16 %v1670_v31, %v1669_v55 }
 0x2a7   : > { %v1251_v39 = vpop.permute.xlu0 %1250  ;;  %v1706_v26 = vpack.c.bf16 %v1672_v7, %v1671_v23 }
 0x2a8   : > { %v1641_v37 = vadd.f32 %v14389_v46, %v15980_v29  ;;  %v14390_v5 = vadd.f32 %v13277_v57, %v1251_v39  ;;  %13306 = vmatprep.mubr.msk.bf16.mxu0 %vm19570_vm15, %v1705_v43  ;;  %v1674_v27 = vmax.f32 %v1642_v10, 0.0 }
 0x2a9   : > { %v1249_v45 = vpop.permute.xlu1 %1248  ;;  %13307 = vmatmul.mubr.msk.bf16.vlgmr.msra.gmra.mrb[16].mxu0 %vm19570_vm15, %v1706_v26 }
 0x2aa   : > { %v1673_v20 = vmax.f32 %v1641_v37, 0.0  ;;  %v1644_v15 = vadd.f32 %v14390_v5, %v15980_v29  ;;  %v14388_v14 = vadd.f32 %v15921_v47, %v1249_v45  ;;  %13339 = vmatpush3.bf16.msra.mxu0 %v14861_v62 }
 0x2ab   : > { %v1255_v36 = vpop.permute.xlu0 %1254 }
 0x2ac   : > { %v1707_v25 = vpack.c.bf16 %v1674_v27, %v1673_v20  ;;  %v1643_v55 = vadd.f32 %v14388_v14, %v15980_v29  ;;  %v14395_v8 = vadd.f32 %v15935_v21, %v1255_v36  ;;  %v1676_v57 = vmax.f32 %v1644_v15, 0.0 }
 0x2ad   : > { %v1253_v51 = vpop.permute.xlu1 %1252 }
 0x2ae   : > { %v1675_v56 = vmax.f32 %v1643_v55, 0.0  ;;  %v1646_v31 = vadd.f32 %v14395_v8, %v15980_v29  ;;  %v14393_v23 = vadd.f32 %v15931_v35, %v1253_v51  ;;  %13310 = vmatprep.mubr.msk.bf16.mxu0 %vm19570_vm15, %v1707_v25 }
 0x2af   : > { %v1259_v13 = vpop.permute.xlu0 %1258 }
 0x2b0   : > { %v1708_v7 = vpack.c.bf16 %v1676_v57, %v1675_v56  ;;  %v1645_v47 = vadd.f32 %v14393_v23, %v15980_v29  ;;  %v14394_v62 = vadd.f32 %v15933_v28, %v1259_v13  ;;  %v1678_v46 = vmax.f32 %v1646_v31, 0.0 }
 0x2b1   : > { %v1257_v10 = vpop.permute.xlu1 %1256 }
 0x2b2   : > { %v1677_v43 = vmax.f32 %v1645_v47, 0.0  ;;  %v1648_v21 = vadd.f32 %v14394_v62, %v15980_v29  ;;  %v14392_v39 = vadd.f32 %v15929_v44, %v1257_v10  ;;  %13311 = vmatmul.mubr.msk.bf16.gmra.mrb[20].mxu0 %vm19570_vm15, %v1708_v7 }
 0x2b3   : > { %v1263_v26 = vpop.permute.xlu0 %1262 }
 0x2b4   : > { %v1709_v37 = vpack.c.bf16 %v1678_v46, %v1677_v43  ;;  %v1647_v35 = vadd.f32 %v14392_v39, %v15980_v29  ;;  %v14399_v5 = vadd.f32 %v15943_v34, %v1263_v26  ;;  %v1680_v27 = vmax.f32 %v1648_v21, 0.0 }
 0x2b5   : > { %v1261_v45 = vpop.permute.xlu1 %1260 }
 0x2b6   : > { %v1679_v20 = vmax.f32 %v1647_v35, 0.0  ;;  %v1650_v28 = vadd.f32 %v14399_v5, %v15980_v29  ;;  %v14397_v15 = vadd.f32 %v15939_v2, %v1261_v45  ;;  %13314 = vmatprep.mubr.msk.bf16.mxu0 %vm19570_vm15, %v1709_v37 }
 0x2b7   : > { %v1267_v14 = vpop.permute.xlu0 %1266 }
 0x2b8   : > { %v1710_v36 = vpack.c.bf16 %v1680_v27, %v1679_v20  ;;  %v1649_v44 = vadd.f32 %v14397_v15, %v15980_v29  ;;  %v14398_v25 = vadd.f32 %v15941_v59, %v1267_v14  ;;  %v1682_v8 = vmax.f32 %v1650_v28, 0.0 }
 0x2b9   : > { %v1265_v55 = vpop.permute.xlu1 %1264 }
 0x2ba   : > { %v1681_v51 = vmax.f32 %v1649_v44, 0.0  ;;  %v1652_v34 = vadd.f32 %v14398_v25, %v15980_v29  ;;  %v14396_v57 = vadd.f32 %v15937_v18, %v1265_v55  ;;  %13315 = vmatmul.mubr.msk.bf16.gmra.mrb[24].mxu0 %vm19570_vm15, %v1710_v36 }
 0x2bb   : > { %v1271_v56 = vpop.permute.xlu0 %1270 }
 0x2bc   : > { %v1711_v31 = vpack.c.bf16 %v1682_v8, %v1681_v51  ;;  %v1651_v2 = vadd.f32 %v14396_v57, %v15980_v29  ;;  %v14403_v23 = vadd.f32 %v15951_v16, %v1271_v56  ;;  %v1684_v7 = vmax.f32 %v1652_v34, 0.0 }
 0x2bd   : > { %v1269_v13 = vpop.permute.xlu1 %1268 }
 0x2be   : > { %v1683_v47 = vmax.f32 %v1651_v2, 0.0  ;;  %v1654_v59 = vadd.f32 %v14403_v23, %v15980_v29  ;;  %v14401_v62 = vadd.f32 %v15947_v40, %v1269_v13  ;;  %13318 = vmatprep.mubr.msk.bf16.mxu0 %vm19570_vm15, %v1711_v31 }
 0x2bf   : > { %v1275_v10 = vpop.permute.xlu0 %1274 }
 0x2c0   : > { %v1712_v46 = vpack.c.bf16 %v1684_v7, %v1683_v47  ;;  %v1653_v18 = vadd.f32 %v14401_v62, %v15980_v29  ;;  %v14402_v43 = vadd.f32 %v15949_v12, %v1275_v10  ;;  %v1686_v39 = vmax.f32 %v1654_v59, 0.0 }
 0x2c1   : > { %v1273_v21 = vpop.permute.xlu1 %1272 }
 0x2c2   : > { %v1685_v26 = vmax.f32 %v1653_v18, 0.0  ;;  %v1656_v16 = vadd.f32 %v14402_v43, %v15980_v29  ;;  %v14400_v37 = vadd.f32 %v15945_v33, %v1273_v21  ;;  %13319 = vmatmul.mubr.msk.bf16.gmra.mrb[28].mxu0 %vm19570_vm15, %v1712_v46 }
 0x2c3   : > { %v1279_v35 = vpop.permute.xlu0 %1278 }
 0x2c4   : > { %v1713_v5 = vpack.c.bf16 %v1686_v39, %v1685_v26  ;;  %v1655_v40 = vadd.f32 %v14400_v37, %v15980_v29  ;;  %v14407_v45 = vadd.f32 %v15959_v58, %v1279_v35  ;;  %v1688_v20 = vmax.f32 %v1656_v16, 0.0 }
 0x2c5   : > { %v1277_v27 = vpop.permute.xlu1 %1276 }
 0x2c6   : > { %v1687_v28 = vmax.f32 %v1655_v40, 0.0  ;;  %v1658_v12 = vadd.f32 %v14407_v45, %v15980_v29  ;;  %v14405_v15 = vadd.f32 %v15955_v1, %v1277_v27  ;;  %13322 = vmatprep.mubr.msk.bf16.mxu0 %vm19570_vm15, %v1713_v5 }
 0x2c7   : > { %v1283_v14 = vpop.permute.xlu0 %1282 }
 0x2c8   : > { %v1714_v36 = vpack.c.bf16 %v1688_v20, %v1687_v28  ;;  %v1657_v33 = vadd.f32 %v14405_v15, %v15980_v29  ;;  %v14406_v44 = vadd.f32 %v15957_v60, %v1283_v14  ;;  %v1690_v55 = vmax.f32 %v1658_v12, 0.0 }
 0x2c9   : > { %v1281_v25 = vpop.permute.xlu1 %1280 }
 0x2ca   : > { %v1689_v8 = vmax.f32 %v1657_v33, 0.0  ;;  %v1660_v58 = vadd.f32 %v14406_v44, %v15980_v29  ;;  %v14404_v51 = vadd.f32 %v15953_v0, %v1281_v25  ;;  %13323 = vmatmul.mubr.msk.bf16.gmra.mrb[32].mxu0 %vm19570_vm15, %v1714_v36 }
 0x2cb   : > { %v1287_v34 = vpop.permute.xlu0 %1286 }
 0x2cc   : > { %v1715_v57 = vpack.c.bf16 %v1690_v55, %v1689_v8  ;;  %v1659_v1 = vadd.f32 %v14404_v51, %v15980_v29  ;;  %v14411_v56 = vadd.f32 %v15967_v24, %v1287_v34  ;;  %v1692_v2 = vmax.f32 %v1660_v58, 0.0  ;;  %v14865_v8 = vld [vmem:[%s19380_s3 + $0x38] sm:$0xff]  }
 0x2cd   : > { %v1285_v31 = vpop.permute.xlu1 %1284  ;;  %2939 = vrot.lane.b32.xlu0 %v14865_v8, %s15093_s12  ;;  %3300 = vrot.lane.b32.xlu1 %v14865_v8, %s15094_s19 }
 0x2ce   : > { %v1691_v23 = vmax.f32 %v1659_v1, 0.0  ;;  %v1662_v60 = vadd.f32 %v14411_v56, %v15980_v29  ;;  %v14409_v13 = vadd.f32 %v15963_v38, %v1285_v31  ;;  %13326 = vmatprep.mubr.msk.bf16.mxu0 %vm19570_vm15, %v1715_v57 }
 0x2cf   : > { %v1291_v7 = vpop.permute.xlu0 %1290 }
 0x2d0   : > { %v1716_v47 = vpack.c.bf16 %v1692_v2, %v1691_v23  ;;  %v1661_v0 = vadd.f32 %v14409_v13, %v15980_v29  ;;  %v14410_v59 = vadd.f32 %v15965_v32, %v1291_v7  ;;  %v1694_v10 = vmax.f32 %v1662_v60, 0.0 }
 0x2d1   : > { %v1289_v62 = vpop.permute.xlu1 %1288  ;;  %3298 = vrot.lane.b32.xlu0 %v15919_v30, %s15094_s19 }
 0x2d2   : > { %v1693_v46 = vmax.f32 %v1661_v0, 0.0  ;;  %v1664_v24 = vadd.f32 %v14410_v59, %v15980_v29  ;;  %v14408_v18 = vadd.f32 %v15961_v61, %v1289_v62  ;;  %13327 = vmatmul.mubr.msk.bf16.gmra.mrb[36].mxu0 %vm19570_vm15, %v1716_v47 }
 0x2d3   : > { %v1295_v43 = vpop.permute.xlu0 %1294 }
 0x2d4   : > { %v1717_v21 = vpack.c.bf16 %v1694_v10, %v1693_v46  ;;  %v1663_v38 = vadd.f32 %v14408_v18, %v15980_v29  ;;  %v14415_v39 = vadd.f32 %v15978_v3, %v1295_v43  ;;  %v1696_v16 = vmax.f32 %v1664_v24, 0.0 }
 0x2d5   : > { %v1293_v26 = vpop.permute.xlu1 %1292 }
 0x2d6   : > { %v1695_v37 = vmax.f32 %v1663_v38, 0.0  ;;  %v1666_v32 = vadd.f32 %v14415_v39, %v15980_v29  ;;  %v14413_v35 = vadd.f32 %v15971_v6, %v1293_v26  ;;  %13330 = vmatprep.mubr.msk.bf16.mxu0 %vm19570_vm15, %v1717_v21 }
 0x2d7   : > { %v1299_v5 = vpop.permute.xlu0 %1298 }
 0x2d8   : > { %v1718_v40 = vpack.c.bf16 %v1696_v16, %v1695_v37  ;;  %v1665_v61 = vadd.f32 %v14413_v35, %v15980_v29  ;;  %v14414_v45 = vadd.f32 %v15973_v63, %v1299_v5  ;;  %v1698_v20 = vmax.f32 %v1666_v32, 0.0  ;;  %v14864_v63 = vld [vmem:[%s19380_s3 + $0x30] sm:$0xff]  }
 0x2d9   : > { %v1297_v27 = vpop.permute.xlu1 %1296  ;;  %13340 = vmatprep.subr.bf16.mxu0 %v14864_v63 }
 0x2da   : > { %v1697_v28 = vmax.f32 %v1665_v61, 0.0  ;;  %v1668_v3 = vadd.f32 %v14414_v45, %v15980_v29  ;;  %v14412_v12 = vadd.f32 %v15969_v11, %v1297_v27  ;;  %13331 = vmatmul.mubr.msk.bf16.gmra.mrb[40].mxu0 %vm19570_vm15, %v1718_v40  ;;  %v19898_v27 = vld [vmem:[#allocation77_spill] sm:$0xff] }
 0x2db   : > { %13341 = vmatpush3.bf16.msra.mxu0 %v14864_v63  ;;  %v2798_v44 = vpop.permute.xlu0 %2797 }
 0x2dc   : > { %v1719_v15 = vpack.c.bf16 %v1698_v20, %v1697_v28  ;;  %v1667_v6 = vadd.f32 %v14412_v12, %v15980_v29  ;;  %v1700_v14 = vmax.f32 %v1668_v3, 0.0  ;;  %v2800_v11 = vand.u32 %v2798_v44, %v15134_v4 }
 0x2dd   : > { %v16059_v25 = vpop.permute.xlu1 %1737 }
 0x2de   : > { %v1699_v36 = vmax.f32 %v1667_v6, 0.0  ;;  %13334 = vmatprep.mubr.msk.bf16.mxu0 %vm19570_vm15, %v1719_v15  ;;  %13374 = vmatprep.subr.bf16.mxu0 %v2800_v11 }
 0x2e0   : > { %v1720_v33 = vpack.c.bf16 %v1700_v14, %v1699_v36 }
 0x2e1   : > { %v16061_v29 = vpop.permute.xlu1 %2937 }
 0x2e2   : > { %13335 = vmatmul.mubr.msk.bf16.gmra.mrb[44].mxu0 %vm19570_vm15, %v1720_v33  ;;  %vm19893_vm15 = vmmov %vm19892_vm0 }
 0x2e5   : > { %v3085_v55 = vpop.permute.xlu1 %3084 }
 0x2e6   : > { %14641 = vmatprep.subr.msk.bf16.mxu1 %vm19892_vm0, %v3085_v55  ;;  %v3087_v58 = vsel %vm19893_vm15, %v3085_v55, 0  ;;  %vm19894_vm15 = vcmask 261120   ;;  %v19900_v55 = vld [vmem:[#allocation78_spill] sm:$0xff] }
 0x2e7   : > { %13413 = vmatpush3.bf16.msra.mxu1 %v3087_v58  ;;  %vm19895_vm0 = vmmov %vm19894_vm15 }
 0x2e8   : > { %vm19906_vm4 = vmmov %vm19895_vm0 }
 0x2ea   : > { %13415 = vmatmul.mubr.msk.bf16.vlgmr.msra.gmra.mrb[64].mxu1 %vm19571_vm13, %v15775_v22 }
 0x2eb   : > { %13418 = vmatprep.mubr.msk.bf16.mxu1 %vm19571_vm13, %v15777_v53 }
 0x2f2   : > { %13419 = vmatmul.mubr.msk.bf16.gmra.mrb[68].mxu1 %vm19571_vm13, %v15787_v17 }
 0x2f3   : > { %13422 = vmatprep.mubr.msk.bf16.mxu1 %vm19571_vm13, %v15789_v54 }
 0x2fa   : > { %13423 = vmatmul.mubr.msk.bf16.gmra.mrb[72].mxu1 %vm19571_vm13, %v15799_v9 }
 0x2fb   : > { %13426 = vmatprep.mubr.msk.bf16.mxu1 %vm19571_vm13, %v15801_v52 }
 0x302   : > { %13427 = vmatmul.mubr.msk.bf16.gmra.mrb[76].mxu1 %vm19571_vm13, %v15811_v50 }
 0x303   : > { %13430 = vmatprep.mubr.msk.bf16.mxu1 %vm19571_vm13, %v15813_v41 }
 0x30a   : > { %13431 = vmatmul.mubr.msk.bf16.gmra.mrb[80].mxu1 %vm19571_vm13, %v15823_v49 }
 0x30b   : > { %13434 = vmatprep.mubr.msk.bf16.mxu1 %vm19571_vm13, %v15825_v19 }
 0x312   : > { %13435 = vmatmul.mubr.msk.bf16.gmra.mrb[84].mxu1 %vm19571_vm13, %v15835_v48 }
 0x313   : > { %13438 = vmatprep.mubr.msk.bf16.mxu1 %vm19571_vm13, %v15837_v42  ;;  %v19897_v42 = vld [vmem:[#allocation76_spill] sm:$0xff] }
 0x31a   : > { %13439 = vmatmul.mubr.msk.bf16.gmra.mrb[88].mxu1 %vm19571_vm13, %v19897_v42 }
 0x31b   : > { %13442 = vmatprep.mubr.msk.bf16.mxu1 %vm19571_vm13, %v19898_v27 }
 0x322   : > { %13443 = vmatmul.mubr.msk.bf16.gmra.mrb[92].mxu1 %vm19571_vm13, %v19900_v55  ;;  %vm19905_vm13 = vmmov %vm19895_vm0  ;;  %v19921_v55 = vld [vmem:[#allocation10_spill] sm:$0xff] }
 0x37c   : > { %v13308_v4 = vpop.f32.mrb[16].mxu0 }
 0x37d   : > { %v1832_v22 = vadd.f32 %v13308_v4, %v16059_v25  ;;  %v1823_v51 = vpop.f32.mrb[17].mxu0 }
 0x37e   : > { %v1824_v53 = vadd.f32 %v1823_v51, %v16059_v25  ;;  %v13309_v30 = vpop.f32.mrb[18].mxu0 }
 0x37f   : > { %v1835_v17 = vadd.f32 %v13309_v30, %v16059_v25  ;;  %v1826_v54 = vpop.f32.mrb[19].mxu0  ;;  %v1952_v34 = vmax.f32 %v1832_v22, 0.0 }
 0x380   : > { %v1827_v9 = vadd.f32 %v1826_v54, %v16059_v25  ;;  %v1950_v57 = vmax.f32 %v1824_v53, 0.0 }
 0x381   : > { %v1953_v52 = vmax.f32 %v1835_v17, 0.0 }
 0x382   : > { %v1951_v1 = vmax.f32 %v1827_v9, 0.0 }
 0x383   : > { %v1987_v56 = vpack.c.bf16 %v1953_v52, %v1952_v34 }
 0x384   : > { %v1986_v31 = vpack.c.bf16 %v1951_v1, %v1950_v57 }
 0x385   : > { %v13312_v2 = vpop.f32.mrb[20].mxu0 }
 0x386   : > { %v1848_v50 = vadd.f32 %v13312_v2, %v16059_v25  ;;  %v1839_v23 = vpop.f32.mrb[21].mxu0  ;;  %13342 = vmatprep.mubr.msk.bf16.mxu0 %vm19894_vm15, %v1986_v31  ;;  %vm19896_vm15 = vmmov %vm19895_vm0 }
 0x387   : > { %v1840_v41 = vadd.f32 %v1839_v23, %v16059_v25  ;;  %v13313_v60 = vpop.f32.mrb[22].mxu0  ;;  %13343 = vmatmul.mubr.msk.bf16.vlgmr.msra.gmra.mrb[48].mxu0 %vm19895_vm0, %v1987_v56 }
 0x388   : > { %v1851_v13 = vadd.f32 %v13313_v60, %v16059_v25  ;;  %v1842_v7 = vpop.f32.mrb[23].mxu0  ;;  %13375 = vmatpush3.bf16.msra.mxu0 %v2800_v11  ;;  %v1956_v49 = vmax.f32 %v1848_v50, 0.0 }
 0x389   : > { %v1843_v47 = vadd.f32 %v1842_v7, %v16059_v25  ;;  %13392 = vmatprep.subr.bf16.mxu0 %v16061_v29  ;;  %v1954_v59 = vmax.f32 %v1840_v41, 0.0 }
 0x38a   : > { %v1957_v0 = vmax.f32 %v1851_v13, 0.0 }
 0x38b   : > { %v1955_v62 = vmax.f32 %v1843_v47, 0.0 }
 0x38c   : > { %v1989_v10 = vpack.c.bf16 %v1957_v0, %v1956_v49 }
 0x38d   : > { %v1988_v46 = vpack.c.bf16 %v1955_v62, %v1954_v59  ;;  %v13316_v19 = vpop.f32.mrb[24].mxu0 }
 0x38e   : > { %v1864_v24 = vadd.f32 %v13316_v19, %v16059_v25  ;;  %v1855_v18 = vpop.f32.mrb[25].mxu0 }
 0x38f   : > { %v1856_v43 = vadd.f32 %v1855_v18, %v16059_v25  ;;  %v13317_v21 = vpop.f32.mrb[26].mxu0  ;;  %13346 = vmatprep.mubr.msk.bf16.mxu0 %vm19896_vm15, %v1988_v46  ;;  %vm19899_vm15 = vmmov %vm19895_vm0 }
 0x390   : > { %v1867_v38 = vadd.f32 %v13317_v21, %v16059_v25  ;;  %v1858_v39 = vpop.f32.mrb[27].mxu0  ;;  %13347 = vmatmul.mubr.msk.bf16.gmra.mrb[52].mxu0 %vm19895_vm0, %v1989_v10  ;;  %v1960_v16 = vmax.f32 %v1864_v24, 0.0 }
 0x391   : > { %v1859_v26 = vadd.f32 %v1858_v39, %v16059_v25  ;;  %v1958_v37 = vmax.f32 %v1856_v43, 0.0 }
 0x392   : > { %v1961_v48 = vmax.f32 %v1867_v38, 0.0 }
 0x393   : > { %v1959_v32 = vmax.f32 %v1859_v26, 0.0 }
 0x394   : > { %v1991_v35 = vpack.c.bf16 %v1961_v48, %v1960_v16 }
 0x395   : > { %v1990_v5 = vpack.c.bf16 %v1959_v32, %v1958_v37  ;;  %v13320_v40 = vpop.f32.mrb[28].mxu0 }
 0x396   : > { %v1880_v61 = vadd.f32 %v13320_v40, %v16059_v25  ;;  %v1871_v45 = vpop.f32.mrb[29].mxu0 }
 0x397   : > { %v1872_v20 = vadd.f32 %v1871_v45, %v16059_v25  ;;  %v13321_v28 = vpop.f32.mrb[30].mxu0  ;;  %13350 = vmatprep.mubr.msk.bf16.mxu0 %vm19899_vm15, %v1990_v5  ;;  %vm19901_vm15 = vmmov %vm19895_vm0 }
 0x398   : > { %v1883_v3 = vadd.f32 %v13321_v28, %v16059_v25  ;;  %v1874_v12 = vpop.f32.mrb[31].mxu0  ;;  %13351 = vmatmul.mubr.msk.bf16.gmra.mrb[56].mxu0 %vm19895_vm0, %v1991_v35  ;;  %v1964_v6 = vmax.f32 %v1880_v61, 0.0 }
 0x399   : > { %v1875_v15 = vadd.f32 %v1874_v12, %v16059_v25  ;;  %v1962_v36 = vmax.f32 %v1872_v20, 0.0 }
 0x39a   : > { %v1965_v14 = vmax.f32 %v1883_v3, 0.0 }
 0x39b   : > { %v1963_v33 = vmax.f32 %v1875_v15, 0.0 }
 0x39c   : > { %v1993_v63 = vpack.c.bf16 %v1965_v14, %v1964_v6  ;;  %v19907_v14 = vld [vmem:[#allocation3_spill] sm:$0xff] }
 0x39d   : > { %v1992_v44 = vpack.c.bf16 %v1963_v33, %v1962_v36  ;;  %v13324_v11 = vpop.f32.mrb[32].mxu0  ;;  %v19909_v36 = vld [vmem:[#allocation4_spill] sm:$0xff]  ;;  %v19911_v33 = vld [vmem:[#allocation5_spill] sm:$0xff] }
 0x39e   : > { %v1896_v8 = vadd.f32 %v13324_v11, %v16059_v25  ;;  %v1887_v58 = vpop.f32.mrb[33].mxu0  ;;  %v19919_v11 = vld [vmem:[#allocation9_spill] sm:$0xff] }
 0x39f   : > { %v1888_v4 = vadd.f32 %v1887_v58, %v16059_v25  ;;  %v13325_v22 = vpop.f32.mrb[34].mxu0  ;;  %13354 = vmatprep.mubr.msk.bf16.mxu0 %vm19901_vm15, %v1992_v44  ;;  %vm19902_vm15 = vmmov %vm19895_vm0  ;;  %v19917_v44 = vld [vmem:[#allocation8_spill] sm:$0xff] }
 0x3a0   : > { %v1899_v51 = vadd.f32 %v13325_v22, %v16059_v25  ;;  %v1890_v53 = vpop.f32.mrb[35].mxu0  ;;  %13355 = vmatmul.mubr.msk.bf16.gmra.mrb[60].mxu0 %vm19895_vm0, %v1993_v63  ;;  %v1968_v17 = vmax.f32 %v1896_v8, 0.0  ;;  %v19915_v63 = vld [vmem:[#allocation7_spill] sm:$0xff]  ;;  %v2940_v8 = vpop.permute.xlu0 %2939 }
 0x3a1   : > { %v1891_v30 = vadd.f32 %v1890_v53, %v16059_v25  ;;  %v1966_v9 = vmax.f32 %v1888_v4, 0.0 }
 0x3a2   : > { %v1969_v54 = vmax.f32 %v1899_v51, 0.0 }
 0x3a3   : > { %v1967_v34 = vmax.f32 %v1891_v30, 0.0 }
 0x3a4   : > { %v1995_v52 = vpack.c.bf16 %v1969_v54, %v1968_v17  ;;  %v16168_v58 = vpop.permute.xlu0 %3298 }
 0x3a5   : > { %v1994_v57 = vpack.c.bf16 %v1967_v34, %v1966_v9  ;;  %v13328_v1 = vpop.f32.mrb[36].mxu0 }
 0x3a6   : > { %v1912_v56 = vadd.f32 %v13328_v1, %v16059_v25  ;;  %v1903_v31 = vpop.f32.mrb[37].mxu0 }
 0x3a7   : > { %v1904_v2 = vadd.f32 %v1903_v31, %v16059_v25  ;;  %v13329_v50 = vpop.f32.mrb[38].mxu0  ;;  %13358 = vmatprep.mubr.msk.bf16.mxu0 %vm19902_vm15, %v1994_v57  ;;  %vm19903_vm15 = vmmov %vm19895_vm0 }
 0x3a8   : > { %v1915_v23 = vadd.f32 %v13329_v50, %v16059_v25  ;;  %v1906_v41 = vpop.f32.mrb[39].mxu0  ;;  %13359 = vmatmul.mubr.msk.bf16.gmra.mrb[64].mxu0 %vm19895_vm0, %v1995_v52  ;;  %v1972_v13 = vmax.f32 %v1912_v56, 0.0 }
 0x3a9   : > { %v1907_v60 = vadd.f32 %v1906_v41, %v16059_v25  ;;  %v1970_v47 = vmax.f32 %v1904_v2, 0.0 }
 0x3aa   : > { %v1973_v7 = vmax.f32 %v1915_v23, 0.0 }
 0x3ab   : > { %v1971_v49 = vmax.f32 %v1907_v60, 0.0 }
 0x3ac   : > { %v1997_v0 = vpack.c.bf16 %v1973_v7, %v1972_v13 }
 0x3ad   : > { %v1996_v59 = vpack.c.bf16 %v1971_v49, %v1970_v47  ;;  %v13332_v62 = vpop.f32.mrb[40].mxu0 }
 0x3ae   : > { %v1928_v10 = vadd.f32 %v13332_v62, %v16059_v25  ;;  %v1919_v46 = vpop.f32.mrb[41].mxu0 }
 0x3af   : > { %v1920_v19 = vadd.f32 %v1919_v46, %v16059_v25  ;;  %v13333_v24 = vpop.f32.mrb[42].mxu0  ;;  %13362 = vmatprep.mubr.msk.bf16.mxu0 %vm19903_vm15, %v1996_v59  ;;  %vm19904_vm15 = vmmov %vm19895_vm0 }
 0x3b0   : > { %v1931_v18 = vadd.f32 %v13333_v24, %v16059_v25  ;;  %v1922_v43 = vpop.f32.mrb[43].mxu0  ;;  %13363 = vmatmul.mubr.msk.bf16.gmra.mrb[68].mxu0 %vm19895_vm0, %v1997_v0  ;;  %v1976_v38 = vmax.f32 %v1928_v10, 0.0 }
 0x3b1   : > { %v1923_v21 = vadd.f32 %v1922_v43, %v16059_v25  ;;  %v1974_v26 = vmax.f32 %v1920_v19, 0.0 }
 0x3b2   : > { %v1977_v39 = vmax.f32 %v1931_v18, 0.0 }
 0x3b3   : > { %v1975_v16 = vmax.f32 %v1923_v21, 0.0 }
 0x3b4   : > { %v1999_v48 = vpack.c.bf16 %v1977_v39, %v1976_v38 }
 0x3b5   : > { %v1998_v37 = vpack.c.bf16 %v1975_v16, %v1974_v26  ;;  %v13336_v32 = vpop.f32.mrb[44].mxu0 }
 0x3b6   : > { %v1944_v35 = vadd.f32 %v13336_v32, %v16059_v25  ;;  %v1935_v5 = vpop.f32.mrb[45].mxu0 }
 0x3b7   : > { %v1936_v40 = vadd.f32 %v1935_v5, %v16059_v25  ;;  %v13337_v42 = vpop.f32.mrb[46].mxu0  ;;  %13366 = vmatprep.mubr.msk.bf16.mxu0 %vm19904_vm15, %v1998_v37  ;;  %vm19910_vm15 = vmmov %vm19908_vm2 }
 0x3b8   : > { %v1947_v61 = vadd.f32 %v13337_v42, %v16059_v25  ;;  %v1938_v45 = vpop.f32.mrb[47].mxu0  ;;  %13367 = vmatmul.mubr.msk.bf16.gmra.mrb[72].mxu0 %vm19895_vm0, %v1999_v48  ;;  %v1980_v20 = vmax.f32 %v1944_v35, 0.0  ;;  %vm19912_vm0 = vmmov %vm19908_vm2 }
 0x3b9   : > { %v1939_v27 = vadd.f32 %v1938_v45, %v16059_v25  ;;  %v1978_v3 = vmax.f32 %v1936_v40, 0.0  ;;  %v19913_v25 = vld [vmem:[#allocation6_spill] sm:$0xff]  ;;  %vm19914_vm3 = vmmov %vm19912_vm0 }
 0x3ba   : > { %v1981_v28 = vmax.f32 %v1947_v61, 0.0  ;;  %vm19916_vm7 = vmmov %vm19912_vm0 }
 0x3bb   : > { %v1979_v12 = vmax.f32 %v1939_v27, 0.0 }
 0x3bc   : > { %v2001_v15 = vpack.c.bf16 %v1981_v28, %v1980_v20 }
 0x3bd   : > { %v2000_v6 = vpack.c.bf16 %v1979_v12, %v1978_v3 }
 0x3bf   : > { %13370 = vmatprep.mubr.msk.bf16.mxu0 %vm19905_vm13, %v2000_v6  ;;  %vm19918_vm13 = vmmov %vm19912_vm0 }
 0x3c0   : > { %13371 = vmatmul.mubr.msk.bf16.gmra.mrb[76].mxu0 %vm19906_vm4, %v2001_v15  ;;  %vm19920_vm4 = vmmov %vm19912_vm0 }
 0x3c1   : > { %13376 = vmatprep.mubr.msk.bf16.mxu0 %vm19908_vm2, %v19907_v14  ;;  %vm19922_vm2 = vmmov %vm19912_vm0 }
 0x3c8   : > { %13377 = vmatmul.mubr.msk.bf16.vlgmr.msra.gmra.mrb[80].mxu0 %vm19910_vm15, %v19909_v36 }
 0x3c9   : > { %13380 = vmatprep.mubr.msk.bf16.mxu0 %vm19912_vm0, %v19911_v33  ;;  %13393 = vmatpush3.bf16.msra.mxu0 %v16061_v29  ;;  %v13416_v29 = vpop.f32.mrb[64].mxu1 }
 0x3ca   : > { %13394 = vmatprep.subr.bf16.mxu0 %v2940_v8  ;;  %v3252_v4 = vmax.f32 %v13416_v29, 0.0  ;;  %v3123_v22 = vpop.f32.mrb[65].mxu1 }
 0x3cb   : > { %v3250_v51 = vmax.f32 %v3123_v22, 0.0  ;;  %v13417_v53 = vpop.f32.mrb[66].mxu1 }
 0x3cc   : > { %v3253_v30 = vmax.f32 %v13417_v53, 0.0  ;;  %v3126_v17 = vpop.f32.mrb[67].mxu1 }
 0x3cd   : > { %13395 = vmatpush3.bf16.msra.mxu0 %v2940_v8  ;;  %v3251_v54 = vmax.f32 %v3126_v17, 0.0  ;;  %v13420_v34 = vpop.f32.mrb[68].mxu1 }
 0x3ce   : > { %13446 = vmatprep.subr.bf16.mxu0 %v16168_v58  ;;  %v16171_v9 = vpack.c.bf16 %v3253_v30, %v3252_v4  ;;  %v3139_v57 = vpop.f32.mrb[69].mxu1  ;;  %v3256_v1 = vmax.f32 %v13420_v34, 0.0 }
 0x3cf   : > { %v16173_v52 = vpack.c.bf16 %v3251_v54, %v3250_v51  ;;  %v3254_v56 = vmax.f32 %v3139_v57, 0.0  ;;  %v13421_v31 = vpop.f32.mrb[70].mxu1 }
 0x3d0   : > { %13381 = vmatmul.mubr.msk.bf16.gmra.mrb[84].mxu0 %vm19914_vm3, %v19913_v25  ;;  %v3257_v2 = vmax.f32 %v13421_v31, 0.0  ;;  %v3142_v50 = vpop.f32.mrb[71].mxu1 }
 0x3d1   : > { %13384 = vmatprep.mubr.msk.bf16.mxu0 %vm19916_vm7, %v19915_v63  ;;  %v3255_v23 = vmax.f32 %v3142_v50, 0.0  ;;  %v13424_v13 = vpop.f32.mrb[72].mxu1  ;;  %vm19941_vm7 = vcmask 261120  }
 0x3d2   : > { %v16175_v41 = vpack.c.bf16 %v3257_v2, %v3256_v1  ;;  %v3155_v7 = vpop.f32.mrb[73].mxu1  ;;  %v3260_v47 = vmax.f32 %v13424_v13, 0.0  ;;  %vm19942_vm3 = vmmov %vm19941_vm7 }
 0x3d3   : > { %v16177_v60 = vpack.c.bf16 %v3255_v23, %v3254_v56  ;;  %v3258_v49 = vmax.f32 %v3155_v7, 0.0  ;;  %v13425_v0 = vpop.f32.mrb[74].mxu1  ;;  %vm19943_vm15 = vmmov %vm19942_vm3 }
 0x3d4   : > { %v3261_v59 = vmax.f32 %v13425_v0, 0.0  ;;  %v3158_v62 = vpop.f32.mrb[75].mxu1  ;;  %vm19944_vm0 = vmmov %vm19942_vm3 }
 0x3d5   : > { %v3259_v10 = vmax.f32 %v3158_v62, 0.0  ;;  %v13428_v24 = vpop.f32.mrb[76].mxu1  ;;  %vm19953_vm14 = vmmov %vm19944_vm0 }
 0x3d6   : > { %v16179_v46 = vpack.c.bf16 %v3261_v59, %v3260_v47  ;;  %v3171_v18 = vpop.f32.mrb[77].mxu1  ;;  %v3264_v43 = vmax.f32 %v13428_v24, 0.0 }
 0x3d7   : > { %v16181_v19 = vpack.c.bf16 %v3259_v10, %v3258_v49  ;;  %v3262_v21 = vmax.f32 %v3171_v18, 0.0  ;;  %v13429_v38 = vpop.f32.mrb[78].mxu1 }
 0x3d8   : > { %13385 = vmatmul.mubr.msk.bf16.gmra.mrb[88].mxu0 %vm19918_vm13, %v19917_v44  ;;  %v3265_v39 = vmax.f32 %v13429_v38, 0.0  ;;  %v3174_v26 = vpop.f32.mrb[79].mxu1  ;;  %vm19945_vm13 = vmmov %vm19944_vm0 }
 0x3d9   : > { %13388 = vmatprep.mubr.msk.bf16.mxu0 %vm19920_vm4, %v19919_v11  ;;  %v3263_v16 = vmax.f32 %v3174_v26, 0.0  ;;  %vm19946_vm4 = vmmov %vm19944_vm0 }
 0x3da   : > { %v16183_v48 = vpack.c.bf16 %v3265_v39, %v3264_v43 }
 0x3db   : > { %v16185_v37 = vpack.c.bf16 %v3263_v16, %v3262_v21 }
 0x3dd   : > { %v13432_v32 = vpop.f32.mrb[80].mxu1 }
 0x3de   : > { %v3187_v35 = vpop.f32.mrb[81].mxu1  ;;  %v3268_v42 = vmax.f32 %v13432_v32, 0.0 }
 0x3df   : > { %v3266_v45 = vmax.f32 %v3187_v35, 0.0  ;;  %v13433_v27 = vpop.f32.mrb[82].mxu1 }
 0x3e0   : > { %13389 = vmatmul.mubr.msk.bf16.gmra.mrb[92].mxu0 %vm19922_vm2, %v19921_v55  ;;  %v3269_v28 = vmax.f32 %v13433_v27, 0.0  ;;  %v3190_v3 = vpop.f32.mrb[83].mxu1  ;;  %v3545_v27 = vld [vmem:[%s19380_s3 + $0x8] sm:$0x7]  ;;  %vm19947_vm2 = vmmov %vm19944_vm0 }
 0x3e1   : > { %v3267_v12 = vmax.f32 %v3190_v3, 0.0  ;;  %v19931_v3 = vld [vmem:[#allocation2_spill] sm:$0xff] }
 0x3e2   : > { %v16195_v15 = vpack.c.bf16 %v3269_v28, %v3268_v42 }
 0x3e3   : > { %v16197_v6 = vpack.c.bf16 %v3267_v12, %v3266_v45  ;;  %v3582_v12 = vand.u32 %v19931_v3, %v3545_v27 }
 0x3e5   : > { %v13436_v14 = vpop.f32.mrb[84].mxu1  ;;  %13482 = vmatprep.subr.bf16.mxu1 %v3582_v12 }
 0x3e6   : > { %v3203_v36 = vpop.f32.mrb[85].mxu1  ;;  %v3272_v25 = vmax.f32 %v13436_v14, 0.0  ;;  %13483 = vmatpush3.bf16.msra.mxu1 %v3582_v12 }
 0x3e7   : > { %v3270_v44 = vmax.f32 %v3203_v36, 0.0  ;;  %v13437_v11 = vpop.f32.mrb[86].mxu1 }
 0x3e8   : > { %v3273_v8 = vmax.f32 %v13437_v11, 0.0  ;;  %v3206_v29 = vpop.f32.mrb[87].mxu1 }
 0x3e9   : > { %v3271_v22 = vmax.f32 %v3206_v29, 0.0 }
 0x3ea   : > { %v16207_v51 = vpack.c.bf16 %v3273_v8, %v3272_v25 }
 0x3eb   : > { %v16209_v53 = vpack.c.bf16 %v3271_v22, %v3270_v44 }
 0x3ed   : > { %v13440_v30 = vpop.f32.mrb[88].mxu1 }
 0x3ee   : > { %v3219_v17 = vpop.f32.mrb[89].mxu1  ;;  %v3276_v34 = vmax.f32 %v13440_v30, 0.0 }
 0x3ef   : > { %v3274_v1 = vmax.f32 %v3219_v17, 0.0  ;;  %v13441_v56 = vpop.f32.mrb[90].mxu1 }
 0x3f0   : > { %v3277_v2 = vmax.f32 %v13441_v56, 0.0  ;;  %v3222_v50 = vpop.f32.mrb[91].mxu1 }
 0x3f1   : > { %v3275_v13 = vmax.f32 %v3222_v50, 0.0 }
 0x3f2   : > { %v16219_v7 = vpack.c.bf16 %v3277_v2, %v3276_v34 }
 0x3f3   : > { %v16221_v47 = vpack.c.bf16 %v3275_v13, %v3274_v1 }
 0x3f5   : > { %v13444_v49 = vpop.f32.mrb[92].mxu1 }
 0x3f6   : > { %v3235_v0 = vpop.f32.mrb[93].mxu1  ;;  %v3280_v62 = vmax.f32 %v13444_v49, 0.0 }
 0x3f7   : > { %v3278_v24 = vmax.f32 %v3235_v0, 0.0  ;;  %v13445_v18 = vpop.f32.mrb[94].mxu1 }
 0x3f8   : > { %v3281_v21 = vmax.f32 %v13445_v18, 0.0  ;;  %v3238_v38 = vpop.f32.mrb[95].mxu1 }
 0x3f9   : > { %v3279_v26 = vmax.f32 %v3238_v38, 0.0 }
 0x3fa   : > { %v16231_v16 = vpack.c.bf16 %v3281_v21, %v3280_v62 }
 0x3fb   : > { %v16233_v32 = vpack.c.bf16 %v3279_v26, %v3278_v24  ;;  %v3301_v26 = vpop.permute.xlu1 %3300 }
 0x45a   : > { %v16187_v5 = vpop.f32.mrb[48].mxu0 }
 0x45b   : > { %v16189_v40 = vpop.f32.mrb[49].mxu0 }
 0x45c   : > { %v16191_v61 = vpop.f32.mrb[50].mxu0 }
 0x45d   : > { %v16193_v20 = vpop.f32.mrb[51].mxu0 }
 0x463   : > { %v16199_v33 = vpop.f32.mrb[52].mxu0 }
 0x464   : > { %v16201_v63 = vpop.f32.mrb[53].mxu0 }
 0x465   : > { %v16203_v55 = vpop.f32.mrb[54].mxu0 }
 0x466   : > { %v16205_v4 = vpop.f32.mrb[55].mxu0 }
 0x46b   : > { %v16211_v54 = vpop.f32.mrb[56].mxu0 }
 0x46c   : > { %19923 = vst [vmem:[#allocation76_spill] sm:$0xff] %v16211_v54  ;;  %v16213_v57 = vpop.f32.mrb[57].mxu0 }
 0x46d   : > { %19924 = vst [vmem:[#allocation77_spill] sm:$0xff] %v16213_v57  ;;  %v16215_v31 = vpop.f32.mrb[58].mxu0 }
 0x46e   : > { %19925 = vst [vmem:[#allocation78_spill] sm:$0xff] %v16215_v31  ;;  %v16217_v23 = vpop.f32.mrb[59].mxu0 }
 0x46f   : > { %19926 = vst [vmem:[#allocation3_spill] sm:$0xff] %v16217_v23 }
 0x473   : > { %v16223_v59 = vpop.f32.mrb[60].mxu0 }
 0x474   : > { %19927 = vst [vmem:[#allocation4_spill] sm:$0xff] %v16223_v59  ;;  %v16225_v10 = vpop.f32.mrb[61].mxu0 }
 0x475   : > { %19928 = vst [vmem:[#allocation5_spill] sm:$0xff] %v16225_v10  ;;  %v16227_v43 = vpop.f32.mrb[62].mxu0 }
 0x476   : > { %19929 = vst [vmem:[#allocation6_spill] sm:$0xff] %v16227_v43  ;;  %v16229_v39 = vpop.f32.mrb[63].mxu0 }
 0x477   : > { %19930 = vst [vmem:[#allocation7_spill] sm:$0xff] %v16229_v39 }
 0x47b   : > { %v16235_v35 = vpop.f32.mrb[64].mxu0 }
 0x47c   : > { %v16237_v42 = vpop.f32.mrb[65].mxu0 }
 0x47d   : > { %v16239_v45 = vpop.f32.mrb[66].mxu0 }
 0x47e   : > { %v16244_v28 = vpop.f32.mrb[67].mxu0 }
 0x483   : > { %v16247_v14 = vpop.f32.mrb[68].mxu0 }
 0x484   : > { %19932 = vst [vmem:[#allocation8_spill] sm:$0xff] %v16247_v14  ;;  %v16249_v36 = vpop.f32.mrb[69].mxu0 }
 0x485   : > { %v16251_v25 = vpop.f32.mrb[70].mxu0 }
 0x486   : > { %v16253_v44 = vpop.f32.mrb[71].mxu0 }
 0x48b   : > { %v16255_v11 = vpop.f32.mrb[72].mxu0 }
 0x48c   : > { %19933 = vst [vmem:[#allocation9_spill] sm:$0xff] %v16255_v11  ;;  %v16257_v8 = vpop.f32.mrb[73].mxu0 }
 0x48d   : > { %19934 = vst [vmem:[#allocation10_spill] sm:$0xff] %v16257_v8  ;;  %v16259_v29 = vpop.f32.mrb[74].mxu0 }
 0x48e   : > { %19935 = vst [vmem:[#allocation80_spill] sm:$0xff] %v16259_v29  ;;  %v16261_v22 = vpop.f32.mrb[75].mxu0 }
 0x48f   : > { %19936 = vst [vmem:[#allocation81_spill] sm:$0xff] %v16261_v22 }
 0x493   : > { %v16263_v30 = vpop.f32.mrb[76].mxu0 }
 0x494   : > { %19937 = vst [vmem:[#allocation82_spill] sm:$0xff] %v16263_v30  ;;  %v16265_v17 = vpop.f32.mrb[77].mxu0 }
 0x495   : > { %19938 = vst [vmem:[#allocation83_spill] sm:$0xff] %v16265_v17  ;;  %v16267_v34 = vpop.f32.mrb[78].mxu0 }
 0x496   : > { %19939 = vst [vmem:[#allocation84_spill] sm:$0xff] %v16267_v34  ;;  %v16269_v1 = vpop.f32.mrb[79].mxu0 }
 0x497   : > { %19940 = vst [vmem:[#allocation85_spill] sm:$0xff] %v16269_v1 }
 0x49b   : > { %v13378_v56 = vpop.f32.mrb[80].mxu0 }
 0x49c   : > { %v2836_v2 = vpop.f32.mrb[81].mxu0  ;;  %v2901_v13 = vmax.f32 %v13378_v56, 0.0 }
 0x49d   : > { %v13379_v50 = vpop.f32.mrb[82].mxu0  ;;  %v2899_v62 = vmax.f32 %v2836_v2, 0.0 }
 0x49e   : > { %v2902_v49 = vmax.f32 %v13379_v50, 0.0  ;;  %v2839_v0 = vpop.f32.mrb[83].mxu0 }
 0x49f   : > { %v2900_v24 = vmax.f32 %v2839_v0, 0.0 }
 0x4a0   : > { %v2920_v18 = vpack.c.bf16 %v2902_v49, %v2901_v13 }
 0x4a1   : > { %v2919_v21 = vpack.c.bf16 %v2900_v24, %v2899_v62 }
 0x4a3   : > { %v13382_v38 = vpop.f32.mrb[84].mxu0  ;;  %13396 = vmatprep.mubr.msk.bf16.mxu0 %vm19941_vm7, %v2919_v21  ;;  %vm19948_vm7 = vmmov %vm19944_vm0 }
 0x4a4   : > { %v2852_v27 = vpop.f32.mrb[85].mxu0  ;;  %13397 = vmatmul.mubr.msk.bf16.vlgmr.msra.gmra.mrb[96].mxu0 %vm19942_vm3, %v2920_v18  ;;  %v2905_v3 = vmax.f32 %v13382_v38, 0.0  ;;  %vm19949_vm3 = vmmov %vm19944_vm0 }
 0x4a5   : > { %v13383_v12 = vpop.f32.mrb[86].mxu0  ;;  %13447 = vmatpush3.bf16.msra.mxu0 %v16168_v58  ;;  %v2903_v56 = vmax.f32 %v2852_v27, 0.0 }
 0x4a6   : > { %v2906_v30 = vmax.f32 %v13383_v12, 0.0  ;;  %v2855_v59 = vpop.f32.mrb[87].mxu0  ;;  %13448 = vmatprep.subr.bf16.mxu0 %v3301_v26 }
 0x4a7   : > { %v2904_v50 = vmax.f32 %v2855_v59, 0.0 }
 0x4a8   : > { %v2922_v2 = vpack.c.bf16 %v2906_v30, %v2905_v3 }
 0x4a9   : > { %v2921_v0 = vpack.c.bf16 %v2904_v50, %v2903_v56  ;;  %13449 = vmatpush3.bf16.msra.mxu0 %v3301_v26 }
 0x4ab   : > { %v13386_v13 = vpop.f32.mrb[88].mxu0  ;;  %13400 = vmatprep.mubr.msk.bf16.mxu0 %vm19943_vm15, %v2921_v0  ;;  %vm19950_vm15 = vmmov %vm19944_vm0 }
 0x4ac   : > { %v2868_v49 = vpop.f32.mrb[89].mxu0  ;;  %13401 = vmatmul.mubr.msk.bf16.gmra.mrb[100].mxu0 %vm19944_vm0, %v2922_v2  ;;  %v2909_v24 = vmax.f32 %v13386_v13, 0.0 }
 0x4ad   : > { %v13387_v62 = vpop.f32.mrb[90].mxu0  ;;  %v2907_v58 = vmax.f32 %v2868_v49, 0.0 }
 0x4ae   : > { %v2910_v18 = vmax.f32 %v13387_v62, 0.0  ;;  %v2871_v21 = vpop.f32.mrb[91].mxu0 }
 0x4af   : > { %v2908_v38 = vmax.f32 %v2871_v21, 0.0 }
 0x4b0   : > { %v2924_v12 = vpack.c.bf16 %v2910_v18, %v2909_v24 }
 0x4b1   : > { %v2923_v34 = vpack.c.bf16 %v2908_v38, %v2907_v58 }
 0x4b3   : > { %v13390_v43 = vpop.f32.mrb[92].mxu0  ;;  %13404 = vmatprep.mubr.msk.bf16.mxu0 %vm19945_vm13, %v2923_v34  ;;  %vm19951_vm13 = vmmov %vm19944_vm0 }
 0x4b4   : > { %v2884_v59 = vpop.f32.mrb[93].mxu0  ;;  %13405 = vmatmul.mubr.msk.bf16.gmra.mrb[104].mxu0 %vm19946_vm4, %v2924_v12  ;;  %v2913_v30 = vmax.f32 %v13390_v43, 0.0  ;;  %vm19952_vm4 = vmmov %vm19944_vm0 }
 0x4b5   : > { %v13391_v3 = vpop.f32.mrb[94].mxu0  ;;  %v2911_v56 = vmax.f32 %v2884_v59, 0.0 }
 0x4b6   : > { %v2914_v26 = vmax.f32 %v13391_v3, 0.0  ;;  %v2887_v27 = vpop.f32.mrb[95].mxu0 }
 0x4b7   : > { %v2912_v50 = vmax.f32 %v2887_v27, 0.0 }
 0x4b8   : > { %v2926_v2 = vpack.c.bf16 %v2914_v26, %v2913_v30 }
 0x4b9   : > { %v2925_v0 = vpack.c.bf16 %v2912_v50, %v2911_v56 }
 0x4bb   : > { %13408 = vmatprep.mubr.msk.bf16.mxu0 %vm19947_vm2, %v2925_v0  ;;  %vm19954_vm2 = vmmov %vm19944_vm0 }
 0x4bc   : > { %13409 = vmatmul.mubr.msk.bf16.gmra.mrb[108].mxu0 %vm19948_vm7, %v2926_v2  ;;  %vm19955_vm7 = vmmov %vm19944_vm0 }
 0x4bd   : > { %13450 = vmatprep.mubr.msk.bf16.mxu0 %vm19949_vm3, %v16173_v52  ;;  %vm19956_vm3 = vmmov %vm19944_vm0 }
 0x4c4   : > { %13451 = vmatmul.mubr.msk.bf16.vlgmr.msra.gmra.mrb[112].mxu0 %vm19950_vm15, %v16171_v9  ;;  %vm19957_vm15 = vmmov %vm19944_vm0  ;;  %v19963_v9 = vmov 1.0|1.0  }
 0x4c5   : > { %13454 = vmatprep.mubr.msk.bf16.mxu0 %vm19944_vm0, %v16177_v60 }
 0x4cc   : > { %13455 = vmatmul.mubr.msk.bf16.gmra.mrb[116].mxu0 %vm19951_vm13, %v16175_v41  ;;  %vm19958_vm13 = vmmov %vm19944_vm0 }
 0x4cd   : > { %13458 = vmatprep.mubr.msk.bf16.mxu0 %vm19952_vm4, %v16181_v19  ;;  %vm19960_vm4 = vmmov %vm19944_vm0 }
 0x4d4   : > { %13459 = vmatmul.mubr.msk.bf16.gmra.mrb[120].mxu0 %vm19953_vm14, %v16179_v46  ;;  %vm19959_vm14 = vmmov %vm19944_vm0 }
 0x4d5   : > { %13462 = vmatprep.mubr.msk.bf16.mxu0 %vm19954_vm2, %v16185_v37  ;;  %vm19961_vm2 = vmmov %vm19944_vm0 }
 0x4dc   : > { %13463 = vmatmul.mubr.msk.bf16.gmra.mrb[124].mxu0 %vm19955_vm7, %v16183_v48  ;;  %vm19962_vm7 = vmmov %vm19944_vm0 }
 0x4dd   : > { %13466 = vmatprep.mubr.msk.bf16.mxu0 %vm19956_vm3, %v16197_v6  ;;  %vm19625_vm3 = vcmask 39936  }
 0x4e4   : > { %13467 = vmatmul.mubr.msk.bf16.gmra.mrb[128].mxu0 %vm19957_vm15, %v16195_v15  ;;  %vm19997_vm15 = vcmask 1041408  }
 0x4e5   : > { %13470 = vmatprep.mubr.msk.bf16.mxu0 %vm19944_vm0, %v16209_v53  ;;  %vm19998_vm0 = vmmov %vm19997_vm15 }
 0x4ec   : > { %13471 = vmatmul.mubr.msk.bf16.gmra.mrb[132].mxu0 %vm19958_vm13, %v16207_v51 }
 0x4ed   : > { %13474 = vmatprep.mubr.msk.bf16.mxu0 %vm19959_vm14, %v16221_v47 }
 0x4f4   : > { %13475 = vmatmul.mubr.msk.bf16.gmra.mrb[136].mxu0 %vm19960_vm4, %v16219_v7 }
 0x4f5   : > { %13478 = vmatprep.mubr.msk.bf16.mxu0 %vm19961_vm2, %v16233_v32 }
 0x4fc   : > { %13479 = vmatmul.mubr.msk.bf16.gmra.mrb[140].mxu0 %vm19962_vm7, %v16231_v16 }
 0x4fd   : > { %13516 = vmatprep.mubr.msk.bf16.mxu0 %vm15282_vm6, %v19963_v9 }
 0x577   : > { %v16315_v41 = vpop.f32.mrb[96].mxu0 }
 0x578   : > { %19965 = vst [vmem:[#allocation86_spill] sm:$0xff] %v16315_v41  ;;  %v16317_v60 = vpop.f32.mrb[97].mxu0  ;;  %v19597_v19 = vmax.f32 %v16315_v41, 0.0 }
 0x579   : > { %19966 = vst [vmem:[#allocation87_spill] sm:$0xff] %v16317_v60  ;;  %v16319_v46 = vpop.f32.mrb[98].mxu0  ;;  %v19596_v15 = vmax.f32 %v16317_v60, 0.0 }
 0x57a   : > { %19967 = vst [vmem:[#allocation88_spill] sm:$0xff] %v16319_v46  ;;  %v19595_v48 = vmax.f32 %v16319_v46, 0.0  ;;  %v16323_v37 = vpop.f32.mrb[99].mxu0 }
 0x57b   : > { %19968 = vst [vmem:[#allocation89_spill] sm:$0xff] %v16323_v37  ;;  %v19594_v6 = vmax.f32 %v16323_v37, 0.0 }
 0x57c   : > { %v3547_v51 = vpack.c.bf16 %v19595_v48, %v19597_v19 }
 0x57d   : > { %v3546_v53 = vpack.c.bf16 %v19594_v6, %v19596_v15 }
 0x57f   : > { %v16335_v7 = vpop.f32.mrb[100].mxu0  ;;  %13484 = vmatprep.mubr.msk.bf16.mxu1 %vm19625_vm3, %v3546_v53 }
 0x580   : > { %19969 = vst [vmem:[#allocation90_spill] sm:$0xff] %v16335_v7  ;;  %v16338_v47 = vpop.f32.mrb[101].mxu0  ;;  %13485 = vmatmul.mubr.msk.bf16.vlgmr.msra.gmra.mrb[96].mxu1 %vm19625_vm3, %v3547_v51  ;;  %v19593_v16 = vmax.f32 %v16335_v7, 0.0 }
 0x581   : > { %19970 = vst [vmem:[#allocation91_spill] sm:$0xff] %v16338_v47  ;;  %v16341_v43 = vpop.f32.mrb[102].mxu0  ;;  %v19592_v13 = vmax.f32 %v16338_v47, 0.0 }
 0x582   : > { %19971 = vst [vmem:[#allocation92_spill] sm:$0xff] %v16341_v43  ;;  %v19591_v32 = vmax.f32 %v16341_v43, 0.0  ;;  %v16345_v34 = vpop.f32.mrb[103].mxu0 }
 0x583   : > { %19972 = vst [vmem:[#allocation93_spill] sm:$0xff] %v16345_v34  ;;  %v19590_v49 = vmax.f32 %v16345_v34, 0.0 }
 0x584   : > { %v3549_v62 = vpack.c.bf16 %v19591_v32, %v19593_v16 }
 0x585   : > { %v3548_v24 = vpack.c.bf16 %v19590_v49, %v19592_v13 }
 0x587   : > { %v16357_v18 = vpop.f32.mrb[104].mxu0  ;;  %13488 = vmatprep.mubr.msk.bf16.mxu1 %vm19625_vm3, %v3548_v24 }
 0x588   : > { %19973 = vst [vmem:[#allocation94_spill] sm:$0xff] %v16357_v18  ;;  %v16360_v21 = vpop.f32.mrb[105].mxu0  ;;  %13489 = vmatmul.mubr.msk.bf16.gmra.mrb[100].mxu1 %vm19625_vm3, %v3549_v62  ;;  %v19585_v38 = vmax.f32 %v16357_v18, 0.0 }
 0x589   : > { %19974 = vst [vmem:[#allocation95_spill] sm:$0xff] %v16360_v21  ;;  %v16363_v58 = vpop.f32.mrb[106].mxu0  ;;  %v19584_v3 = vmax.f32 %v16360_v21, 0.0 }
 0x58a   : > { %19975 = vst [vmem:[#allocation96_spill] sm:$0xff] %v16363_v58  ;;  %v19583_v12 = vmax.f32 %v16363_v58, 0.0  ;;  %v16367_v59 = vpop.f32.mrb[107].mxu0 }
 0x58b   : > { %19976 = vst [vmem:[#allocation97_spill] sm:$0xff] %v16367_v59  ;;  %v19582_v30 = vmax.f32 %v16367_v59, 0.0 }
 0x58c   : > { %v3551_v26 = vpack.c.bf16 %v19583_v12, %v19585_v38 }
 0x58d   : > { %v3550_v27 = vpack.c.bf16 %v19582_v30, %v19584_v3 }
 0x58f   : > { %v16379_v56 = vpop.f32.mrb[108].mxu0  ;;  %13492 = vmatprep.mubr.msk.bf16.mxu1 %vm19625_vm3, %v3550_v27 }
 0x590   : > { %19977 = vst [vmem:[#allocation98_spill] sm:$0xff] %v16379_v56  ;;  %v16382_v50 = vpop.f32.mrb[109].mxu0  ;;  %13493 = vmatmul.mubr.msk.bf16.gmra.mrb[104].mxu1 %vm19625_vm3, %v3551_v26  ;;  %v19587_v0 = vmax.f32 %v16379_v56, 0.0 }
 0x591   : > { %19978 = vst [vmem:[#allocation99_spill] sm:$0xff] %v16382_v50  ;;  %v16385_v2 = vpop.f32.mrb[110].mxu0  ;;  %v19589_v62 = vmax.f32 %v16382_v50, 0.0 }
 0x592   : > { %19979 = vst [vmem:[#allocation100_spill] sm:$0xff] %v16385_v2  ;;  %v19586_v51 = vmax.f32 %v16385_v2, 0.0  ;;  %v16389_v53 = vpop.f32.mrb[111].mxu0 }
 0x593   : > { %19980 = vst [vmem:[#allocation101_spill] sm:$0xff] %v16389_v53  ;;  %v19588_v24 = vmax.f32 %v16389_v53, 0.0 }
 0x594   : > { %v3553_v27 = vpack.c.bf16 %v19586_v51, %v19587_v0 }
 0x595   : > { %v3552_v26 = vpack.c.bf16 %v19588_v24, %v19589_v62 }
 0x597   : > { %13496 = vmatprep.mubr.msk.bf16.mxu1 %vm19625_vm3, %v3552_v26  ;;  %v13452_v13 = vpop.f32.mrb[112].mxu0 }
 0x598   : > { %13497 = vmatmul.mubr.msk.bf16.gmra.mrb[108].mxu1 %vm19625_vm3, %v3553_v27  ;;  %v3386_v16 = vpop.f32.mrb[113].mxu0  ;;  %v3515_v53 = vmax.f32 %v13452_v13, 0.0 }
 0x599   : > { %v13453_v2 = vpop.f32.mrb[114].mxu0 }
 0x59a   : > { %v3516_v50 = vmax.f32 %v13453_v2, 0.0  ;;  %v3389_v56 = vpop.f32.mrb[115].mxu0 }
 0x59b   : > { %v3514_v58 = vmax.f32 %v3389_v56, 0.0 }
 0x59f   : > { %v13456_v21 = vpop.f32.mrb[116].mxu0 }
 0x5a0   : > { %v3402_v34 = vpop.f32.mrb[117].mxu0  ;;  %v3519_v56 = vmax.f32 %v13456_v21, 0.0 }
 0x5a1   : > { %v3517_v2 = vmax.f32 %v3402_v34, 0.0  ;;  %v13457_v7 = vpop.f32.mrb[118].mxu0 }
 0x653   : > { %v16403_v30 = vpop.f32.mrb[96].mxu1 }
 0x654   : > { %19981 = vst [vmem:[#allocation102_spill] sm:$0xff] %v16403_v30  ;;  %v16405_v12 = vpop.f32.mrb[97].mxu1 }
 0x655   : > { %19982 = vst [vmem:[#allocation103_spill] sm:$0xff] %v16405_v12  ;;  %v16407_v3 = vpop.f32.mrb[98].mxu1 }
 0x656   : > { %19983 = vst [vmem:[#allocation104_spill] sm:$0xff] %v16407_v3  ;;  %v16409_v38 = vpop.f32.mrb[99].mxu1  ;;  %v3682_v51 = vpack.c.bf16 %v16407_v3, %v16403_v30 }
 0x657   : > { %19984 = vst [vmem:[#allocation105_spill] sm:$0xff] %v16409_v38  ;;  %v3681_v0 = vpack.c.bf16 %v16409_v38, %v16405_v12 }
 0x659   : > { %13500 = vmatprep.subr.bf16.mxu0 %v3681_v0 }
 0x65a   : > { %13501 = vmatpush3.bf16.msra.mxu0 %v3681_v0 }
 0x65b   : > { %v16415_v24 = vpop.f32.mrb[100].mxu1  ;;  %13502 = vmatprep.subr.bf16.mxu0 %v3682_v51 }
 0x65c   : > { %19985 = vst [vmem:[#allocation106_spill] sm:$0xff] %v16415_v24  ;;  %v16417_v27 = vpop.f32.mrb[101].mxu1 }
 0x65d   : > { %19986 = vst [vmem:[#allocation107_spill] sm:$0xff] %v16417_v27  ;;  %v16419_v26 = vpop.f32.mrb[102].mxu1 }
 0x65e   : > { %19987 = vst [vmem:[#allocation108_spill] sm:$0xff] %v16419_v26  ;;  %v16421_v62 = vpop.f32.mrb[103].mxu1  ;;  %13503 = vmatpush3.bf16.msra.mxu0 %v3682_v51  ;;  %v3684_v49 = vpack.c.bf16 %v16419_v26, %v16415_v24 }
 0x65f   : > { %19988 = vst [vmem:[#allocation109_spill] sm:$0xff] %v16421_v62  ;;  %v3683_v32 = vpack.c.bf16 %v16421_v62, %v16417_v27 }
 0x661   : > { %13504 = vmatprep.subr.bf16.mxu0 %v3683_v32 }
 0x662   : > { %13505 = vmatpush3.bf16.msra.mxu0 %v3683_v32  ;;  %v3513_v32 = vmax.f32 %v3386_v16, 0.0 }
 0x663   : > { %v16427_v0 = vpop.f32.mrb[104].mxu1  ;;  %13506 = vmatprep.subr.bf16.mxu0 %v3684_v49 }
 0x664   : > { %19989 = vst [vmem:[#allocation110_spill] sm:$0xff] %v16427_v0  ;;  %v16429_v6 = vpop.f32.mrb[105].mxu1  ;;  %v16447_v47 = vpack.c.bf16 %v3514_v58, %v3513_v32 }
 0x665   : > { %19990 = vst [vmem:[#allocation111_spill] sm:$0xff] %v16429_v6  ;;  %v16431_v48 = vpop.f32.mrb[106].mxu1 }
 0x666   : > { %19991 = vst [vmem:[#allocation112_spill] sm:$0xff] %v16431_v48  ;;  %v16433_v15 = vpop.f32.mrb[107].mxu1  ;;  %13507 = vmatpush3.bf16.msra.mxu0 %v3684_v49  ;;  %v3686_v51 = vpack.c.bf16 %v16431_v48, %v16427_v0  ;;  %v16443_v49 = vpack.c.bf16 %v3516_v50, %v3515_v53  ;;  %v3520_v50 = vmax.f32 %v13457_v7, 0.0  ;;  %v3405_v53 = vpop.f32.mrb[119].mxu0 }
 0x667   : > { %19992 = vst [vmem:[#allocation113_spill] sm:$0xff] %v16433_v15  ;;  %v3685_v19 = vpack.c.bf16 %v16433_v15, %v16429_v6  ;;  %v3518_v37 = vmax.f32 %v3405_v53, 0.0  ;;  %v13460_v58 = vpop.f32.mrb[120].mxu0  ;;  %v20006_v15 = vld [vmem:[#allocation52_spill] sm:$0xff] }
 0x668   : > { %v16458_v32 = vpack.c.bf16 %v3520_v50, %v3519_v56  ;;  %v3418_v46 = vpop.f32.mrb[121].mxu0  ;;  %v3523_v21 = vmax.f32 %v13460_v58, 0.0  ;;  %vm20007_vm13 = vnez %v20006_v15 }
 0x669   : > { %13508 = vmatprep.subr.bf16.mxu0 %v3685_v19  ;;  %v16460_v60 = vpack.c.bf16 %v3518_v37, %v3517_v2  ;;  %v13461_v53 = vpop.f32.mrb[122].mxu0 }
 0x66a   : > { %13509 = vmatpush3.bf16.msra.mxu0 %v3685_v19  ;;  %v3524_v56 = vmax.f32 %v13461_v53, 0.0  ;;  %v3421_v37 = vpop.f32.mrb[123].mxu0 }
 0x66b   : > { %v16439_v59 = vpop.f32.mrb[108].mxu1  ;;  %13510 = vmatprep.subr.bf16.mxu0 %v3686_v51  ;;  %v3522_v2 = vmax.f32 %v3421_v37, 0.0 }
 0x66c   : > { %19993 = vst [vmem:[#allocation114_spill] sm:$0xff] %v16439_v59  ;;  %v16441_v18 = vpop.f32.mrb[109].mxu1  ;;  %v16470_v50 = vpack.c.bf16 %v3524_v56, %v3523_v21 }
 0x66d   : > { %19994 = vst [vmem:[#allocation115_spill] sm:$0xff] %v16441_v18  ;;  %v16445_v43 = vpop.f32.mrb[110].mxu1 }
 0x66e   : > { %19995 = vst [vmem:[#allocation116_spill] sm:$0xff] %v16445_v43  ;;  %v16449_v13 = vpop.f32.mrb[111].mxu1  ;;  %13511 = vmatpush3.bf16.msra.mxu0 %v3686_v51  ;;  %v3688_v19 = vpack.c.bf16 %v16445_v43, %v16439_v59  ;;  %v4138_v51 = vld [vmem:[%s19380_s3 + $0x38] sm:$0x3] }
 0x66f   : > { %19996 = vst [vmem:[#allocation117_spill] sm:$0xff] %v16449_v13  ;;  %v3687_v16 = vpack.c.bf16 %v16449_v13, %v16441_v18  ;;  %v4204_v34 = vsel %vm19998_vm0, %v4138_v51, 0 }
 0x671   : > { %13512 = vmatprep.subr.bf16.mxu0 %v3687_v16 }
 0x672   : > { %13513 = vmatpush3.bf16.msra.mxu0 %v3687_v16  ;;  %v3521_v16 = vmax.f32 %v3418_v46, 0.0 }
 0x673   : > { %13514 = vmatprep.subr.bf16.mxu0 %v3688_v19 }
 0x676   : > { %13515 = vmatpush3.bf16.msra.mxu0 %v3688_v19  ;;  %v13464_v19 = vpop.f32.mrb[124].mxu0 }
 0x677   : > { %14642 = vmatprep.subr.msk.bf16.mxu0 %vm19997_vm15, %v4138_v51  ;;  %v3434_v52 = vpop.f32.mrb[125].mxu0  ;;  %v16472_v51 = vpack.c.bf16 %v3522_v2, %v3521_v16  ;;  %v3527_v58 = vmax.f32 %v13464_v19, 0.0 }
 0x678   : > { %v3525_v46 = vmax.f32 %v3434_v52, 0.0  ;;  %v13465_v43 = vpop.f32.mrb[126].mxu0 }
 0x679   : > { %13517 = vmatmul.mubr.msk.bf16.vlgmr.msra.gmra.mrb[144].mxu0 %vm15356_vm11, %v19963_v9  ;;  %v3437_v53 = vpop.f32.mrb[127].mxu0 }
 0x67a   : > { %13520 = vmatprep.mubr.msk.bf16.mxu0 %vm15366_vm12, %v19963_v9  ;;  %13581 = vmatpush3.bf16.msra.mxu0 %v4204_v34  ;;  %v3528_v34 = vmax.f32 %v13465_v43, 0.0  ;;  %v3526_v37 = vmax.f32 %v3437_v53, 0.0  ;;  %v13468_v13 = vpop.f32.mrb[128].mxu0 }
 0x67b   : > { %v3450_v56 = vpop.f32.mrb[129].mxu0  ;;  %v3531_v2 = vmax.f32 %v13468_v13, 0.0 }
 0x67c   : > { %v16480_v21 = vpack.c.bf16 %v3528_v34, %v3527_v58  ;;  %v16482_v16 = vpack.c.bf16 %v3526_v37, %v3525_v46  ;;  %v3529_v52 = vmax.f32 %v3450_v56, 0.0  ;;  %v13469_v7 = vpop.f32.mrb[130].mxu0 }
 0x67d   : > { %v3532_v43 = vmax.f32 %v13469_v7, 0.0  ;;  %v3453_v41 = vpop.f32.mrb[131].mxu0 }
 0x67e   : > { %v3530_v53 = vmax.f32 %v3453_v41, 0.0  ;;  %v13472_v18 = vpop.f32.mrb[132].mxu0 }
 0x67f   : > { %v16490_v58 = vpack.c.bf16 %v3532_v43, %v3531_v2  ;;  %v3466_v34 = vpop.f32.mrb[133].mxu0  ;;  %v3535_v37 = vmax.f32 %v13472_v18, 0.0  ;;  %v20008_v18 = vld [vmem:[#allocation53_spill] sm:$0xff] }
 0x680   : > { %v4147_v46 = vpack.c.bf16 %v3530_v53, %v3529_v52  ;;  %v3533_v19 = vmax.f32 %v3466_v34, 0.0  ;;  %v13473_v56 = vpop.f32.mrb[134].mxu0  ;;  %vm20009_vm14 = vnez %v20008_v18  ;;  %v20010_v34 = vld [vmem:[#allocation54_spill] sm:$0xff] }
 0x681   : > { %13521 = vmatmul.mubr.msk.bf16.gmra.mrb[148].mxu0 %vm15394_vm1, %v19963_v9  ;;  %v3536_v59 = vmax.f32 %v13473_v56, 0.0  ;;  %v3469_v7 = vpop.f32.mrb[135].mxu0  ;;  %vm20011_vm4 = vnez %v20010_v34 }
 0x682   : > { %13524 = vmatprep.mubr.msk.bf16.mxu0 %vm15404_vm10, %v19963_v9  ;;  %v3534_v48 = vmax.f32 %v3469_v7, 0.0  ;;  %v13476_v41 = vpop.f32.mrb[136].mxu0 }
 0x683   : > { %v4150_v6 = vpack.c.bf16 %v3536_v59, %v3535_v37  ;;  %v3482_v2 = vpop.f32.mrb[137].mxu0  ;;  %v3539_v0 = vmax.f32 %v13476_v41, 0.0 }
 0x684   : > { %v4149_v43 = vpack.c.bf16 %v3534_v48, %v3533_v19  ;;  %v3537_v52 = vmax.f32 %v3482_v2, 0.0  ;;  %v13477_v53 = vpop.f32.mrb[138].mxu0  ;;  %v20012_v48 = vld [vmem:[#allocation55_spill] sm:$0xff]  ;;  %v20014_v2 = vld [vmem:[#allocation56_spill] sm:$0xff] }
 0x685   : > { %v3540_v15 = vmax.f32 %v13477_v53, 0.0  ;;  %v3485_v13 = vpop.f32.mrb[139].mxu0  ;;  %vm20013_vm2 = vnez %v20012_v48  ;;  %vm20015_vm7 = vnez %v20014_v2 }
 0x686   : > { %v3538_v56 = vmax.f32 %v3485_v13, 0.0  ;;  %v13480_v62 = vpop.f32.mrb[140].mxu0 }
 0x687   : > { %v4152_v7 = vpack.c.bf16 %v3540_v15, %v3539_v0  ;;  %v3498_v26 = vpop.f32.mrb[141].mxu0  ;;  %v3543_v37 = vmax.f32 %v13480_v62, 0.0  ;;  %v20016_v15 = vld [vmem:[#allocation57_spill] sm:$0xff]  ;;  %v20018_v62 = vld [vmem:[#allocation58_spill] sm:$0xff]  ;;  %v20022_v0 = vld [vmem:[#allocation60_spill] sm:$0xff] }
 0x688   : > { %v4151_v59 = vpack.c.bf16 %v3538_v56, %v3537_v52  ;;  %v3541_v19 = vmax.f32 %v3498_v26, 0.0  ;;  %v13481_v41 = vpop.f32.mrb[142].mxu0  ;;  %vm20017_vm15 = vnez %v20016_v15  ;;  %vm20019_vm0 = vnez %v20018_v62  ;;  %v20020_v26 = vld [vmem:[#allocation59_spill] sm:$0xff]  ;;  %v20026_v52 = vld [vmem:[#allocation62_spill] sm:$0xff]  ;;  %v20030_v56 = vld [vmem:[#allocation64_spill] sm:$0xff] }
 0x689   : > { %13525 = vmatmul.mubr.msk.bf16.gmra.mrb[152].mxu0 %vm15432_vm9, %v19963_v9  ;;  %v3544_v34 = vmax.f32 %v13481_v41, 0.0  ;;  %v3501_v18 = vpop.f32.mrb[143].mxu0  ;;  %vm20021_vm3 = vnez %v20020_v26  ;;  %v20036_v41 = vld [vmem:[#allocation67_spill] sm:$0xff] }
 0x68a   : > { %13528 = vmatprep.mubr.msk.bf16.mxu0 %vm15442_vm5, %v19963_v9  ;;  %v3542_v53 = vmax.f32 %v3501_v18, 0.0  ;;  %v20024_v18 = vld [vmem:[#allocation61_spill] sm:$0xff] }
 0x68b   : > { %v4154_v27 = vpack.c.bf16 %v3544_v34, %v3543_v37  ;;  %v20028_v34 = vld [vmem:[#allocation63_spill] sm:$0xff]  ;;  %v20032_v37 = vld [vmem:[#allocation65_spill] sm:$0xff] }
 0x68c   : > { %v4153_v13 = vpack.c.bf16 %v3542_v53, %v3541_v19  ;;  %v20034_v19 = vld [vmem:[#allocation66_spill] sm:$0xff]  ;;  %v20038_v53 = vld [vmem:[#allocation68_spill] sm:$0xff] }
 0x691   : > { %13529 = vmatmul.mubr.msk.bf16.gmra.mrb[156].mxu0 %vm15470_vm8, %v19963_v9 }
 0x692   : > { %13532 = vmatprep.mubr.msk.bf16.mxu0 %vm20007_vm13, %v19963_v9 }
 0x699   : > { %13533 = vmatmul.mubr.msk.bf16.gmra.mrb[160].mxu0 %vm20009_vm14, %v19963_v9 }
 0x69a   : > { %13536 = vmatprep.mubr.msk.bf16.mxu0 %vm20011_vm4, %v19963_v9  ;;  %vm20027_vm4 = vnez %v20026_v52 }
 0x6a1   : > { %13537 = vmatmul.mubr.msk.bf16.gmra.mrb[164].mxu0 %vm20013_vm2, %v19963_v9  ;;  %vm20025_vm2 = vnez %v20024_v18 }
 0x6a2   : > { %13540 = vmatprep.mubr.msk.bf16.mxu0 %vm20015_vm7, %v19963_v9  ;;  %vm20023_vm7 = vnez %v20022_v0 }
 0x6a9   : > { %13541 = vmatmul.mubr.msk.bf16.gmra.mrb[168].mxu0 %vm20017_vm15, %v19963_v9  ;;  %vm20029_vm15 = vnez %v20028_v34  ;;  %v20040_v34 = vld [vmem:[#allocation69_spill] sm:$0xff] }
 0x6aa   : > { %13544 = vmatprep.mubr.msk.bf16.mxu0 %vm20019_vm0, %v19963_v9  ;;  %vm20031_vm0 = vnez %v20030_v56  ;;  %v20042_v56 = vld [vmem:[#allocation70_spill] sm:$0xff] }
 0x6b1   : > { %13545 = vmatmul.mubr.msk.bf16.gmra.mrb[172].mxu0 %vm20021_vm3, %v19963_v9  ;;  %vm20033_vm3 = vnez %v20032_v37  ;;  %v20044_v37 = vld [vmem:[#allocation71_spill] sm:$0xff] }
 0x6b2   : > { %13548 = vmatprep.mubr.msk.bf16.mxu0 %vm20023_vm7, %v19963_v9  ;;  %vm20035_vm7 = vnez %v20034_v19  ;;  %v20046_v19 = vld [vmem:[#allocation72_spill] sm:$0xff] }
 0x6b9   : > { %13549 = vmatmul.mubr.msk.bf16.gmra.mrb[176].mxu0 %vm20025_vm2, %v19963_v9  ;;  %vm20037_vm2 = vnez %v20036_v41  ;;  %v20048_v41 = vld [vmem:[#allocation73_spill] sm:$0xff] }
 0x6ba   : > { %13552 = vmatprep.mubr.msk.bf16.mxu0 %vm20027_vm4, %v19963_v9  ;;  %vm20039_vm4 = vnez %v20038_v53  ;;  %v20050_v53 = vld [vmem:[#allocation74_spill] sm:$0xff] }
 0x6c1   : > { %13553 = vmatmul.mubr.msk.bf16.gmra.mrb[180].mxu0 %vm20029_vm15, %v19963_v9  ;;  %vm20041_vm15 = vnez %v20040_v34  ;;  %v20052_v34 = vld [vmem:[#allocation75_spill] sm:$0xff] }
 0x6c2   : > { %13556 = vmatprep.mubr.msk.bf16.mxu0 %vm20031_vm0, %v19963_v9  ;;  %vm20043_vm0 = vnez %v20042_v56 }
 0x6c9   : > { %13557 = vmatmul.mubr.msk.bf16.gmra.mrb[184].mxu0 %vm20033_vm3, %v19963_v9  ;;  %vm20045_vm3 = vnez %v20044_v37 }
 0x6ca   : > { %13560 = vmatprep.mubr.msk.bf16.mxu0 %vm20035_vm7, %v19963_v9  ;;  %vm20047_vm7 = vnez %v20046_v19 }
 0x6d1   : > { %13561 = vmatmul.mubr.msk.bf16.gmra.mrb[188].mxu0 %vm20037_vm2, %v19963_v9  ;;  %vm20049_vm2 = vnez %v20048_v41 }
 0x6d2   : > { %13564 = vmatprep.mubr.msk.bf16.mxu0 %vm20039_vm4, %v19963_v9  ;;  %vm20051_vm4 = vnez %v20050_v53 }
 0x6d9   : > { %13565 = vmatmul.mubr.msk.bf16.gmra.mrb[192].mxu0 %vm20041_vm15, %v19963_v9  ;;  %vm20053_vm15 = vnez %v20052_v34 }
 0x6da   : > { %13568 = vmatprep.mubr.msk.bf16.mxu0 %vm20043_vm0, %v19963_v9  ;;  %vm20054_vm0 = vcmask 31744  }
 0x6db   : > { %vm20057_vm14 = vmmov %vm20054_vm0 }
 0x6dc   : > { %vm20061_vm13 = vmmov %vm20054_vm0 }
 0x6dd   : > { %vm20065_vm8 = vmmov %vm20054_vm0 }
 0x6de   : > { %vm20068_vm5 = vmmov %vm20054_vm0 }
 0x6e1   : > { %13569 = vmatmul.mubr.msk.bf16.gmra.mrb[196].mxu0 %vm20045_vm3, %v19963_v9  ;;  %vm20055_vm3 = vmmov %vm20054_vm0 }
 0x6e2   : > { %13572 = vmatprep.mubr.msk.bf16.mxu0 %vm20047_vm7, %v19963_v9  ;;  %vm20056_vm7 = vmmov %vm20054_vm0 }
 0x6e9   : > { %13573 = vmatmul.mubr.msk.bf16.gmra.mrb[200].mxu0 %vm20049_vm2, %v19963_v9  ;;  %vm20058_vm2 = vmmov %vm20054_vm0 }
 0x6ea   : > { %13576 = vmatprep.mubr.msk.bf16.mxu0 %vm20051_vm4, %v19963_v9  ;;  %vm20059_vm4 = vmmov %vm20054_vm0 }
 0x6f1   : > { %13577 = vmatmul.mubr.msk.bf16.gmra.mrb[204].mxu0 %vm20053_vm15, %v19963_v9  ;;  %vm20060_vm15 = vmmov %vm20054_vm0 }
 0x6f2   : > { %13582 = vmatprep.mubr.msk.bf16.mxu0 %vm20054_vm0, %v16447_v47  ;;  %v16605_v47 = vld [vmem:[%s19380_s3 + $0x48] sm:$0xff]  }
 0x6f9   : > { %13583 = vmatmul.mubr.msk.bf16.vlgmr.msra.gmra.mrb[144].mxu0 %vm20055_vm3, %v16443_v49  ;;  %vm20062_vm3 = vmmov %vm20054_vm0 }
 0x6fa   : > { %13586 = vmatprep.mubr.msk.bf16.mxu0 %vm20056_vm7, %v16460_v60  ;;  %vm20063_vm7 = vmmov %vm20054_vm0  ;;  %v16595_v60 = vld [vmem:[%s19380_s3 + $0x40] sm:$0xff]  }
 0x6fb   : > { %13614 = vmatprep.subr.bf16.mxu1 %v16595_v60 }
 0x6fc   : > { %13615 = vmatpush3.bf16.msra.mxu1 %v16595_v60 }
 0x6fd   : > { %13616 = vmatprep.subr.bf16.mxu1 %v16605_v47 }
 0x700   : > { %13617 = vmatpush3.bf16.msra.mxu1 %v16605_v47 }
 0x701   : > { %13587 = vmatmul.mubr.msk.bf16.gmra.mrb[148].mxu0 %vm20057_vm14, %v16458_v32  ;;  %vm20064_vm14 = vmmov %vm20054_vm0 }
 0x702   : > { %13590 = vmatprep.mubr.msk.bf16.mxu0 %vm20058_vm2, %v16472_v51  ;;  %vm20066_vm2 = vmmov %vm20054_vm0 }
 0x709   : > { %13591 = vmatmul.mubr.msk.bf16.gmra.mrb[152].mxu0 %vm20059_vm4, %v16470_v50  ;;  %vm20067_vm4 = vmmov %vm20054_vm0 }
 0x70a   : > { %13594 = vmatprep.mubr.msk.bf16.mxu0 %vm20060_vm15, %v16482_v16 }
 0x711   : > { %13595 = vmatmul.mubr.msk.bf16.gmra.mrb[156].mxu0 %vm20054_vm0, %v16480_v21  ;;  %v20069_v21 = vld [vmem:[#allocation79_spill] sm:$0xff] }
 0x712   : > { %13598 = vmatprep.mubr.msk.bf16.mxu0 %vm20061_vm13, %v4147_v46 }
 0x719   : > { %13599 = vmatmul.mubr.msk.bf16.gmra.mrb[160].mxu0 %vm20062_vm3, %v16490_v58 }
 0x71a   : > { %13602 = vmatprep.mubr.msk.bf16.mxu0 %vm20063_vm7, %v4149_v43 }
 0x721   : > { %13603 = vmatmul.mubr.msk.bf16.gmra.mrb[164].mxu0 %vm20064_vm14, %v4150_v6  ;;  %v4399_v6 = vld [vmem:[%s19380_s3 + $0x38] sm:$0x1] }
 0x722   : > { %13606 = vmatprep.mubr.msk.bf16.mxu0 %vm20065_vm8, %v4151_v59  ;;  %v4400_v32 = vunpack.c.l.bf16 %v4399_v6 }
 0x724   : > { %v4404_v16 = vrot.slane %v4400_v32, %v20069_v21 }
 0x729   : > { %13607 = vmatmul.mubr.msk.bf16.gmra.mrb[168].mxu0 %vm20066_vm2, %v4152_v7 }
 0x72a   : > { %13610 = vmatprep.mubr.msk.bf16.mxu0 %vm20067_vm4, %v4153_v13 }
 0x731   : > { %13611 = vmatmul.mubr.msk.bf16.gmra.mrb[172].mxu0 %vm20068_vm5, %v4154_v27  ;;  %vm20071_vm5 = vcmask 261120  }
 0x732   : > { %vm20072_vm8 = vmmov %vm20071_vm5 }
 0x733   : > { %vm20073_vm13 = vmmov %vm20071_vm5 }
 0x734   : > { %vm20074_vm15 = vmmov %vm20071_vm5 }
 0x735   : > { %vm20075_vm0 = vmmov %vm20071_vm5 }
 0x736   : > { %vm20076_vm3 = vmmov %vm20075_vm0 }
 0x737   : > { %vm20077_vm7 = vmmov %vm20075_vm0 }
 0x738   : > { %vm20078_vm14 = vmmov %vm20075_vm0 }
 0x739   : > { %vm20079_vm2 = vmmov %vm20075_vm0 }
 0x73a   : > { %vm20080_vm4 = vmmov %vm20075_vm0 }
 0x78c   : > { %v13550_v49 = vpop.f32.mrb[176].mxu0 }
 0x78d   : > { %4014 = vrot.lane.b32.xlu0 %v13550_v49, %s15093_s12  ;;  %v3851_v27 = vpop.f32.mrb[177].mxu0 }
 0x78e   : > { %v13551_v50 = vpop.f32.mrb[178].mxu0 }
 0x78f   : > { %v3854_v51 = vpop.f32.mrb[179].mxu0 }
 0x790   : > { %4012 = vrot.lane.b32.xlu1 %v3854_v51, %s15093_s12 }
 0x791   : > { %4010 = vrot.lane.b32.xlu0 %v3851_v27, %s15093_s12 }
 0x794   : > { %4016 = vrot.lane.b32.xlu1 %v13551_v50, %s15093_s12  ;;  %v13554_v58 = vpop.f32.mrb[180].mxu0 }
 0x795   : > { %4406 = vrot.lane.b32.xlu0 %v4404_v16, %s15092_s5  ;;  %v3867_v46 = vpop.f32.mrb[181].mxu0 }
 0x796   : > { %v13555_v43 = vpop.f32.mrb[182].mxu0 }
 0x797   : > { %v3870_v7 = vpop.f32.mrb[183].mxu0 }
 0x798   : > { %4018 = vrot.lane.b32.xlu1 %v3867_v46, %s15093_s12 }
 0x799   : > { %4020 = vrot.lane.b32.xlu0 %v3870_v7, %s15093_s12 }
 0x79c   : > { %4022 = vrot.lane.b32.xlu1 %v13554_v58, %s15093_s12  ;;  %v13558_v59 = vpop.f32.mrb[184].mxu0 }
 0x79d   : > { %4024 = vrot.lane.b32.xlu0 %v13555_v43, %s15093_s12  ;;  %v3883_v13 = vpop.f32.mrb[185].mxu0 }
 0x79e   : > { %v13559_v6 = vpop.f32.mrb[186].mxu0 }
 0x79f   : > { %v3886_v49 = vpop.f32.mrb[187].mxu0 }
 0x7a0   : > { %4026 = vrot.lane.b32.xlu1 %v3883_v13, %s15093_s12 }
 0x7a1   : > { %4028 = vrot.lane.b32.xlu0 %v3886_v49, %s15093_s12 }
 0x7a4   : > { %4030 = vrot.lane.b32.xlu1 %v13558_v59, %s15093_s12  ;;  %v13562_v27 = vpop.f32.mrb[188].mxu0 }
 0x7a5   : > { %4032 = vrot.lane.b32.xlu0 %v13559_v6, %s15093_s12  ;;  %v3899_v32 = vpop.f32.mrb[189].mxu0 }
 0x7a6   : > { %v13563_v50 = vpop.f32.mrb[190].mxu0 }
 0x7a7   : > { %v3902_v51 = vpop.f32.mrb[191].mxu0 }
 0x7a8   : > { %4034 = vrot.lane.b32.xlu1 %v3899_v32, %s15093_s12 }
 0x7a9   : > { %4036 = vrot.lane.b32.xlu0 %v3902_v51, %s15093_s12 }
 0x7ac   : > { %4038 = vrot.lane.b32.xlu1 %v13562_v27, %s15093_s12  ;;  %v13566_v16 = vpop.f32.mrb[192].mxu0 }
 0x7ad   : > { %4040 = vrot.lane.b32.xlu0 %v13563_v50, %s15093_s12  ;;  %v3915_v58 = vpop.f32.mrb[193].mxu0 }
 0x7ae   : > { %v13567_v46 = vpop.f32.mrb[194].mxu0 }
 0x7af   : > { %v3918_v43 = vpop.f32.mrb[195].mxu0 }
 0x7b0   : > { %4042 = vrot.lane.b32.xlu1 %v3915_v58, %s15093_s12 }
 0x7b1   : > { %4044 = vrot.lane.b32.xlu0 %v3918_v43, %s15093_s12 }
 0x7b4   : > { %4046 = vrot.lane.b32.xlu1 %v13566_v16, %s15093_s12  ;;  %v13570_v7 = vpop.f32.mrb[196].mxu0 }
 0x7b5   : > { %4048 = vrot.lane.b32.xlu0 %v13567_v46, %s15093_s12  ;;  %v3931_v59 = vpop.f32.mrb[197].mxu0  ;;  %v4493_v46 = vld [vmem:[%s19380_s3 + $0x40] sm:$0x1] }
 0x7b6   : > { %v13571_v13 = vpop.f32.mrb[198].mxu0 }
 0x7b7   : > { %v3934_v6 = vpop.f32.mrb[199].mxu0 }
 0x7b8   : > { %4050 = vrot.lane.b32.xlu1 %v3931_v59, %s15093_s12  ;;  %v2002_v59 = vld [vmem:[%s19380_s3 + $0x28] sm:$0x1] }
 0x7b9   : > { %4052 = vrot.lane.b32.xlu0 %v3934_v6, %s15093_s12 }
 0x7bc   : > { %4054 = vrot.lane.b32.xlu1 %v13570_v7, %s15093_s12  ;;  %v13574_v49 = vpop.f32.mrb[200].mxu0  ;;  %v4494_v7 = vunpack.c.l.bf16 %v4493_v46 }
 0x7bd   : > { %4056 = vrot.lane.b32.xlu0 %v13571_v13, %s15093_s12  ;;  %v3947_v27 = vpop.f32.mrb[201].mxu0 }
 0x7be   : > { %v13575_v32 = vpop.f32.mrb[202].mxu0 }
 0x7bf   : > { %v3950_v50 = vpop.f32.mrb[203].mxu0 }
 0x7c0   : > { %4058 = vrot.lane.b32.xlu1 %v3947_v27, %s15093_s12  ;;  %v2003_v27 = vunpack.c.l.bf16 %v2002_v59 }
 0x7c1   : > { %4060 = vrot.lane.b32.xlu0 %v3950_v50, %s15093_s12 }
 0x7c4   : > { %4062 = vrot.lane.b32.xlu1 %v13574_v49, %s15093_s12  ;;  %v13578_v51 = vpop.f32.mrb[204].mxu0  ;;  %v16650_v49 = vrot.slane %v4494_v7, %v20069_v21 }
 0x7c5   : > { %4064 = vrot.lane.b32.xlu0 %v13575_v32, %s15093_s12  ;;  %v3963_v16 = vpop.f32.mrb[205].mxu0 }
 0x7c6   : > { %v13579_v58 = vpop.f32.mrb[206].mxu0  ;;  %20070 = vst [vmem:[#allocation118_spill] sm:$0xff] %v16650_v49 }
 0x7c7   : > { %v3966_v43 = vpop.f32.mrb[207].mxu0 }
 0x7c8   : > { %4066 = vrot.lane.b32.xlu1 %v3963_v16, %s15093_s12  ;;  %v2007_v16 = vrot.slane %v2003_v27, %v20069_v21 }
 0x7c9   : > { %4068 = vrot.lane.b32.xlu0 %v3966_v43, %s15093_s12 }
 0x7cc   : > { %4070 = vrot.lane.b32.xlu1 %v13578_v51, %s15093_s12  ;;  %v13584_v13 = vpop.f32.mrb[144].mxu0 }
 0x7cd   : > { %4072 = vrot.lane.b32.xlu0 %v13579_v58, %s15093_s12  ;;  %v4240_v6 = vpop.f32.mrb[145].mxu0 }
 0x7ce   : > { %v13585_v32 = vpop.f32.mrb[146].mxu0 }
 0x7cf   : > { %v4243_v50 = vpop.f32.mrb[147].mxu0 }
 0x7d0   : > { %4772 = vrot.lane.b32.xlu1 %v16595_v60, %s15092_s5 }
 0x7d1   : > { %4512 = vrot.lane.b32.xlu0 %v16650_v49, %s15093_s12 }
 0x7d4   : > { %v13588_v46 = vpop.f32.mrb[148].mxu0  ;;  %4774 = vrot.lane.b32.xlu1 %v16605_v47, %s15092_s5 }
 0x7d5   : > { %2021 = vrot.lane.b32.xlu0 %v2007_v16, %s15093_s12  ;;  %v4256_v51 = vpop.f32.mrb[149].mxu0 }
 0x7d6   : > { %v13589_v58 = vpop.f32.mrb[150].mxu0 }
 0x7d7   : > { %v4259_v43 = vpop.f32.mrb[151].mxu0 }
 0x7dc   : > { %v16660_v7 = vpop.f32.mrb[152].mxu0 }
 0x7dd   : > { %v4272_v59 = vpop.f32.mrb[153].mxu0 }
 0x7de   : > { %v16662_v34 = vpop.f32.mrb[154].mxu0 }
 0x7df   : > { %v4275_v60 = vpop.f32.mrb[155].mxu0 }
 0x7e4   : > { %v16664_v53 = vpop.f32.mrb[156].mxu0 }
 0x7e5   : > { %v16666_v41 = vpop.f32.mrb[157].mxu0 }
 0x7e6   : > { %v16668_v27 = vpop.f32.mrb[158].mxu0 }
 0x7e7   : > { %v16670_v19 = vpop.f32.mrb[159].mxu0 }
 0x7ec   : > { %v16672_v47 = vpop.f32.mrb[160].mxu0 }
 0x7ed   : > { %v16674_v16 = vpop.f32.mrb[161].mxu0 }
 0x7ee   : > { %v16676_v37 = vpop.f32.mrb[162].mxu0 }
 0x7ef   : > { %v16678_v56 = vpop.f32.mrb[163].mxu0 }
 0x7f4   : > { %v16680_v52 = vpop.f32.mrb[164].mxu0 }
 0x7f5   : > { %v16682_v18 = vpop.f32.mrb[165].mxu0 }
 0x7f6   : > { %v16684_v0 = vpop.f32.mrb[166].mxu0 }
 0x7f7   : > { %v16686_v26 = vpop.f32.mrb[167].mxu0 }
 0x7fc   : > { %v16688_v62 = vpop.f32.mrb[168].mxu0 }
 0x7fd   : > { %v16690_v15 = vpop.f32.mrb[169].mxu0 }
 0x7fe   : > { %v16692_v2 = vpop.f32.mrb[170].mxu0 }
 0x7ff   : > { %v4015_v48 = vpop.permute.xlu0 %4014  ;;  %v16694_v9 = vpop.f32.mrb[171].mxu0 }
 0x800   : > { %v14416_v30 = vadd.f32 %v13584_v13, %v4015_v48 }
 0x802   : > { %v4013_v24 = vpop.permute.xlu1 %4012 }
 0x803   : > { %v4011_v38 = vpop.permute.xlu0 %4010  ;;  %v14419_v21 = vadd.f32 %v4243_v50, %v4013_v24 }
 0x804   : > { %v16696_v3 = vpop.f32.mrb[172].mxu0  ;;  %v14417_v49 = vadd.f32 %v4240_v6, %v4011_v38 }
 0x805   : > { %v16698_v12 = vpop.f32.mrb[173].mxu0 }
 0x806   : > { %v4017_v17 = vpop.permute.xlu1 %4016  ;;  %v16700_v10 = vpop.f32.mrb[174].mxu0 }
 0x807   : > { %v14418_v1 = vadd.f32 %v13585_v32, %v4017_v17  ;;  %v16702_v39 = vpop.permute.xlu0 %4406  ;;  %v16704_v11 = vpop.f32.mrb[175].mxu0 }
 0x808   : > { %v4409_v54 = vadd.f32 %v14417_v49, %v16702_v39  ;;  %v4410_v29 = vadd.f32 %v14419_v21, %v16702_v39  ;;  %v4411_v31 = vadd.f32 %v14416_v30, %v16702_v39 }
 0x809   : > { %v4412_v8 = vadd.f32 %v14418_v1, %v16702_v39 }
 0x80a   : > { %v4019_v57 = vpop.permute.xlu1 %4018  ;;  %v4441_v48 = vmax.f32 %v4409_v54, 0.0  ;;  %v4442_v24 = vmax.f32 %v4410_v29, 0.0  ;;  %v4443_v38 = vmax.f32 %v4411_v31, 0.0 }
 0x80b   : > { %v14421_v13 = vadd.f32 %v4256_v51, %v4019_v57  ;;  %v4021_v6 = vpop.permute.xlu0 %4020  ;;  %v4444_v50 = vmax.f32 %v4412_v8, 0.0 }
 0x80c   : > { %v14423_v17 = vadd.f32 %v4259_v43, %v4021_v6  ;;  %v4477_v32 = vpack.c.bf16 %v4442_v24, %v4441_v48 }
 0x80d   : > { %v4413_v22 = vadd.f32 %v14421_v13, %v16702_v39  ;;  %v4478_v23 = vpack.c.bf16 %v4444_v50, %v4443_v38 }
 0x80e   : > { %v4414_v49 = vadd.f32 %v14423_v17, %v16702_v39  ;;  %v4023_v14 = vpop.permute.xlu1 %4022  ;;  %13618 = vmatprep.mubr.msk.bf16.mxu1 %vm20071_vm5, %v4477_v32  ;;  %vm20081_vm5 = vmmov %vm20075_vm0 }
 0x80f   : > { %v4445_v30 = vmax.f32 %v4413_v22, 0.0  ;;  %v14420_v21 = vadd.f32 %v13588_v46, %v4023_v14  ;;  %v4025_v1 = vpop.permute.xlu0 %4024  ;;  %13619 = vmatmul.mubr.msk.bf16.vlgmr.msra.gmra.mrb[112].mxu1 %vm20072_vm8, %v4478_v23  ;;  %vm20082_vm8 = vmmov %vm20075_vm0 }
 0x810   : > { %v4446_v54 = vmax.f32 %v4414_v49, 0.0  ;;  %v14422_v31 = vadd.f32 %v13589_v58, %v4025_v1 }
 0x811   : > { %v4415_v57 = vadd.f32 %v14420_v21, %v16702_v39 }
 0x812   : > { %v4479_v8 = vpack.c.bf16 %v4446_v54, %v4445_v30  ;;  %v4416_v29 = vadd.f32 %v14422_v31, %v16702_v39  ;;  %v4027_v51 = vpop.permute.xlu1 %4026 }
 0x813   : > { %v4447_v43 = vmax.f32 %v4415_v57, 0.0  ;;  %v14425_v48 = vadd.f32 %v4272_v59, %v4027_v51  ;;  %v4029_v24 = vpop.permute.xlu0 %4028 }
 0x814   : > { %v4448_v38 = vmax.f32 %v4416_v29, 0.0  ;;  %v14427_v13 = vadd.f32 %v4275_v60, %v4029_v24  ;;  %13622 = vmatprep.mubr.msk.bf16.mxu1 %vm20073_vm13, %v4479_v8  ;;  %vm20083_vm13 = vmmov %vm20075_vm0 }
 0x815   : > { %v4417_v14 = vadd.f32 %v14425_v48, %v16702_v39 }
 0x816   : > { %v4480_v22 = vpack.c.bf16 %v4448_v38, %v4447_v43  ;;  %v4418_v23 = vadd.f32 %v14427_v13, %v16702_v39  ;;  %v4031_v46 = vpop.permute.xlu1 %4030 }
 0x817   : > { %v4449_v58 = vmax.f32 %v4417_v14, 0.0  ;;  %v14424_v6 = vadd.f32 %v16660_v7, %v4031_v46  ;;  %v4033_v50 = vpop.permute.xlu0 %4032 }
 0x818   : > { %v4450_v17 = vmax.f32 %v4418_v23, 0.0  ;;  %v14426_v32 = vadd.f32 %v16662_v34, %v4033_v50  ;;  %13623 = vmatmul.mubr.msk.bf16.gmra.mrb[116].mxu1 %vm20074_vm15, %v4480_v22  ;;  %vm20084_vm15 = vmmov %vm20075_vm0 }
 0x819   : > { %v4419_v59 = vadd.f32 %v14424_v6, %v16702_v39 }
 0x81a   : > { %v4481_v60 = vpack.c.bf16 %v4450_v17, %v4449_v58  ;;  %v4420_v49 = vadd.f32 %v14426_v32, %v16702_v39  ;;  %v4035_v30 = vpop.permute.xlu1 %4034 }
 0x81b   : > { %v4451_v21 = vmax.f32 %v4419_v59, 0.0  ;;  %v14429_v1 = vadd.f32 %v16666_v41, %v4035_v30  ;;  %v4037_v54 = vpop.permute.xlu0 %4036 }
 0x81c   : > { %v4452_v31 = vmax.f32 %v4420_v49, 0.0  ;;  %v14431_v57 = vadd.f32 %v16670_v19, %v4037_v54  ;;  %13626 = vmatprep.mubr.msk.bf16.mxu1 %vm20075_vm0, %v4481_v60 }
 0x81d   : > { %v4421_v7 = vadd.f32 %v14429_v1, %v16702_v39 }
 0x81e   : > { %v4482_v34 = vpack.c.bf16 %v4452_v31, %v4451_v21  ;;  %v4422_v8 = vadd.f32 %v14431_v57, %v16702_v39  ;;  %v4039_v29 = vpop.permute.xlu1 %4038 }
 0x81f   : > { %v4453_v51 = vmax.f32 %v4421_v7, 0.0  ;;  %v14428_v43 = vadd.f32 %v16664_v53, %v4039_v29  ;;  %v4041_v48 = vpop.permute.xlu0 %4040 }
 0x820   : > { %v4454_v24 = vmax.f32 %v4422_v8, 0.0  ;;  %v14430_v38 = vadd.f32 %v16668_v27, %v4041_v48  ;;  %13627 = vmatmul.mubr.msk.bf16.gmra.mrb[120].mxu1 %vm20076_vm3, %v4482_v34  ;;  %vm20085_vm3 = vmmov %vm20075_vm0 }
 0x821   : > { %v4423_v41 = vadd.f32 %v14428_v43, %v16702_v39 }
 0x822   : > { %v4483_v19 = vpack.c.bf16 %v4454_v24, %v4453_v51  ;;  %v4424_v13 = vadd.f32 %v14430_v38, %v16702_v39  ;;  %v4043_v14 = vpop.permute.xlu1 %4042 }
 0x823   : > { %v4455_v22 = vmax.f32 %v4423_v41, 0.0  ;;  %v14433_v23 = vadd.f32 %v16674_v16, %v4043_v14  ;;  %v4045_v46 = vpop.permute.xlu0 %4044 }
 0x824   : > { %v4456_v58 = vmax.f32 %v4424_v13, 0.0  ;;  %v14435_v6 = vadd.f32 %v16678_v56, %v4045_v46  ;;  %13630 = vmatprep.mubr.msk.bf16.mxu1 %vm20077_vm7, %v4483_v19 }
 0x825   : > { %v4425_v53 = vadd.f32 %v14433_v23, %v16702_v39 }
 0x826   : > { %v4484_v27 = vpack.c.bf16 %v4456_v58, %v4455_v22  ;;  %v4426_v50 = vadd.f32 %v14435_v6, %v16702_v39  ;;  %v4047_v17 = vpop.permute.xlu1 %4046 }
 0x827   : > { %v4457_v32 = vmax.f32 %v4425_v53, 0.0  ;;  %v14432_v59 = vadd.f32 %v16672_v47, %v4047_v17  ;;  %v4049_v60 = vpop.permute.xlu0 %4048 }
 0x828   : > { %v4458_v49 = vmax.f32 %v4426_v50, 0.0  ;;  %v14434_v30 = vadd.f32 %v16676_v37, %v4049_v60  ;;  %13631 = vmatmul.mubr.msk.bf16.gmra.mrb[124].mxu1 %vm20078_vm14, %v4484_v27 }
 0x829   : > { %v4427_v16 = vadd.f32 %v14432_v59, %v16702_v39 }
 0x82a   : > { %v4485_v56 = vpack.c.bf16 %v4458_v49, %v4457_v32  ;;  %v4428_v21 = vadd.f32 %v14434_v30, %v16702_v39  ;;  %v4051_v1 = vpop.permute.xlu1 %4050 }
 0x82b   : > { %v4459_v54 = vmax.f32 %v4427_v16, 0.0  ;;  %v14437_v31 = vadd.f32 %v16682_v18, %v4051_v1  ;;  %v4053_v57 = vpop.permute.xlu0 %4052 }
 0x82c   : > { %v4460_v7 = vmax.f32 %v4428_v21, 0.0  ;;  %v14439_v34 = vadd.f32 %v16686_v26, %v4053_v57  ;;  %13634 = vmatprep.mubr.msk.bf16.mxu1 %vm20079_vm2, %v4485_v56 }
 0x82d   : > { %v4429_v47 = vadd.f32 %v14437_v31, %v16702_v39 }
 0x82e   : > { %v4486_v37 = vpack.c.bf16 %v4460_v7, %v4459_v54  ;;  %v4430_v8 = vadd.f32 %v14439_v34, %v16702_v39  ;;  %v4055_v29 = vpop.permute.xlu1 %4054 }
 0x82f   : > { %v4461_v51 = vmax.f32 %v4429_v47, 0.0  ;;  %v14436_v43 = vadd.f32 %v16680_v52, %v4055_v29  ;;  %v4057_v48 = vpop.permute.xlu0 %4056 }
 0x830   : > { %v4462_v24 = vmax.f32 %v4430_v8, 0.0  ;;  %v14438_v38 = vadd.f32 %v16684_v0, %v4057_v48  ;;  %13635 = vmatmul.mubr.msk.bf16.gmra.mrb[128].mxu1 %vm20080_vm4, %v4486_v37 }
 0x831   : > { %v4431_v18 = vadd.f32 %v14436_v43, %v16702_v39 }
 0x832   : > { %v4487_v26 = vpack.c.bf16 %v4462_v24, %v4461_v51  ;;  %v4432_v41 = vadd.f32 %v14438_v38, %v16702_v39  ;;  %v4059_v19 = vpop.permute.xlu1 %4058 }
 0x833   : > { %v4463_v13 = vmax.f32 %v4431_v18, 0.0  ;;  %v14441_v14 = vadd.f32 %v16690_v15, %v4059_v19  ;;  %v4061_v22 = vpop.permute.xlu0 %4060 }
 0x834   : > { %v4464_v23 = vmax.f32 %v4432_v41, 0.0  ;;  %v14443_v46 = vadd.f32 %v16694_v9, %v4061_v22  ;;  %13638 = vmatprep.mubr.msk.bf16.mxu1 %vm20081_vm5, %v4487_v26 }
 0x835   : > { %v4433_v52 = vadd.f32 %v14441_v14, %v16702_v39 }
 0x836   : > { %v4488_v0 = vpack.c.bf16 %v4464_v23, %v4463_v13  ;;  %v4434_v58 = vadd.f32 %v14443_v46, %v16702_v39  ;;  %v4063_v6 = vpop.permute.xlu1 %4062 }
 0x837   : > { %v4465_v53 = vmax.f32 %v4433_v52, 0.0  ;;  %v14440_v27 = vadd.f32 %v16688_v62, %v4063_v6  ;;  %v4065_v50 = vpop.permute.xlu0 %4064 }
 0x838   : > { %v4466_v17 = vmax.f32 %v4434_v58, 0.0  ;;  %v14442_v32 = vadd.f32 %v16692_v2, %v4065_v50  ;;  %13639 = vmatmul.mubr.msk.bf16.gmra.mrb[132].mxu1 %vm20082_vm8, %v4488_v0 }
 0x839   : > { %v4435_v15 = vadd.f32 %v14440_v27, %v16702_v39 }
 0x83a   : > { %v4489_v9 = vpack.c.bf16 %v4466_v17, %v4465_v53  ;;  %v4436_v59 = vadd.f32 %v14442_v32, %v16702_v39  ;;  %v4067_v60 = vpop.permute.xlu1 %4066 }
 0x83b   : > { %v4467_v49 = vmax.f32 %v4435_v15, 0.0  ;;  %v14445_v30 = vadd.f32 %v16698_v12, %v4067_v60  ;;  %v4069_v16 = vpop.permute.xlu0 %4068 }
 0x83c   : > { %v4468_v56 = vmax.f32 %v4436_v59, 0.0  ;;  %v14447_v21 = vadd.f32 %v16704_v11, %v4069_v16  ;;  %13642 = vmatprep.mubr.msk.bf16.mxu1 %vm20083_vm13, %v4489_v9 }
 0x83d   : > { %v4437_v62 = vadd.f32 %v14445_v30, %v16702_v39 }
 0x83e   : > { %v4490_v2 = vpack.c.bf16 %v4468_v56, %v4467_v49  ;;  %v4438_v1 = vadd.f32 %v14447_v21, %v16702_v39  ;;  %v4071_v54 = vpop.permute.xlu1 %4070  ;;  %v20086_v56 = vld [vmem:[#allocation8_spill] sm:$0xff] }
 0x83f   : > { %v4469_v31 = vmax.f32 %v4437_v62, 0.0  ;;  %v14444_v57 = vadd.f32 %v16696_v3, %v4071_v54  ;;  %v4073_v7 = vpop.permute.xlu0 %4072  ;;  %v20088_v54 = vld [vmem:[#allocation81_spill] sm:$0xff] }
 0x840   : > { %v4470_v34 = vmax.f32 %v4438_v1, 0.0  ;;  %v14446_v47 = vadd.f32 %v16700_v10, %v4073_v7  ;;  %13643 = vmatmul.mubr.msk.bf16.gmra.mrb[136].mxu1 %vm20084_vm15, %v4490_v2  ;;  %v20087_v2 = vld [vmem:[#allocation3_spill] sm:$0xff] }
 0x841   : > { %v4439_v12 = vadd.f32 %v14444_v57, %v16702_v39 }
 0x842   : > { %v4491_v11 = vpack.c.bf16 %v4470_v34, %v4469_v31  ;;  %v4440_v37 = vadd.f32 %v14446_v47, %v16702_v39  ;;  %v4773_v8 = vpop.permute.xlu1 %4772  ;;  %v20090_v47 = vld [vmem:[#allocation10_spill] sm:$0xff] }
 0x843   : > { %v4471_v29 = vmax.f32 %v4439_v12, 0.0  ;;  %v16774_v51 = vpop.permute.xlu0 %4512  ;;  %13650 = vmatprep.subr.bf16.mxu1 %v4773_v8 }
 0x844   : > { %v4472_v43 = vmax.f32 %v4440_v37, 0.0  ;;  %13646 = vmatprep.mubr.msk.bf16.mxu1 %vm20075_vm0, %v4491_v11  ;;  %13651 = vmatpush3.bf16.msra.mxu1 %v4773_v8  ;;  %v20091_v8 = vld [vmem:[#allocation78_spill] sm:$0xff] }
 0x846   : > { %v4492_v3 = vpack.c.bf16 %v4472_v43, %v4471_v29  ;;  %v20092_v43 = vld [vmem:[#allocation80_spill] sm:$0xff] }
 0x847   : > { %v16777_v48 = vpop.permute.xlu0 %2021 }
 0x848   : > { %13647 = vmatmul.mubr.msk.bf16.gmra.mrb[140].mxu1 %vm20085_vm3, %v4492_v3  ;;  %v2110_v10 = vadd.f32 %v16193_v20, %v16777_v48  ;;  %v2174_v39 = vadd.f32 %v16244_v28, %v16777_v48  ;;  %v2107_v24 = vadd.f32 %v16189_v40, %v16777_v48  ;;  %v2171_v38 = vadd.f32 %v16237_v42, %v16777_v48 }
 0x849   : > { %v2118_v18 = vadd.f32 %v16191_v61, %v16777_v48  ;;  %v2182_v26 = vadd.f32 %v16239_v45, %v16777_v48  ;;  %v2115_v20 = vadd.f32 %v16187_v5, %v16777_v48  ;;  %v2179_v28 = vadd.f32 %v16235_v35, %v16777_v48 }
 0x84a   : > { %v11731_v41 = vmul.f32 -1.442695, %v2110_v10  ;;  %v11747_v19 = vmul.f32 -1.442695, %v2174_v39  ;;  %v11730_v13 = vmul.f32 -1.442695, %v2107_v24  ;;  %v2126_v42 = vadd.f32 %v16205_v4, %v16777_v48 }
 0x84b   : > { %v11746_v14 = vmul.f32 -1.442695, %v2171_v38  ;;  %v11733_v40 = vmul.f32 -1.442695, %v2118_v18  ;;  %v11749_v61 = vmul.f32 -1.442695, %v2182_v26  ;;  %v2190_v45 = vadd.f32 %v16253_v44, %v16777_v48 }
 0x84c   : > { %14889 = vpow2.f32 %v11731_v41  ;;  %v11732_v22 = vmul.f32 -1.442695, %v2115_v20  ;;  %v2123_v23 = vadd.f32 %v16201_v63, %v16777_v48  ;;  %v11748_v5 = vmul.f32 -1.442695, %v2179_v28 }
 0x84d   : > { %14891 = vpow2.f32 %v11747_v19  ;;  %v2187_v35 = vadd.f32 %v16249_v36, %v16777_v48  ;;  %v11735_v46 = vmul.f32 -1.442695, %v2126_v42  ;;  %v2134_v4 = vadd.f32 %v16203_v55, %v16777_v48 }
 0x84e   : > { %14893 = vpow2.f32 %v11730_v13  ;;  %v11751_v52 = vmul.f32 -1.442695, %v2190_v45  ;;  %v11734_v0 = vmul.f32 -1.442695, %v2123_v23  ;;  %v2198_v50 = vadd.f32 %v16251_v25, %v16777_v48  ;;  %v20095_v23 = vld [vmem:[#allocation76_spill] sm:$0xff] }
 0x84f   : > { %14895 = vpow2.f32 %v11746_v14  ;;  %v11750_v44 = vmul.f32 -1.442695, %v2187_v35  ;;  %v11737_v58 = vmul.f32 -1.442695, %v2134_v4  ;;  %v2131_v60 = vadd.f32 %v16199_v33, %v16777_v48  ;;  %v20089_v33 = vld [vmem:[#allocation77_spill] sm:$0xff] }
 0x850   : > { %14897 = vpow2.f32 %v11733_v40  ;;  %v11753_v16 = vmul.f32 -1.442695, %v2198_v50  ;;  %v2195_v25 = vadd.f32 %v20086_v56, %v16777_v48  ;;  %v2142_v1 = vadd.f32 %v20087_v2, %v16777_v48  ;;  %v20096_v35 = vld [vmem:[#allocation9_spill] sm:$0xff] }
 0x851   : > { %14899 = vpow2.f32 %v11749_v61  ;;  %v2206_v31 = vadd.f32 %v20088_v54, %v16777_v48  ;;  %v2139_v34 = vadd.f32 %v20089_v33, %v16777_v48  ;;  %v2203_v12 = vadd.f32 %v20090_v47, %v16777_v48 }
 0x852   : > { %14901 = vpow2.f32 %v11732_v22  ;;  %v2150_v29 = vadd.f32 %v20091_v8, %v16777_v48  ;;  %v2214_v3 = vadd.f32 %v20092_v43, %v16777_v48  ;;  %v11736_v24 = vmul.f32 -1.442695, %v2131_v60 }
 0x853   : > { %14903 = vpow2.f32 %v11748_v5  ;;  %v11752_v38 = vmul.f32 -1.442695, %v2195_v25  ;;  %v11739_v41 = vmul.f32 -1.442695, %v2142_v1  ;;  %v11755_v19 = vmul.f32 -1.442695, %v2206_v31 }
 0x854   : > { %14905 = vpow2.f32 %v11735_v46  ;;  %v11738_v14 = vmul.f32 -1.442695, %v2139_v34  ;;  %v11754_v28 = vmul.f32 -1.442695, %v2203_v12  ;;  %v11741_v61 = vmul.f32 -1.442695, %v2150_v29 }
 0x855   : > { %14907 = vpow2.f32 %v11751_v52  ;;  %v11757_v45 = vmul.f32 -1.442695, %v2214_v3  ;;  %v2147_v5 = vadd.f32 %v20095_v23, %v16777_v48  ;;  %v2211_v46 = vadd.f32 %v20096_v35, %v16777_v48 }
 0x856   : > { %v14890_v63 = vpop.eup %14889  ;;  %14909 = vpow2.f32 %v11734_v0  ;;  %v19641_v52 = vmov 0.0  }
 0x857   : > { %v14892_v6 = vpop.eup %14891  ;;  %v2330_v53 = vadd.f32 1.0, %v14890_v63  ;;  %14911 = vpow2.f32 %v11750_v44  ;;  %v20098_v44 = vld [vmem:[#allocation7_spill] sm:$0xff]  ;;  %v4775_v63 = vpop.permute.xlu1 %4774  ;;  %v11756_v56 = vmul.f32 -1.442695, %v2211_v46 }
 0x858   : > { %v14894_v36 = vpop.eup %14893  ;;  %v2346_v27 = vadd.f32 1.0, %v14892_v6  ;;  %14913 = vpow2.f32 %v11737_v58  ;;  %v2158_v58 = vadd.f32 %v20098_v44, %v16777_v48  ;;  %13652 = vmatprep.subr.bf16.mxu1 %v4775_v63 }
 0x859   : > { %v14896_v55 = vpop.eup %14895  ;;  %14915 = vrcp.f32 %v2330_v53  ;;  %v2329_v17 = vadd.f32 1.0, %v14894_v36  ;;  %v20100_v36 = vld [vmem:[#allocation85_spill] sm:$0xff]  ;;  %13653 = vmatpush3.bf16.msra.mxu1 %v4775_v63 }
 0x85a   : > { %v14898_v32 = vpop.eup %14897  ;;  %14917 = vrcp.f32 %v2346_v27  ;;  %v2345_v15 = vadd.f32 1.0, %v14896_v55  ;;  %v2222_v27 = vadd.f32 %v20100_v36, %v16777_v48  ;;  %v11743_v54 = vmul.f32 -1.442695, %v2158_v58 }
 0x85b   : > { %v14900_v9 = vpop.eup %14899  ;;  %14919 = vrcp.f32 %v2329_v17  ;;  %v2332_v59 = vadd.f32 1.0, %v14898_v32 }
 0x85c   : > { %v14902_v49 = vpop.eup %14901  ;;  %14921 = vrcp.f32 %v2345_v15  ;;  %v2348_v30 = vadd.f32 1.0, %v14900_v9  ;;  %v11740_v9 = vmul.f32 -1.442695, %v2147_v5  ;;  %v11759_v47 = vmul.f32 -1.442695, %v2222_v27 }
 0x85d   : > { %v14904_v21 = vpop.eup %14903  ;;  %14923 = vrcp.f32 %v2332_v59  ;;  %v2331_v62 = vadd.f32 1.0, %v14902_v49 }
 0x85e   : > { %v14906_v57 = vpop.eup %14905  ;;  %14925 = vrcp.f32 %v2348_v30  ;;  %v2347_v7 = vadd.f32 1.0, %v14904_v21 }
 0x85f   : > { %v14908_v11 = vpop.eup %14907  ;;  %14927 = vrcp.f32 %v2331_v62  ;;  %v2334_v37 = vadd.f32 1.0, %v14906_v57 }
 0x860   : > { %v14910_v10 = vpop.eup %14909  ;;  %14929 = vrcp.f32 %v2347_v7  ;;  %v2350_v39 = vadd.f32 1.0, %v14908_v11 }
 0x861   : > { %v14912_v18 = vpop.eup %14911  ;;  %14931 = vrcp.f32 %v2334_v37  ;;  %v2333_v26 = vadd.f32 1.0, %v14910_v10 }
 0x862   : > { %v14914_v13 = vpop.eup %14913  ;;  %14933 = vrcp.f32 %v2350_v39  ;;  %v2349_v20 = vadd.f32 1.0, %v14912_v18 }
 0x863   : > { %v16824_v40 = vpop.eup %14915  ;;  %14935 = vrcp.f32 %v2333_v26  ;;  %v2336_v42 = vadd.f32 1.0, %v14914_v13 }
 0x864   : > { %20093 = vst [vmem:[#allocation8_spill] sm:$0xff] %v16824_v40  ;;  %v16826_v22 = vpop.eup %14917  ;;  %vm2426_vm7 = vcmp.gt.f32.partialorder %v16824_v40, 0.5  ;;  %14937 = vrcp.f32 %v2349_v20 }
 0x865   : > { %20094 = vst [vmem:[#allocation3_spill] sm:$0xff] %v16826_v22  ;;  %v16833_v4 = vpop.eup %14919  ;;  %vm2442_vm14 = vcmp.gt.f32.partialorder %v16826_v22, 0.5  ;;  %v11763_v0 = vsel %vm2426_vm7, 1.0, %v19641_v52  ;;  %14939 = vpow2.f32 %v11753_v16 }
 0x866   : > { %20097 = vst [vmem:[#allocation81_spill] sm:$0xff] %v16833_v4  ;;  %v16839_v6 = vpop.eup %14921  ;;  %v11779_v53 = vsel %vm2442_vm14, 1.0, %v19641_v52  ;;  %vm2425_vm2 = vcmp.gt.f32.partialorder %v16833_v4, 0.5  ;;  %14941 = vrcp.f32 %v2336_v42 }
 0x867   : > { %20099 = vst [vmem:[#allocation77_spill] sm:$0xff] %v16839_v6  ;;  %v16845_v50 = vpop.eup %14923  ;;  %v14671_v55 = vpack.i.bf16 %v11763_v0, %v11779_v53  ;;  %vm2441_vm4 = vcmp.gt.f32.partialorder %v16839_v6, 0.5  ;;  %v11762_v17 = vsel %vm2425_vm2, 1.0, %v19641_v52  ;;  %14943 = vpow2.f32 %v11736_v24  ;;  %v20111_v0 = vld [vmem:[#allocation83_spill] sm:$0xff]  ;;  %v20112_v53 = vld [vmem:[#allocation6_spill] sm:$0xff] }
 0x868   : > { %20101 = vst [vmem:[#allocation10_spill] sm:$0xff] %v16845_v50  ;;  %v16849_v32 = vpop.eup %14925  ;;  %v11778_v15 = vsel %vm2441_vm4, 1.0, %v19641_v52  ;;  %vm2428_vm5 = vcmp.gt.f32.partialorder %v16845_v50, 0.5  ;;  %14945 = vpow2.f32 %v11752_v38  ;;  %v2219_v44 = vadd.f32 %v20111_v0, %v16777_v48 }
 0x869   : > { %20102 = vst [vmem:[#allocation78_spill] sm:$0xff] %v16849_v32  ;;  %v16853_v59 = vpop.eup %14927  ;;  %14672 = vperm.xlu0 %14664, %v14671_v55   ;;  %v14666_v60 = vpack.i.bf16 %v11762_v17, %v11778_v15  ;;  %vm2444_vm8 = vcmp.gt.f32.partialorder %v16849_v32, 0.5  ;;  %v11765_v49 = vsel %vm2428_vm5, 1.0, %v19641_v52  ;;  %14947 = vpow2.f32 %v11739_v41  ;;  %v20113_v15 = vld [vmem:[#allocation84_spill] sm:$0xff] }
 0x86a   : > { %20103 = vst [vmem:[#allocation80_spill] sm:$0xff] %v16853_v59  ;;  %v16857_v30 = vpop.eup %14929  ;;  %v11781_v16 = vsel %vm2444_vm8, 1.0, %v19641_v52  ;;  %vm2427_vm13 = vcmp.gt.f32.partialorder %v16853_v59, 0.5  ;;  %14949 = vpow2.f32 %v11755_v19  ;;  %v2166_v36 = vadd.f32 %v20112_v53, %v16777_v48 }
 0x86b   : > { %20104 = vst [vmem:[#allocation76_spill] sm:$0xff] %v16857_v30  ;;  %v16861_v25 = vpop.eup %14931  ;;  %14667 = vperm.xlu1 %14665, %v14666_v60   ;;  %v14681_v21 = vpack.i.bf16 %v11765_v49, %v11781_v16  ;;  %vm2443_vm15 = vcmp.gt.f32.partialorder %v16857_v30, 0.5  ;;  %v11764_v62 = vsel %vm2427_vm13, 1.0, %v19641_v52  ;;  %14951 = vpow2.f32 %v11738_v14 }
 0x86c   : > { %20105 = vst [vmem:[#allocation9_spill] sm:$0xff] %v16861_v25  ;;  %v16865_v2 = vpop.eup %14933  ;;  %v11780_v1 = vsel %vm2443_vm15, 1.0, %v19641_v52  ;;  %vm2430_vm0 = vcmp.gt.f32.partialorder %v16861_v25, 0.5  ;;  %14953 = vpow2.f32 %v11754_v28  ;;  %v20236_v25 = vld [vmem:[#allocation107_spill] sm:$0xff] }
 0x86d   : > { %20106 = vst [vmem:[#allocation7_spill] sm:$0xff] %v16865_v2  ;;  %v16869_v31 = vpop.eup %14935  ;;  %14682 = vperm.xlu0 %14664, %v14681_v21   ;;  %v14676_v57 = vpack.i.bf16 %v11764_v62, %v11780_v1  ;;  %vm2446_vm3 = vcmp.gt.f32.partialorder %v16865_v2, 0.5  ;;  %v11767_v7 = vsel %vm2430_vm0, 1.0, %v19641_v52  ;;  %14955 = vpow2.f32 %v11741_v61  ;;  %v20110_v61 = vld [vmem:[#allocation5_spill] sm:$0xff] }
 0x86e   : > { %20107 = vst [vmem:[#allocation85_spill] sm:$0xff] %v16869_v31  ;;  %v16873_v33 = vpop.eup %14937  ;;  %v11783_v34 = vsel %vm2446_vm3, 1.0, %v19641_v52  ;;  %vm2429_vm7 = vcmp.gt.f32.partialorder %v16869_v31, 0.5  ;;  %14957 = vpow2.f32 %v11757_v45  ;;  %v2155_v45 = vadd.f32 %v20110_v61, %v16777_v48 }
 0x86f   : > { %20108 = vst [vmem:[#allocation119_spill] sm:$0xff] %v16873_v33  ;;  %v14940_v12 = vpop.eup %14939  ;;  %14677 = vperm.xlu1 %14665, %v14676_v57   ;;  %v14691_v11 = vpack.i.bf16 %v11767_v7, %v11783_v34  ;;  %vm2445_vm14 = vcmp.gt.f32.partialorder %v16873_v33, 0.5  ;;  %v11766_v37 = vsel %vm2429_vm7, 1.0, %v19641_v52  ;;  %14959 = vpow2.f32 %v11740_v9 }
 0x870   : > { %v16879_v8 = vpop.eup %14941  ;;  %v11782_v29 = vsel %vm2445_vm14, 1.0, %v19641_v52  ;;  %v2352_v43 = vadd.f32 1.0, %v14940_v12  ;;  %14961 = vpow2.f32 %v11756_v56  ;;  %v11742_v17 = vmul.f32 -1.442695, %v2155_v45  ;;  %v20115_v56 = vld [vmem:[#allocation4_spill] sm:$0xff] }
 0x871   : > { %20109 = vst [vmem:[#allocation120_spill] sm:$0xff] %v16879_v8  ;;  %v14944_v3 = vpop.eup %14943  ;;  %14692 = vperm.xlu0 %14664, %v14691_v11   ;;  %v14686_v10 = vpack.i.bf16 %v11766_v37, %v11782_v29  ;;  %14963 = vpow2.f32 %v11743_v54  ;;  %vm2432_vm2 = vcmp.gt.f32.partialorder %v16879_v8, 0.5  ;;  %v2230_v9 = vadd.f32 %v20113_v15, %v16777_v48  ;;  %v20116_v54 = vld [vmem:[#allocation82_spill] sm:$0xff] }
 0x872   : > { %v14946_v39 = vpop.eup %14945  ;;  %14965 = vrcp.f32 %v2352_v43  ;;  %v2335_v24 = vadd.f32 1.0, %v14944_v3  ;;  %v11769_v49 = vsel %vm2432_vm2, 1.0, %v19641_v52  ;;  %v2163_v21 = vadd.f32 %v20115_v56, %v16777_v48 }
 0x873   : > { %v14948_v38 = vpop.eup %14947  ;;  %14687 = vperm.xlu1 %14665, %v14686_v10   ;;  %v2351_v18 = vadd.f32 1.0, %v14946_v39  ;;  %14967 = vpow2.f32 %v11759_v47  ;;  %v11758_v1 = vmul.f32 -1.442695, %v2219_v44  ;;  %v2227_v57 = vadd.f32 %v20116_v54, %v16777_v48 }
 0x874   : > { %v14950_v26 = vpop.eup %14949  ;;  %14969 = vrcp.f32 %v2335_v24  ;;  %v2338_v41 = vadd.f32 1.0, %v14948_v38  ;;  %v11745_v12 = vmul.f32 -1.442695, %v2166_v36  ;;  %v11761_v29 = vmul.f32 -1.442695, %v2230_v9 }
 0x875   : > { %v14952_v19 = vpop.eup %14951  ;;  %14971 = vrcp.f32 %v2351_v18  ;;  %v2354_v13 = vadd.f32 1.0, %v14950_v26  ;;  %v11744_v3 = vmul.f32 -1.442695, %v2163_v21  ;;  %v11760_v24 = vmul.f32 -1.442695, %v2227_v57 }
 0x876   : > { %v14954_v20 = vpop.eup %14953  ;;  %14973 = vrcp.f32 %v2338_v41  ;;  %v2337_v14 = vadd.f32 1.0, %v14952_v19 }
 0x877   : > { %v14956_v28 = vpop.eup %14955  ;;  %14975 = vrcp.f32 %v2354_v13  ;;  %v2353_v42 = vadd.f32 1.0, %v14954_v20 }
 0x878   : > { %v14958_v23 = vpop.eup %14957  ;;  %14977 = vrcp.f32 %v2337_v14  ;;  %v2340_v5 = vadd.f32 1.0, %v14956_v28 }
 0x879   : > { %v14960_v35 = vpop.eup %14959  ;;  %14979 = vrcp.f32 %v2353_v42  ;;  %v2356_v46 = vadd.f32 1.0, %v14958_v23 }
 0x87a   : > { %v14962_v58 = vpop.eup %14961  ;;  %14981 = vrcp.f32 %v2340_v5  ;;  %v2339_v63 = vadd.f32 1.0, %v14960_v35 }
 0x87b   : > { %v14964_v27 = vpop.eup %14963  ;;  %14983 = vrcp.f32 %v2356_v46  ;;  %v2355_v55 = vadd.f32 1.0, %v14962_v58 }
 0x87c   : > { %v16891_v60 = vpop.eup %14965  ;;  %14985 = vrcp.f32 %v2339_v63  ;;  %v2342_v16 = vadd.f32 1.0, %v14964_v27 }
 0x87d   : > { %20114 = vst [vmem:[#allocation5_spill] sm:$0xff] %v16891_v60  ;;  %v14968_v62 = vpop.eup %14967  ;;  %vm2448_vm4 = vcmp.gt.f32.partialorder %v16891_v60, 0.5  ;;  %14987 = vrcp.f32 %v2355_v55 }
 0x87e   : > { %v16899_v7 = vpop.eup %14969  ;;  %v11785_v34 = vsel %vm2448_vm4, 1.0, %v19641_v52  ;;  %v2358_v47 = vadd.f32 1.0, %v14968_v62  ;;  %14989 = vrcp.f32 %v2342_v16 }
 0x87f   : > { %20117 = vst [vmem:[#allocation83_spill] sm:$0xff] %v16899_v7  ;;  %v16902_v11 = vpop.eup %14971  ;;  %v14701_v37 = vpack.i.bf16 %v11769_v49, %v11785_v34  ;;  %vm2431_vm5 = vcmp.gt.f32.partialorder %v16899_v7, 0.5  ;;  %14991 = vpow2.f32 %v11742_v17 }
 0x880   : > { %20118 = vst [vmem:[#allocation6_spill] sm:$0xff] %v16902_v11  ;;  %v16905_v43 = vpop.eup %14973  ;;  %vm2447_vm8 = vcmp.gt.f32.partialorder %v16902_v11, 0.5  ;;  %v11768_v48 = vsel %vm2431_vm5, 1.0, %v19641_v52  ;;  %14993 = vrcp.f32 %v2358_v47 }
 0x881   : > { %20119 = vst [vmem:[#allocation84_spill] sm:$0xff] %v16905_v43  ;;  %v16909_v10 = vpop.eup %14975  ;;  %14702 = vperm.xlu0 %14664, %v14701_v37   ;;  %v11784_v39 = vsel %vm2447_vm8, 1.0, %v19641_v52  ;;  %vm2434_vm13 = vcmp.gt.f32.partialorder %v16905_v43, 0.5  ;;  %14995 = vpow2.f32 %v11758_v1 }
 0x882   : > { %20120 = vst [vmem:[#allocation4_spill] sm:$0xff] %v16909_v10  ;;  %v16913_v38 = vpop.eup %14977  ;;  %v14696_v18 = vpack.i.bf16 %v11768_v48, %v11784_v39  ;;  %vm2450_vm15 = vcmp.gt.f32.partialorder %v16909_v10, 0.5  ;;  %v11771_v26 = vsel %vm2434_vm13, 1.0, %v19641_v52  ;;  %14997 = vpow2.f32 %v11745_v12 }
 0x883   : > { %20121 = vst [vmem:[#allocation82_spill] sm:$0xff] %v16913_v38  ;;  %v16917_v41 = vpop.eup %14979  ;;  %v11787_v19 = vsel %vm2450_vm15, 1.0, %v19641_v52  ;;  %vm2433_vm0 = vcmp.gt.f32.partialorder %v16913_v38, 0.5  ;;  %14999 = vpow2.f32 %v11761_v29 }
 0x884   : > { %20122 = vst [vmem:[#allocation121_spill] sm:$0xff] %v16917_v41  ;;  %v16921_v13 = vpop.eup %14981  ;;  %14697 = vperm.xlu1 %14665, %v14696_v18   ;;  %v14711_v20 = vpack.i.bf16 %v11771_v26, %v11787_v19  ;;  %vm2449_vm3 = vcmp.gt.f32.partialorder %v16917_v41, 0.5  ;;  %v11770_v14 = vsel %vm2433_vm0, 1.0, %v19641_v52  ;;  %15001 = vpow2.f32 %v11744_v3 }
 0x885   : > { %20123 = vst [vmem:[#allocation122_spill] sm:$0xff] %v16921_v13  ;;  %v16925_v28 = vpop.eup %14983  ;;  %v11786_v42 = vsel %vm2449_vm3, 1.0, %v19641_v52  ;;  %vm2436_vm7 = vcmp.gt.f32.partialorder %v16921_v13, 0.5  ;;  %15003 = vpow2.f32 %v11760_v24  ;;  %v20235_v13 = vld [vmem:[#allocation106_spill] sm:$0xff] }
 0x886   : > { %20124 = vst [vmem:[#allocation123_spill] sm:$0xff] %v16925_v28  ;;  %v16929_v61 = vpop.eup %14985  ;;  %14712 = vperm.xlu0 %14664, %v14711_v20   ;;  %v14706_v45 = vpack.i.bf16 %v11770_v14, %v11786_v42  ;;  %vm2452_vm14 = vcmp.gt.f32.partialorder %v16925_v28, 0.5  ;;  %v11773_v23 = vsel %vm2436_vm7, 1.0, %v19641_v52 }
 0x887   : > { %20125 = vst [vmem:[#allocation124_spill] sm:$0xff] %v16929_v61  ;;  %v16933_v5 = vpop.eup %14987  ;;  %v11789_v35 = vsel %vm2452_vm14, 1.0, %v19641_v52  ;;  %vm2435_vm2 = vcmp.gt.f32.partialorder %v16929_v61, 0.5 }
 0x888   : > { %20126 = vst [vmem:[#allocation125_spill] sm:$0xff] %v16933_v5  ;;  %v16937_v46 = vpop.eup %14989  ;;  %14707 = vperm.xlu1 %14665, %v14706_v45   ;;  %v14721_v0 = vpack.i.bf16 %v11773_v23, %v11789_v35  ;;  %vm2451_vm4 = vcmp.gt.f32.partialorder %v16933_v5, 0.5  ;;  %v11772_v44 = vsel %vm2435_vm2, 1.0, %v19641_v52  ;;  %v20135_v23 = vld [vmem:[#allocation118_spill] sm:$0xff] }
 0x889   : > { %20127 = vst [vmem:[#allocation126_spill] sm:$0xff] %v16937_v46  ;;  %v14992_v58 = vpop.eup %14991  ;;  %v11788_v63 = vsel %vm2451_vm4, 1.0, %v19641_v52  ;;  %vm2438_vm5 = vcmp.gt.f32.partialorder %v16937_v46, 0.5 }
 0x88a   : > { %v16943_v53 = vpop.eup %14993  ;;  %14722 = vperm.xlu0 %14664, %v14721_v0   ;;  %v14716_v36 = vpack.i.bf16 %v11772_v44, %v11788_v63  ;;  %v11775_v27 = vsel %vm2438_vm5, 1.0, %v19641_v52  ;;  %v2341_v55 = vadd.f32 1.0, %v14992_v58 }
 0x88b   : > { %20128 = vst [vmem:[#allocation127_spill] sm:$0xff] %v16943_v53  ;;  %v14996_v17 = vpop.eup %14995  ;;  %vm2454_vm8 = vcmp.gt.f32.partialorder %v16943_v53, 0.5 }
 0x88c   : > { %v14998_v15 = vpop.eup %14997  ;;  %14717 = vperm.xlu1 %14665, %v14716_v36   ;;  %v11791_v9 = vsel %vm2454_vm8, 1.0, %v19641_v52  ;;  %v2357_v49 = vadd.f32 1.0, %v14996_v17  ;;  %15005 = vrcp.f32 %v2341_v55  ;;  %v20136_v17 = vld [vmem:[#allocation11_spill] sm:$0xff] }
 0x88d   : > { %v15000_v16 = vpop.eup %14999  ;;  %v14731_v56 = vpack.i.bf16 %v11775_v27, %v11791_v9  ;;  %v2344_v21 = vadd.f32 1.0, %v14998_v15  ;;  %v20137_v15 = vld [vmem:[#allocation15_spill] sm:$0xff] }
 0x88e   : > { %v15002_v62 = vpop.eup %15001  ;;  %15007 = vrcp.f32 %v2357_v49  ;;  %v2360_v1 = vadd.f32 1.0, %v15000_v16  ;;  %vm20138_vm2 = vcmp.eq.s32.totalorder %v20136_v17, %v20137_v15  ;;  %v20151_v15 = vld [vmem:[#allocation30_spill] sm:$0xff] }
 0x88f   : > { %v15004_v54 = vpop.eup %15003  ;;  %14732 = vperm.xlu0 %14664, %v14731_v56   ;;  %15009 = vrcp.f32 %v2344_v21  ;;  %v2343_v57 = vadd.f32 1.0, %v15002_v62  ;;  %v11544_v9 = vsel %vm20138_vm2, 1.0, %v19641_v52  ;;  %v20139_v56 = vld [vmem:[#allocation12_spill] sm:$0xff]  ;;  %vm20157_vm2 = vcmask 261120  }
 0x890   : > { %15011 = vrcp.f32 %v2360_v1  ;;  %v2359_v34 = vadd.f32 1.0, %v15004_v54  ;;  %vm20140_vm4 = vcmp.eq.s32.totalorder %v20136_v17, %v20139_v56  ;;  %v20141_v62 = vld [vmem:[#allocation16_spill] sm:$0xff] }
 0x891   : > { %15013 = vrcp.f32 %v2343_v57  ;;  %v11542_v21 = vsel %vm20140_vm4, 1.0, %v19641_v52  ;;  %vm20142_vm5 = vcmp.eq.s32.totalorder %v20136_v17, %v20141_v62  ;;  %v20155_v62 = vld [vmem:[#allocation32_spill] sm:$0xff]  ;;  %vm20158_vm4 = vmmov %vm20157_vm2 }
 0x892   : > { %15015 = vrcp.f32 %v2359_v34  ;;  %v11545_v1 = vsel %vm20142_vm5, 1.0, %v19641_v52 }
 0x896   : > { %v16948_v47 = vpop.eup %15005 }
 0x897   : > { %20129 = vst [vmem:[#allocation128_spill] sm:$0xff] %v16948_v47  ;;  %vm2437_vm13 = vcmp.gt.f32.partialorder %v16948_v47, 0.5 }
 0x898   : > { %v16951_v12 = vpop.eup %15007  ;;  %v11774_v37 = vsel %vm2437_vm13, 1.0, %v19641_v52 }
 0x899   : > { %20130 = vst [vmem:[#allocation129_spill] sm:$0xff] %v16951_v12  ;;  %v16954_v29 = vpop.eup %15009  ;;  %vm2453_vm15 = vcmp.gt.f32.partialorder %v16951_v12, 0.5 }
 0x89a   : > { %20131 = vst [vmem:[#allocation130_spill] sm:$0xff] %v16954_v29  ;;  %v16957_v48 = vpop.eup %15011  ;;  %v11790_v3 = vsel %vm2453_vm15, 1.0, %v19641_v52  ;;  %vm2440_vm0 = vcmp.gt.f32.partialorder %v16954_v29, 0.5 }
 0x89b   : > { %20132 = vst [vmem:[#allocation131_spill] sm:$0xff] %v16957_v48  ;;  %v16961_v39 = vpop.eup %15013  ;;  %v14726_v24 = vpack.i.bf16 %v11774_v37, %v11790_v3  ;;  %vm2456_vm3 = vcmp.gt.f32.partialorder %v16957_v48, 0.5  ;;  %v11777_v18 = vsel %vm2440_vm0, 1.0, %v19641_v52  ;;  %v20143_v37 = vld [vmem:[#allocation13_spill] sm:$0xff] }
 0x89c   : > { %20133 = vst [vmem:[#allocation132_spill] sm:$0xff] %v16961_v39  ;;  %v16965_v26 = vpop.eup %15015  ;;  %v11793_v19 = vsel %vm2456_vm3, 1.0, %v19641_v52  ;;  %vm2439_vm7 = vcmp.gt.f32.partialorder %v16961_v39, 0.5  ;;  %vm20144_vm8 = vcmp.eq.s32.totalorder %v20136_v17, %v20143_v37  ;;  %vm20152_vm3 = vcmp.eq.s32.totalorder %v20136_v17, %v20151_v15 }
 0x89d   : > { %20134 = vst [vmem:[#allocation133_spill] sm:$0xff] %v16965_v26  ;;  %14727 = vperm.xlu1 %14665, %v14726_v24   ;;  %v14741_v20 = vpack.i.bf16 %v11777_v18, %v11793_v19  ;;  %vm2455_vm14 = vcmp.gt.f32.partialorder %v16965_v26, 0.5  ;;  %v11776_v14 = vsel %vm2439_vm7, 1.0, %v19641_v52  ;;  %v11543_v3 = vsel %vm20144_vm8, 1.0, %v19641_v52 }
 0x89e   : > { %v11792_v42 = vsel %vm2455_vm14, 1.0, %v19641_v52  ;;  %vm20156_vm14 = vcmp.eq.s32.totalorder %v20136_v17, %v20155_v62 }
 0x89f   : > { %14742 = vperm.xlu0 %14664, %v14741_v20   ;;  %v14736_v45 = vpack.i.bf16 %v11776_v14, %v11792_v42  ;;  %v20145_v20 = vld [vmem:[#allocation17_spill] sm:$0xff]  ;;  %v20147_v42 = vld [vmem:[#allocation18_spill] sm:$0xff] }
 0x8a0   : > { %vm20146_vm13 = vcmp.eq.s32.totalorder %v20136_v17, %v20145_v20  ;;  %vm20148_vm15 = vcmp.eq.s32.totalorder %v20136_v17, %v20147_v42 }
 0x8a1   : > { %14737 = vperm.xlu1 %14665, %v14736_v45   ;;  %v11547_v14 = vsel %vm20146_vm13, 1.0, %v19641_v52  ;;  %v11546_v45 = vsel %vm20148_vm15, 1.0, %v19641_v52  ;;  %vm20164_vm13 = vmmov %vm20157_vm2 }
 0x8a2   : > { %vm20165_vm15 = vmmov %vm20157_vm2 }
 0x8a5   : > { %4778 = vrot.lane.b32.xlu1 %v20135_v23, %s15094_s19  ;;  %v20149_v23 = vld [vmem:[#allocation29_spill] sm:$0xff] }
 0x8a6   : > { %vm20150_vm0 = vcmp.eq.s32.totalorder %v20136_v17, %v20149_v23  ;;  %v20159_v23 = vld [vmem:[#allocation33_spill] sm:$0xff] }
 0x8a7   : > { %vm20160_vm5 = vcmp.eq.s32.totalorder %v20136_v17, %v20159_v23 }
 0x8e2   : > { %v13620_v35 = vpop.f32.mrb[112].mxu1 }
 0x8e3   : > { %v4606_v0 = vadd.f32 %v13620_v35, %v16774_v51  ;;  %v4597_v44 = vpop.f32.mrb[113].mxu1  ;;  %v11559_v35 = vsel %vm20150_vm0, 1.0, %v19641_v52  ;;  %vm20166_vm0 = vmmov %vm20157_vm2 }
 0x8e4   : > { %v4598_v58 = vadd.f32 %v4597_v44, %v16774_v51  ;;  %v13621_v63 = vpop.f32.mrb[114].mxu1 }
 0x8e5   : > { %v4609_v36 = vadd.f32 %v13621_v63, %v16774_v51  ;;  %v4600_v27 = vpop.f32.mrb[115].mxu1  ;;  %v4726_v49 = vmax.f32 %v4606_v0, 0.0 }
 0x8e6   : > { %v4601_v55 = vadd.f32 %v4600_v27, %v16774_v51  ;;  %v4724_v54 = vmax.f32 %v4598_v58, 0.0 }
 0x8e7   : > { %v4727_v16 = vmax.f32 %v4609_v36, 0.0 }
 0x8e8   : > { %v4725_v57 = vmax.f32 %v4601_v55, 0.0  ;;  %v14673_v34 = vpop.permute.xlu0 %14672 }
 0x8e9   : > { %v4757_v24 = vpack.c.bf16 %v4727_v16, %v4726_v49  ;;  %v14675_v18 = vunpack.i.h.bf16 %v14673_v34  ;;  %v14674_v19 = vunpack.i.l.bf16 %v14673_v34  ;;  %v11558_v49 = vsel %vm20152_vm3, 1.0, %v19641_v52  ;;  %v20153_v16 = vld [vmem:[#allocation31_spill] sm:$0xff]  ;;  %vm20167_vm3 = vmmov %vm20166_vm0 }
 0x8ea   : > { %v4756_v0 = vpack.c.bf16 %v4725_v57, %v4724_v54  ;;  %v14668_v44 = vpop.permute.xlu1 %14667  ;;  %vm20154_vm7 = vcmp.eq.s32.totalorder %v20136_v17, %v20153_v16  ;;  %v11560_v54 = vsel %vm20156_vm14, 1.0, %v19641_v52 }
 0x8eb   : > { %v2682_v58 = vmul.f32 %v14675_v18, %v11543_v3  ;;  %v2698_v63 = vmul.f32 %v14674_v19, %v11559_v35  ;;  %v14670_v36 = vunpack.i.h.bf16 %v14668_v44  ;;  %v14669_v27 = vunpack.i.l.bf16 %v14668_v44  ;;  %v13624_v55 = vpop.f32.mrb[116].mxu1 }
 0x8ec   : > { %v11561_v56 = vsel %vm20154_vm7, 1.0, %v19641_v52  ;;  %v14683_v57 = vpop.permute.xlu0 %14682  ;;  %v4622_v34 = vadd.f32 %v13624_v55, %v16774_v51  ;;  %v4613_v37 = vpop.f32.mrb[117].mxu1  ;;  %13654 = vmatprep.mubr.msk.bf16.mxu1 %vm20157_vm2, %v4756_v0  ;;  %v11563_v35 = vsel %vm20160_vm5, 1.0, %v19641_v52 }
 0x8ed   : > { %v2681_v3 = vmul.f32 %v14670_v36, %v11542_v21  ;;  %v2697_v18 = vmul.f32 %v14669_v27, %v11558_v49  ;;  %v14685_v19 = vunpack.i.h.bf16 %v14683_v57  ;;  %v14684_v20 = vunpack.i.l.bf16 %v14683_v57  ;;  %v13625_v42 = vpop.f32.mrb[118].mxu1  ;;  %13655 = vmatmul.mubr.msk.bf16.vlgmr.msra.gmra.mrb[144].mxu1 %vm20158_vm4, %v4757_v24 }
 0x8ee   : > { %v14678_v44 = vpop.permute.xlu1 %14677  ;;  %v4614_v15 = vadd.f32 %v4613_v37, %v16774_v51  ;;  %v4625_v55 = vadd.f32 %v13625_v42, %v16774_v51  ;;  %v4616_v16 = vpop.f32.mrb[119].mxu1  ;;  %v14748_v62 = vpack.i.bf16 %v2682_v58, %v2698_v63  ;;  %v4730_v49 = vmax.f32 %v4622_v34, 0.0 }
 0x8ef   : > { %v2684_v0 = vmul.f32 %v14685_v19, %v11545_v1  ;;  %v2700_v21 = vmul.f32 %v14684_v20, %v11561_v56  ;;  %v14680_v36 = vunpack.i.h.bf16 %v14678_v44  ;;  %v14679_v27 = vunpack.i.l.bf16 %v14678_v44  ;;  %v20162_v19 = vld [vmem:[#allocation34_spill] sm:$0xff] }
 0x8f0   : > { %v4731_v57 = vmax.f32 %v4625_v55, 0.0  ;;  %v14746_v48 = vpack.i.bf16 %v2681_v3, %v2697_v18  ;;  %v4617_v24 = vadd.f32 %v4616_v16, %v16774_v51  ;;  %v14693_v26 = vpop.permute.xlu0 %14692  ;;  %v4728_v28 = vmax.f32 %v4614_v15, 0.0 }
 0x8f1   : > { %v2683_v53 = vmul.f32 %v14680_v36, %v11544_v9  ;;  %v2699_v23 = vmul.f32 %v14679_v27, %v11560_v54  ;;  %v14695_v52 = vunpack.i.h.bf16 %v14693_v26  ;;  %v14694_v12 = vunpack.i.l.bf16 %v14693_v26 }
 0x8f2   : > { %v4759_v37 = vpack.c.bf16 %v4731_v57, %v4730_v49  ;;  %14747 = vxpose.xlu0.b32.start [1/16] %v14746_v48, 128  ;;  %v4729_v42 = vmax.f32 %v4617_v24, 0.0  ;;  %v14688_v5 = vpop.permute.xlu1 %14687  ;;  %v14752_v58 = vpack.i.bf16 %v2684_v0, %v2700_v21  ;;  %v20161_v18 = vmov 0.0  }
 0x8f3   : > { %v17028_v1 = vmul.f32 %v14695_v52, %v11547_v14  ;;  %v17030_v63 = vmul.f32 %v14694_v12, %v11563_v35  ;;  %v14690_v56 = vunpack.i.h.bf16 %v14688_v5  ;;  %v14689_v34 = vunpack.i.l.bf16 %v14688_v5  ;;  %v13628_v3 = vpop.f32.mrb[120].mxu1 }
 0x8f4   : > { %vm20163_vm8 = vcmp.eq.s32.totalorder %v20136_v17, %v20162_v19  ;;  %v4758_v54 = vpack.c.bf16 %v4729_v42, %v4728_v28  ;;  %v4638_v26 = vadd.f32 %v13628_v3, %v16774_v51  ;;  %v4629_v20 = vpop.f32.mrb[121].mxu1  ;;  %v14750_v48 = vpack.i.bf16 %v2683_v53, %v2699_v23 }
 0x8f5   : > { %v11562_v9 = vsel %vm20163_vm8, 1.0, %v20161_v18  ;;  %v2685_v44 = vmul.f32 %v14690_v56, %v11546_v45  ;;  %v4630_v52 = vadd.f32 %v4629_v20, %v16774_v51  ;;  %v13629_v14 = vpop.f32.mrb[122].mxu1  ;;  %v14756_v12 = vpack.i.bf16 %v17028_v1, %v17030_v63  ;;  %v20168_v1 = vld [vmem:[#allocation19_spill] sm:$0xff]  ;;  %v20170_v56 = vld [vmem:[#allocation20_spill] sm:$0xff] }
 0x8f6   : > { %v2701_v15 = vmul.f32 %v14689_v34, %v11562_v9  ;;  %14749 = vxpose.xlu0.b32.cont [2/16] %v14748_v62, 128  ;;  %v4641_v5 = vadd.f32 %v13629_v14, %v16774_v51  ;;  %13658 = vmatprep.mubr.msk.bf16.mxu1 %vm20164_vm13, %v4758_v54  ;;  %v4632_v35 = vpop.f32.mrb[123].mxu1  ;;  %v4734_v53 = vmax.f32 %v4638_v26, 0.0  ;;  %vm20169_vm7 = vcmp.eq.s32.totalorder %v20136_v17, %v20168_v1  ;;  %v20176_v14 = vld [vmem:[#allocation35_spill] sm:$0xff] }
 0x8f7   : > { %v4633_v28 = vadd.f32 %v4632_v35, %v16774_v51  ;;  %13659 = vmatmul.mubr.msk.bf16.gmra.mrb[148].mxu1 %vm20165_vm15, %v4759_v37  ;;  %v4732_v16 = vmax.f32 %v4630_v52, 0.0  ;;  %v11549_v63 = vsel %vm20169_vm7, 1.0, %v20161_v18  ;;  %vm20171_vm14 = vcmp.eq.s32.totalorder %v20136_v17, %v20170_v56 }
 0x8f8   : > { %v14754_v55 = vpack.i.bf16 %v2685_v44, %v2701_v15  ;;  %v4735_v45 = vmax.f32 %v4641_v5, 0.0  ;;  %v11548_v34 = vsel %vm20171_vm14, 1.0, %v20161_v18  ;;  %v20174_v15 = vld [vmem:[#allocation22_spill] sm:$0xff]  ;;  %vm20177_vm5 = vcmp.eq.s32.totalorder %v20136_v17, %v20176_v14  ;;  %vm20188_vm14 = vmmov %vm20167_vm3 }
 0x8f9   : > { %v4733_v0 = vmax.f32 %v4633_v28, 0.0  ;;  %vm20175_vm4 = vcmp.eq.s32.totalorder %v20136_v17, %v20174_v15  ;;  %v11565_v5 = vsel %vm20177_vm5, 1.0, %v20161_v18  ;;  %v20178_v28 = vld [vmem:[#allocation23_spill] sm:$0xff]  ;;  %vm20193_vm5 = vmmov %vm20167_vm3 }
 0x8fa   : > { %v4761_v21 = vpack.c.bf16 %v4735_v45, %v4734_v53  ;;  %14751 = vxpose.xlu0.b32.cont [3/16] %v14750_v48, 128  ;;  %v20172_v48 = vld [vmem:[#allocation21_spill] sm:$0xff]  ;;  %v11550_v52 = vsel %vm20175_vm4, 1.0, %v20161_v18  ;;  %vm20179_vm8 = vcmp.eq.s32.totalorder %v20136_v17, %v20178_v28 }
 0x8fb   : > { %v4760_v36 = vpack.c.bf16 %v4733_v0, %v4732_v16  ;;  %v13632_v27 = vpop.f32.mrb[124].mxu1  ;;  %vm20173_vm2 = vcmp.eq.s32.totalorder %v20136_v17, %v20172_v48  ;;  %v11553_v53 = vsel %vm20179_vm8, 1.0, %v20161_v18  ;;  %v20186_v48 = vld [vmem:[#allocation38_spill] sm:$0xff] }
 0x8fc   : > { %v4654_v62 = vadd.f32 %v13632_v27, %v16774_v51  ;;  %v4645_v49 = vpop.f32.mrb[125].mxu1  ;;  %v11551_v44 = vsel %vm20173_vm2, 1.0, %v20161_v18  ;;  %v20180_v27 = vld [vmem:[#allocation24_spill] sm:$0xff]  ;;  %vm20187_vm7 = vcmp.eq.s32.totalorder %v20136_v17, %v20186_v48 }
 0x8fd   : > { %v4646_v57 = vadd.f32 %v4645_v49, %v16774_v51  ;;  %v13633_v24 = vpop.f32.mrb[126].mxu1  ;;  %13662 = vmatprep.mubr.msk.bf16.mxu1 %vm20166_vm0, %v4760_v36  ;;  %vm20181_vm13 = vcmp.eq.s32.totalorder %v20136_v17, %v20180_v27  ;;  %v11566_v15 = vsel %vm20187_vm7, 1.0, %v20161_v18 }
 0x8fe   : > { %14753 = vxpose.xlu0.b32.cont [4/16] %v14752_v58, 128  ;;  %v4657_v23 = vadd.f32 %v13633_v24, %v16774_v51  ;;  %v4648_v37 = vpop.f32.mrb[127].mxu1  ;;  %v4738_v19 = vmax.f32 %v4654_v62, 0.0  ;;  %v11552_v62 = vsel %vm20181_vm13, 1.0, %v20161_v18 }
 0x8ff   : > { %v4649_v42 = vadd.f32 %v4648_v37, %v16774_v51  ;;  %13663 = vmatmul.mubr.msk.bf16.gmra.mrb[152].mxu1 %vm20167_vm3, %v4761_v21  ;;  %v4736_v26 = vmax.f32 %v4646_v57, 0.0 }
 0x900   : > { %v14703_v3 = vpop.permute.xlu0 %14702  ;;  %v4739_v58 = vmax.f32 %v4657_v23, 0.0  ;;  %v20182_v23 = vld [vmem:[#allocation36_spill] sm:$0xff] }
 0x901   : > { %v14705_v9 = vunpack.i.h.bf16 %v14703_v3  ;;  %v14704_v54 = vunpack.i.l.bf16 %v14703_v3  ;;  %v4737_v20 = vmax.f32 %v4649_v42, 0.0  ;;  %vm20183_vm15 = vcmp.eq.s32.totalorder %v20136_v17, %v20182_v23  ;;  %v20184_v42 = vld [vmem:[#allocation37_spill] sm:$0xff] }
 0x902   : > { %v4763_v35 = vpack.c.bf16 %v4739_v58, %v4738_v19  ;;  %14755 = vxpose.xlu0.b32.cont [5/16] %v14754_v55, 128  ;;  %v11564_v37 = vsel %vm20183_vm15, 1.0, %v20161_v18  ;;  %vm20185_vm0 = vcmp.eq.s32.totalorder %v20136_v17, %v20184_v42  ;;  %v20189_v42 = vld [vmem:[#allocation41_spill] sm:$0xff]  ;;  %vm20198_vm15 = vmmov %vm20167_vm3 }
 0x903   : > { %v17074_v45 = vmul.f32 %v14705_v9, %v11549_v63  ;;  %v17076_v16 = vmul.f32 %v14704_v54, %v11565_v5  ;;  %v14698_v0 = vpop.permute.xlu1 %14697  ;;  %v4762_v21 = vpack.c.bf16 %v4737_v20, %v4736_v26  ;;  %v13636_v36 = vpop.f32.mrb[128].mxu1  ;;  %v11567_v1 = vsel %vm20185_vm0, 1.0, %v20161_v18  ;;  %vm20199_vm0 = vmmov %vm20167_vm3 }
 0x904   : > { %v14700_v49 = vunpack.i.h.bf16 %v14698_v0  ;;  %v14699_v57 = vunpack.i.l.bf16 %v14698_v0  ;;  %v4670_v55 = vadd.f32 %v13636_v36, %v16774_v51  ;;  %v4661_v24 = vpop.f32.mrb[129].mxu1  ;;  %vm20190_vm2 = vcmp.eq.s32.totalorder %v20136_v17, %v20189_v42 }
 0x905   : > { %v14713_v63 = vpop.permute.xlu0 %14712  ;;  %v4662_v56 = vadd.f32 %v4661_v24, %v16774_v51  ;;  %v13637_v3 = vpop.f32.mrb[130].mxu1  ;;  %13666 = vmatprep.mubr.msk.bf16.mxu1 %vm20167_vm3, %v4762_v21  ;;  %v14760_v19 = vpack.i.bf16 %v17074_v45, %v17076_v16  ;;  %vm20200_vm3 = vmmov %vm20199_vm0 }
 0x906   : > { %v2687_v58 = vmul.f32 %v14700_v49, %v11548_v34  ;;  %v2703_v9 = vmul.f32 %v14699_v57, %v11564_v37  ;;  %v14715_v54 = vunpack.i.h.bf16 %v14713_v63  ;;  %v14714_v26 = vunpack.i.l.bf16 %v14713_v63  ;;  %14757 = vxpose.xlu0.b32.cont [6/16] %v14756_v12, 128  ;;  %v4664_v20 = vpop.f32.mrb[131].mxu1 }
 0x907   : > { %v14708_v14 = vpop.permute.xlu1 %14707  ;;  %v4742_v5 = vmax.f32 %v4670_v55, 0.0  ;;  %v4673_v28 = vadd.f32 %v13637_v3, %v16774_v51  ;;  %v4665_v0 = vadd.f32 %v4664_v20, %v16774_v51  ;;  %13667 = vmatmul.mubr.msk.bf16.gmra.mrb[156].mxu1 %vm20188_vm14, %v4763_v35  ;;  %v4740_v36 = vmax.f32 %v4662_v56, 0.0  ;;  %v20191_v20 = vld [vmem:[#allocation42_spill] sm:$0xff] }
 0x908   : > { %v17102_v45 = vmul.f32 %v14715_v54, %v11551_v44  ;;  %v2706_v34 = vmul.f32 %v14714_v26, %v11567_v1  ;;  %v14710_v16 = vunpack.i.h.bf16 %v14708_v14  ;;  %v14709_v21 = vunpack.i.l.bf16 %v14708_v14 }
 0x909   : > { %v14723_v12 = vpop.permute.xlu0 %14722  ;;  %v4743_v27 = vmax.f32 %v4673_v28, 0.0  ;;  %v14758_v49 = vpack.i.bf16 %v2687_v58, %v2703_v9  ;;  %v4741_v57 = vmax.f32 %v4665_v0, 0.0  ;;  %v11569_v63 = vsel %vm20190_vm2, 1.0, %v20161_v18 }
 0x90a   : > { %v2689_v24 = vmul.f32 %v14710_v16, %v11550_v52  ;;  %v2705_v23 = vmul.f32 %v14709_v21, %v11566_v15  ;;  %v14725_v37 = vunpack.i.h.bf16 %v14723_v12  ;;  %v14724_v55 = vunpack.i.l.bf16 %v14723_v12  ;;  %v20194_v12 = vld [vmem:[#allocation25_spill] sm:$0xff] }
 0x90b   : > { %v14718_v35 = vpop.permute.xlu1 %14717  ;;  %v4765_v44 = vpack.c.bf16 %v4743_v27, %v4742_v5  ;;  %14759 = vxpose.xlu0.b32.cont [7/16] %v14758_v49, 128  ;;  %v4764_v1 = vpack.c.bf16 %v4741_v57, %v4740_v36  ;;  %v13640_v3 = vpop.f32.mrb[132].mxu1  ;;  %v14764_v54 = vpack.i.bf16 %v17102_v45, %v2706_v34  ;;  %vm20192_vm4 = vcmp.eq.s32.totalorder %v20136_v17, %v20191_v20  ;;  %v20196_v27 = vld [vmem:[#allocation45_spill] sm:$0xff] }
 0x90c   : > { %v17109_v56 = vmul.f32 %v14725_v37, %v11553_v53  ;;  %v17111_v58 = vmul.f32 %v14724_v55, %v11569_v63  ;;  %v14720_v52 = vunpack.i.h.bf16 %v14718_v35  ;;  %v14719_v9 = vunpack.i.l.bf16 %v14718_v35  ;;  %v4677_v26 = vpop.f32.mrb[133].mxu1 }
 0x90d   : > { %v11568_v48 = vsel %vm20192_vm4, 1.0, %v20161_v18  ;;  %v4686_v15 = vadd.f32 %v13640_v3, %v16774_v51  ;;  %v4678_v14 = vadd.f32 %v4677_v26, %v16774_v51  ;;  %v13641_v5 = vpop.f32.mrb[134].mxu1  ;;  %13670 = vmatprep.mubr.msk.bf16.mxu1 %vm20193_vm5, %v4764_v1  ;;  %v14762_v28 = vpack.i.bf16 %v2689_v24, %v2705_v23  ;;  %vm20207_vm4 = vmmov %vm20199_vm0 }
 0x90e   : > { %v2691_v53 = vmul.f32 %v14720_v52, %v11552_v62  ;;  %v2707_v0 = vmul.f32 %v14719_v9, %v11568_v48  ;;  %v14733_v45 = vpop.permute.xlu0 %14732  ;;  %v4689_v34 = vadd.f32 %v13641_v5, %v16774_v51  ;;  %v4680_v16 = vpop.f32.mrb[135].mxu1  ;;  %v14768_v21 = vpack.i.bf16 %v17109_v56, %v17111_v58 }
 0x90f   : > { %vm20195_vm8 = vcmp.eq.s32.totalorder %v20136_v17, %v20194_v12  ;;  %vm20197_vm13 = vcmp.eq.s32.totalorder %v20136_v17, %v20196_v27  ;;  %v14735_v57 = vunpack.i.h.bf16 %v14733_v45  ;;  %v14734_v62 = vunpack.i.l.bf16 %v14733_v45  ;;  %14761 = vxpose.xlu0.b32.cont [8/16] %v14760_v19, 128  ;;  %13671 = vmatmul.mubr.msk.bf16.gmra.mrb[160].mxu1 %vm20198_vm15, %v4765_v44 }
 0x910   : > { %v11555_v36 = vsel %vm20195_vm8, 1.0, %v20161_v18  ;;  %v11571_v49 = vsel %vm20197_vm13, 1.0, %v20161_v18  ;;  %v4746_v24 = vmax.f32 %v4686_v15, 0.0  ;;  %v4747_v23 = vmax.f32 %v4689_v34, 0.0  ;;  %vm20212_vm13 = vmmov %vm20199_vm0 }
 0x911   : > { %v4681_v37 = vadd.f32 %v4680_v16, %v16774_v51  ;;  %v14766_v55 = vpack.i.bf16 %v2691_v53, %v2707_v0  ;;  %v17133_v42 = vmul.f32 %v14735_v57, %v11555_v36  ;;  %v17135_v63 = vmul.f32 %v14734_v62, %v11571_v49  ;;  %v20201_v16 = vld [vmem:[#allocation26_spill] sm:$0xff]  ;;  %v20203_v49 = vld [vmem:[#allocation27_spill] sm:$0xff]  ;;  %v20205_v62 = vld [vmem:[#allocation28_spill] sm:$0xff] }
 0x912   : > { %v4744_v35 = vmax.f32 %v4678_v14, 0.0  ;;  %v4767_v1 = vpack.c.bf16 %v4747_v23, %v4746_v24  ;;  %vm20202_vm7 = vcmp.eq.s32.totalorder %v20136_v17, %v20201_v16  ;;  %vm20204_vm14 = vcmp.eq.s32.totalorder %v20136_v17, %v20203_v49 }
 0x913   : > { %v4745_v3 = vmax.f32 %v4681_v37, 0.0  ;;  %14763 = vxpose.xlu0.b32.cont [9/16] %v14762_v28, 128  ;;  %v13644_v56 = vpop.f32.mrb[136].mxu1  ;;  %v14772_v58 = vpack.i.bf16 %v17133_v42, %v17135_v63  ;;  %v11554_v12 = vsel %vm20202_vm7, 1.0, %v20161_v18  ;;  %v11557_v57 = vsel %vm20204_vm14, 1.0, %v20161_v18 }
 0x914   : > { %v4702_v44 = vadd.f32 %v13644_v56, %v16774_v51  ;;  %v4693_v52 = vpop.f32.mrb[137].mxu1  ;;  %vm20206_vm2 = vcmp.eq.s32.totalorder %v20136_v17, %v20205_v62  ;;  %vm20218_vm7 = vcmask 1041408  }
 0x915   : > { %v4766_v19 = vpack.c.bf16 %v4745_v3, %v4744_v35  ;;  %v4694_v9 = vadd.f32 %v4693_v52, %v16774_v51  ;;  %v13645_v26 = vpop.f32.mrb[138].mxu1  ;;  %v11556_v24 = vsel %vm20206_vm2, 1.0, %v20161_v18  ;;  %v20208_v35 = vld [vmem:[#allocation46_spill] sm:$0xff]  ;;  %v20210_v3 = vld [vmem:[#allocation49_spill] sm:$0xff]  ;;  %vm20219_vm14 = vmmov %vm20218_vm7  ;;  %vm20223_vm2 = vcmask 31744  }
 0x916   : > { %v4705_v20 = vadd.f32 %v13645_v26, %v16774_v51  ;;  %v4696_v48 = vpop.f32.mrb[139].mxu1  ;;  %v4750_v14 = vmax.f32 %v4702_v44, 0.0  ;;  %vm20209_vm5 = vcmp.eq.s32.totalorder %v20136_v17, %v20208_v35  ;;  %vm20211_vm8 = vcmp.eq.s32.totalorder %v20136_v17, %v20210_v3 }
 0x917   : > { %13674 = vmatprep.mubr.msk.bf16.mxu1 %vm20199_vm0, %v4766_v19  ;;  %14765 = vxpose.xlu0.b32.cont [10/16] %v14764_v54, 128  ;;  %v4697_v15 = vadd.f32 %v4696_v48, %v16774_v51  ;;  %v4748_v28 = vmax.f32 %v4694_v9, 0.0  ;;  %v11573_v56 = vsel %vm20211_vm8, 1.0, %v20161_v18  ;;  %vm20226_vm8 = vmmov %vm20223_vm2 }
 0x918   : > { %13675 = vmatmul.mubr.msk.bf16.gmra.mrb[164].mxu1 %vm20200_vm3, %v4767_v1  ;;  %v4751_v5 = vmax.f32 %v4705_v20, 0.0  ;;  %v11570_v1 = vsel %vm20209_vm5, 1.0, %v20161_v18  ;;  %vm20215_vm3 = vmmov %vm20199_vm0 }
 0x919   : > { %v4749_v53 = vmax.f32 %v4697_v15, 0.0  ;;  %vm20225_vm5 = vmmov %vm20223_vm2 }
 0x91a   : > { %v4769_v0 = vpack.c.bf16 %v4751_v5, %v4750_v14  ;;  %v20213_v14 = vld [vmem:[#allocation50_spill] sm:$0xff] }
 0x91b   : > { %14767 = vxpose.xlu0.b32.cont [11/16] %v14766_v55, 128  ;;  %v4768_v45 = vpack.c.bf16 %v4749_v53, %v4748_v28  ;;  %v13648_v34 = vpop.f32.mrb[140].mxu1  ;;  %vm20214_vm15 = vcmp.eq.s32.totalorder %v20136_v17, %v20213_v14 }
 0x91c   : > { %v14728_v36 = vpop.permute.xlu1 %14727  ;;  %v4718_v54 = vadd.f32 %v13648_v34, %v16774_v51  ;;  %v4709_v27 = vpop.f32.mrb[141].mxu1  ;;  %v11572_v5 = vsel %vm20214_vm15, 1.0, %v20161_v18  ;;  %vm20228_vm15 = vmmov %vm20223_vm2 }
 0x91d   : > { %v14730_v23 = vunpack.i.h.bf16 %v14728_v36  ;;  %v14729_v37 = vunpack.i.l.bf16 %v14728_v36  ;;  %v13649_v55 = vpop.f32.mrb[142].mxu1  ;;  %13678 = vmatprep.mubr.msk.bf16.mxu1 %vm20207_vm4, %v4768_v45  ;;  %v4710_v44 = vadd.f32 %v4709_v27, %v16774_v51  ;;  %vm20224_vm4 = vmmov %vm20223_vm2 }
 0x91e   : > { %v14743_v19 = vpop.permute.xlu0 %14742  ;;  %v4721_v52 = vadd.f32 %v13649_v55, %v16774_v51  ;;  %v4712_v9 = vpop.f32.mrb[143].mxu1  ;;  %v4754_v53 = vmax.f32 %v4718_v54, 0.0 }
 0x91f   : > { %v2693_v26 = vmul.f32 %v14730_v23, %v11554_v12  ;;  %v2709_v20 = vmul.f32 %v14729_v37, %v11570_v1  ;;  %v14745_v48 = vunpack.i.h.bf16 %v14743_v19  ;;  %v14744_v15 = vunpack.i.l.bf16 %v14743_v19  ;;  %14769 = vxpose.xlu0.b32.cont [12/16] %v14768_v21, 128 }
 0x920   : > { %13679 = vmatmul.mubr.msk.bf16.gmra.mrb[168].mxu1 %vm20212_vm13, %v4769_v0  ;;  %v14738_v28 = vpop.permute.xlu1 %14737  ;;  %v4755_v45 = vmax.f32 %v4721_v52, 0.0  ;;  %v4713_v34 = vadd.f32 %v4712_v9, %v16774_v51  ;;  %v4752_v49 = vmax.f32 %v4710_v44, 0.0  ;;  %vm20227_vm13 = vmmov %vm20223_vm2 }
 0x921   : > { %v2696_v16 = vmul.f32 %v14745_v48, %v11557_v57  ;;  %v2712_v36 = vmul.f32 %v14744_v15, %v11573_v56  ;;  %v14740_v27 = vunpack.i.h.bf16 %v14738_v28  ;;  %v14739_v12 = vunpack.i.l.bf16 %v14738_v28 }
 0x922   : > { %v4771_v62 = vpack.c.bf16 %v4755_v45, %v4754_v53  ;;  %v14770_v23 = vpack.i.bf16 %v2693_v26, %v2709_v20  ;;  %v4753_v21 = vmax.f32 %v4713_v34, 0.0  ;;  %v14868_v34 = vld [vmem:[%s19380_s3 + $0x48] ss:$0 sps:$4 sm:$0x33]  }
 0x923   : > { %v2695_v37 = vmul.f32 %v14740_v27, %v11556_v24  ;;  %v2711_v0 = vmul.f32 %v14739_v12, %v11572_v5  ;;  %v14776_v55 = vpack.i.bf16 %v2696_v16, %v2712_v36  ;;  %5115 = vrot.lane.b32.xlu1 %v14868_v34, %s15093_s12 }
 0x924   : > { %14771 = vxpose.xlu0.b32.cont [13/16] %v14770_v23, 128  ;;  %v4770_v35 = vpack.c.bf16 %v4753_v21, %v4752_v49  ;;  %v17217_v5 = vpop.permute.xlu1 %4778 }
 0x925   : > { %v14774_v17 = vpack.i.bf16 %v2695_v37, %v2711_v0 }
 0x926   : > { %13682 = vmatprep.mubr.msk.bf16.mxu1 %vm20199_vm0, %v4770_v35  ;;  %vm20229_vm0 = vmmov %vm20223_vm2 }
 0x928   : > { %13683 = vmatmul.mubr.msk.bf16.gmra.mrb[172].mxu1 %vm20215_vm3, %v4771_v62  ;;  %14773 = vxpose.xlu0.b32.cont [14/16] %v14772_v58, 128  ;;  %vm20230_vm3 = vmmov %vm20229_vm0 }
 0x92c   : > { %14775 = vxpose.xlu0.b32.cont [15/16] %v14774_v17, 128 }
 0x930   : > { %14777 = vxpose.xlu0.b32.end [16/16] %v14776_v55, 128 }
 0x974   : > { %v17180_v51 = vpop.trf.xlu0 }
 0x975   : > { %v14779_v1 = vunpack.i.l.bf16 %v17180_v51 }
 0x978   : > { %v17182_v54 = vpop.trf.xlu0 }
 0x979   : > { %v14784_v24 = vunpack.i.l.bf16 %v17182_v54 }
 0x97b   : > { %v17188_v3 = vpack.c.bf16 %v14784_v24, %v14779_v1 }
 0x97c   : > { %v17184_v57 = vpop.trf.xlu0 }
 0x97d   : > { %5038 = vmatprep.mubr.bf16.mxu1 %v17188_v3 }
 0x980   : > { %v17191_v56 = vpop.trf.xlu0 }
 0x984   : > { %v17193_v42 = vpop.trf.xlu0 }
 0x988   : > { %v17195_v63 = vpop.trf.xlu0 }
 0x98c   : > { %v17197_v58 = vpop.trf.xlu0 }
 0x990   : > { %v17199_v19 = vpop.trf.xlu0 }
 0x994   : > { %v17201_v44 = vpop.trf.xlu0 }
 0x998   : > { %v17203_v52 = vpop.trf.xlu0 }
 0x99c   : > { %v17205_v9 = vpop.trf.xlu0 }
 0x9a0   : > { %v17207_v26 = vpop.trf.xlu0 }
 0x9a4   : > { %v17209_v20 = vpop.trf.xlu0 }
 0x9a8   : > { %v17211_v48 = vpop.trf.xlu0 }
 0x9ac   : > { %v17213_v15 = vpop.trf.xlu0 }
 0x9b0   : > { %v17215_v14 = vpop.trf.xlu0 }
 0x9c0   : > { %v13656_v28 = vpop.f32.mrb[144].mxu1 }
 0x9c1   : > { %v4863_v53 = vpop.f32.mrb[145].mxu1  ;;  %v4872_v16 = vadd.f32 %v13656_v28, %v17217_v5 }
 0x9c2   : > { %v13657_v45 = vpop.f32.mrb[146].mxu1  ;;  %v4864_v12 = vadd.f32 %v4863_v53, %v17217_v5 }
 0x9c3   : > { %v4875_v36 = vadd.f32 %v13657_v45, %v17217_v5  ;;  %v4866_v27 = vpop.f32.mrb[147].mxu1 }
 0x9c4   : > { %v4867_v49 = vadd.f32 %v4866_v27, %v17217_v5 }
 0x9c5   : > { %v17227_v62 = vpack.c.bf16 %v4875_v36, %v4872_v16 }
 0x9c6   : > { %v17229_v23 = vpack.c.bf16 %v4867_v49, %v4864_v12 }
 0x9ca   : > { %v13660_v21 = vpop.f32.mrb[148].mxu1 }
 0x9cb   : > { %v4879_v37 = vpop.f32.mrb[149].mxu1  ;;  %v4888_v55 = vadd.f32 %v13660_v21, %v17217_v5 }
 0x9cc   : > { %v13661_v0 = vpop.f32.mrb[150].mxu1  ;;  %v4880_v24 = vadd.f32 %v4879_v37, %v17217_v5 }
 0x9cd   : > { %v4891_v35 = vadd.f32 %v13661_v0, %v17217_v5  ;;  %v4882_v17 = vpop.f32.mrb[151].mxu1 }
 0x9ce   : > { %v4883_v1 = vadd.f32 %v4882_v17, %v17217_v5 }
 0x9cf   : > { %v17235_v28 = vpack.c.bf16 %v4891_v35, %v4888_v55 }
 0x9d0   : > { %v17237_v53 = vpack.c.bf16 %v4883_v1, %v4880_v24 }
 0x9d2   : > { %v13664_v45 = vpop.f32.mrb[152].mxu1 }
 0x9d3   : > { %v4895_v34 = vpop.f32.mrb[153].mxu1  ;;  %v4904_v36 = vadd.f32 %v13664_v45, %v17217_v5 }
 0x9d4   : > { %v13665_v16 = vpop.f32.mrb[154].mxu1  ;;  %v4896_v49 = vadd.f32 %v4895_v34, %v17217_v5 }
 0x9d5   : > { %v4907_v27 = vadd.f32 %v13665_v16, %v17217_v5  ;;  %v4898_v12 = vpop.f32.mrb[155].mxu1 }
 0x9d6   : > { %v4899_v21 = vadd.f32 %v4898_v12, %v17217_v5 }
 0x9d7   : > { %v17243_v0 = vpack.c.bf16 %v4907_v27, %v4904_v36 }
 0x9d8   : > { %v17245_v37 = vpack.c.bf16 %v4899_v21, %v4896_v49 }
 0x9da   : > { %v13668_v55 = vpop.f32.mrb[156].mxu1 }
 0x9db   : > { %v4911_v35 = vpop.f32.mrb[157].mxu1  ;;  %v4920_v24 = vadd.f32 %v13668_v55, %v17217_v5 }
 0x9dc   : > { %v13669_v17 = vpop.f32.mrb[158].mxu1  ;;  %v4912_v45 = vadd.f32 %v4911_v35, %v17217_v5 }
 0x9dd   : > { %v4923_v1 = vadd.f32 %v13669_v17, %v17217_v5  ;;  %v4914_v10 = vpop.f32.mrb[159].mxu1 }
 0x9de   : > { %v4915_v16 = vadd.f32 %v4914_v10, %v17217_v5 }
 0x9df   : > { %v17251_v41 = vpack.c.bf16 %v4923_v1, %v4920_v24 }
 0x9e0   : > { %v17253_v34 = vpack.c.bf16 %v4915_v16, %v4912_v45 }
 0x9e2   : > { %v13672_v36 = vpop.f32.mrb[160].mxu1 }
 0x9e3   : > { %v4927_v27 = vpop.f32.mrb[161].mxu1  ;;  %v4936_v49 = vadd.f32 %v13672_v36, %v17217_v5 }
 0x9e4   : > { %v13673_v12 = vpop.f32.mrb[162].mxu1  ;;  %v4928_v55 = vadd.f32 %v4927_v27, %v17217_v5 }
 0x9e5   : > { %v4939_v21 = vadd.f32 %v13673_v12, %v17217_v5  ;;  %v4930_v60 = vpop.f32.mrb[163].mxu1 }
 0x9e6   : > { %v4931_v17 = vadd.f32 %v4930_v60, %v17217_v5 }
 0x9e7   : > { %v17259_v11 = vpack.c.bf16 %v4939_v21, %v4936_v49 }
 0x9e8   : > { %v17261_v35 = vpack.c.bf16 %v4931_v17, %v4928_v55 }
 0x9ea   : > { %12629 = vmatprep.subr.bf16.mxu1 %v17261_v35 }
 0x9eb   : > { %v13676_v10 = vpop.f32.mrb[164].mxu1  ;;  %12630 = vmatpush3.bf16.msra.mxu1 %v17229_v23 }
 0x9ec   : > { %v4943_v24 = vpop.f32.mrb[165].mxu1  ;;  %12631 = vmatprep.subr.bf16.mxu1 %v17259_v11  ;;  %v4952_v45 = vadd.f32 %v13676_v10, %v17217_v5 }
 0x9ed   : > { %v13677_v1 = vpop.f32.mrb[166].mxu1  ;;  %v4944_v60 = vadd.f32 %v4943_v24, %v17217_v5 }
 0x9ee   : > { %v4955_v16 = vadd.f32 %v13677_v1, %v17217_v5  ;;  %v4946_v36 = vpop.f32.mrb[167].mxu1 }
 0x9ef   : > { %v4947_v27 = vadd.f32 %v4946_v36, %v17217_v5  ;;  %12632 = vmatpush3.bf16.msra.mxu1 %v17227_v62 }
 0x9f0   : > { %v17271_v12 = vpack.c.bf16 %v4955_v16, %v4952_v45 }
 0x9f1   : > { %v17273_v49 = vpack.c.bf16 %v4947_v27, %v4944_v60 }
 0x9f3   : > { %v13680_v21 = vpop.f32.mrb[168].mxu1  ;;  %12633 = vmatprep.subr.bf16.mxu1 %v17273_v49 }
 0x9f4   : > { %v4959_v55 = vpop.f32.mrb[169].mxu1  ;;  %12634 = vmatpush3.bf16.msra.mxu1 %v17237_v53  ;;  %v4968_v10 = vadd.f32 %v13680_v21, %v17217_v5 }
 0x9f5   : > { %v13681_v17 = vpop.f32.mrb[170].mxu1  ;;  %12635 = vmatprep.subr.bf16.mxu1 %v17271_v12  ;;  %v4960_v36 = vadd.f32 %v4959_v55, %v17217_v5 }
 0x9f6   : > { %v4971_v24 = vadd.f32 %v13681_v17, %v17217_v5  ;;  %v4962_v1 = vpop.f32.mrb[171].mxu1 }
 0x9f7   : > { %v4963_v45 = vadd.f32 %v4962_v1, %v17217_v5 }
 0x9f8   : > { %12636 = vmatpush3.bf16.msra.mxu1 %v17235_v28  ;;  %v17283_v16 = vpack.c.bf16 %v4971_v24, %v4968_v10 }
 0x9f9   : > { %v17285_v60 = vpack.c.bf16 %v4963_v45, %v4960_v36  ;;  %v14794_v45 = vunpack.i.l.bf16 %v17191_v56 }
 0x9fb   : > { %v13684_v27 = vpop.f32.mrb[172].mxu1  ;;  %12637 = vmatprep.subr.bf16.mxu1 %v17285_v60 }
 0x9fc   : > { %v4975_v2 = vpop.f32.mrb[173].mxu1  ;;  %12638 = vmatpush3.bf16.msra.mxu1 %v17245_v37  ;;  %v4984_v17 = vadd.f32 %v13684_v27, %v17217_v5  ;;  %v14789_v27 = vunpack.i.l.bf16 %v17184_v57 }
 0x9fd   : > { %v13685_v21 = vpop.f32.mrb[174].mxu1  ;;  %12639 = vmatprep.subr.bf16.mxu1 %v17283_v16  ;;  %v4976_v33 = vadd.f32 %v4975_v2, %v17217_v5  ;;  %v14787_v2 = vunpack.i.h.bf16 %v17182_v54  ;;  %v14792_v54 = vunpack.i.h.bf16 %v17184_v57  ;;  %v14824_v57 = vunpack.i.l.bf16 %v17203_v52 }
 0x9fe   : > { %v4987_v55 = vadd.f32 %v13685_v21, %v17217_v5  ;;  %v4978_v1 = vpop.f32.mrb[175].mxu1  ;;  %v14782_v21 = vunpack.i.h.bf16 %v17180_v51  ;;  %v14797_v51 = vunpack.i.h.bf16 %v17191_v56 }
 0x9ff   : > { %v4979_v10 = vadd.f32 %v4978_v1, %v17217_v5  ;;  %v17307_v5 = vpack.c.bf16 %v14794_v45, %v14789_v27  ;;  %v14814_v45 = vunpack.i.l.bf16 %v17199_v19  ;;  %v14809_v27 = vunpack.i.l.bf16 %v17197_v58 }
 0xa00   : > { %12640 = vmatpush3.bf16.msra.mxu1 %v17243_v0  ;;  %v17295_v24 = vpack.c.bf16 %v4987_v55, %v4984_v17  ;;  %v14804_v17 = vunpack.i.l.bf16 %v17195_v63  ;;  %v14799_v55 = vunpack.i.l.bf16 %v17193_v42 }
 0xa01   : > { %v17297_v36 = vpack.c.bf16 %v4979_v10, %v4976_v33  ;;  %v17309_v33 = vpack.c.bf16 %v14787_v2, %v14782_v21  ;;  %v17319_v10 = vpack.c.bf16 %v14797_v51, %v14792_v54  ;;  %v14807_v21 = vunpack.i.h.bf16 %v17195_v63 }
 0xa02   : > { %v17317_v1 = vpack.c.bf16 %v14804_v17, %v14799_v55  ;;  %v14802_v2 = vunpack.i.h.bf16 %v17193_v42  ;;  %v17327_v32 = vpack.c.bf16 %v14814_v45, %v14809_v27  ;;  %v14819_v17 = vunpack.i.l.bf16 %v17201_v44 }
 0xa03   : > { %12641 = vmatprep.subr.bf16.mxu1 %v17297_v36  ;;  %v14817_v55 = vunpack.i.h.bf16 %v17199_v19  ;;  %v14812_v51 = vunpack.i.h.bf16 %v17197_v58  ;;  %v14834_v42 = vunpack.i.l.bf16 %v17207_v26  ;;  %v14829_v45 = vunpack.i.l.bf16 %v17205_v9 }
 0xa04   : > { %12642 = vmatpush3.bf16.msra.mxu1 %v17253_v34  ;;  %v17329_v56 = vpack.c.bf16 %v14807_v21, %v14802_v2  ;;  %v17337_v54 = vpack.c.bf16 %v14824_v57, %v14819_v17  ;;  %v14827_v27 = vunpack.i.h.bf16 %v17203_v52  ;;  %v14822_v21 = vunpack.i.h.bf16 %v17201_v44 }
 0xa05   : > { %12643 = vmatprep.subr.bf16.mxu1 %v17295_v24  ;;  %v17339_v63 = vpack.c.bf16 %v14817_v55, %v14812_v51  ;;  %v17347_v2 = vpack.c.bf16 %v14834_v42, %v14829_v45  ;;  %v14844_v58 = vunpack.i.l.bf16 %v17211_v48  ;;  %v14839_v57 = vunpack.i.l.bf16 %v17209_v20 }
 0xa06   : > { %v17349_v19 = vpack.c.bf16 %v14827_v27, %v14822_v21  ;;  %v14837_v17 = vunpack.i.h.bf16 %v17207_v26  ;;  %v14832_v55 = vunpack.i.h.bf16 %v17205_v9  ;;  %v14854_v44 = vunpack.i.l.bf16 %v17215_v14  ;;  %v5116_v21 = vpop.permute.xlu1 %5115 }
 0xa07   : > { %v17357_v51 = vpack.c.bf16 %v14844_v58, %v14839_v57  ;;  %v14849_v42 = vunpack.i.l.bf16 %v17213_v15  ;;  %v14847_v45 = vunpack.i.h.bf16 %v17211_v48  ;;  %v14842_v27 = vunpack.i.h.bf16 %v17209_v20  ;;  %14643 = vmatprep.subr.msk.bf16.mxu0 %vm20218_vm7, %v5116_v21  ;;  %v5321_v20 = vld [vmem:[%s19380_s3 + $0x48] sm:$0x1] }
 0xa08   : > { %12644 = vmatpush3.bf16.msra.mxu1 %v17251_v41  ;;  %v17359_v52 = vpack.c.bf16 %v14837_v17, %v14832_v55  ;;  %v5142_v9 = vsel %vm20219_vm14, %v5116_v21, 0  ;;  %v14857_v57 = vunpack.i.h.bf16 %v17215_v14  ;;  %v14852_v48 = vunpack.i.h.bf16 %v17213_v15 }
 0xa09   : > { %20216 = vst [vmem:[#allocation118_spill] sm:$0xff] %v17357_v51  ;;  %v17367_v26 = vpack.c.bf16 %v14854_v44, %v14849_v42  ;;  %v17371_v58 = vpack.c.bf16 %v14847_v45, %v14842_v27  ;;  %13687 = vmatpush3.bf16.msra.mxu0 %v5142_v9  ;;  %v5322_v55 = vunpack.c.l.bf16 %v5321_v20  ;;  %v20222_v44 = vld [vmem:[#allocation79_spill] sm:$0xff]  ;;  %vm20247_vm7 = vcmask 261120  }
 0xa0a   : > { %v17377_v17 = vpack.c.bf16 %v14857_v57, %v14852_v48  ;;  %vm20248_vm14 = vmmov %vm20247_vm7 }
 0xa0b   : > { %5039 = vmatmul.mubr.bf16.vlgmr.msra.gmra.mrb[176].mxu1 %v17309_v33  ;;  %20217 = vst [vmem:[#allocation11_spill] sm:$0xff] %v17367_v26  ;;  %20220 = vst [vmem:[#allocation15_spill] sm:$0xff] %v17371_v58  ;;  %v5326_v42 = vrot.slane %v5322_v55, %v20222_v44 }
 0xa0c   : > { %5046 = vmatprep.mubr.bf16.mxu1 %v17307_v5  ;;  %20221 = vst [vmem:[#allocation12_spill] sm:$0xff] %v17377_v17 }
 0xa0d   : > { %5328 = vrot.lane.b32.xlu1 %v5326_v42, %s15093_s12 }
 0xa13   : > { %5047 = vmatmul.mubr.bf16.gmra.mrb[180].mxu1 %v17319_v10 }
 0xa14   : > { %5054 = vmatprep.mubr.bf16.mxu1 %v17317_v1 }
 0xa1b   : > { %5055 = vmatmul.mubr.bf16.gmra.mrb[184].mxu1 %v17329_v56 }
 0xa1c   : > { %5062 = vmatprep.mubr.bf16.mxu1 %v17327_v32 }
 0xa23   : > { %5063 = vmatmul.mubr.bf16.gmra.mrb[188].mxu1 %v17339_v63 }
 0xa24   : > { %5070 = vmatprep.mubr.bf16.mxu1 %v17337_v54 }
 0xa2b   : > { %5071 = vmatmul.mubr.bf16.gmra.mrb[192].mxu1 %v17349_v19 }
 0xa2c   : > { %5078 = vmatprep.mubr.bf16.mxu1 %v17347_v2 }
 0xa33   : > { %5079 = vmatmul.mubr.bf16.gmra.mrb[196].mxu1 %v17359_v52 }
 0xa34   : > { %5086 = vmatprep.mubr.bf16.mxu1 %v17357_v51 }
 0xa3b   : > { %5087 = vmatmul.mubr.bf16.gmra.mrb[200].mxu1 %v17371_v58 }
 0xa3c   : > { %5094 = vmatprep.mubr.bf16.mxu1 %v17367_v26 }
 0xa43   : > { %5095 = vmatmul.mubr.bf16.gmra.mrb[204].mxu1 %v17377_v17 }
 0xade   : > { %v12645_v45 = vpop.f32.mrb[176].mxu1 }
 0xadf   : > { %v12646_v27 = vpop.f32.mrb[177].mxu1 }
 0xae0   : > { %v12647_v21 = vadd.f32 %v12646_v27, %v12645_v45  ;;  %v12648_v9 = vpop.f32.mrb[178].mxu1 }
 0xae1   : > { %v12649_v14 = vpop.f32.mrb[179].mxu1 }
 0xae2   : > { %v12650_v30 = vadd.f32 %v12649_v14, %v12648_v9 }
 0xae4   : > { %v5104_v15 = vpack.c.bf16 %v12650_v30, %v12647_v21 }
 0xae6   : > { %v12651_v57 = vpop.f32.mrb[180].mxu1  ;;  %13688 = vmatprep.mubr.msk.bf16.mxu0 %vm20223_vm2, %v5104_v15  ;;  %vm20249_vm2 = vmmov %vm20247_vm7 }
 0xae7   : > { %v12652_v48 = vpop.f32.mrb[181].mxu1 }
 0xae8   : > { %v12653_v22 = vadd.f32 %v12652_v48, %v12651_v57  ;;  %v12654_v6 = vpop.f32.mrb[182].mxu1 }
 0xae9   : > { %v12655_v47 = vpop.f32.mrb[183].mxu1 }
 0xaea   : > { %v12656_v29 = vadd.f32 %v12655_v47, %v12654_v6 }
 0xaec   : > { %v5105_v20 = vpack.c.bf16 %v12656_v29, %v12653_v22 }
 0xaee   : > { %v12657_v39 = vpop.f32.mrb[184].mxu1  ;;  %13689 = vmatmul.mubr.msk.bf16.vlgmr.msra.gmra.mrb[208].mxu0 %vm20224_vm4, %v5105_v20  ;;  %vm20250_vm4 = vmmov %vm20249_vm2 }
 0xaef   : > { %v12658_v55 = vpop.f32.mrb[185].mxu1 }
 0xaf0   : > { %v12659_v42 = vadd.f32 %v12658_v55, %v12657_v39  ;;  %v12660_v46 = vpop.f32.mrb[186].mxu1 }
 0xaf1   : > { %v12661_v45 = vpop.f32.mrb[187].mxu1 }
 0xaf2   : > { %v12662_v27 = vadd.f32 %v12661_v45, %v12660_v46 }
 0xaf4   : > { %v5106_v43 = vpack.c.bf16 %v12662_v27, %v12659_v42 }
 0xaf6   : > { %v12663_v9 = vpop.f32.mrb[188].mxu1  ;;  %13692 = vmatprep.mubr.msk.bf16.mxu0 %vm20225_vm5, %v5106_v43  ;;  %vm20251_vm5 = vmmov %vm20249_vm2 }
 0xaf7   : > { %v12664_v30 = vpop.f32.mrb[189].mxu1 }
 0xaf8   : > { %v12665_v21 = vadd.f32 %v12664_v30, %v12663_v9  ;;  %v12666_v14 = vpop.f32.mrb[190].mxu1 }
 0xaf9   : > { %v12667_v15 = vpop.f32.mrb[191].mxu1 }
 0xafa   : > { %v12668_v57 = vadd.f32 %v12667_v15, %v12666_v14 }
 0xafc   : > { %v5107_v48 = vpack.c.bf16 %v12668_v57, %v12665_v21 }
 0xafe   : > { %v12669_v6 = vpop.f32.mrb[192].mxu1  ;;  %13693 = vmatmul.mubr.msk.bf16.gmra.mrb[212].mxu0 %vm20226_vm8, %v5107_v48  ;;  %vm20252_vm8 = vmmov %vm20249_vm2 }
 0xaff   : > { %v12670_v22 = vpop.f32.mrb[193].mxu1 }
 0xb00   : > { %v12671_v47 = vadd.f32 %v12670_v22, %v12669_v6  ;;  %v12672_v29 = vpop.f32.mrb[194].mxu1 }
 0xb01   : > { %v12673_v39 = vpop.f32.mrb[195].mxu1 }
 0xb02   : > { %v12674_v20 = vadd.f32 %v12673_v39, %v12672_v29 }
 0xb04   : > { %v5108_v55 = vpack.c.bf16 %v12674_v20, %v12671_v47 }
 0xb06   : > { %v12675_v46 = vpop.f32.mrb[196].mxu1  ;;  %13696 = vmatprep.mubr.msk.bf16.mxu0 %vm20227_vm13, %v5108_v55  ;;  %vm20253_vm13 = vmmov %vm20249_vm2 }
 0xb07   : > { %v12676_v42 = vpop.f32.mrb[197].mxu1 }
 0xb08   : > { %v12677_v43 = vadd.f32 %v12676_v42, %v12675_v46  ;;  %v12678_v45 = vpop.f32.mrb[198].mxu1 }
 0xb09   : > { %v12679_v27 = vpop.f32.mrb[199].mxu1 }
 0xb0a   : > { %v12680_v9 = vadd.f32 %v12679_v27, %v12678_v45 }
 0xb0c   : > { %v5109_v30 = vpack.c.bf16 %v12680_v9, %v12677_v43 }
 0xb0e   : > { %v12681_v14 = vpop.f32.mrb[200].mxu1  ;;  %13697 = vmatmul.mubr.msk.bf16.gmra.mrb[216].mxu0 %vm20228_vm15, %v5109_v30  ;;  %vm20254_vm15 = vmmov %vm20249_vm2 }
 0xb0f   : > { %v12682_v21 = vpop.f32.mrb[201].mxu1 }
 0xb10   : > { %v12683_v15 = vadd.f32 %v12682_v21, %v12681_v14  ;;  %v12684_v57 = vpop.f32.mrb[202].mxu1 }
 0xb11   : > { %v12685_v48 = vpop.f32.mrb[203].mxu1 }
 0xb12   : > { %v12686_v6 = vadd.f32 %v12685_v48, %v12684_v57 }
 0xb14   : > { %v5110_v22 = vpack.c.bf16 %v12686_v6, %v12683_v15 }
 0xb16   : > { %v12687_v29 = vpop.f32.mrb[204].mxu1  ;;  %13700 = vmatprep.mubr.msk.bf16.mxu0 %vm20229_vm0, %v5110_v22  ;;  %vm20255_vm0 = vmmov %vm20249_vm2 }
 0xb17   : > { %v12688_v47 = vpop.f32.mrb[205].mxu1 }
 0xb18   : > { %v12689_v39 = vadd.f32 %v12688_v47, %v12687_v29  ;;  %v12690_v20 = vpop.f32.mrb[206].mxu1 }
 0xb19   : > { %v12691_v55 = vpop.f32.mrb[207].mxu1 }
 0xb1a   : > { %v12692_v46 = vadd.f32 %v12691_v55, %v12690_v20  ;;  %v17410_v55 = vld [vmem:[%s19380_s3 + $0x50] sm:$0xff]  }
 0xb1b   : > { %13704 = vmatprep.subr.bf16.mxu1 %v17410_v55 }
 0xb1c   : > { %v5111_v42 = vpack.c.bf16 %v12692_v46, %v12689_v39  ;;  %13705 = vmatpush3.bf16.msra.mxu1 %v17410_v55  ;;  %v17416_v46 = vpop.permute.xlu1 %5328 }
 0xb1e   : > { %13701 = vmatmul.mubr.msk.bf16.gmra.mrb[220].mxu0 %vm20230_vm3, %v5111_v42  ;;  %vm20256_vm3 = vmmov %vm20255_vm0 }
 0xbc1   : > { %v13690_v43 = vpop.f32.mrb[208].mxu0 }
 0xbc2   : > { %5261 = vrot.lane.b32.xlu1 %v13690_v43, %s15092_s5  ;;  %v5178_v45 = vpop.f32.mrb[209].mxu0 }
 0xbc3   : > { %v13691_v27 = vpop.f32.mrb[210].mxu0 }
 0xbc4   : > { %v5181_v9 = vpop.f32.mrb[211].mxu0 }
 0xbc6   : > { %5257 = vrot.lane.b32.xlu1 %v5178_v45, %s15092_s5  ;;  %v20231_v45 = vld [vmem:[#allocation102_spill] sm:$0xff] }
 0xbca   : > { %5263 = vrot.lane.b32.xlu1 %v13691_v27, %s15092_s5 }
 0xbce   : > { %5259 = vrot.lane.b32.xlu1 %v5181_v9, %s15092_s5  ;;  %v17422_v9 = vld [vmem:[%s19380_s3 + $0x58] sm:$0xff]  }
 0xbcf   : > { %13706 = vmatprep.subr.bf16.mxu1 %v17422_v9 }
 0xbd0   : > { %13707 = vmatpush3.bf16.msra.mxu1 %v17422_v9 }
 0xbd1   : > { %v13694_v30 = vpop.f32.mrb[212].mxu0 }
 0xbd2   : > { %5269 = vrot.lane.b32.xlu1 %v13694_v30, %s15092_s5  ;;  %v5194_v14 = vpop.f32.mrb[213].mxu0 }
 0xbd3   : > { %v13695_v21 = vpop.f32.mrb[214].mxu0 }
 0xbd4   : > { %v5197_v15 = vpop.f32.mrb[215].mxu0 }
 0xbd6   : > { %5265 = vrot.lane.b32.xlu1 %v5194_v14, %s15092_s5 }
 0xbda   : > { %5271 = vrot.lane.b32.xlu1 %v13695_v21, %s15092_s5  ;;  %v20232_v21 = vld [vmem:[#allocation103_spill] sm:$0xff] }
 0xbde   : > { %5267 = vrot.lane.b32.xlu1 %v5197_v15, %s15092_s5 }
 0xbe1   : > { %v13698_v57 = vpop.f32.mrb[216].mxu0 }
 0xbe2   : > { %5277 = vrot.lane.b32.xlu1 %v13698_v57, %s15092_s5  ;;  %v5210_v48 = vpop.f32.mrb[217].mxu0  ;;  %v20233_v57 = vld [vmem:[#allocation104_spill] sm:$0xff] }
 0xbe3   : > { %v13699_v6 = vpop.f32.mrb[218].mxu0 }
 0xbe4   : > { %v5213_v22 = vpop.f32.mrb[219].mxu0 }
 0xbe6   : > { %5273 = vrot.lane.b32.xlu1 %v5210_v48, %s15092_s5 }
 0xbea   : > { %5279 = vrot.lane.b32.xlu1 %v13699_v6, %s15092_s5 }
 0xbee   : > { %5275 = vrot.lane.b32.xlu1 %v5213_v22, %s15092_s5 }
 0xbf1   : > { %v13702_v29 = vpop.f32.mrb[220].mxu0 }
 0xbf2   : > { %5285 = vrot.lane.b32.xlu1 %v13702_v29, %s15092_s5  ;;  %v5226_v47 = vpop.f32.mrb[221].mxu0 }
 0xbf3   : > { %v13703_v39 = vpop.f32.mrb[222].mxu0 }
 0xbf4   : > { %v5229_v20 = vpop.f32.mrb[223].mxu0 }
 0xbf6   : > { %5281 = vrot.lane.b32.xlu1 %v5226_v47, %s15092_s5 }
 0xbfa   : > { %5283 = vrot.lane.b32.xlu1 %v5229_v20, %s15092_s5  ;;  %v20234_v20 = vld [vmem:[#allocation105_spill] sm:$0xff] }
 0xbfe   : > { %5287 = vrot.lane.b32.xlu1 %v13703_v39, %s15092_s5 }
 0xc34   : > { %v5262_v42 = vpop.permute.xlu1 %5261 }
 0xc35   : > { %v5307_v27 = vadd.f32 %v20231_v45, %v5262_v42 }
 0xc37   : > { %v5333_v14 = vadd.f32 %v17416_v46, %v5307_v27 }
 0xc38   : > { %v5258_v43 = vpop.permute.xlu1 %5257 }
 0xc39   : > { %v5305_v15 = vadd.f32 %v5258_v43, %v20232_v21  ;;  %v5349_v29 = vmax.f32 %v5333_v14, 0.0 }
 0xc3b   : > { %v5331_v47 = vadd.f32 %v17416_v46, %v5305_v15 }
 0xc3c   : > { %v5264_v30 = vpop.permute.xlu1 %5263 }
 0xc3d   : > { %v5308_v48 = vadd.f32 %v20233_v57, %v5264_v30  ;;  %v5347_v43 = vmax.f32 %v5331_v47, 0.0 }
 0xc3f   : > { %v5334_v6 = vadd.f32 %v17416_v46, %v5308_v48 }
 0xc40   : > { %v5260_v22 = vpop.permute.xlu1 %5259 }
 0xc41   : > { %v5350_v39 = vmax.f32 %v5334_v6, 0.0  ;;  %v5306_v42 = vadd.f32 %v5260_v22, %v20234_v20  ;;  %v20237_v6 = vld [vmem:[#allocation108_spill] sm:$0xff] }
 0xc43   : > { %v5368_v45 = vpack.c.bf16 %v5350_v39, %v5349_v29  ;;  %v5332_v27 = vadd.f32 %v17416_v46, %v5306_v42  ;;  %v20238_v42 = vld [vmem:[#allocation109_spill] sm:$0xff] }
 0xc44   : > { %v5270_v38 = vpop.permute.xlu1 %5269 }
 0xc45   : > { %v5348_v21 = vmax.f32 %v5332_v27, 0.0  ;;  %v5311_v61 = vadd.f32 %v20235_v13, %v5270_v38 }
 0xc47   : > { %v5367_v30 = vpack.c.bf16 %v5348_v21, %v5347_v43  ;;  %v5337_v14 = vadd.f32 %v17416_v46, %v5311_v61 }
 0xc48   : > { %v5266_v57 = vpop.permute.xlu1 %5265 }
 0xc49   : > { %5389 = vrot.lane.b32.xlu1 %v5367_v30, %s15092_s5  ;;  %v5309_v15 = vadd.f32 %v5266_v57, %v20236_v25  ;;  %v5353_v47 = vmax.f32 %v5337_v14, 0.0  ;;  %v20239_v57 = vld [vmem:[#allocation110_spill] sm:$0xff]  ;;  %v20240_v14 = vld [vmem:[#allocation111_spill] sm:$0xff] }
 0xc4b   : > { %v5335_v39 = vadd.f32 %v17416_v46, %v5309_v15 }
 0xc4c   : > { %v5272_v48 = vpop.permute.xlu1 %5271 }
 0xc4d   : > { %v5312_v31 = vadd.f32 %v20237_v6, %v5272_v48  ;;  %5391 = vrot.lane.b32.xlu1 %v5368_v45, %s15092_s5  ;;  %v5351_v61 = vmax.f32 %v5335_v39, 0.0  ;;  %v20241_v6 = vld [vmem:[#allocation112_spill] sm:$0xff] }
 0xc4f   : > { %v5338_v22 = vadd.f32 %v17416_v46, %v5312_v31 }
 0xc50   : > { %v5268_v29 = vpop.permute.xlu1 %5267 }
 0xc51   : > { %v5354_v20 = vmax.f32 %v5338_v22, 0.0  ;;  %v5310_v38 = vadd.f32 %v5268_v29, %v20238_v42 }
 0xc53   : > { %v5370_v13 = vpack.c.bf16 %v5354_v20, %v5353_v47  ;;  %v5336_v27 = vadd.f32 %v17416_v46, %v5310_v38  ;;  %v20242_v38 = vld [vmem:[#allocation113_spill] sm:$0xff] }
 0xc54   : > { %v5278_v43 = vpop.permute.xlu1 %5277 }
 0xc55   : > { %v5352_v21 = vmax.f32 %v5336_v27, 0.0  ;;  %v5315_v48 = vadd.f32 %v20239_v57, %v5278_v43 }
 0xc57   : > { %v5369_v25 = vpack.c.bf16 %v5352_v21, %v5351_v61  ;;  %v5341_v45 = vadd.f32 %v17416_v46, %v5315_v48 }
 0xc58   : > { %v5274_v30 = vpop.permute.xlu1 %5273 }
 0xc59   : > { %5393 = vrot.lane.b32.xlu1 %v5369_v25, %s15092_s5  ;;  %v5313_v15 = vadd.f32 %v5274_v30, %v20240_v14  ;;  %v5357_v39 = vmax.f32 %v5341_v45, 0.0  ;;  %v20244_v14 = vld [vmem:[#allocation114_spill] sm:$0xff] }
 0xc5b   : > { %v5339_v20 = vadd.f32 %v17416_v46, %v5313_v15 }
 0xc5c   : > { %v5280_v31 = vpop.permute.xlu1 %5279 }
 0xc5d   : > { %v5316_v22 = vadd.f32 %v20241_v6, %v5280_v31  ;;  %5395 = vrot.lane.b32.xlu1 %v5370_v13, %s15092_s5  ;;  %v5355_v25 = vmax.f32 %v5339_v20, 0.0  ;;  %v20243_v13 = vld [vmem:[#allocation115_spill] sm:$0xff] }
 0xc5f   : > { %v5342_v29 = vadd.f32 %v17416_v46, %v5316_v22  ;;  %v20245_v22 = vld [vmem:[#allocation117_spill] sm:$0xff] }
 0xc60   : > { %v5276_v47 = vpop.permute.xlu1 %5275 }
 0xc61   : > { %v5358_v42 = vmax.f32 %v5342_v29, 0.0  ;;  %v5314_v27 = vadd.f32 %v5276_v47, %v20242_v38 }
 0xc63   : > { %v5372_v43 = vpack.c.bf16 %v5358_v42, %v5357_v39  ;;  %v5340_v61 = vadd.f32 %v17416_v46, %v5314_v27  ;;  %v20246_v27 = vld [vmem:[#allocation116_spill] sm:$0xff] }
 0xc64   : > { %v5286_v21 = vpop.permute.xlu1 %5285 }
 0xc65   : > { %v5356_v57 = vmax.f32 %v5340_v61, 0.0  ;;  %5399 = vrot.lane.b32.xlu0 %v5372_v43, %s15092_s5  ;;  %v5319_v15 = vadd.f32 %v20244_v14, %v5286_v21  ;;  %v5375_v21 = vld [vmem:[%s19380_s3 + $0x50] sm:$0x1] }
 0xc67   : > { %v5371_v30 = vpack.c.bf16 %v5356_v57, %v5355_v25  ;;  %v5345_v20 = vadd.f32 %v17416_v46, %v5319_v15 }
 0xc68   : > { %v5282_v48 = vpop.permute.xlu1 %5281 }
 0xc69   : > { %v5317_v31 = vadd.f32 %v5282_v48, %v20243_v13  ;;  %5397 = vrot.lane.b32.xlu1 %v5371_v30, %s15092_s5  ;;  %v5361_v57 = vmax.f32 %v5345_v20, 0.0  ;;  %v5376_v13 = vunpack.c.l.bf16 %v5375_v21 }
 0xc6b   : > { %v5343_v6 = vadd.f32 %v17416_v46, %v5317_v31  ;;  %v5380_v31 = vrot.slane %v5376_v13, %v20222_v44 }
 0xc6c   : > { %v5284_v45 = vpop.permute.xlu1 %5283 }
 0xc6d   : > { %v5318_v29 = vadd.f32 %v5284_v45, %v20245_v22  ;;  %v5359_v42 = vmax.f32 %v5343_v6, 0.0 }
 0xc6f   : > { %v5344_v47 = vadd.f32 %v17416_v46, %v5318_v29 }
 0xc70   : > { %v5288_v39 = vpop.permute.xlu1 %5287 }
 0xc71   : > { %v5360_v38 = vmax.f32 %v5344_v47, 0.0  ;;  %v5320_v43 = vadd.f32 %v20246_v27, %v5288_v39 }
 0xc73   : > { %v5373_v61 = vpack.c.bf16 %v5360_v38, %v5359_v42  ;;  %v5346_v25 = vadd.f32 %v17416_v46, %v5320_v43 }
 0xc75   : > { %v5362_v30 = vmax.f32 %v5346_v25, 0.0  ;;  %5401 = vrot.lane.b32.xlu1 %v5373_v61, %s15092_s5 }
 0xc77   : > { %v5374_v48 = vpack.c.bf16 %v5362_v30, %v5361_v57 }
 0xc79   : > { %5403 = vrot.lane.b32.xlu1 %v5374_v48, %s15092_s5 }
 0xc7d   : > { %5566 = vrot.lane.b32.xlu1 %v17410_v55, %s15092_s5 }
 0xc81   : > { %5418 = vrot.lane.b32.xlu1 %v5380_v31, %s15093_s12 }
 0xc85   : > { %5568 = vrot.lane.b32.xlu1 %v17422_v9, %s15092_s5 }
 0xc89   : > { %5572 = vrot.lane.b32.xlu1 %v5380_v31, %s15094_s19 }
 0xcbb   : > { %v5390_v46 = vpop.permute.xlu1 %5389 }
 0xcbc   : > { %13708 = vmatprep.mubr.msk.bf16.mxu1 %vm20247_vm7, %v5390_v46  ;;  %vm20257_vm7 = vmmov %vm20255_vm0 }
 0xcbf   : > { %v5392_v45 = vpop.permute.xlu1 %5391 }
 0xcc0   : > { %13709 = vmatmul.mubr.msk.bf16.vlgmr.msra.gmra.mrb[208].mxu1 %vm20248_vm14, %v5392_v45  ;;  %vm20258_vm14 = vmmov %vm20255_vm0 }
 0xccb   : > { %v5394_v14 = vpop.permute.xlu1 %5393 }
 0xccc   : > { %13712 = vmatprep.mubr.msk.bf16.mxu1 %vm20249_vm2, %v5394_v14  ;;  %vm20259_vm2 = vmmov %vm20255_vm0 }
 0xccf   : > { %v5396_v15 = vpop.permute.xlu1 %5395 }
 0xcd0   : > { %13713 = vmatmul.mubr.msk.bf16.gmra.mrb[212].mxu1 %vm20250_vm4, %v5396_v15  ;;  %vm20260_vm4 = vmmov %vm20255_vm0 }
 0xcd7   : > { %v5400_v6 = vpop.permute.xlu0 %5399 }
 0xcdb   : > { %v5398_v55 = vpop.permute.xlu1 %5397 }
 0xcdc   : > { %13716 = vmatprep.mubr.msk.bf16.mxu1 %vm20251_vm5, %v5398_v55  ;;  %vm20261_vm5 = vmmov %vm20255_vm0 }
 0xcdd   : > { %13717 = vmatmul.mubr.msk.bf16.gmra.mrb[216].mxu1 %vm20252_vm8, %v5400_v6  ;;  %vm20262_vm8 = vmmov %vm20255_vm0 }
 0xce7   : > { %v5402_v9 = vpop.permute.xlu1 %5401 }
 0xce8   : > { %13720 = vmatprep.mubr.msk.bf16.mxu1 %vm20253_vm13, %v5402_v9  ;;  %vm20278_vm13 = vcmask 39936  }
 0xceb   : > { %v5404_v22 = vpop.permute.xlu1 %5403 }
 0xcec   : > { %13721 = vmatmul.mubr.msk.bf16.gmra.mrb[220].mxu1 %vm20254_vm15, %v5404_v22  ;;  %vm20279_vm15 = vmmov %vm20278_vm13 }
 0xcef   : > { %v5567_v29 = vpop.permute.xlu1 %5566 }
 0xcf0   : > { %13724 = vmatprep.subr.bf16.mxu0 %v5567_v29 }
 0xcf1   : > { %13725 = vmatpush3.bf16.msra.mxu0 %v5567_v29 }
 0xcf3   : > { %v5419_v47 = vpop.permute.xlu1 %5418 }
 0xcf7   : > { %v5569_v39 = vpop.permute.xlu1 %5568 }
 0xcf8   : > { %13726 = vmatprep.subr.bf16.mxu0 %v5569_v39 }
 0xcf9   : > { %13727 = vmatpush3.bf16.msra.mxu0 %v5569_v39 }
 0xd93   : > { %v13710_v20 = vpop.f32.mrb[208].mxu1 }
 0xd94   : > { %v5479_v42 = vpop.f32.mrb[209].mxu1  ;;  %v5488_v38 = vadd.f32 %v13710_v20, %v5419_v47 }
 0xd95   : > { %v5480_v27 = vadd.f32 %v5479_v42, %v5419_v47  ;;  %v13711_v43 = vpop.f32.mrb[210].mxu1 }
 0xd96   : > { %v5491_v61 = vadd.f32 %v13711_v43, %v5419_v47  ;;  %v5482_v25 = vpop.f32.mrb[211].mxu1  ;;  %v5544_v30 = vmax.f32 %v5488_v38, 0.0 }
 0xd97   : > { %v5483_v57 = vadd.f32 %v5482_v25, %v5419_v47  ;;  %v5542_v48 = vmax.f32 %v5480_v27, 0.0 }
 0xd98   : > { %v5545_v21 = vmax.f32 %v5491_v61, 0.0 }
 0xd99   : > { %v5543_v13 = vmax.f32 %v5483_v57, 0.0 }
 0xd9a   : > { %v5559_v31 = vpack.c.bf16 %v5545_v21, %v5544_v30 }
 0xd9b   : > { %v5558_v46 = vpack.c.bf16 %v5543_v13, %v5542_v48 }
 0xd9d   : > { %13728 = vmatprep.mubr.msk.bf16.mxu0 %vm20255_vm0, %v5558_v46  ;;  %vm20292_vm0 = vmmov %vm20278_vm13 }
 0xd9e   : > { %13729 = vmatmul.mubr.msk.bf16.vlgmr.msra.gmra.mrb[224].mxu0 %vm20256_vm3, %v5559_v31  ;;  %vm20293_vm3 = vmmov %vm20292_vm0 }
 0xda3   : > { %v13714_v45 = vpop.f32.mrb[212].mxu1 }
 0xda4   : > { %v5504_v14 = vadd.f32 %v13714_v45, %v5419_v47  ;;  %v5495_v15 = vpop.f32.mrb[213].mxu1 }
 0xda5   : > { %v5496_v55 = vadd.f32 %v5495_v15, %v5419_v47  ;;  %v13715_v6 = vpop.f32.mrb[214].mxu1 }
 0xda6   : > { %v5507_v9 = vadd.f32 %v13715_v6, %v5419_v47  ;;  %v5498_v22 = vpop.f32.mrb[215].mxu1  ;;  %v5548_v39 = vmax.f32 %v5504_v14, 0.0 }
 0xda7   : > { %v5499_v29 = vadd.f32 %v5498_v22, %v5419_v47  ;;  %v5546_v42 = vmax.f32 %v5496_v55, 0.0 }
 0xda8   : > { %v5549_v20 = vmax.f32 %v5507_v9, 0.0 }
 0xda9   : > { %v5547_v38 = vmax.f32 %v5499_v29, 0.0 }
 0xdaa   : > { %v5561_v27 = vpack.c.bf16 %v5549_v20, %v5548_v39 }
 0xdab   : > { %v5560_v43 = vpack.c.bf16 %v5547_v38, %v5546_v42 }
 0xdad   : > { %13732 = vmatprep.mubr.msk.bf16.mxu0 %vm20257_vm7, %v5560_v43  ;;  %vm20306_vm7 = vmmov %vm20292_vm0 }
 0xdae   : > { %13733 = vmatmul.mubr.msk.bf16.gmra.mrb[228].mxu0 %vm20258_vm14, %v5561_v27  ;;  %vm20307_vm14 = vmmov %vm20292_vm0 }
 0xdb0   : > { %v13718_v61 = vpop.f32.mrb[216].mxu1 }
 0xdb1   : > { %v5520_v25 = vadd.f32 %v13718_v61, %v5419_v47  ;;  %v5511_v57 = vpop.f32.mrb[217].mxu1 }
 0xdb2   : > { %v5512_v30 = vadd.f32 %v5511_v57, %v5419_v47  ;;  %v13719_v21 = vpop.f32.mrb[218].mxu1 }
 0xdb3   : > { %v5523_v48 = vadd.f32 %v13719_v21, %v5419_v47  ;;  %v5514_v13 = vpop.f32.mrb[219].mxu1  ;;  %v5552_v46 = vmax.f32 %v5520_v25, 0.0 }
 0xdb4   : > { %v5515_v31 = vadd.f32 %v5514_v13, %v5419_v47  ;;  %v5550_v14 = vmax.f32 %v5512_v30, 0.0 }
 0xdb5   : > { %v5553_v45 = vmax.f32 %v5523_v48, 0.0  ;;  %v20263_v48 = vmov 1.0|1.0  }
 0xdb6   : > { %v5551_v15 = vmax.f32 %v5515_v31, 0.0  ;;  %v5760_v31 = vld [vmem:[%s19380_s3 + $0x10] sm:$0x7] }
 0xdb7   : > { %v5563_v55 = vpack.c.bf16 %v5553_v45, %v5552_v46  ;;  %v20265_v46 = vld [vmem:[#allocation2_spill] sm:$0xff]  ;;  %v17498_v45 = vpop.permute.xlu1 %5572 }
 0xdb8   : > { %v5562_v6 = vpack.c.bf16 %v5551_v15, %v5550_v14 }
 0xdba   : > { %13736 = vmatprep.mubr.msk.bf16.mxu0 %vm20259_vm2, %v5562_v6  ;;  %vm20320_vm2 = vmmov %vm20292_vm0 }
 0xdbb   : > { %13737 = vmatmul.mubr.msk.bf16.gmra.mrb[232].mxu0 %vm20260_vm4, %v5563_v55  ;;  %vm20321_vm4 = vmmov %vm20292_vm0 }
 0xdbf   : > { %v13722_v9 = vpop.f32.mrb[220].mxu1 }
 0xdc0   : > { %v5536_v22 = vadd.f32 %v13722_v9, %v5419_v47  ;;  %v5527_v29 = vpop.f32.mrb[221].mxu1 }
 0xdc1   : > { %v5528_v39 = vadd.f32 %v5527_v29, %v5419_v47  ;;  %v13723_v20 = vpop.f32.mrb[222].mxu1 }
 0xdc2   : > { %v5539_v42 = vadd.f32 %v13723_v20, %v5419_v47  ;;  %v5530_v38 = vpop.f32.mrb[223].mxu1  ;;  %v5556_v43 = vmax.f32 %v5536_v22, 0.0 }
 0xdc3   : > { %v5531_v27 = vadd.f32 %v5530_v38, %v5419_v47  ;;  %v5554_v25 = vmax.f32 %v5528_v39, 0.0  ;;  %v5794_v47 = vand.u32 %v5760_v31, %v20265_v46  ;;  %v20266_v38 = vld [vmem:[#allocation86_spill] sm:$0xff] }
 0xdc4   : > { %v5557_v61 = vmax.f32 %v5539_v42, 0.0 }
 0xdc5   : > { %v5555_v57 = vmax.f32 %v5531_v27, 0.0  ;;  %13744 = vmatprep.subr.bf16.mxu1 %v5794_v47  ;;  %v20267_v27 = vmax.f32 %v20266_v38, 0.0 }
 0xdc6   : > { %v5565_v30 = vpack.c.bf16 %v5557_v61, %v5556_v43  ;;  %13745 = vmatpush3.bf16.msra.mxu1 %v5794_v47 }
 0xdc7   : > { %v5564_v21 = vpack.c.bf16 %v5555_v57, %v5554_v25  ;;  %v5698_v43 = vmul.f32 0.5, %v20267_v27  ;;  %v20268_v57 = vld [vmem:[#allocation87_spill] sm:$0xff] }
 0xdc9   : > { %13740 = vmatprep.mubr.msk.bf16.mxu0 %vm20261_vm5, %v5564_v21  ;;  %vm20338_vm5 = vcmask 1041408  }
 0xdca   : > { %13741 = vmatmul.mubr.msk.bf16.gmra.mrb[236].mxu0 %vm20262_vm8, %v5565_v30  ;;  %v20269_v30 = vmax.f32 %v20268_v57, 0.0  ;;  %vm20339_vm8 = vmmov %vm20338_vm5 }
 0xdcb   : > { %13778 = vmatprep.mubr.msk.bf16.mxu0 %vm15282_vm6, %v20263_v48 }
 0xdcc   : > { %v5696_v21 = vmul.f32 0.5, %v20269_v30 }
 0xe71   : > { %v13730_v14 = vpop.f32.mrb[224].mxu0 }
 0xe72   : > { %v5633_v15 = vpop.f32.mrb[225].mxu0  ;;  %v5642_v55 = vadd.f32 %v13730_v14, %v17498_v45  ;;  %v20270_v14 = vld [vmem:[#allocation88_spill] sm:$0xff] }
 0xe73   : > { %v5634_v6 = vadd.f32 %v5633_v15, %v17498_v45  ;;  %v13731_v9 = vpop.f32.mrb[226].mxu0  ;;  %v20271_v15 = vmax.f32 %v20270_v14, 0.0 }
 0xe74   : > { %v5645_v22 = vadd.f32 %v13731_v9, %v17498_v45  ;;  %v5714_v29 = vmax.f32 %v5642_v55, 0.0  ;;  %v5636_v39 = vpop.f32.mrb[227].mxu0 }
 0xe75   : > { %v5712_v20 = vmax.f32 %v5634_v6, 0.0  ;;  %v5637_v42 = vadd.f32 %v5636_v39, %v17498_v45  ;;  %v5699_v8 = vmul.f32 0.5, %v20271_v15  ;;  %v20274_v6 = vld [vmem:[#allocation89_spill] sm:$0xff] }
 0xe76   : > { %v5715_v61 = vmax.f32 %v5645_v22, 0.0  ;;  %v5730_v25 = vmul.f32 0.5, %v5714_v29  ;;  %v20275_v39 = vmax.f32 %v20274_v6, 0.0 }
 0xe77   : > { %v5728_v31 = vmul.f32 0.5, %v5712_v20  ;;  %v5713_v47 = vmax.f32 %v5637_v42, 0.0 }
 0xe78   : > { %v5731_v7 = vmul.f32 0.5, %v5715_v61  ;;  %v17510_v9 = vadd.f32 %v5730_v25, %v5698_v43  ;;  %v5697_v40 = vmul.f32 0.5, %v20275_v39  ;;  %v20282_v39 = vld [vmem:[#allocation91_spill] sm:$0xff] }
 0xe79   : > { %v17512_v55 = vadd.f32 %v5728_v31, %v5696_v21  ;;  %v5729_v38 = vmul.f32 0.5, %v5713_v47  ;;  %v20280_v31 = vld [vmem:[#allocation90_spill] sm:$0xff] }
 0xe7a   : > { %20272 = vst [vmem:[#allocation16_spill] sm:$0xff] %v17510_v9  ;;  %v17516_v27 = vadd.f32 %v5731_v7, %v5699_v8  ;;  %v20281_v47 = vmax.f32 %v20280_v31, 0.0 }
 0xe7b   : > { %20273 = vst [vmem:[#allocation13_spill] sm:$0xff] %v17512_v55  ;;  %v17518_v22 = vadd.f32 %v5729_v38, %v5697_v40  ;;  %v20283_v38 = vmax.f32 %v20282_v39, 0.0 }
 0xe7c   : > { %20276 = vst [vmem:[#allocation17_spill] sm:$0xff] %v17516_v27  ;;  %v5762_v29 = vpack.c.bf16 %v17516_v27, %v17510_v9  ;;  %v5702_v14 = vmul.f32 0.5, %v20281_v47 }
 0xe7d   : > { %20277 = vst [vmem:[#allocation18_spill] sm:$0xff] %v17518_v22  ;;  %v5761_v20 = vpack.c.bf16 %v17518_v22, %v17512_v55 }
 0xe7f   : > { %13746 = vmatprep.mubr.msk.bf16.mxu1 %vm20278_vm13, %v5761_v20 }
 0xe80   : > { %13747 = vmatmul.mubr.msk.bf16.vlgmr.msra.gmra.mrb[224].mxu1 %vm20279_vm15, %v5762_v29  ;;  %v5700_v29 = vmul.f32 0.5, %v20283_v38 }
 0xe81   : > { %v13734_v42 = vpop.f32.mrb[228].mxu0 }
 0xe82   : > { %v5658_v43 = vadd.f32 %v13734_v42, %v17498_v45  ;;  %v5649_v61 = vpop.f32.mrb[229].mxu0 }
 0xe83   : > { %v5650_v25 = vadd.f32 %v5649_v61, %v17498_v45  ;;  %v13735_v8 = vpop.f32.mrb[230].mxu0  ;;  %v20285_v61 = vld [vmem:[#allocation92_spill] sm:$0xff] }
 0xe84   : > { %v5718_v7 = vmax.f32 %v5658_v43, 0.0  ;;  %v5661_v40 = vadd.f32 %v13735_v8, %v17498_v45  ;;  %v5652_v57 = vpop.f32.mrb[231].mxu0  ;;  %v20286_v43 = vmax.f32 %v20285_v61, 0.0 }
 0xe85   : > { %v5716_v30 = vmax.f32 %v5650_v25, 0.0  ;;  %v5653_v21 = vadd.f32 %v5652_v57, %v17498_v45  ;;  %v20288_v25 = vld [vmem:[#allocation93_spill] sm:$0xff] }
 0xe86   : > { %v5734_v15 = vmul.f32 0.5, %v5718_v7  ;;  %v5719_v6 = vmax.f32 %v5661_v40, 0.0  ;;  %v5703_v50 = vmul.f32 0.5, %v20286_v43  ;;  %v20289_v57 = vmax.f32 %v20288_v25, 0.0 }
 0xe87   : > { %v5732_v20 = vmul.f32 0.5, %v5716_v30  ;;  %v5717_v42 = vmax.f32 %v5653_v21, 0.0 }
 0xe88   : > { %v17534_v4 = vadd.f32 %v5734_v15, %v5702_v14  ;;  %v5735_v8 = vmul.f32 0.5, %v5719_v6  ;;  %v5701_v18 = vmul.f32 0.5, %v20289_v57  ;;  %v20296_v57 = vld [vmem:[#allocation95_spill] sm:$0xff] }
 0xe89   : > { %v17538_v59 = vadd.f32 %v5732_v20, %v5700_v29  ;;  %v5733_v31 = vmul.f32 0.5, %v5717_v42  ;;  %v20294_v42 = vld [vmem:[#allocation94_spill] sm:$0xff] }
 0xe8a   : > { %20284 = vst [vmem:[#allocation29_spill] sm:$0xff] %v17534_v4  ;;  %v17542_v47 = vadd.f32 %v5735_v8, %v5703_v50  ;;  %v20295_v61 = vmax.f32 %v20294_v42, 0.0 }
 0xe8b   : > { %20287 = vst [vmem:[#allocation30_spill] sm:$0xff] %v17538_v59  ;;  %v17544_v7 = vadd.f32 %v5733_v31, %v5701_v18  ;;  %v20297_v31 = vmax.f32 %v20296_v57, 0.0 }
 0xe8c   : > { %20290 = vst [vmem:[#allocation31_spill] sm:$0xff] %v17542_v47  ;;  %v5764_v40 = vpack.c.bf16 %v17542_v47, %v17534_v4  ;;  %v5706_v43 = vmul.f32 0.5, %v20295_v61 }
 0xe8d   : > { %20291 = vst [vmem:[#allocation32_spill] sm:$0xff] %v17544_v7  ;;  %v5763_v30 = vpack.c.bf16 %v17544_v7, %v17538_v59 }
 0xe8e   : > { %v13738_v21 = vpop.f32.mrb[232].mxu0 }
 0xe8f   : > { %v5674_v14 = vadd.f32 %v13738_v21, %v17498_v45  ;;  %v5665_v15 = vpop.f32.mrb[233].mxu0  ;;  %13750 = vmatprep.mubr.msk.bf16.mxu1 %vm20292_vm0, %v5763_v30  ;;  %v5704_v30 = vmul.f32 0.5, %v20297_v31 }
 0xe90   : > { %v5666_v6 = vadd.f32 %v5665_v15, %v17498_v45  ;;  %v13739_v39 = vpop.f32.mrb[234].mxu0  ;;  %13751 = vmatmul.mubr.msk.bf16.gmra.mrb[228].mxu1 %vm20293_vm3, %v5764_v40  ;;  %v20299_v40 = vld [vmem:[#allocation96_spill] sm:$0xff] }
 0xe91   : > { %v5722_v50 = vmax.f32 %v5674_v14, 0.0  ;;  %v5677_v18 = vadd.f32 %v13739_v39, %v17498_v45  ;;  %v5668_v38 = vpop.f32.mrb[235].mxu0  ;;  %v20300_v14 = vmax.f32 %v20299_v40, 0.0 }
 0xe92   : > { %v5720_v29 = vmax.f32 %v5666_v6, 0.0  ;;  %v5669_v20 = vadd.f32 %v5668_v38, %v17498_v45  ;;  %v20302_v6 = vld [vmem:[#allocation97_spill] sm:$0xff] }
 0xe93   : > { %v5738_v8 = vmul.f32 0.5, %v5722_v50  ;;  %v5723_v25 = vmax.f32 %v5677_v18, 0.0  ;;  %v5707_v47 = vmul.f32 0.5, %v20300_v14  ;;  %v20303_v38 = vmax.f32 %v20302_v6, 0.0 }
 0xe94   : > { %v5736_v21 = vmul.f32 0.5, %v5720_v29  ;;  %v5721_v15 = vmax.f32 %v5669_v20, 0.0 }
 0xe95   : > { %v17560_v7 = vadd.f32 %v5738_v8, %v5706_v43  ;;  %v5739_v39 = vmul.f32 0.5, %v5723_v25  ;;  %v5705_v4 = vmul.f32 0.5, %v20303_v38  ;;  %v20310_v38 = vld [vmem:[#allocation99_spill] sm:$0xff] }
 0xe96   : > { %v17564_v59 = vadd.f32 %v5736_v21, %v5704_v30  ;;  %v5737_v42 = vmul.f32 0.5, %v5721_v15  ;;  %v20308_v15 = vld [vmem:[#allocation98_spill] sm:$0xff] }
 0xe97   : > { %20298 = vst [vmem:[#allocation33_spill] sm:$0xff] %v17560_v7  ;;  %v17568_v61 = vadd.f32 %v5739_v39, %v5707_v47  ;;  %v20309_v40 = vmax.f32 %v20308_v15, 0.0 }
 0xe98   : > { %20301 = vst [vmem:[#allocation34_spill] sm:$0xff] %v17564_v59  ;;  %v17570_v50 = vadd.f32 %v5737_v42, %v5705_v4  ;;  %v20311_v42 = vmax.f32 %v20310_v38, 0.0 }
 0xe99   : > { %20304 = vst [vmem:[#allocation19_spill] sm:$0xff] %v17568_v61  ;;  %v5766_v18 = vpack.c.bf16 %v17568_v61, %v17560_v7  ;;  %v5710_v14 = vmul.f32 0.5, %v20309_v40 }
 0xe9a   : > { %20305 = vst [vmem:[#allocation20_spill] sm:$0xff] %v17570_v50  ;;  %v5765_v29 = vpack.c.bf16 %v17570_v50, %v17564_v59 }
 0xe9c   : > { %13754 = vmatprep.mubr.msk.bf16.mxu1 %vm20306_vm7, %v5765_v29 }
 0xe9d   : > { %v13742_v20 = vpop.f32.mrb[236].mxu0  ;;  %13755 = vmatmul.mubr.msk.bf16.gmra.mrb[232].mxu1 %vm20307_vm14, %v5766_v18  ;;  %v5708_v18 = vmul.f32 0.5, %v20311_v42 }
 0xe9e   : > { %v5690_v43 = vadd.f32 %v13742_v20, %v17498_v45  ;;  %v5681_v8 = vpop.f32.mrb[237].mxu0 }
 0xe9f   : > { %v5682_v25 = vadd.f32 %v5681_v8, %v17498_v45  ;;  %v13743_v47 = vpop.f32.mrb[238].mxu0  ;;  %v20313_v8 = vld [vmem:[#allocation100_spill] sm:$0xff] }
 0xea0   : > { %v5726_v57 = vmax.f32 %v5690_v43, 0.0  ;;  %v5693_v4 = vadd.f32 %v13743_v47, %v17498_v45  ;;  %v5684_v31 = vpop.f32.mrb[239].mxu0  ;;  %v20314_v43 = vmax.f32 %v20313_v8, 0.0 }
 0xea1   : > { %v5724_v30 = vmax.f32 %v5682_v25, 0.0  ;;  %v5685_v21 = vadd.f32 %v5684_v31, %v17498_v45  ;;  %v20316_v25 = vld [vmem:[#allocation101_spill] sm:$0xff] }
 0xea2   : > { %v5742_v39 = vmul.f32 0.5, %v5726_v57  ;;  %v5727_v6 = vmax.f32 %v5693_v4, 0.0  ;;  %v5711_v61 = vmul.f32 0.5, %v20314_v43  ;;  %v20317_v45 = vmax.f32 %v20316_v25, 0.0 }
 0xea3   : > { %v5740_v29 = vmul.f32 0.5, %v5724_v30  ;;  %v5725_v20 = vmax.f32 %v5685_v21, 0.0  ;;  %v14871_v21 = vld [vmem:[%s19380_s3 + $0x58] ss:$0 sps:$4 sm:$0x33]  }
 0xea4   : > { %v17586_v50 = vadd.f32 %v5742_v39, %v5710_v14  ;;  %v5743_v47 = vmul.f32 0.5, %v5727_v6  ;;  %v5709_v31 = vmul.f32 0.5, %v20317_v45  ;;  %6354 = vrot.lane.b32.xlu1 %v14871_v21, %s15093_s12 }
 0xea5   : > { %v17590_v59 = vadd.f32 %v5740_v29, %v5708_v18  ;;  %v5741_v15 = vmul.f32 0.5, %v5725_v20 }
 0xea6   : > { %20312 = vst [vmem:[#allocation21_spill] sm:$0xff] %v17586_v50  ;;  %v17594_v40 = vadd.f32 %v5743_v47, %v5711_v61 }
 0xea7   : > { %20315 = vst [vmem:[#allocation22_spill] sm:$0xff] %v17590_v59  ;;  %v17596_v57 = vadd.f32 %v5741_v15, %v5709_v31 }
 0xea8   : > { %20318 = vst [vmem:[#allocation35_spill] sm:$0xff] %v17594_v40  ;;  %v5768_v4 = vpack.c.bf16 %v17594_v40, %v17586_v50  ;;  %v20351_v50 = vld [vmem:[#allocation53_spill] sm:$0xff] }
 0xea9   : > { %20319 = vst [vmem:[#allocation23_spill] sm:$0xff] %v17596_v57  ;;  %v5767_v30 = vpack.c.bf16 %v17596_v57, %v17590_v59  ;;  %v20347_v59 = vld [vmem:[#allocation51_spill] sm:$0xff]  ;;  %vm20352_vm3 = vnez %v20351_v50 }
 0xeaa   : > { %vm20348_vm15 = vnez %v20347_v59  ;;  %v20359_v59 = vld [vmem:[#allocation57_spill] sm:$0xff]  ;;  %v20363_v50 = vld [vmem:[#allocation59_spill] sm:$0xff] }
 0xeab   : > { %13758 = vmatprep.mubr.msk.bf16.mxu1 %vm20320_vm2, %v5767_v30 }
 0xeac   : > { %13759 = vmatmul.mubr.msk.bf16.gmra.mrb[236].mxu1 %vm20321_vm4, %v5768_v4  ;;  %vm20360_vm4 = vnez %v20359_v59  ;;  %v20371_v59 = vld [vmem:[#allocation63_spill] sm:$0xff] }
 0xf53   : > { %v17608_v61 = vpop.f32.mrb[224].mxu1 }
 0xf54   : > { %20322 = vst [vmem:[#allocation24_spill] sm:$0xff] %v17608_v61  ;;  %v17610_v14 = vpop.f32.mrb[225].mxu1 }
 0xf55   : > { %20323 = vst [vmem:[#allocation36_spill] sm:$0xff] %v17610_v14  ;;  %v17612_v39 = vpop.f32.mrb[226].mxu1 }
 0xf56   : > { %20324 = vst [vmem:[#allocation37_spill] sm:$0xff] %v17612_v39  ;;  %v17614_v6 = vpop.f32.mrb[227].mxu1  ;;  %v5894_v38 = vpack.c.bf16 %v17612_v39, %v17608_v61 }
 0xf57   : > { %20325 = vst [vmem:[#allocation38_spill] sm:$0xff] %v17614_v6  ;;  %v5893_v42 = vpack.c.bf16 %v17614_v6, %v17610_v14 }
 0xf59   : > { %13762 = vmatprep.subr.bf16.mxu0 %v5893_v42 }
 0xf5a   : > { %13763 = vmatpush3.bf16.msra.mxu0 %v5893_v42 }
 0xf5b   : > { %13764 = vmatprep.subr.bf16.mxu0 %v5894_v38 }
 0xf5e   : > { %13765 = vmatpush3.bf16.msra.mxu0 %v5894_v38 }
 0xf63   : > { %v17620_v18 = vpop.f32.mrb[228].mxu1 }
 0xf64   : > { %20326 = vst [vmem:[#allocation41_spill] sm:$0xff] %v17620_v18  ;;  %v17622_v29 = vpop.f32.mrb[229].mxu1 }
 0xf65   : > { %20327 = vst [vmem:[#allocation42_spill] sm:$0xff] %v17622_v29  ;;  %v17624_v20 = vpop.f32.mrb[230].mxu1 }
 0xf66   : > { %20328 = vst [vmem:[#allocation25_spill] sm:$0xff] %v17624_v20  ;;  %v17626_v8 = vpop.f32.mrb[231].mxu1  ;;  %v5896_v43 = vpack.c.bf16 %v17624_v20, %v17620_v18 }
 0xf67   : > { %20329 = vst [vmem:[#allocation45_spill] sm:$0xff] %v17626_v8  ;;  %v5895_v47 = vpack.c.bf16 %v17626_v8, %v17622_v29 }
 0xf69   : > { %13766 = vmatprep.subr.bf16.mxu0 %v5895_v47 }
 0xf6a   : > { %13767 = vmatpush3.bf16.msra.mxu0 %v5895_v47 }
 0xf6b   : > { %13768 = vmatprep.subr.bf16.mxu0 %v5896_v43 }
 0xf6e   : > { %13769 = vmatpush3.bf16.msra.mxu0 %v5896_v43 }
 0xf70   : > { %v17632_v25 = vpop.f32.mrb[232].mxu1 }
 0xf71   : > { %20330 = vst [vmem:[#allocation26_spill] sm:$0xff] %v17632_v25  ;;  %v17634_v45 = vpop.f32.mrb[233].mxu1 }
 0xf72   : > { %20331 = vst [vmem:[#allocation27_spill] sm:$0xff] %v17634_v45  ;;  %v17636_v31 = vpop.f32.mrb[234].mxu1 }
 0xf73   : > { %20332 = vst [vmem:[#allocation28_spill] sm:$0xff] %v17636_v31  ;;  %v17638_v15 = vpop.f32.mrb[235].mxu1  ;;  %v5898_v4 = vpack.c.bf16 %v17636_v31, %v17632_v25 }
 0xf74   : > { %20333 = vst [vmem:[#allocation46_spill] sm:$0xff] %v17638_v15  ;;  %v5897_v30 = vpack.c.bf16 %v17638_v15, %v17634_v45 }
 0xf76   : > { %13770 = vmatprep.subr.bf16.mxu0 %v5897_v30 }
 0xf77   : > { %13771 = vmatpush3.bf16.msra.mxu0 %v5897_v30  ;;  %v6355_v30 = vpop.permute.xlu1 %6354 }
 0xf78   : > { %13772 = vmatprep.subr.bf16.mxu0 %v5898_v4 }
 0xf7b   : > { %13773 = vmatpush3.bf16.msra.mxu0 %v5898_v4  ;;  %v6405_v4 = vsel %vm20339_vm8, %v6355_v30, 0  ;;  %vm20364_vm8 = vnez %v20363_v50  ;;  %v20375_v50 = vld [vmem:[#allocation65_spill] sm:$0xff] }
 0xf7f   : > { %v17644_v21 = vpop.f32.mrb[236].mxu1 }
 0xf80   : > { %20334 = vst [vmem:[#allocation49_spill] sm:$0xff] %v17644_v21  ;;  %v17646_v38 = vpop.f32.mrb[237].mxu1 }
 0xf81   : > { %20335 = vst [vmem:[#allocation50_spill] sm:$0xff] %v17646_v38  ;;  %v17648_v42 = vpop.f32.mrb[238].mxu1 }
 0xf82   : > { %20336 = vst [vmem:[#allocation102_spill] sm:$0xff] %v17648_v42  ;;  %v17650_v43 = vpop.f32.mrb[239].mxu1  ;;  %v5900_v47 = vpack.c.bf16 %v17648_v42, %v17644_v21 }
 0xf83   : > { %20337 = vst [vmem:[#allocation103_spill] sm:$0xff] %v17650_v43  ;;  %v5899_v57 = vpack.c.bf16 %v17650_v43, %v17646_v38 }
 0xf85   : > { %13774 = vmatprep.subr.bf16.mxu0 %v5899_v57 }
 0xf86   : > { %13775 = vmatpush3.bf16.msra.mxu0 %v5899_v57  ;;  %v20353_v57 = vld [vmem:[#allocation54_spill] sm:$0xff] }
 0xf87   : > { %13776 = vmatprep.subr.bf16.mxu0 %v5900_v47  ;;  %vm20354_vm7 = vnez %v20353_v57  ;;  %v20365_v57 = vld [vmem:[#allocation60_spill] sm:$0xff] }
 0xf8a   : > { %13777 = vmatpush3.bf16.msra.mxu0 %v5900_v47  ;;  %v20355_v47 = vld [vmem:[#allocation55_spill] sm:$0xff] }
 0xf8b   : > { %14644 = vmatprep.subr.msk.bf16.mxu0 %vm20338_vm5, %v6355_v30  ;;  %v20345_v30 = vld [vmem:[#allocation48_spill] sm:$0xff]  ;;  %vm20356_vm14 = vnez %v20355_v47  ;;  %v20367_v47 = vld [vmem:[#allocation61_spill] sm:$0xff] }
 0xf8c   : > { %vm20346_vm13 = vnez %v20345_v30  ;;  %v20357_v30 = vld [vmem:[#allocation56_spill] sm:$0xff] }
 0xf8d   : > { %13779 = vmatmul.mubr.msk.bf16.vlgmr.msra.gmra.mrb[240].mxu0 %vm15356_vm11, %v20263_v48  ;;  %vm20358_vm2 = vnez %v20357_v30  ;;  %v20369_v30 = vld [vmem:[#allocation62_spill] sm:$0xff] }
 0xf8e   : > { %13782 = vmatprep.mubr.msk.bf16.mxu0 %vm15366_vm12, %v20263_v48  ;;  %13843 = vmatpush3.bf16.msra.mxu0 %v6405_v4  ;;  %v20349_v4 = vld [vmem:[#allocation52_spill] sm:$0xff] }
 0xf8f   : > { %vm20350_vm0 = vnez %v20349_v4  ;;  %v20361_v4 = vld [vmem:[#allocation58_spill] sm:$0xff] }
 0xf90   : > { %vm20362_vm5 = vnez %v20361_v4  ;;  %v20373_v4 = vld [vmem:[#allocation64_spill] sm:$0xff] }
 0xf95   : > { %13783 = vmatmul.mubr.msk.bf16.gmra.mrb[244].mxu0 %vm15394_vm1, %v20263_v48 }
 0xf96   : > { %13786 = vmatprep.mubr.msk.bf16.mxu0 %vm15404_vm10, %v20263_v48 }
 0xf9d   : > { %13787 = vmatmul.mubr.msk.bf16.gmra.mrb[248].mxu0 %vm15432_vm9, %v20263_v48 }
 0xf9e   : > { %13790 = vmatprep.mubr.msk.bf16.mxu0 %vm20346_vm13, %v20263_v48 }
 0xfa5   : > { %13791 = vmatmul.mubr.msk.bf16.gmra.mrb[252].mxu0 %vm20348_vm15, %v20263_v48 }
 0xfa6   : > { %13794 = vmatprep.mubr.msk.bf16.mxu0 %vm20350_vm0, %v20263_v48 }
 0xfad   : > { %13795 = vmatmul.mubr.msk.bf16.gmra.mrb[0].mxu0 %vm20352_vm3, %v20263_v48 }
 0xfae   : > { %13798 = vmatprep.mubr.msk.bf16.mxu0 %vm20354_vm7, %v20263_v48  ;;  %vm20366_vm7 = vnez %v20365_v57  ;;  %v20377_v57 = vld [vmem:[#allocation66_spill] sm:$0xff] }
 0xfb5   : > { %13799 = vmatmul.mubr.msk.bf16.gmra.mrb[4].mxu0 %vm20356_vm14, %v20263_v48  ;;  %vm20368_vm14 = vnez %v20367_v47  ;;  %v20379_v47 = vld [vmem:[#allocation67_spill] sm:$0xff] }
 0xfb6   : > { %13802 = vmatprep.mubr.msk.bf16.mxu0 %vm20358_vm2, %v20263_v48  ;;  %vm20370_vm2 = vnez %v20369_v30  ;;  %v20381_v30 = vld [vmem:[#allocation68_spill] sm:$0xff] }
 0xfbd   : > { %13803 = vmatmul.mubr.msk.bf16.gmra.mrb[8].mxu0 %vm20360_vm4, %v20263_v48  ;;  %vm20372_vm4 = vnez %v20371_v59  ;;  %v20383_v59 = vld [vmem:[#allocation69_spill] sm:$0xff] }
 0xfbe   : > { %13806 = vmatprep.mubr.msk.bf16.mxu0 %vm20362_vm5, %v20263_v48  ;;  %vm20374_vm5 = vnez %v20373_v4  ;;  %v20385_v4 = vld [vmem:[#allocation70_spill] sm:$0xff] }
 0xfc5   : > { %13807 = vmatmul.mubr.msk.bf16.gmra.mrb[12].mxu0 %vm20364_vm8, %v20263_v48  ;;  %vm20376_vm8 = vnez %v20375_v50  ;;  %v20387_v50 = vld [vmem:[#allocation71_spill] sm:$0xff] }
 0xfc6   : > { %13810 = vmatprep.mubr.msk.bf16.mxu0 %vm20366_vm7, %v20263_v48  ;;  %vm20378_vm7 = vnez %v20377_v57  ;;  %v20389_v57 = vld [vmem:[#allocation72_spill] sm:$0xff] }
 0xfcd   : > { %13811 = vmatmul.mubr.msk.bf16.gmra.mrb[16].mxu0 %vm20368_vm14, %v20263_v48  ;;  %vm20380_vm14 = vnez %v20379_v47  ;;  %v20391_v47 = vld [vmem:[#allocation73_spill] sm:$0xff] }
 0xfce   : > { %13814 = vmatprep.mubr.msk.bf16.mxu0 %vm20370_vm2, %v20263_v48  ;;  %vm20382_vm2 = vnez %v20381_v30  ;;  %v20393_v30 = vld [vmem:[#allocation74_spill] sm:$0xff] }
 0xfd5   : > { %13815 = vmatmul.mubr.msk.bf16.gmra.mrb[20].mxu0 %vm20372_vm4, %v20263_v48  ;;  %vm20384_vm4 = vnez %v20383_v59  ;;  %v20395_v59 = vld [vmem:[#allocation75_spill] sm:$0xff] }
 0xfd6   : > { %13818 = vmatprep.mubr.msk.bf16.mxu0 %vm20374_vm5, %v20263_v48  ;;  %vm20386_vm5 = vnez %v20385_v4 }
 0xfdd   : > { %13819 = vmatmul.mubr.msk.bf16.gmra.mrb[24].mxu0 %vm20376_vm8, %v20263_v48  ;;  %vm20388_vm8 = vnez %v20387_v50 }
 0xfde   : > { %13822 = vmatprep.mubr.msk.bf16.mxu0 %vm20378_vm7, %v20263_v48  ;;  %vm20390_vm7 = vnez %v20389_v57 }
 0xfe5   : > { %13823 = vmatmul.mubr.msk.bf16.gmra.mrb[28].mxu0 %vm20380_vm14, %v20263_v48  ;;  %vm20392_vm14 = vnez %v20391_v47 }
 0xfe6   : > { %13826 = vmatprep.mubr.msk.bf16.mxu0 %vm20382_vm2, %v20263_v48  ;;  %vm20394_vm2 = vnez %v20393_v30 }
 0xfed   : > { %13827 = vmatmul.mubr.msk.bf16.gmra.mrb[32].mxu0 %vm20384_vm4, %v20263_v48  ;;  %vm20396_vm4 = vnez %v20395_v59 }
 0xfee   : > { %13830 = vmatprep.mubr.msk.bf16.mxu0 %vm20386_vm5, %v20263_v48  ;;  %vm20397_vm5 = vcmask 31744  }
 0xfef   : > { %vm20400_vm3 = vmmov %vm20397_vm5 }
 0xff5   : > { %13831 = vmatmul.mubr.msk.bf16.gmra.mrb[36].mxu0 %vm20388_vm8, %v20263_v48  ;;  %vm20398_vm8 = vmmov %vm20397_vm5 }
 0xff6   : > { %13834 = vmatprep.mubr.msk.bf16.mxu0 %vm20390_vm7, %v20263_v48  ;;  %vm20399_vm7 = vmmov %vm20397_vm5 }
 0xffd   : > { %13835 = vmatmul.mubr.msk.bf16.gmra.mrb[40].mxu0 %vm20392_vm14, %v20263_v48  ;;  %vm20401_vm14 = vmmov %vm20400_vm3 }
 0xffe   : > { %13838 = vmatprep.mubr.msk.bf16.mxu0 %vm20394_vm2, %v20263_v48  ;;  %vm20402_vm2 = vmmov %vm20400_vm3 }
0x1005   : > { %13839 = vmatmul.mubr.msk.bf16.gmra.mrb[44].mxu0 %vm20396_vm4, %v20263_v48  ;;  %vm20403_vm4 = vmmov %vm20402_vm2 }
0x1006   : > { %13844 = vmatprep.mubr.msk.bf16.mxu0 %vm20397_vm5, %v17229_v23  ;;  %vm20404_vm5 = vmmov %vm20402_vm2 }
0x100d   : > { %13845 = vmatmul.mubr.msk.bf16.vlgmr.msra.gmra.mrb[240].mxu0 %vm20398_vm8, %v17227_v62  ;;  %vm20405_vm8 = vmmov %vm20402_vm2 }
0x100e   : > { %13848 = vmatprep.mubr.msk.bf16.mxu0 %vm20399_vm7, %v17237_v53  ;;  %vm20406_vm7 = vmmov %vm20402_vm2 }
0x1015   : > { %13849 = vmatmul.mubr.msk.bf16.gmra.mrb[244].mxu0 %vm20400_vm3, %v17235_v28  ;;  %vm20407_vm3 = vmmov %vm20402_vm2  ;;  %v6600_v28 = vld [vmem:[%s19380_s3 + $0x58] sm:$0x1] }
0x1016   : > { %13852 = vmatprep.mubr.msk.bf16.mxu0 %vm20401_vm14, %v17245_v37  ;;  %vm20408_vm14 = vmmov %vm20402_vm2  ;;  %v17799_v37 = vld [vmem:[%s19380_s3 + $0x68] sm:$0xff]  }
0x101d   : > { %13853 = vmatmul.mubr.msk.bf16.gmra.mrb[248].mxu0 %vm20402_vm2, %v17243_v0  ;;  %v6601_v0 = vunpack.c.l.bf16 %v6600_v28 }
0x101e   : > { %13856 = vmatprep.mubr.msk.bf16.mxu0 %vm20403_vm4, %v17253_v34  ;;  %vm20409_vm4 = vmmov %vm20402_vm2 }
0x1025   : > { %13857 = vmatmul.mubr.msk.bf16.gmra.mrb[252].mxu0 %vm20404_vm5, %v17251_v41  ;;  %vm20410_vm5 = vmmov %vm20402_vm2 }
0x1026   : > { %13860 = vmatprep.mubr.msk.bf16.mxu0 %vm20405_vm8, %v17261_v35  ;;  %vm20411_vm8 = vmmov %vm20402_vm2 }
0x102d   : > { %13861 = vmatmul.mubr.msk.bf16.gmra.mrb[0].mxu0 %vm20406_vm7, %v17259_v11  ;;  %v17786_v11 = vld [vmem:[%s19380_s3 + $0x60] sm:$0xff]   ;;  %vm20412_vm7 = vcmask 261120  }
0x102e   : > { %13864 = vmatprep.mubr.msk.bf16.mxu0 %vm20407_vm3, %v17273_v49  ;;  %13876 = vmatprep.subr.bf16.mxu1 %v17786_v11  ;;  %vm20413_vm3 = vmmov %vm20412_vm7 }
0x102f   : > { %13877 = vmatpush3.bf16.msra.mxu1 %v17786_v11 }
0x1030   : > { %13878 = vmatprep.subr.bf16.mxu1 %v17799_v37 }
0x1033   : > { %13879 = vmatpush3.bf16.msra.mxu1 %v17799_v37 }
0x1035   : > { %13865 = vmatmul.mubr.msk.bf16.gmra.mrb[4].mxu0 %vm20408_vm14, %v17271_v12  ;;  %v6605_v12 = vrot.slane %v6601_v0, %v20222_v44  ;;  %vm20414_vm14 = vmmov %vm20413_vm3 }
0x1036   : > { %13868 = vmatprep.mubr.msk.bf16.mxu0 %vm20402_vm2, %v17285_v60  ;;  %vm20415_vm2 = vmmov %vm20413_vm3 }
0x103d   : > { %13869 = vmatmul.mubr.msk.bf16.gmra.mrb[8].mxu0 %vm20409_vm4, %v17283_v16  ;;  %vm20416_vm4 = vmmov %vm20415_vm2 }
0x103e   : > { %13872 = vmatprep.mubr.msk.bf16.mxu0 %vm20410_vm5, %v17297_v36  ;;  %vm20417_vm5 = vmmov %vm20415_vm2 }
0x1045   : > { %13873 = vmatmul.mubr.msk.bf16.gmra.mrb[12].mxu0 %vm20411_vm8, %v17295_v24  ;;  %vm20418_vm8 = vmmov %vm20415_vm2 }
0x10a0   : > { %v13812_v41 = vpop.f32.mrb[16].mxu0 }
0x10a1   : > { %6226 = vrot.lane.b32.xlu1 %v13812_v41, %s15093_s12  ;;  %v6063_v62 = vpop.f32.mrb[17].mxu0 }
0x10a2   : > { %v13813_v23 = vpop.f32.mrb[18].mxu0 }
0x10a3   : > { %6228 = vrot.lane.b32.xlu0 %v13813_v23, %s15093_s12  ;;  %v6066_v53 = vpop.f32.mrb[19].mxu0 }
0x10a5   : > { %6222 = vrot.lane.b32.xlu1 %v6063_v62, %s15093_s12 }
0x10a8   : > { %v13816_v34 = vpop.f32.mrb[20].mxu0 }
0x10a9   : > { %6224 = vrot.lane.b32.xlu1 %v6066_v53, %s15093_s12  ;;  %v6079_v35 = vpop.f32.mrb[21].mxu0 }
0x10aa   : > { %6230 = vrot.lane.b32.xlu0 %v6079_v35, %s15093_s12  ;;  %v13817_v49 = vpop.f32.mrb[22].mxu0 }
0x10ab   : > { %v6082_v16 = vpop.f32.mrb[23].mxu0 }
0x10ad   : > { %6607 = vrot.lane.b32.xlu1 %v6605_v12, %s15094_s19 }
0x10ae   : > { %6234 = vrot.lane.b32.xlu0 %v13816_v34, %s15093_s12 }
0x10b0   : > { %v13820_v60 = vpop.f32.mrb[24].mxu0 }
0x10b1   : > { %6232 = vrot.lane.b32.xlu1 %v6082_v16, %s15093_s12  ;;  %v6095_v24 = vpop.f32.mrb[25].mxu0 }
0x10b2   : > { %6238 = vrot.lane.b32.xlu0 %v6095_v24, %s15093_s12  ;;  %v13821_v36 = vpop.f32.mrb[26].mxu0 }
0x10b3   : > { %v6098_v41 = vpop.f32.mrb[27].mxu0 }
0x10b5   : > { %6236 = vrot.lane.b32.xlu1 %v13817_v49, %s15093_s12 }
0x10b6   : > { %6242 = vrot.lane.b32.xlu0 %v13820_v60, %s15093_s12 }
0x10b8   : > { %v13824_v62 = vpop.f32.mrb[28].mxu0 }
0x10b9   : > { %6240 = vrot.lane.b32.xlu1 %v6098_v41, %s15093_s12  ;;  %v6111_v23 = vpop.f32.mrb[29].mxu0 }
0x10ba   : > { %6246 = vrot.lane.b32.xlu0 %v6111_v23, %s15093_s12  ;;  %v13825_v28 = vpop.f32.mrb[30].mxu0 }
0x10bb   : > { %v6114_v53 = vpop.f32.mrb[31].mxu0 }
0x10bd   : > { %6244 = vrot.lane.b32.xlu1 %v13821_v36, %s15093_s12 }
0x10be   : > { %6250 = vrot.lane.b32.xlu0 %v13824_v62, %s15093_s12 }
0x10c0   : > { %v13828_v0 = vpop.f32.mrb[32].mxu0 }
0x10c1   : > { %6248 = vrot.lane.b32.xlu1 %v6114_v53, %s15093_s12  ;;  %v6127_v34 = vpop.f32.mrb[33].mxu0 }
0x10c2   : > { %6254 = vrot.lane.b32.xlu0 %v6127_v34, %s15093_s12  ;;  %v13829_v35 = vpop.f32.mrb[34].mxu0 }
0x10c3   : > { %v6130_v12 = vpop.f32.mrb[35].mxu0 }
0x10c5   : > { %6252 = vrot.lane.b32.xlu1 %v13825_v28, %s15093_s12 }
0x10c6   : > { %6258 = vrot.lane.b32.xlu0 %v13828_v0, %s15093_s12 }
0x10c8   : > { %v13832_v49 = vpop.f32.mrb[36].mxu0 }
0x10c9   : > { %6256 = vrot.lane.b32.xlu1 %v6130_v12, %s15093_s12  ;;  %v6143_v16 = vpop.f32.mrb[37].mxu0  ;;  %v6694_v12 = vld [vmem:[%s19380_s3 + $0x60] sm:$0x1] }
0x10ca   : > { %6262 = vrot.lane.b32.xlu0 %v6143_v16, %s15093_s12  ;;  %v13833_v60 = vpop.f32.mrb[38].mxu0  ;;  %v6695_v16 = vunpack.c.l.bf16 %v6694_v12 }
0x10cb   : > { %v6146_v24 = vpop.f32.mrb[39].mxu0 }
0x10cd   : > { %6260 = vrot.lane.b32.xlu1 %v13829_v35, %s15093_s12 }
0x10ce   : > { %6266 = vrot.lane.b32.xlu0 %v13832_v49, %s15093_s12 }
0x10d0   : > { %v13836_v36 = vpop.f32.mrb[40].mxu0 }
0x10d1   : > { %6264 = vrot.lane.b32.xlu1 %v6146_v24, %s15093_s12  ;;  %v6159_v41 = vpop.f32.mrb[41].mxu0 }
0x10d2   : > { %6270 = vrot.lane.b32.xlu0 %v6159_v41, %s15093_s12  ;;  %v13837_v62 = vpop.f32.mrb[42].mxu0 }
0x10d3   : > { %v6162_v23 = vpop.f32.mrb[43].mxu0 }
0x10d5   : > { %6268 = vrot.lane.b32.xlu1 %v13833_v60, %s15093_s12 }
0x10d6   : > { %6274 = vrot.lane.b32.xlu0 %v13836_v36, %s15093_s12  ;;  %v6699_v36 = vrot.slane %v6695_v16, %v20222_v44 }
0x10d8   : > { %v13840_v28 = vpop.f32.mrb[44].mxu0 }
0x10d9   : > { %6272 = vrot.lane.b32.xlu1 %v6162_v23, %s15093_s12  ;;  %v6175_v53 = vpop.f32.mrb[45].mxu0 }
0x10da   : > { %6278 = vrot.lane.b32.xlu0 %v6175_v53, %s15093_s12  ;;  %v13841_v0 = vpop.f32.mrb[46].mxu0 }
0x10db   : > { %v6178_v34 = vpop.f32.mrb[47].mxu0 }
0x10dd   : > { %6276 = vrot.lane.b32.xlu1 %v13837_v62, %s15093_s12 }
0x10de   : > { %6282 = vrot.lane.b32.xlu0 %v13840_v28, %s15093_s12 }
0x10e0   : > { %v13846_v35 = vpop.f32.mrb[240].mxu0 }
0x10e1   : > { %6280 = vrot.lane.b32.xlu1 %v6178_v34, %s15093_s12  ;;  %v6441_v49 = vpop.f32.mrb[241].mxu0 }
0x10e2   : > { %v13847_v60 = vpop.f32.mrb[242].mxu0  ;;  %6973 = vrot.lane.b32.xlu0 %v17786_v11, %s15092_s5 }
0x10e3   : > { %v6444_v24 = vpop.f32.mrb[243].mxu0 }
0x10e5   : > { %6284 = vrot.lane.b32.xlu1 %v13841_v0, %s15093_s12 }
0x10e6   : > { %6975 = vrot.lane.b32.xlu0 %v17799_v37, %s15092_s5 }
0x10e8   : > { %v13850_v41 = vpop.f32.mrb[244].mxu0 }
0x10e9   : > { %v6457_v62 = vpop.f32.mrb[245].mxu0  ;;  %6713 = vrot.lane.b32.xlu1 %v6699_v36, %s15093_s12 }
0x10ea   : > { %v13851_v23 = vpop.f32.mrb[246].mxu0 }
0x10eb   : > { %v6460_v28 = vpop.f32.mrb[247].mxu0 }
0x10ed   : > { %6979 = vrot.lane.b32.xlu1 %v6699_v36, %s15094_s19 }
0x10f0   : > { %v17844_v53 = vpop.f32.mrb[248].mxu0 }
0x10f1   : > { %v6473_v34 = vpop.f32.mrb[249].mxu0 }
0x10f2   : > { %v17846_v11 = vpop.f32.mrb[250].mxu0 }
0x10f3   : > { %v17848_v12 = vpop.f32.mrb[251].mxu0 }
0x10f8   : > { %v17850_v0 = vpop.f32.mrb[252].mxu0 }
0x10f9   : > { %v17852_v16 = vpop.f32.mrb[253].mxu0 }
0x10fa   : > { %v17854_v37 = vpop.f32.mrb[254].mxu0 }
0x10fb   : > { %v17856_v59 = vpop.f32.mrb[255].mxu0 }
0x1100   : > { %v17858_v30 = vpop.f32.mrb[0].mxu0 }
0x1101   : > { %v17860_v47 = vpop.f32.mrb[1].mxu0 }
0x1102   : > { %v17862_v36 = vpop.f32.mrb[2].mxu0 }
0x1103   : > { %v17864_v57 = vpop.f32.mrb[3].mxu0 }
0x1108   : > { %v17866_v50 = vpop.f32.mrb[4].mxu0 }
0x1109   : > { %v17868_v4 = vpop.f32.mrb[5].mxu0 }
0x110a   : > { %v17870_v40 = vpop.f32.mrb[6].mxu0 }
0x110b   : > { %v17872_v7 = vpop.f32.mrb[7].mxu0 }
0x1110   : > { %v17874_v22 = vpop.f32.mrb[8].mxu0 }
0x1111   : > { %v17876_v27 = vpop.f32.mrb[9].mxu0 }
0x1112   : > { %v17878_v55 = vpop.f32.mrb[10].mxu0 }
0x1113   : > { %v17880_v9 = vpop.f32.mrb[11].mxu0  ;;  %v6227_v46 = vpop.permute.xlu1 %6226 }
0x1114   : > { %v14448_v15 = vadd.f32 %v13846_v35, %v6227_v46 }
0x1115   : > { %v6229_v48 = vpop.permute.xlu0 %6228 }
0x1116   : > { %v14450_v18 = vadd.f32 %v13847_v60, %v6229_v48 }
0x1117   : > { %v6223_v13 = vpop.permute.xlu1 %6222 }
0x1118   : > { %v17882_v42 = vpop.f32.mrb[12].mxu0  ;;  %v14449_v45 = vadd.f32 %v6441_v49, %v6223_v13 }
0x1119   : > { %v17884_v21 = vpop.f32.mrb[13].mxu0 }
0x111a   : > { %v17886_v43 = vpop.f32.mrb[14].mxu0 }
0x111b   : > { %v17888_v38 = vpop.f32.mrb[15].mxu0  ;;  %v6225_v31 = vpop.permute.xlu1 %6224 }
0x111c   : > { %v6231_v25 = vpop.permute.xlu0 %6230  ;;  %v14451_v20 = vadd.f32 %v6444_v24, %v6225_v31 }
0x111d   : > { %v14453_v29 = vadd.f32 %v6457_v62, %v6231_v25 }
0x111f   : > { %v17890_v8 = vpop.permute.xlu1 %6607 }
0x1120   : > { %v6235_v39 = vpop.permute.xlu0 %6234  ;;  %v6610_v14 = vadd.f32 %v14449_v45, %v17890_v8  ;;  %v6611_v6 = vadd.f32 %v14451_v20, %v17890_v8  ;;  %v6612_v61 = vadd.f32 %v14448_v15, %v17890_v8  ;;  %v6613_v44 = vadd.f32 %v14450_v18, %v17890_v8 }
0x1121   : > { %v14452_v13 = vadd.f32 %v13850_v41, %v6235_v39  ;;  %v6614_v48 = vadd.f32 %v14453_v29, %v17890_v8 }
0x1122   : > { %v6642_v17 = vmax.f32 %v6610_v14, 0.0  ;;  %v6643_v26 = vmax.f32 %v6611_v6, 0.0  ;;  %v6644_v58 = vmax.f32 %v6612_v61, 0.0  ;;  %v6645_v46 = vmax.f32 %v6613_v44, 0.0 }
0x1123   : > { %v6233_v51 = vpop.permute.xlu1 %6232  ;;  %v6616_v14 = vadd.f32 %v14452_v13, %v17890_v8  ;;  %v6646_v61 = vmax.f32 %v6614_v48, 0.0 }
0x1124   : > { %v14455_v31 = vadd.f32 %v6460_v28, %v6233_v51  ;;  %v6239_v35 = vpop.permute.xlu0 %6238  ;;  %v6678_v25 = vpack.c.bf16 %v6643_v26, %v6642_v17  ;;  %v6679_v49 = vpack.c.bf16 %v6645_v46, %v6644_v58 }
0x1125   : > { %v14457_v20 = vadd.f32 %v6473_v34, %v6239_v35  ;;  %v6648_v17 = vmax.f32 %v6616_v14, 0.0 }
0x1126   : > { %v6615_v45 = vadd.f32 %v14455_v31, %v17890_v8  ;;  %13880 = vmatprep.mubr.msk.bf16.mxu1 %vm20412_vm7, %v6678_v25  ;;  %vm20419_vm7 = vmmov %vm20415_vm2 }
0x1127   : > { %13881 = vmatmul.mubr.msk.bf16.vlgmr.msra.gmra.mrb[240].mxu1 %vm20413_vm3, %v6679_v49  ;;  %v6237_v18 = vpop.permute.xlu1 %6236  ;;  %v6618_v26 = vadd.f32 %v14457_v20, %v17890_v8  ;;  %vm20420_vm3 = vmmov %vm20415_vm2 }
0x1128   : > { %v6647_v6 = vmax.f32 %v6615_v45, 0.0  ;;  %v14454_v44 = vadd.f32 %v13851_v23, %v6237_v18  ;;  %v6243_v39 = vpop.permute.xlu0 %6242 }
0x1129   : > { %v14456_v60 = vadd.f32 %v17844_v53, %v6243_v39  ;;  %v6650_v23 = vmax.f32 %v6618_v26, 0.0 }
0x112a   : > { %v6680_v15 = vpack.c.bf16 %v6647_v6, %v6646_v61  ;;  %v6617_v51 = vadd.f32 %v14454_v44, %v17890_v8 }
0x112b   : > { %v6241_v58 = vpop.permute.xlu1 %6240  ;;  %v6620_v46 = vadd.f32 %v14456_v60, %v17890_v8 }
0x112c   : > { %v6649_v29 = vmax.f32 %v6617_v51, 0.0  ;;  %v14459_v24 = vadd.f32 %v17848_v12, %v6241_v58  ;;  %v6247_v41 = vpop.permute.xlu0 %6246  ;;  %13884 = vmatprep.mubr.msk.bf16.mxu1 %vm20414_vm14, %v6680_v15  ;;  %vm20421_vm14 = vmmov %vm20415_vm2 }
0x112d   : > { %v14461_v48 = vadd.f32 %v17852_v16, %v6247_v41  ;;  %v6652_v45 = vmax.f32 %v6620_v46, 0.0 }
0x112e   : > { %v6681_v62 = vpack.c.bf16 %v6649_v29, %v6648_v17  ;;  %v6619_v28 = vadd.f32 %v14459_v24, %v17890_v8 }
0x112f   : > { %v6245_v34 = vpop.permute.xlu1 %6244  ;;  %v6622_v20 = vadd.f32 %v14461_v48, %v17890_v8 }
0x1130   : > { %v6651_v13 = vmax.f32 %v6619_v28, 0.0  ;;  %v14458_v31 = vadd.f32 %v17846_v11, %v6245_v34  ;;  %v6251_v35 = vpop.permute.xlu0 %6250  ;;  %13885 = vmatmul.mubr.msk.bf16.gmra.mrb[244].mxu1 %vm20415_vm2, %v6681_v62 }
0x1131   : > { %v14460_v25 = vadd.f32 %v17850_v0, %v6251_v35  ;;  %v6654_v39 = vmax.f32 %v6622_v20, 0.0 }
0x1132   : > { %v6682_v53 = vpack.c.bf16 %v6651_v13, %v6650_v23  ;;  %v6621_v12 = vadd.f32 %v14458_v31, %v17890_v8 }
0x1133   : > { %v6249_v49 = vpop.permute.xlu1 %6248  ;;  %v6624_v6 = vadd.f32 %v14460_v25, %v17890_v8 }
0x1134   : > { %v6653_v18 = vmax.f32 %v6621_v12, 0.0  ;;  %v14463_v14 = vadd.f32 %v17856_v59, %v6249_v49  ;;  %v6255_v61 = vpop.permute.xlu0 %6254  ;;  %13888 = vmatprep.mubr.msk.bf16.mxu1 %vm20416_vm4, %v6682_v53  ;;  %vm20422_vm4 = vmmov %vm20415_vm2 }
0x1135   : > { %v14465_v0 = vadd.f32 %v17860_v47, %v6255_v61  ;;  %v6656_v17 = vmax.f32 %v6624_v6, 0.0 }
0x1136   : > { %v6683_v16 = vpack.c.bf16 %v6653_v18, %v6652_v45  ;;  %v6623_v11 = vadd.f32 %v14463_v14, %v17890_v8 }
0x1137   : > { %v6253_v44 = vpop.permute.xlu1 %6252  ;;  %v6626_v60 = vadd.f32 %v14465_v0, %v17890_v8 }
0x1138   : > { %v6655_v15 = vmax.f32 %v6623_v11, 0.0  ;;  %v14462_v51 = vadd.f32 %v17854_v37, %v6253_v44  ;;  %v6259_v26 = vpop.permute.xlu0 %6258  ;;  %13889 = vmatmul.mubr.msk.bf16.gmra.mrb[248].mxu1 %vm20417_vm5, %v6683_v16  ;;  %vm20423_vm5 = vmmov %vm20415_vm2 }
0x1139   : > { %v14464_v41 = vadd.f32 %v17858_v30, %v6259_v26  ;;  %v6658_v46 = vmax.f32 %v6626_v60, 0.0 }
0x113a   : > { %v6684_v58 = vpack.c.bf16 %v6655_v15, %v6654_v39  ;;  %v6625_v59 = vadd.f32 %v14462_v51, %v17890_v8 }
0x113b   : > { %v6257_v29 = vpop.permute.xlu1 %6256  ;;  %v6628_v13 = vadd.f32 %v14464_v41, %v17890_v8 }
0x113c   : > { %v6657_v24 = vmax.f32 %v6625_v59, 0.0  ;;  %v14467_v62 = vadd.f32 %v17864_v57, %v6257_v29  ;;  %v6263_v28 = vpop.permute.xlu0 %6262  ;;  %13892 = vmatprep.mubr.msk.bf16.mxu1 %vm20418_vm8, %v6684_v58  ;;  %vm20424_vm8 = vmmov %vm20415_vm2 }
0x113d   : > { %v14469_v23 = vadd.f32 %v17868_v4, %v6263_v28  ;;  %v6660_v25 = vmax.f32 %v6628_v13, 0.0 }
0x113e   : > { %v6685_v47 = vpack.c.bf16 %v6657_v24, %v6656_v17  ;;  %v6627_v37 = vadd.f32 %v14467_v62, %v17890_v8 }
0x113f   : > { %v6261_v34 = vpop.permute.xlu1 %6260  ;;  %v6630_v53 = vadd.f32 %v14469_v23, %v17890_v8 }
0x1140   : > { %v6659_v48 = vmax.f32 %v6627_v37, 0.0  ;;  %v14466_v31 = vadd.f32 %v17862_v36, %v6261_v34  ;;  %v6267_v35 = vpop.permute.xlu0 %6266  ;;  %13893 = vmatmul.mubr.msk.bf16.gmra.mrb[252].mxu1 %vm20419_vm7, %v6685_v47  ;;  %vm20425_vm7 = vmmov %vm20415_vm2 }
0x1141   : > { %v14468_v4 = vadd.f32 %v17866_v50, %v6267_v35  ;;  %v6662_v14 = vmax.f32 %v6630_v53, 0.0 }
0x1142   : > { %v6686_v30 = vpack.c.bf16 %v6659_v48, %v6658_v46  ;;  %v6629_v57 = vadd.f32 %v14466_v31, %v17890_v8 }
0x1143   : > { %v6265_v12 = vpop.permute.xlu1 %6264  ;;  %v6632_v16 = vadd.f32 %v14468_v4, %v17890_v8 }
0x1144   : > { %v6661_v49 = vmax.f32 %v6629_v57, 0.0  ;;  %v14471_v45 = vadd.f32 %v17872_v7, %v6265_v12  ;;  %v6271_v20 = vpop.permute.xlu0 %6270  ;;  %13896 = vmatprep.mubr.msk.bf16.mxu1 %vm20420_vm3, %v6686_v30  ;;  %vm20426_vm3 = vmmov %vm20415_vm2 }
0x1145   : > { %v14473_v6 = vadd.f32 %v17876_v27, %v6271_v20  ;;  %v6664_v51 = vmax.f32 %v6632_v16, 0.0 }
0x1146   : > { %v6687_v18 = vpack.c.bf16 %v6661_v49, %v6660_v25  ;;  %v6631_v36 = vadd.f32 %v14471_v45, %v17890_v8 }
0x1147   : > { %v6269_v61 = vpop.permute.xlu1 %6268  ;;  %v6634_v26 = vadd.f32 %v14473_v6, %v17890_v8 }
0x1148   : > { %v6663_v11 = vmax.f32 %v6631_v36, 0.0  ;;  %v14470_v44 = vadd.f32 %v17870_v40, %v6269_v61  ;;  %v6275_v39 = vpop.permute.xlu0 %6274  ;;  %13897 = vmatmul.mubr.msk.bf16.gmra.mrb[32].mxu1 %vm20421_vm14, %v6687_v18  ;;  %vm20427_vm14 = vmmov %vm20415_vm2 }
0x1149   : > { %v14472_v15 = vadd.f32 %v17874_v22, %v6275_v39  ;;  %v6666_v24 = vmax.f32 %v6634_v26, 0.0 }
0x114a   : > { %v6688_v50 = vpack.c.bf16 %v6663_v11, %v6662_v14  ;;  %v6633_v7 = vadd.f32 %v14470_v44, %v17890_v8 }
0x114b   : > { %v6273_v0 = vpop.permute.xlu1 %6272  ;;  %v6636_v29 = vadd.f32 %v14472_v15, %v17890_v8 }
0x114c   : > { %v6665_v58 = vmax.f32 %v6633_v7, 0.0  ;;  %v14475_v59 = vadd.f32 %v17880_v9, %v6273_v0  ;;  %v6279_v17 = vpop.permute.xlu0 %6278  ;;  %13900 = vmatprep.mubr.msk.bf16.mxu1 %vm20415_vm2, %v6688_v50 }
0x114d   : > { %v14477_v22 = vadd.f32 %v17884_v21, %v6279_v17  ;;  %v6668_v37 = vmax.f32 %v6636_v29, 0.0 }
0x114e   : > { %v6689_v27 = vpack.c.bf16 %v6665_v58, %v6664_v51  ;;  %v6635_v40 = vadd.f32 %v14475_v59, %v17890_v8 }
0x114f   : > { %v6277_v60 = vpop.permute.xlu1 %6276  ;;  %v6638_v34 = vadd.f32 %v14477_v22, %v17890_v8 }
0x1150   : > { %v6667_v41 = vmax.f32 %v6635_v40, 0.0  ;;  %v14474_v62 = vadd.f32 %v17878_v55, %v6277_v60  ;;  %v6283_v28 = vpop.permute.xlu0 %6282  ;;  %13901 = vmatmul.mubr.msk.bf16.gmra.mrb[36].mxu1 %vm20422_vm4, %v6689_v27  ;;  %vm20428_vm4 = vmmov %vm20415_vm2 }
0x1151   : > { %v14476_v13 = vadd.f32 %v17882_v42, %v6283_v28  ;;  %v6670_v30 = vmax.f32 %v6638_v34, 0.0 }
0x1152   : > { %v6690_v47 = vpack.c.bf16 %v6667_v41, %v6666_v24  ;;  %v6637_v9 = vadd.f32 %v14474_v62, %v17890_v8 }
0x1153   : > { %v6281_v23 = vpop.permute.xlu1 %6280  ;;  %v6640_v57 = vadd.f32 %v14476_v13, %v17890_v8 }
0x1154   : > { %v6669_v46 = vmax.f32 %v6637_v9, 0.0  ;;  %v14479_v48 = vadd.f32 %v17888_v38, %v6281_v23  ;;  %13904 = vmatprep.mubr.msk.bf16.mxu1 %vm20423_vm5, %v6690_v47  ;;  %v6974_v21 = vpop.permute.xlu0 %6973  ;;  %vm20429_vm5 = vmmov %vm20415_vm2 }
0x1155   : > { %13912 = vmatprep.subr.bf16.mxu1 %v6974_v21  ;;  %v6672_v25 = vmax.f32 %v6640_v57, 0.0 }
0x1156   : > { %v6691_v55 = vpack.c.bf16 %v6669_v46, %v6668_v37  ;;  %v6639_v31 = vadd.f32 %v14479_v48, %v17890_v8  ;;  %13913 = vmatpush3.bf16.msra.mxu1 %v6974_v21 }
0x1157   : > { %v6285_v35 = vpop.permute.xlu1 %6284 }
0x1158   : > { %v6671_v53 = vmax.f32 %v6639_v31, 0.0  ;;  %v14478_v12 = vadd.f32 %v17886_v43, %v6285_v35  ;;  %13905 = vmatmul.mubr.msk.bf16.gmra.mrb[40].mxu1 %vm20424_vm8, %v6691_v55  ;;  %v6976_v45 = vpop.permute.xlu0 %6975  ;;  %vm20430_vm8 = vmmov %vm20415_vm2 }
0x1159   : > { %13914 = vmatprep.subr.bf16.mxu1 %v6976_v45 }
0x115a   : > { %v6692_v42 = vpack.c.bf16 %v6671_v53, %v6670_v30  ;;  %v6641_v38 = vadd.f32 %v14478_v12, %v17890_v8  ;;  %13915 = vmatpush3.bf16.msra.mxu1 %v6976_v45 }
0x115b   : > { %v17963_v20 = vpop.permute.xlu1 %6713 }
0x115c   : > { %v6673_v49 = vmax.f32 %v6641_v38, 0.0  ;;  %13908 = vmatprep.mubr.msk.bf16.mxu1 %vm20425_vm7, %v6692_v42  ;;  %vm20431_vm7 = vmmov %vm20415_vm2 }
0x115e   : > { %v6693_v4 = vpack.c.bf16 %v6673_v49, %v6672_v25 }
0x1160   : > { %13909 = vmatmul.mubr.msk.bf16.gmra.mrb[44].mxu1 %vm20426_vm3, %v6693_v4  ;;  %vm20432_vm3 = vmmov %vm20415_vm2 }
0x11fa   : > { %v13882_v18 = vpop.f32.mrb[240].mxu1 }
0x11fb   : > { %v6798_v36 = vpop.f32.mrb[241].mxu1  ;;  %v6807_v43 = vadd.f32 %v13882_v18, %v17963_v20 }
0x11fc   : > { %v6799_v14 = vadd.f32 %v6798_v36, %v17963_v20  ;;  %v13883_v61 = vpop.f32.mrb[242].mxu1 }
0x11fd   : > { %v6810_v8 = vadd.f32 %v13883_v61, %v17963_v20  ;;  %v6801_v16 = vpop.f32.mrb[243].mxu1  ;;  %v6927_v6 = vmax.f32 %v6807_v43, 0.0 }
0x11fe   : > { %v6802_v11 = vadd.f32 %v6801_v16, %v17963_v20  ;;  %v6925_v39 = vmax.f32 %v6799_v14, 0.0 }
0x11ff   : > { %v6928_v44 = vmax.f32 %v6810_v8, 0.0 }
0x1200   : > { %v6926_v50 = vmax.f32 %v6802_v11, 0.0 }
0x1201   : > { %v6958_v7 = vpack.c.bf16 %v6928_v44, %v6927_v6 }
0x1202   : > { %v6957_v15 = vpack.c.bf16 %v6926_v50, %v6925_v39 }
0x1203   : > { %v13886_v0 = vpop.f32.mrb[244].mxu1 }
0x1204   : > { %v6823_v51 = vadd.f32 %v13886_v0, %v17963_v20  ;;  %v6814_v26 = vpop.f32.mrb[245].mxu1  ;;  %13916 = vmatprep.mubr.msk.bf16.mxu1 %vm20427_vm14, %v6957_v15  ;;  %vm20433_vm14 = vmmov %vm20415_vm2 }
0x1205   : > { %v6815_v58 = vadd.f32 %v6814_v26, %v17963_v20  ;;  %v13887_v59 = vpop.f32.mrb[246].mxu1  ;;  %13917 = vmatmul.mubr.msk.bf16.vlgmr.msra.gmra.mrb[48].mxu1 %vm20415_vm2, %v6958_v7 }
0x1206   : > { %v6826_v17 = vadd.f32 %v13887_v59, %v17963_v20  ;;  %v6817_v27 = vpop.f32.mrb[247].mxu1  ;;  %v6931_v29 = vmax.f32 %v6823_v51, 0.0 }
0x1207   : > { %v6818_v40 = vadd.f32 %v6817_v27, %v17963_v20  ;;  %v6929_v24 = vmax.f32 %v6815_v58, 0.0 }
0x1208   : > { %v6932_v60 = vmax.f32 %v6826_v17, 0.0 }
0x1209   : > { %v6930_v41 = vmax.f32 %v6818_v40, 0.0 }
0x120a   : > { %v6960_v22 = vpack.c.bf16 %v6932_v60, %v6931_v29 }
0x120b   : > { %v6959_v62 = vpack.c.bf16 %v6930_v41, %v6929_v24  ;;  %v13890_v28 = vpop.f32.mrb[248].mxu1 }
0x120c   : > { %v6839_v47 = vadd.f32 %v13890_v28, %v17963_v20  ;;  %v6830_v9 = vpop.f32.mrb[249].mxu1 }
0x120d   : > { %v6831_v37 = vadd.f32 %v6830_v9, %v17963_v20  ;;  %v13891_v23 = vpop.f32.mrb[250].mxu1  ;;  %13920 = vmatprep.mubr.msk.bf16.mxu1 %vm20428_vm4, %v6959_v62  ;;  %vm20434_vm4 = vmmov %vm20415_vm2 }
0x120e   : > { %v6842_v34 = vadd.f32 %v13891_v23, %v17963_v20  ;;  %v6833_v46 = vpop.f32.mrb[251].mxu1  ;;  %13921 = vmatmul.mubr.msk.bf16.gmra.mrb[52].mxu1 %vm20429_vm5, %v6960_v22  ;;  %v6935_v48 = vmax.f32 %v6839_v47, 0.0  ;;  %vm20435_vm5 = vmmov %vm20415_vm2 }
0x120f   : > { %v6834_v13 = vadd.f32 %v6833_v46, %v17963_v20  ;;  %v6933_v55 = vmax.f32 %v6831_v37, 0.0 }
0x1210   : > { %v6936_v21 = vmax.f32 %v6842_v34, 0.0 }
0x1211   : > { %v6934_v31 = vmax.f32 %v6834_v13, 0.0 }
0x1212   : > { %v6962_v35 = vpack.c.bf16 %v6936_v21, %v6935_v48 }
0x1213   : > { %v6961_v30 = vpack.c.bf16 %v6934_v31, %v6933_v55  ;;  %v13894_v57 = vpop.f32.mrb[252].mxu1 }
0x1214   : > { %v6855_v53 = vadd.f32 %v13894_v57, %v17963_v20  ;;  %v6846_v12 = vpop.f32.mrb[253].mxu1 }
0x1215   : > { %v6847_v42 = vadd.f32 %v6846_v12, %v17963_v20  ;;  %v13895_v38 = vpop.f32.mrb[254].mxu1  ;;  %13924 = vmatprep.mubr.msk.bf16.mxu1 %vm20430_vm8, %v6961_v30  ;;  %vm20436_vm8 = vmmov %vm20415_vm2 }
0x1216   : > { %v6858_v25 = vadd.f32 %v13895_v38, %v17963_v20  ;;  %v6849_v49 = vpop.f32.mrb[255].mxu1  ;;  %13925 = vmatmul.mubr.msk.bf16.gmra.mrb[56].mxu1 %vm20431_vm7, %v6962_v35  ;;  %v6939_v45 = vmax.f32 %v6855_v53, 0.0  ;;  %vm20437_vm7 = vmmov %vm20415_vm2 }
0x1217   : > { %v6850_v4 = vadd.f32 %v6849_v49, %v17963_v20  ;;  %v6937_v36 = vmax.f32 %v6847_v42, 0.0 }
0x1218   : > { %v6940_v18 = vmax.f32 %v6858_v25, 0.0 }
0x1219   : > { %v6938_v43 = vmax.f32 %v6850_v4, 0.0 }
0x121a   : > { %v6964_v14 = vpack.c.bf16 %v6940_v18, %v6939_v45 }
0x121b   : > { %v6963_v61 = vpack.c.bf16 %v6938_v43, %v6937_v36  ;;  %v13898_v8 = vpop.f32.mrb[32].mxu1 }
0x121c   : > { %v6871_v16 = vadd.f32 %v13898_v8, %v17963_v20  ;;  %v6862_v11 = vpop.f32.mrb[33].mxu1 }
0x121d   : > { %v6863_v6 = vadd.f32 %v6862_v11, %v17963_v20  ;;  %v13899_v44 = vpop.f32.mrb[34].mxu1  ;;  %13928 = vmatprep.mubr.msk.bf16.mxu1 %vm20432_vm3, %v6963_v61  ;;  %vm20438_vm3 = vmmov %vm20415_vm2 }
0x121e   : > { %v6874_v39 = vadd.f32 %v13899_v44, %v17963_v20  ;;  %v6865_v50 = vpop.f32.mrb[35].mxu1  ;;  %13929 = vmatmul.mubr.msk.bf16.gmra.mrb[60].mxu1 %vm20433_vm14, %v6964_v14  ;;  %v6943_v15 = vmax.f32 %v6871_v16, 0.0  ;;  %vm20439_vm14 = vmmov %vm20415_vm2 }
0x121f   : > { %v6866_v7 = vadd.f32 %v6865_v50, %v17963_v20  ;;  %v6941_v51 = vmax.f32 %v6863_v6, 0.0  ;;  %v18014_v50 = vpop.permute.xlu1 %6979 }
0x1220   : > { %v6944_v0 = vmax.f32 %v6874_v39, 0.0 }
0x1221   : > { %v6942_v26 = vmax.f32 %v6866_v7, 0.0 }
0x1222   : > { %v6966_v58 = vpack.c.bf16 %v6944_v0, %v6943_v15 }
0x1223   : > { %v6965_v59 = vpack.c.bf16 %v6942_v26, %v6941_v51  ;;  %v13902_v17 = vpop.f32.mrb[36].mxu1 }
0x1224   : > { %v6887_v27 = vadd.f32 %v13902_v17, %v17963_v20  ;;  %v6878_v40 = vpop.f32.mrb[37].mxu1 }
0x1225   : > { %v6879_v29 = vadd.f32 %v6878_v40, %v17963_v20  ;;  %v13903_v60 = vpop.f32.mrb[38].mxu1  ;;  %13932 = vmatprep.mubr.msk.bf16.mxu1 %vm20415_vm2, %v6965_v59 }
0x1226   : > { %v6890_v24 = vadd.f32 %v13903_v60, %v17963_v20  ;;  %v6881_v41 = vpop.f32.mrb[39].mxu1  ;;  %13933 = vmatmul.mubr.msk.bf16.gmra.mrb[0].mxu1 %vm20434_vm4, %v6966_v58  ;;  %v6947_v62 = vmax.f32 %v6887_v27, 0.0  ;;  %vm20444_vm4 = vcmask 1041408  }
0x1227   : > { %v6882_v22 = vadd.f32 %v6881_v41, %v17963_v20  ;;  %v6945_v47 = vmax.f32 %v6879_v29, 0.0 }
0x1228   : > { %v6948_v28 = vmax.f32 %v6890_v24, 0.0 }
0x1229   : > { %v6946_v9 = vmax.f32 %v6882_v22, 0.0 }
0x122a   : > { %v6968_v37 = vpack.c.bf16 %v6948_v28, %v6947_v62 }
0x122b   : > { %v6967_v23 = vpack.c.bf16 %v6946_v9, %v6945_v47  ;;  %v13906_v34 = vpop.f32.mrb[40].mxu1 }
0x122c   : > { %v6903_v46 = vadd.f32 %v13906_v34, %v17963_v20  ;;  %v6894_v13 = vpop.f32.mrb[41].mxu1 }
0x122d   : > { %v6895_v48 = vadd.f32 %v6894_v13, %v17963_v20  ;;  %v13907_v21 = vpop.f32.mrb[42].mxu1  ;;  %13936 = vmatprep.mubr.msk.bf16.mxu1 %vm20435_vm5, %v6967_v23  ;;  %vm20445_vm5 = vmmov %vm20444_vm4 }
0x122e   : > { %v6906_v55 = vadd.f32 %v13907_v21, %v17963_v20  ;;  %v6897_v31 = vpop.f32.mrb[43].mxu1  ;;  %13937 = vmatmul.mubr.msk.bf16.gmra.mrb[4].mxu1 %vm20436_vm8, %v6968_v37  ;;  %v6951_v30 = vmax.f32 %v6903_v46, 0.0  ;;  %vm20446_vm8 = vcmask 31744  }
0x122f   : > { %v6898_v35 = vadd.f32 %v6897_v31, %v17963_v20  ;;  %v6949_v53 = vmax.f32 %v6895_v48, 0.0 }
0x1230   : > { %v6952_v57 = vmax.f32 %v6906_v55, 0.0 }
0x1231   : > { %v6950_v12 = vmax.f32 %v6898_v35, 0.0 }
0x1232   : > { %v6970_v42 = vpack.c.bf16 %v6952_v57, %v6951_v30 }
0x1233   : > { %v6969_v38 = vpack.c.bf16 %v6950_v12, %v6949_v53  ;;  %v13910_v25 = vpop.f32.mrb[44].mxu1 }
0x1234   : > { %v6919_v49 = vadd.f32 %v13910_v25, %v17963_v20  ;;  %v6910_v4 = vpop.f32.mrb[45].mxu1 }
0x1235   : > { %v6911_v45 = vadd.f32 %v6910_v4, %v17963_v20  ;;  %v13911_v18 = vpop.f32.mrb[46].mxu1  ;;  %13940 = vmatprep.mubr.msk.bf16.mxu1 %vm20437_vm7, %v6969_v38  ;;  %vm20447_vm7 = vmmov %vm20446_vm8 }
0x1236   : > { %v6922_v36 = vadd.f32 %v13911_v18, %v17963_v20  ;;  %v6913_v43 = vpop.f32.mrb[47].mxu1  ;;  %13941 = vmatmul.mubr.msk.bf16.gmra.mrb[8].mxu1 %vm20438_vm3, %v6970_v42  ;;  %v6955_v61 = vmax.f32 %v6919_v49, 0.0  ;;  %vm20448_vm3 = vmmov %vm20447_vm7 }
0x1237   : > { %v6914_v14 = vadd.f32 %v6913_v43, %v17963_v20  ;;  %v6953_v16 = vmax.f32 %v6911_v45, 0.0  ;;  %v14874_v20 = vld [vmem:[%s19380_s3 + $0x68] ss:$0 sps:$4 sm:$0x33]  }
0x1238   : > { %v6956_v8 = vmax.f32 %v6922_v36, 0.0  ;;  %7316 = vrot.lane.b32.xlu0 %v14874_v20, %s15093_s12 }
0x1239   : > { %v6954_v11 = vmax.f32 %v6914_v14, 0.0 }
0x123a   : > { %v6972_v6 = vpack.c.bf16 %v6956_v8, %v6955_v61 }
0x123b   : > { %v6971_v44 = vpack.c.bf16 %v6954_v11, %v6953_v16 }
0x123d   : > { %13944 = vmatprep.mubr.msk.bf16.mxu1 %vm20439_vm14, %v6971_v44  ;;  %vm20449_vm14 = vmmov %vm20448_vm3 }
0x123e   : > { %13945 = vmatmul.mubr.msk.bf16.gmra.mrb[12].mxu1 %vm20415_vm2, %v6972_v6  ;;  %vm20450_vm2 = vmmov %vm20448_vm3 }
0x123f   : > { %7239 = vmatprep.mubr.bf16.mxu1 %v17188_v3 }
0x12d8   : > { %v13918_v39 = vpop.f32.mrb[48].mxu1 }
0x12d9   : > { %v7064_v7 = vpop.f32.mrb[49].mxu1  ;;  %v7073_v0 = vadd.f32 %v13918_v39, %v18014_v50 }
0x12da   : > { %v13919_v15 = vpop.f32.mrb[50].mxu1  ;;  %v7065_v58 = vadd.f32 %v7064_v7, %v18014_v50 }
0x12db   : > { %v7076_v51 = vadd.f32 %v13919_v15, %v18014_v50  ;;  %v7067_v26 = vpop.f32.mrb[51].mxu1 }
0x12dc   : > { %v7068_v59 = vadd.f32 %v7067_v26, %v18014_v50 }
0x12dd   : > { %v18024_v17 = vpack.c.bf16 %v7076_v51, %v7073_v0 }
0x12de   : > { %v18026_v27 = vpack.c.bf16 %v7068_v59, %v7065_v58 }
0x12e1   : > { %v13922_v40 = vpop.f32.mrb[52].mxu1 }
0x12e2   : > { %v7080_v29 = vpop.f32.mrb[53].mxu1  ;;  %v7089_v24 = vadd.f32 %v13922_v40, %v18014_v50 }
0x12e3   : > { %v13923_v60 = vpop.f32.mrb[54].mxu1  ;;  %v7081_v62 = vadd.f32 %v7080_v29, %v18014_v50 }
0x12e4   : > { %v7092_v41 = vadd.f32 %v13923_v60, %v18014_v50  ;;  %v7083_v22 = vpop.f32.mrb[55].mxu1 }
0x12e5   : > { %v7084_v28 = vadd.f32 %v7083_v22, %v18014_v50 }
0x12e6   : > { %v18032_v47 = vpack.c.bf16 %v7092_v41, %v7089_v24 }
0x12e7   : > { %v18034_v9 = vpack.c.bf16 %v7084_v28, %v7081_v62 }
0x12e9   : > { %v13926_v37 = vpop.f32.mrb[56].mxu1 }
0x12ea   : > { %v7096_v23 = vpop.f32.mrb[57].mxu1  ;;  %v7105_v46 = vadd.f32 %v13926_v37, %v18014_v50 }
0x12eb   : > { %v13927_v34 = vpop.f32.mrb[58].mxu1  ;;  %v7097_v21 = vadd.f32 %v7096_v23, %v18014_v50 }
0x12ec   : > { %v7108_v13 = vadd.f32 %v13927_v34, %v18014_v50  ;;  %v7099_v48 = vpop.f32.mrb[59].mxu1 }
0x12ed   : > { %v7100_v55 = vadd.f32 %v7099_v48, %v18014_v50 }
0x12ee   : > { %v18040_v31 = vpack.c.bf16 %v7108_v13, %v7105_v46 }
0x12ef   : > { %v18042_v35 = vpack.c.bf16 %v7100_v55, %v7097_v21 }
0x12f1   : > { %v13930_v30 = vpop.f32.mrb[60].mxu1 }
0x12f2   : > { %v7112_v57 = vpop.f32.mrb[61].mxu1  ;;  %v7121_v12 = vadd.f32 %v13930_v30, %v18014_v50 }
0x12f3   : > { %v13931_v53 = vpop.f32.mrb[62].mxu1  ;;  %v7113_v25 = vadd.f32 %v7112_v57, %v18014_v50 }
0x12f4   : > { %v7124_v42 = vadd.f32 %v13931_v53, %v18014_v50  ;;  %v7115_v38 = vpop.f32.mrb[63].mxu1 }
0x12f5   : > { %v7116_v49 = vadd.f32 %v7115_v38, %v18014_v50  ;;  %v20441_v38 = vld [vmem:[#allocation15_spill] sm:$0xff] }
0x12f6   : > { %v18048_v4 = vpack.c.bf16 %v7124_v42, %v7121_v12 }
0x12f7   : > { %v18050_v45 = vpack.c.bf16 %v7116_v49, %v7113_v25  ;;  %v20442_v25 = vld [vmem:[#allocation11_spill] sm:$0xff]  ;;  %v20443_v49 = vld [vmem:[#allocation12_spill] sm:$0xff] }
0x12f9   : > { %v13934_v18 = vpop.f32.mrb[0].mxu1 }
0x12fa   : > { %v7128_v36 = vpop.f32.mrb[1].mxu1  ;;  %v7137_v14 = vadd.f32 %v13934_v18, %v18014_v50  ;;  %v7317_v18 = vpop.permute.xlu0 %7316 }
0x12fb   : > { %v13935_v43 = vpop.f32.mrb[2].mxu1  ;;  %v7129_v16 = vadd.f32 %v7128_v36, %v18014_v50  ;;  %14645 = vmatprep.subr.msk.bf16.mxu0 %vm20444_vm4, %v7317_v18  ;;  %v7343_v36 = vsel %vm20445_vm5, %v7317_v18, 0  ;;  %vm20451_vm4 = vmmov %vm20450_vm2 }
0x12fc   : > { %v7140_v61 = vadd.f32 %v13935_v43, %v18014_v50  ;;  %v7131_v8 = vpop.f32.mrb[3].mxu1  ;;  %13949 = vmatpush3.bf16.msra.mxu0 %v7343_v36  ;;  %vm20452_vm5 = vmmov %vm20450_vm2 }
0x12fd   : > { %v7132_v11 = vadd.f32 %v7131_v8, %v18014_v50 }
0x12fe   : > { %v18056_v6 = vpack.c.bf16 %v7140_v61, %v7137_v14 }
0x12ff   : > { %v18058_v44 = vpack.c.bf16 %v7132_v11, %v7129_v16 }
0x1301   : > { %v13938_v39 = vpop.f32.mrb[4].mxu1  ;;  %12824 = vmatprep.subr.bf16.mxu1 %v18058_v44 }
0x1302   : > { %v7144_v7 = vpop.f32.mrb[5].mxu1  ;;  %12825 = vmatpush3.bf16.msra.mxu1 %v18026_v27  ;;  %v7153_v15 = vadd.f32 %v13938_v39, %v18014_v50 }
0x1303   : > { %v13939_v20 = vpop.f32.mrb[6].mxu1  ;;  %12826 = vmatprep.subr.bf16.mxu1 %v18056_v6  ;;  %v7145_v26 = vadd.f32 %v7144_v7, %v18014_v50 }
0x1304   : > { %v7156_v0 = vadd.f32 %v13939_v20, %v18014_v50  ;;  %v7147_v51 = vpop.f32.mrb[7].mxu1 }
0x1305   : > { %v7148_v58 = vadd.f32 %v7147_v51, %v18014_v50 }
0x1306   : > { %v18067_v59 = vpack.c.bf16 %v7156_v0, %v7153_v15  ;;  %12827 = vmatpush3.bf16.msra.mxu1 %v18024_v17 }
0x1307   : > { %v18070_v40 = vpack.c.bf16 %v7148_v58, %v7145_v26 }
0x1309   : > { %v13942_v29 = vpop.f32.mrb[8].mxu1  ;;  %12828 = vmatprep.subr.bf16.mxu1 %v18070_v40 }
0x130a   : > { %v7160_v60 = vpop.f32.mrb[9].mxu1  ;;  %12829 = vmatpush3.bf16.msra.mxu1 %v18034_v9  ;;  %v7169_v41 = vadd.f32 %v13942_v29, %v18014_v50 }
0x130b   : > { %v13943_v24 = vpop.f32.mrb[10].mxu1  ;;  %12830 = vmatprep.subr.bf16.mxu1 %v18067_v59  ;;  %v7161_v28 = vadd.f32 %v7160_v60, %v18014_v50 }
0x130c   : > { %v7172_v22 = vadd.f32 %v13943_v24, %v18014_v50  ;;  %v7163_v62 = vpop.f32.mrb[11].mxu1 }
0x130d   : > { %v7164_v37 = vadd.f32 %v7163_v62, %v18014_v50 }
0x130e   : > { %v18079_v23 = vpack.c.bf16 %v7172_v22, %v7169_v41  ;;  %12831 = vmatpush3.bf16.msra.mxu1 %v18032_v47 }
0x130f   : > { %v18082_v34 = vpack.c.bf16 %v7164_v37, %v7161_v28 }
0x1311   : > { %v13946_v46 = vpop.f32.mrb[12].mxu1  ;;  %12832 = vmatprep.subr.bf16.mxu1 %v18082_v34 }
0x1312   : > { %v7176_v13 = vpop.f32.mrb[13].mxu1  ;;  %12833 = vmatpush3.bf16.msra.mxu1 %v18042_v35  ;;  %v7185_v21 = vadd.f32 %v13946_v46, %v18014_v50 }
0x1313   : > { %v13947_v48 = vpop.f32.mrb[14].mxu1  ;;  %12834 = vmatprep.subr.bf16.mxu1 %v18079_v23  ;;  %v7177_v57 = vadd.f32 %v7176_v13, %v18014_v50 }
0x1314   : > { %v7188_v55 = vadd.f32 %v13947_v48, %v18014_v50  ;;  %v7179_v30 = vpop.f32.mrb[15].mxu1 }
0x1315   : > { %v7180_v53 = vadd.f32 %v7179_v30, %v18014_v50  ;;  %v20440_v50 = vld [vmem:[#allocation118_spill] sm:$0xff] }
0x1316   : > { %v18091_v12 = vpack.c.bf16 %v7188_v55, %v7185_v21  ;;  %12835 = vmatpush3.bf16.msra.mxu1 %v18040_v31 }
0x1317   : > { %v18094_v42 = vpack.c.bf16 %v7180_v53, %v7177_v57 }
0x1319   : > { %12836 = vmatprep.subr.bf16.mxu1 %v18094_v42 }
0x131a   : > { %12837 = vmatpush3.bf16.msra.mxu1 %v18050_v45 }
0x131b   : > { %12838 = vmatprep.subr.bf16.mxu1 %v18091_v12 }
0x131e   : > { %12839 = vmatpush3.bf16.msra.mxu1 %v18048_v4 }
0x1321   : > { %7240 = vmatmul.mubr.bf16.vlgmr.msra.gmra.mrb[16].mxu1 %v17309_v33 }
0x1322   : > { %7247 = vmatprep.mubr.bf16.mxu1 %v17307_v5 }
0x1329   : > { %7248 = vmatmul.mubr.bf16.gmra.mrb[20].mxu1 %v17319_v10 }
0x132a   : > { %7255 = vmatprep.mubr.bf16.mxu1 %v17317_v1 }
0x1331   : > { %7256 = vmatmul.mubr.bf16.gmra.mrb[24].mxu1 %v17329_v56 }
0x1332   : > { %7263 = vmatprep.mubr.bf16.mxu1 %v17327_v32 }
0x1339   : > { %7264 = vmatmul.mubr.bf16.gmra.mrb[28].mxu1 %v17339_v63 }
0x133a   : > { %7271 = vmatprep.mubr.bf16.mxu1 %v17337_v54 }
0x1341   : > { %7272 = vmatmul.mubr.bf16.gmra.mrb[64].mxu1 %v17349_v19 }
0x1342   : > { %7279 = vmatprep.mubr.bf16.mxu1 %v17347_v2 }
0x1349   : > { %7280 = vmatmul.mubr.bf16.gmra.mrb[68].mxu1 %v17359_v52 }
0x134a   : > { %7287 = vmatprep.mubr.bf16.mxu1 %v20440_v50 }
0x1351   : > { %7288 = vmatmul.mubr.bf16.gmra.mrb[72].mxu1 %v20441_v38 }
0x1352   : > { %7295 = vmatprep.mubr.bf16.mxu1 %v20442_v25 }
0x1359   : > { %7296 = vmatmul.mubr.bf16.gmra.mrb[76].mxu1 %v20443_v49 }
0x13f4   : > { %v12840_v43 = vpop.f32.mrb[16].mxu1 }
0x13f5   : > { %v12841_v14 = vpop.f32.mrb[17].mxu1 }
0x13f6   : > { %v12842_v61 = vadd.f32 %v12841_v14, %v12840_v43  ;;  %v12843_v8 = vpop.f32.mrb[18].mxu1 }
0x13f7   : > { %v12844_v16 = vpop.f32.mrb[19].mxu1 }
0x13f8   : > { %v12845_v11 = vadd.f32 %v12844_v16, %v12843_v8 }
0x13fa   : > { %v7305_v39 = vpack.c.bf16 %v12845_v11, %v12842_v61 }
0x13fc   : > { %v12846_v7 = vpop.f32.mrb[20].mxu1  ;;  %13950 = vmatprep.mubr.msk.bf16.mxu0 %vm20446_vm8, %v7305_v39  ;;  %vm20453_vm8 = vmmov %vm20450_vm2 }
0x13fd   : > { %v12847_v20 = vpop.f32.mrb[21].mxu1 }
0x13fe   : > { %v12848_v15 = vadd.f32 %v12847_v20, %v12846_v7  ;;  %v12849_v0 = vpop.f32.mrb[22].mxu1 }
0x13ff   : > { %v12850_v51 = vpop.f32.mrb[23].mxu1 }
0x1400   : > { %v12851_v26 = vadd.f32 %v12850_v51, %v12849_v0 }
0x1402   : > { %v7306_v58 = vpack.c.bf16 %v12851_v26, %v12848_v15 }
0x1404   : > { %v12852_v29 = vpop.f32.mrb[24].mxu1  ;;  %13951 = vmatmul.mubr.msk.bf16.vlgmr.msra.gmra.mrb[48].mxu0 %vm20447_vm7, %v7306_v58  ;;  %vm20471_vm7 = vcmask 261120  }
0x1405   : > { %v12853_v60 = vpop.f32.mrb[25].mxu1 }
0x1406   : > { %v12854_v24 = vadd.f32 %v12853_v60, %v12852_v29  ;;  %v12855_v41 = vpop.f32.mrb[26].mxu1 }
0x1407   : > { %v12856_v22 = vpop.f32.mrb[27].mxu1 }
0x1408   : > { %v12857_v62 = vadd.f32 %v12856_v22, %v12855_v41 }
0x140a   : > { %v7307_v28 = vpack.c.bf16 %v12857_v62, %v12854_v24 }
0x140c   : > { %v12858_v37 = vpop.f32.mrb[28].mxu1  ;;  %13954 = vmatprep.mubr.msk.bf16.mxu0 %vm20448_vm3, %v7307_v28  ;;  %vm20472_vm3 = vmmov %vm20471_vm7 }
0x140d   : > { %v12859_v46 = vpop.f32.mrb[29].mxu1 }
0x140e   : > { %v12860_v13 = vadd.f32 %v12859_v46, %v12858_v37  ;;  %v12861_v48 = vpop.f32.mrb[30].mxu1 }
0x140f   : > { %v12862_v21 = vpop.f32.mrb[31].mxu1 }
0x1410   : > { %v12863_v55 = vadd.f32 %v12862_v21, %v12861_v48  ;;  %v7522_v48 = vld [vmem:[%s19380_s3 + $0x68] sm:$0x1] }
0x1412   : > { %v7308_v30 = vpack.c.bf16 %v12863_v55, %v12860_v13 }
0x1414   : > { %v12864_v57 = vpop.f32.mrb[64].mxu1  ;;  %13955 = vmatmul.mubr.msk.bf16.gmra.mrb[52].mxu0 %vm20449_vm14, %v7308_v30  ;;  %v7523_v30 = vunpack.c.l.bf16 %v7522_v48  ;;  %v20458_v48 = vld [vmem:[#allocation37_spill] sm:$0xff]  ;;  %vm20473_vm14 = vmmov %vm20472_vm3 }
0x1415   : > { %v12865_v53 = vpop.f32.mrb[65].mxu1 }
0x1416   : > { %v12866_v18 = vadd.f32 %v12865_v53, %v12864_v57  ;;  %v12867_v36 = vpop.f32.mrb[66].mxu1 }
0x1417   : > { %v12868_v43 = vpop.f32.mrb[67].mxu1 }
0x1418   : > { %v12869_v14 = vadd.f32 %v12868_v43, %v12867_v36 }
0x141a   : > { %v7309_v61 = vpack.c.bf16 %v12869_v14, %v12866_v18  ;;  %v20454_v18 = vld [vmem:[#allocation79_spill] sm:$0xff] }
0x141b   : > { %v7527_v36 = vrot.slane %v7523_v30, %v20454_v18 }
0x141c   : > { %v12870_v8 = vpop.f32.mrb[68].mxu1  ;;  %13958 = vmatprep.mubr.msk.bf16.mxu0 %vm20450_vm2, %v7309_v61  ;;  %vm20474_vm2 = vmmov %vm20472_vm3 }
0x141d   : > { %v12871_v16 = vpop.f32.mrb[69].mxu1 }
0x141e   : > { %v12872_v11 = vadd.f32 %v12871_v16, %v12870_v8  ;;  %v12873_v39 = vpop.f32.mrb[70].mxu1 }
0x141f   : > { %v12874_v7 = vpop.f32.mrb[71].mxu1 }
0x1420   : > { %v12875_v20 = vadd.f32 %v12874_v7, %v12873_v39 }
0x1422   : > { %v7310_v15 = vpack.c.bf16 %v12875_v20, %v12872_v11 }
0x1424   : > { %v12876_v0 = vpop.f32.mrb[72].mxu1  ;;  %13959 = vmatmul.mubr.msk.bf16.gmra.mrb[56].mxu0 %vm20451_vm4, %v7310_v15  ;;  %vm20475_vm4 = vmmov %vm20474_vm2 }
0x1425   : > { %v12877_v51 = vpop.f32.mrb[73].mxu1 }
0x1426   : > { %v12878_v26 = vadd.f32 %v12877_v51, %v12876_v0  ;;  %v12879_v58 = vpop.f32.mrb[74].mxu1 }
0x1427   : > { %v12880_v29 = vpop.f32.mrb[75].mxu1 }
0x1428   : > { %v12881_v60 = vadd.f32 %v12880_v29, %v12879_v58  ;;  %v18151_v58 = vld [vmem:[%s19380_s3 + $0x78] sm:$0xff]  }
0x142a   : > { %v7311_v24 = vpack.c.bf16 %v12881_v60, %v12878_v26  ;;  %v18146_v26 = vld [vmem:[%s19380_s3 + $0x70] sm:$0xff]  }
0x142b   : > { %13966 = vmatprep.subr.bf16.mxu1 %v18146_v26 }
0x142c   : > { %v12882_v41 = vpop.f32.mrb[76].mxu1  ;;  %13962 = vmatprep.mubr.msk.bf16.mxu0 %vm20452_vm5, %v7311_v24  ;;  %13967 = vmatpush3.bf16.msra.mxu1 %v18146_v26  ;;  %vm20476_vm5 = vmmov %vm20474_vm2 }
0x142d   : > { %v12883_v22 = vpop.f32.mrb[77].mxu1  ;;  %13968 = vmatprep.subr.bf16.mxu1 %v18151_v58 }
0x142e   : > { %v12884_v62 = vadd.f32 %v12883_v22, %v12882_v41  ;;  %v12885_v28 = vpop.f32.mrb[78].mxu1  ;;  %v20455_v41 = vld [vmem:[#allocation24_spill] sm:$0xff] }
0x142f   : > { %v12886_v37 = vpop.f32.mrb[79].mxu1 }
0x1430   : > { %v12887_v46 = vadd.f32 %v12886_v37, %v12885_v28  ;;  %13969 = vmatpush3.bf16.msra.mxu1 %v18151_v58  ;;  %v20457_v37 = vld [vmem:[#allocation36_spill] sm:$0xff] }
0x1432   : > { %v7312_v13 = vpack.c.bf16 %v12887_v46, %v12884_v62  ;;  %v20456_v62 = vld [vmem:[#allocation38_spill] sm:$0xff] }
0x1434   : > { %13963 = vmatmul.mubr.msk.bf16.gmra.mrb[60].mxu0 %vm20453_vm8, %v7312_v13  ;;  %vm20477_vm8 = vmmov %vm20474_vm2 }
0x14d7   : > { %v13952_v21 = vpop.f32.mrb[48].mxu0 }
0x14d8   : > { %7462 = vrot.lane.b32.xlu1 %v13952_v21, %s15092_s5  ;;  %v7379_v55 = vpop.f32.mrb[49].mxu0 }
0x14d9   : > { %v13953_v57 = vpop.f32.mrb[50].mxu0 }
0x14da   : > { %v7382_v53 = vpop.f32.mrb[51].mxu0 }
0x14db   : > { %7460 = vrot.lane.b32.xlu0 %v7382_v53, %s15092_s5 }
0x14dc   : > { %7458 = vrot.lane.b32.xlu1 %v7379_v55, %s15092_s5 }
0x14df   : > { %7464 = vrot.lane.b32.xlu0 %v13953_v57, %s15092_s5 }
0x14e0   : > { %7529 = vrot.lane.b32.xlu1 %v7527_v36, %s15093_s12 }
0x14e7   : > { %v13956_v43 = vpop.f32.mrb[52].mxu0 }
0x14e8   : > { %v7395_v14 = vpop.f32.mrb[53].mxu0 }
0x14e9   : > { %7466 = vrot.lane.b32.xlu0 %v7395_v14, %s15092_s5  ;;  %v13957_v61 = vpop.f32.mrb[54].mxu0 }
0x14ea   : > { %v7398_v8 = vpop.f32.mrb[55].mxu0 }
0x14eb   : > { %7468 = vrot.lane.b32.xlu1 %v7398_v8, %s15092_s5 }
0x14ed   : > { %7470 = vrot.lane.b32.xlu0 %v13956_v43, %s15092_s5 }
0x14ef   : > { %7472 = vrot.lane.b32.xlu1 %v13957_v61, %s15092_s5 }
0x14f7   : > { %v13960_v16 = vpop.f32.mrb[56].mxu0 }
0x14f8   : > { %v7411_v11 = vpop.f32.mrb[57].mxu0 }
0x14f9   : > { %7474 = vrot.lane.b32.xlu0 %v7411_v11, %s15092_s5  ;;  %v13961_v39 = vpop.f32.mrb[58].mxu0 }
0x14fa   : > { %v7414_v7 = vpop.f32.mrb[59].mxu0 }
0x14fb   : > { %7476 = vrot.lane.b32.xlu1 %v7414_v7, %s15092_s5  ;;  %v20459_v7 = vld [vmem:[#allocation42_spill] sm:$0xff] }
0x14fd   : > { %7478 = vrot.lane.b32.xlu0 %v13960_v16, %s15092_s5 }
0x14ff   : > { %7480 = vrot.lane.b32.xlu1 %v13961_v39, %s15092_s5 }
0x1507   : > { %v13964_v20 = vpop.f32.mrb[60].mxu0 }
0x1508   : > { %v7427_v15 = vpop.f32.mrb[61].mxu0 }
0x1509   : > { %7482 = vrot.lane.b32.xlu0 %v7427_v15, %s15092_s5  ;;  %v13965_v0 = vpop.f32.mrb[62].mxu0 }
0x150a   : > { %v7430_v51 = vpop.f32.mrb[63].mxu0 }
0x150b   : > { %7484 = vrot.lane.b32.xlu1 %v7430_v51, %s15092_s5  ;;  %v20460_v51 = vld [vmem:[#allocation45_spill] sm:$0xff] }
0x150d   : > { %7486 = vrot.lane.b32.xlu0 %v13964_v20, %s15092_s5 }
0x150f   : > { %7488 = vrot.lane.b32.xlu1 %v13965_v0, %s15092_s5 }
0x154a   : > { %v7463_v29 = vpop.permute.xlu1 %7462 }
0x154b   : > { %v7508_v22 = vadd.f32 %v20455_v41, %v7463_v29  ;;  %v20461_v41 = vld [vmem:[#allocation41_spill] sm:$0xff] }
0x154d   : > { %v7461_v60 = vpop.permute.xlu0 %7460 }
0x154e   : > { %v7459_v24 = vpop.permute.xlu1 %7458  ;;  %v7507_v28 = vadd.f32 %v7461_v60, %v20456_v62 }
0x154f   : > { %v7506_v46 = vadd.f32 %v7459_v24, %v20457_v37 }
0x1551   : > { %v7465_v13 = vpop.permute.xlu0 %7464 }
0x1552   : > { %v7509_v21 = vadd.f32 %v20458_v48, %v7465_v13  ;;  %v18164_v55 = vpop.permute.xlu1 %7529  ;;  %v20462_v13 = vld [vmem:[#allocation25_spill] sm:$0xff] }
0x1553   : > { %v7532_v30 = vadd.f32 %v18164_v55, %v7506_v46  ;;  %v7533_v57 = vadd.f32 %v18164_v55, %v7507_v28  ;;  %v7534_v53 = vadd.f32 %v18164_v55, %v7508_v22 }
0x1554   : > { %v7535_v36 = vadd.f32 %v18164_v55, %v7509_v21 }
0x1555   : > { %v7548_v43 = vmax.f32 %v7532_v30, 0.0  ;;  %v7549_v14 = vmax.f32 %v7533_v57, 0.0  ;;  %v7550_v61 = vmax.f32 %v7534_v53, 0.0 }
0x1556   : > { %v7551_v8 = vmax.f32 %v7535_v36, 0.0 }
0x1557   : > { %v7568_v16 = vpack.c.bf16 %v7549_v14, %v7548_v43  ;;  %v20463_v14 = vld [vmem:[#allocation27_spill] sm:$0xff] }
0x1558   : > { %v7569_v11 = vpack.c.bf16 %v7551_v8, %v7550_v61 }
0x1559   : > { %7590 = vrot.lane.b32.xlu0 %v7568_v16, %s15092_s5 }
0x155a   : > { %7592 = vrot.lane.b32.xlu1 %v7569_v11, %s15092_s5  ;;  %v20464_v11 = vld [vmem:[#allocation46_spill] sm:$0xff] }
0x155b   : > { %v7467_v39 = vpop.permute.xlu0 %7466 }
0x155c   : > { %v7510_v20 = vadd.f32 %v7467_v39, %v20459_v7 }
0x155d   : > { %v7469_v15 = vpop.permute.xlu1 %7468 }
0x155e   : > { %v7536_v0 = vadd.f32 %v18164_v55, %v7510_v20  ;;  %v7511_v29 = vadd.f32 %v7469_v15, %v20460_v51  ;;  %v20465_v15 = vld [vmem:[#allocation26_spill] sm:$0xff] }
0x155f   : > { %v7471_v60 = vpop.permute.xlu0 %7470 }
0x1560   : > { %v7537_v24 = vadd.f32 %v18164_v55, %v7511_v29  ;;  %v7512_v22 = vadd.f32 %v20461_v41, %v7471_v60  ;;  %v7552_v28 = vmax.f32 %v7536_v0, 0.0  ;;  %v20466_v41 = vld [vmem:[#allocation28_spill] sm:$0xff] }
0x1561   : > { %v7473_v62 = vpop.permute.xlu1 %7472 }
0x1562   : > { %v7553_v37 = vmax.f32 %v7537_v24, 0.0  ;;  %v7538_v46 = vadd.f32 %v18164_v55, %v7512_v22  ;;  %v7513_v48 = vadd.f32 %v20462_v13, %v7473_v62 }
0x1564   : > { %v7570_v21 = vpack.c.bf16 %v7553_v37, %v7552_v28  ;;  %v7539_v30 = vadd.f32 %v18164_v55, %v7513_v48  ;;  %v7554_v57 = vmax.f32 %v7538_v46, 0.0 }
0x1566   : > { %v7555_v53 = vmax.f32 %v7539_v30, 0.0  ;;  %7594 = vrot.lane.b32.xlu0 %v7570_v21, %s15092_s5  ;;  %v20467_v21 = vld [vmem:[#allocation50_spill] sm:$0xff] }
0x1568   : > { %v7571_v36 = vpack.c.bf16 %v7555_v53, %v7554_v57 }
0x156a   : > { %7596 = vrot.lane.b32.xlu1 %v7571_v36, %s15092_s5  ;;  %v20468_v36 = vld [vmem:[#allocation103_spill] sm:$0xff] }
0x156b   : > { %v7475_v43 = vpop.permute.xlu0 %7474 }
0x156c   : > { %v7514_v61 = vadd.f32 %v7475_v43, %v20463_v14 }
0x156d   : > { %v7477_v8 = vpop.permute.xlu1 %7476 }
0x156e   : > { %v7540_v16 = vadd.f32 %v18164_v55, %v7514_v61  ;;  %v7515_v39 = vadd.f32 %v7477_v8, %v20464_v11  ;;  %v20469_v8 = vld [vmem:[#allocation49_spill] sm:$0xff] }
0x156f   : > { %v7479_v7 = vpop.permute.xlu0 %7478 }
0x1570   : > { %v7541_v20 = vadd.f32 %v18164_v55, %v7515_v39  ;;  %v7516_v0 = vadd.f32 %v20465_v15, %v7479_v7  ;;  %v7556_v29 = vmax.f32 %v7540_v16, 0.0  ;;  %v20470_v15 = vld [vmem:[#allocation102_spill] sm:$0xff] }
0x1571   : > { %v7481_v51 = vpop.permute.xlu1 %7480 }
0x1572   : > { %v7557_v60 = vmax.f32 %v7541_v20, 0.0  ;;  %v7542_v24 = vadd.f32 %v18164_v55, %v7516_v0  ;;  %v7517_v22 = vadd.f32 %v20466_v41, %v7481_v51  ;;  %v7576_v51 = vld [vmem:[%s19380_s3 + $0x70] sm:$0x1] }
0x1574   : > { %v7572_v62 = vpack.c.bf16 %v7557_v60, %v7556_v29  ;;  %v7543_v28 = vadd.f32 %v18164_v55, %v7517_v22  ;;  %v7558_v37 = vmax.f32 %v7542_v24, 0.0  ;;  %v7577_v22 = vunpack.c.l.bf16 %v7576_v51 }
0x1576   : > { %v7559_v46 = vmax.f32 %v7543_v28, 0.0  ;;  %7598 = vrot.lane.b32.xlu0 %v7572_v62, %s15092_s5  ;;  %v7581_v28 = vrot.slane %v7577_v22, %v20454_v18 }
0x1578   : > { %v7573_v13 = vpack.c.bf16 %v7559_v46, %v7558_v37 }
0x157a   : > { %7600 = vrot.lane.b32.xlu1 %v7573_v13, %s15092_s5 }
0x157b   : > { %v7483_v48 = vpop.permute.xlu0 %7482 }
0x157c   : > { %v7518_v30 = vadd.f32 %v7483_v48, %v20467_v21 }
0x157d   : > { %v7485_v57 = vpop.permute.xlu1 %7484 }
0x157e   : > { %v7544_v53 = vadd.f32 %v18164_v55, %v7518_v30  ;;  %v7519_v43 = vadd.f32 %v7485_v57, %v20468_v36 }
0x157f   : > { %v7487_v14 = vpop.permute.xlu0 %7486 }
0x1580   : > { %v7545_v61 = vadd.f32 %v18164_v55, %v7519_v43  ;;  %v7520_v16 = vadd.f32 %v20469_v8, %v7487_v14  ;;  %v7560_v39 = vmax.f32 %v7544_v53, 0.0 }
0x1581   : > { %v7489_v11 = vpop.permute.xlu1 %7488 }
0x1582   : > { %v7561_v7 = vmax.f32 %v7545_v61, 0.0  ;;  %v7546_v20 = vadd.f32 %v18164_v55, %v7520_v16  ;;  %v7521_v0 = vadd.f32 %v20470_v15, %v7489_v11 }
0x1584   : > { %v7574_v29 = vpack.c.bf16 %v7561_v7, %v7560_v39  ;;  %v7547_v60 = vadd.f32 %v18164_v55, %v7521_v0  ;;  %v7562_v24 = vmax.f32 %v7546_v20, 0.0 }
0x1586   : > { %v7563_v41 = vmax.f32 %v7547_v60, 0.0  ;;  %7602 = vrot.lane.b32.xlu0 %v7574_v29, %s15092_s5 }
0x1588   : > { %v7575_v62 = vpack.c.bf16 %v7563_v41, %v7562_v24 }
0x158a   : > { %7604 = vrot.lane.b32.xlu1 %v7575_v62, %s15092_s5  ;;  %7767 = vrot.lane.b32.xlu0 %v18146_v26, %s15092_s5 }
0x158e   : > { %7619 = vrot.lane.b32.xlu1 %v7581_v28, %s15093_s12  ;;  %7769 = vrot.lane.b32.xlu0 %v18151_v58, %s15092_s5 }
0x1592   : > { %7773 = vrot.lane.b32.xlu1 %v7581_v28, %s15094_s19 }
0x15cb   : > { %v7591_v55 = vpop.permute.xlu0 %7590 }
0x15cc   : > { %13970 = vmatprep.mubr.msk.bf16.mxu1 %vm20471_vm7, %v7591_v55  ;;  %v7593_v37 = vpop.permute.xlu1 %7592  ;;  %vm20478_vm7 = vmmov %vm20474_vm2 }
0x15cd   : > { %13971 = vmatmul.mubr.msk.bf16.vlgmr.msra.gmra.mrb[80].mxu1 %vm20472_vm3, %v7593_v37  ;;  %vm20479_vm3 = vmmov %vm20474_vm2 }
0x15d8   : > { %v7595_v46 = vpop.permute.xlu0 %7594 }
0x15d9   : > { %13974 = vmatprep.mubr.msk.bf16.mxu1 %vm20473_vm14, %v7595_v46  ;;  %vm20480_vm14 = vmmov %vm20474_vm2 }
0x15dc   : > { %v7597_v13 = vpop.permute.xlu1 %7596 }
0x15dd   : > { %13975 = vmatmul.mubr.msk.bf16.gmra.mrb[84].mxu1 %vm20474_vm2, %v7597_v13 }
0x15e8   : > { %v7599_v26 = vpop.permute.xlu0 %7598 }
0x15e9   : > { %13978 = vmatprep.mubr.msk.bf16.mxu1 %vm20475_vm4, %v7599_v26  ;;  %vm20481_vm4 = vmmov %vm20474_vm2 }
0x15ec   : > { %v7601_v48 = vpop.permute.xlu1 %7600 }
0x15ed   : > { %13979 = vmatmul.mubr.msk.bf16.gmra.mrb[88].mxu1 %vm20476_vm5, %v7601_v48  ;;  %vm20482_vm5 = vmmov %vm20474_vm2 }
0x15f8   : > { %v7603_v58 = vpop.permute.xlu0 %7602 }
0x15f9   : > { %13982 = vmatprep.mubr.msk.bf16.mxu1 %vm20477_vm8, %v7603_v58  ;;  %vm20483_vm8 = vmmov %vm20474_vm2 }
0x15fc   : > { %v7605_v21 = vpop.permute.xlu1 %7604  ;;  %v7768_v30 = vpop.permute.xlu0 %7767 }
0x15fd   : > { %13983 = vmatmul.mubr.msk.bf16.gmra.mrb[92].mxu1 %vm20478_vm7, %v7605_v21  ;;  %13986 = vmatprep.subr.bf16.mxu0 %v7768_v30  ;;  %vm20484_vm7 = vmmov %vm20474_vm2 }
0x15fe   : > { %13987 = vmatpush3.bf16.msra.mxu0 %v7768_v30 }
0x1600   : > { %v7770_v57 = vpop.permute.xlu0 %7769  ;;  %v7620_v53 = vpop.permute.xlu1 %7619 }
0x1601   : > { %13988 = vmatprep.subr.bf16.mxu0 %v7770_v57 }
0x1602   : > { %13989 = vmatpush3.bf16.msra.mxu0 %v7770_v57 }
0x16a0   : > { %v13972_v36 = vpop.f32.mrb[80].mxu1 }
0x16a1   : > { %v7680_v43 = vpop.f32.mrb[81].mxu1  ;;  %v7689_v14 = vadd.f32 %v13972_v36, %v7620_v53 }
0x16a2   : > { %v7681_v61 = vadd.f32 %v7680_v43, %v7620_v53  ;;  %v13973_v8 = vpop.f32.mrb[82].mxu1 }
0x16a3   : > { %v7692_v16 = vadd.f32 %v13973_v8, %v7620_v53  ;;  %v7683_v11 = vpop.f32.mrb[83].mxu1  ;;  %v7745_v7 = vmax.f32 %v7689_v14, 0.0 }
0x16a4   : > { %v7684_v39 = vadd.f32 %v7683_v11, %v7620_v53  ;;  %v7743_v15 = vmax.f32 %v7681_v61, 0.0 }
0x16a5   : > { %v7746_v20 = vmax.f32 %v7692_v16, 0.0 }
0x16a6   : > { %v7744_v0 = vmax.f32 %v7684_v39, 0.0 }
0x16a7   : > { %v7760_v51 = vpack.c.bf16 %v7746_v20, %v7745_v7 }
0x16a8   : > { %v7759_v29 = vpack.c.bf16 %v7744_v0, %v7743_v15 }
0x16aa   : > { %13990 = vmatprep.mubr.msk.bf16.mxu0 %vm20479_vm3, %v7759_v29  ;;  %vm20485_vm3 = vmmov %vm20474_vm2 }
0x16ab   : > { %13991 = vmatmul.mubr.msk.bf16.vlgmr.msra.gmra.mrb[64].mxu0 %vm20480_vm14, %v7760_v51 }
0x16b0   : > { %v13976_v60 = vpop.f32.mrb[84].mxu1 }
0x16b1   : > { %v7705_v24 = vadd.f32 %v13976_v60, %v7620_v53  ;;  %v7696_v41 = vpop.f32.mrb[85].mxu1 }
0x16b2   : > { %v7697_v22 = vadd.f32 %v7696_v41, %v7620_v53  ;;  %v13977_v62 = vpop.f32.mrb[86].mxu1 }
0x16b3   : > { %v7708_v28 = vadd.f32 %v13977_v62, %v7620_v53  ;;  %v7699_v55 = vpop.f32.mrb[87].mxu1  ;;  %v7749_v46 = vmax.f32 %v7705_v24, 0.0 }
0x16b4   : > { %v7700_v37 = vadd.f32 %v7699_v55, %v7620_v53  ;;  %v7747_v26 = vmax.f32 %v7697_v22, 0.0 }
0x16b5   : > { %v7750_v13 = vmax.f32 %v7708_v28, 0.0 }
0x16b6   : > { %v7748_v48 = vmax.f32 %v7700_v37, 0.0 }
0x16b7   : > { %v7762_v58 = vpack.c.bf16 %v7750_v13, %v7749_v46 }
0x16b8   : > { %v7761_v21 = vpack.c.bf16 %v7748_v48, %v7747_v26 }
0x16ba   : > { %13994 = vmatprep.mubr.msk.bf16.mxu0 %vm20474_vm2, %v7761_v21 }
0x16bb   : > { %13995 = vmatmul.mubr.msk.bf16.gmra.mrb[68].mxu0 %vm20481_vm4, %v7762_v58  ;;  %v20486_v58 = vmov 1.0|1.0  }
0x16c0   : > { %v13980_v30 = vpop.f32.mrb[88].mxu1 }
0x16c1   : > { %v7721_v57 = vadd.f32 %v13980_v30, %v7620_v53  ;;  %v7712_v36 = vpop.f32.mrb[89].mxu1  ;;  %v7961_v30 = vld [vmem:[%s19380_s3 + $0x18] sm:$0x7] }
0x16c2   : > { %v7713_v43 = vadd.f32 %v7712_v36, %v7620_v53  ;;  %v13981_v14 = vpop.f32.mrb[90].mxu1  ;;  %v18235_v36 = vpop.permute.xlu1 %7773 }
0x16c3   : > { %v7724_v61 = vadd.f32 %v13981_v14, %v7620_v53  ;;  %v7715_v8 = vpop.f32.mrb[91].mxu1  ;;  %v7753_v11 = vmax.f32 %v7721_v57, 0.0  ;;  %v20488_v57 = vld [vmem:[#allocation2_spill] sm:$0xff] }
0x16c4   : > { %v7716_v16 = vadd.f32 %v7715_v8, %v7620_v53  ;;  %v7751_v7 = vmax.f32 %v7713_v43, 0.0 }
0x16c5   : > { %v7754_v39 = vmax.f32 %v7724_v61, 0.0 }
0x16c6   : > { %v7752_v20 = vmax.f32 %v7716_v16, 0.0 }
0x16c7   : > { %v7764_v15 = vpack.c.bf16 %v7754_v39, %v7753_v11 }
0x16c8   : > { %v7763_v0 = vpack.c.bf16 %v7752_v20, %v7751_v7 }
0x16ca   : > { %13998 = vmatprep.mubr.msk.bf16.mxu0 %vm20482_vm5, %v7763_v0  ;;  %v20489_v0 = vld [vmem:[#allocation16_spill] sm:$0xff] }
0x16cb   : > { %13999 = vmatmul.mubr.msk.bf16.gmra.mrb[72].mxu0 %vm20483_vm8, %v7764_v15 }
0x16d0   : > { %v13984_v51 = vpop.f32.mrb[92].mxu1 }
0x16d1   : > { %v7737_v29 = vadd.f32 %v13984_v51, %v7620_v53  ;;  %v7728_v60 = vpop.f32.mrb[93].mxu1  ;;  %v7899_v51 = vmul.f32 0.5, %v20489_v0 }
0x16d2   : > { %v7729_v24 = vadd.f32 %v7728_v60, %v7620_v53  ;;  %v13985_v41 = vpop.f32.mrb[94].mxu1 }
0x16d3   : > { %v7740_v22 = vadd.f32 %v13985_v41, %v7620_v53  ;;  %v7731_v62 = vpop.f32.mrb[95].mxu1  ;;  %v7757_v55 = vmax.f32 %v7737_v29, 0.0 }
0x16d4   : > { %v7732_v28 = vadd.f32 %v7731_v62, %v7620_v53  ;;  %v7755_v46 = vmax.f32 %v7729_v24, 0.0  ;;  %v7995_v53 = vand.u32 %v7961_v30, %v20488_v57  ;;  %v20490_v24 = vld [vmem:[#allocation13_spill] sm:$0xff] }
0x16d5   : > { %v7758_v37 = vmax.f32 %v7740_v22, 0.0  ;;  %v7897_v41 = vmul.f32 0.5, %v20490_v24 }
0x16d6   : > { %v7756_v13 = vmax.f32 %v7732_v28, 0.0  ;;  %14006 = vmatprep.subr.bf16.mxu1 %v7995_v53  ;;  %v20491_v28 = vld [vmem:[#allocation17_spill] sm:$0xff] }
0x16d7   : > { %v7766_v26 = vpack.c.bf16 %v7758_v37, %v7757_v55  ;;  %14007 = vmatpush3.bf16.msra.mxu1 %v7995_v53  ;;  %v7900_v55 = vmul.f32 0.5, %v20491_v28 }
0x16d8   : > { %v7765_v48 = vpack.c.bf16 %v7756_v13, %v7755_v46 }
0x16da   : > { %14002 = vmatprep.mubr.msk.bf16.mxu0 %vm20484_vm7, %v7765_v48 }
0x16db   : > { %14003 = vmatmul.mubr.msk.bf16.gmra.mrb[76].mxu0 %vm20485_vm3, %v7766_v26  ;;  %v20494_v26 = vld [vmem:[#allocation18_spill] sm:$0xff] }
0x16dc   : > { %14040 = vmatprep.mubr.msk.bf16.mxu0 %vm15282_vm6, %v20486_v58  ;;  %v7898_v48 = vmul.f32 0.5, %v20494_v26  ;;  %vm20497_vm6 = vcmask 39936   ;;  %v20502_v26 = vld [vmem:[#allocation31_spill] sm:$0xff] }
0x16dd   : > { %vm20498_vm14 = vmmov %vm20497_vm6 }
0x16de   : > { %vm20507_vm2 = vmmov %vm20497_vm6 }
0x16df   : > { %vm20508_vm4 = vmmov %vm20507_vm2 }
0x16e0   : > { %vm20517_vm5 = vmmov %vm20507_vm2 }
0x16e1   : > { %vm20518_vm8 = vmmov %vm20507_vm2 }
0x16e2   : > { %vm20527_vm7 = vmmov %vm20507_vm2 }
0x16e3   : > { %vm20528_vm3 = vmmov %vm20507_vm2 }
0x177e   : > { %v13992_v43 = vpop.f32.mrb[64].mxu0 }
0x177f   : > { %v7834_v14 = vpop.f32.mrb[65].mxu0  ;;  %v7843_v61 = vadd.f32 %v13992_v43, %v18235_v36 }
0x1780   : > { %v7835_v8 = vadd.f32 %v7834_v14, %v18235_v36  ;;  %v13993_v16 = vpop.f32.mrb[66].mxu0 }
0x1781   : > { %v7846_v11 = vadd.f32 %v13993_v16, %v18235_v36  ;;  %v7915_v39 = vmax.f32 %v7843_v61, 0.0  ;;  %v7837_v7 = vpop.f32.mrb[67].mxu0 }
0x1782   : > { %v7913_v20 = vmax.f32 %v7835_v8, 0.0  ;;  %v7838_v15 = vadd.f32 %v7837_v7, %v18235_v36 }
0x1783   : > { %v7916_v29 = vmax.f32 %v7846_v11, 0.0  ;;  %v7931_v60 = vmul.f32 0.5, %v7915_v39 }
0x1784   : > { %v7929_v22 = vmul.f32 0.5, %v7913_v20  ;;  %v7914_v62 = vmax.f32 %v7838_v15, 0.0 }
0x1785   : > { %v7932_v37 = vmul.f32 0.5, %v7916_v29  ;;  %v18244_v46 = vadd.f32 %v7931_v60, %v7899_v51  ;;  %v20499_v29 = vld [vmem:[#allocation29_spill] sm:$0xff] }
0x1786   : > { %v18246_v13 = vadd.f32 %v7929_v22, %v7897_v41  ;;  %v7930_v21 = vmul.f32 0.5, %v7914_v62  ;;  %v7903_v60 = vmul.f32 0.5, %v20499_v29  ;;  %v20500_v22 = vld [vmem:[#allocation30_spill] sm:$0xff] }
0x1787   : > { %20492 = vst [vmem:[#allocation104_spill] sm:$0xff] %v18244_v46  ;;  %v18249_v30 = vadd.f32 %v7932_v37, %v7900_v55  ;;  %v7901_v62 = vmul.f32 0.5, %v20500_v22 }
0x1788   : > { %20493 = vst [vmem:[#allocation105_spill] sm:$0xff] %v18246_v13  ;;  %v18251_v53 = vadd.f32 %v7930_v21, %v7898_v48  ;;  %v7904_v48 = vmul.f32 0.5, %v20502_v26 }
0x1789   : > { %20495 = vst [vmem:[#allocation106_spill] sm:$0xff] %v18249_v30  ;;  %v7963_v43 = vpack.c.bf16 %v18249_v30, %v18244_v46 }
0x178a   : > { %20496 = vst [vmem:[#allocation107_spill] sm:$0xff] %v18251_v53  ;;  %v7962_v14 = vpack.c.bf16 %v18251_v53, %v18246_v13 }
0x178c   : > { %14008 = vmatprep.mubr.msk.bf16.mxu1 %vm20497_vm6, %v7962_v14  ;;  %v20504_v14 = vld [vmem:[#allocation32_spill] sm:$0xff]  ;;  %vm20545_vm6 = vcmask 1041408  }
0x178d   : > { %14009 = vmatmul.mubr.msk.bf16.vlgmr.msra.gmra.mrb[96].mxu1 %vm20498_vm14, %v7963_v43  ;;  %vm20546_vm14 = vmmov %vm20545_vm6 }
0x178e   : > { %v13996_v61 = vpop.f32.mrb[68].mxu0 }
0x178f   : > { %v7859_v8 = vadd.f32 %v13996_v61, %v18235_v36  ;;  %v7850_v16 = vpop.f32.mrb[69].mxu0  ;;  %v7902_v61 = vmul.f32 0.5, %v20504_v14 }
0x1790   : > { %v7851_v11 = vadd.f32 %v7850_v16, %v18235_v36  ;;  %v13997_v39 = vpop.f32.mrb[70].mxu0 }
0x1791   : > { %v7919_v7 = vmax.f32 %v7859_v8, 0.0  ;;  %v7862_v20 = vadd.f32 %v13997_v39, %v18235_v36  ;;  %v7853_v15 = vpop.f32.mrb[71].mxu0 }
0x1792   : > { %v7917_v0 = vmax.f32 %v7851_v11, 0.0  ;;  %v7854_v51 = vadd.f32 %v7853_v15, %v18235_v36 }
0x1793   : > { %v7935_v24 = vmul.f32 0.5, %v7919_v7  ;;  %v7920_v41 = vmax.f32 %v7862_v20, 0.0 }
0x1794   : > { %v7933_v28 = vmul.f32 0.5, %v7917_v0  ;;  %v7918_v55 = vmax.f32 %v7854_v51, 0.0 }
0x1795   : > { %v18265_v37 = vadd.f32 %v7935_v24, %v7903_v60  ;;  %v7936_v21 = vmul.f32 0.5, %v7920_v41 }
0x1796   : > { %v18268_v43 = vadd.f32 %v7933_v28, %v7901_v62  ;;  %v7934_v8 = vmul.f32 0.5, %v7918_v55  ;;  %v20509_v28 = vld [vmem:[#allocation33_spill] sm:$0xff] }
0x1797   : > { %20501 = vst [vmem:[#allocation108_spill] sm:$0xff] %v18265_v37  ;;  %v18271_v16 = vadd.f32 %v7936_v21, %v7904_v48  ;;  %v7907_v55 = vmul.f32 0.5, %v20509_v28  ;;  %v20510_v21 = vld [vmem:[#allocation34_spill] sm:$0xff] }
0x1798   : > { %20503 = vst [vmem:[#allocation109_spill] sm:$0xff] %v18268_v43  ;;  %v18273_v11 = vadd.f32 %v7934_v8, %v7902_v61  ;;  %v7905_v14 = vmul.f32 0.5, %v20510_v21 }
0x1799   : > { %20505 = vst [vmem:[#allocation110_spill] sm:$0xff] %v18271_v16  ;;  %v7965_v39 = vpack.c.bf16 %v18271_v16, %v18265_v37 }
0x179a   : > { %20506 = vst [vmem:[#allocation111_spill] sm:$0xff] %v18273_v11  ;;  %v7964_v7 = vpack.c.bf16 %v18273_v11, %v18268_v43 }
0x179c   : > { %14012 = vmatprep.mubr.msk.bf16.mxu1 %vm20507_vm2, %v7964_v7  ;;  %v20512_v7 = vld [vmem:[#allocation19_spill] sm:$0xff] }
0x179d   : > { %14013 = vmatmul.mubr.msk.bf16.gmra.mrb[100].mxu1 %vm20508_vm4, %v7965_v39 }
0x179e   : > { %v14000_v20 = vpop.f32.mrb[72].mxu0 }
0x179f   : > { %v7875_v15 = vadd.f32 %v14000_v20, %v18235_v36  ;;  %v7866_v0 = vpop.f32.mrb[73].mxu0  ;;  %v7908_v20 = vmul.f32 0.5, %v20512_v7 }
0x17a0   : > { %v7867_v51 = vadd.f32 %v7866_v0, %v18235_v36  ;;  %v14001_v29 = vpop.f32.mrb[74].mxu0 }
0x17a1   : > { %v7923_v60 = vmax.f32 %v7875_v15, 0.0  ;;  %v7878_v24 = vadd.f32 %v14001_v29, %v18235_v36  ;;  %v7869_v41 = vpop.f32.mrb[75].mxu0  ;;  %v20514_v29 = vld [vmem:[#allocation20_spill] sm:$0xff] }
0x17a2   : > { %v7921_v22 = vmax.f32 %v7867_v51, 0.0  ;;  %v7870_v62 = vadd.f32 %v7869_v41, %v18235_v36  ;;  %v7906_v11 = vmul.f32 0.5, %v20514_v29  ;;  %v20520_v29 = vld [vmem:[#allocation22_spill] sm:$0xff] }
0x17a3   : > { %v7939_v26 = vmul.f32 0.5, %v7923_v60  ;;  %v7924_v48 = vmax.f32 %v7878_v24, 0.0 }
0x17a4   : > { %v7937_v61 = vmul.f32 0.5, %v7921_v22  ;;  %v7922_v8 = vmax.f32 %v7870_v62, 0.0 }
0x17a5   : > { %v18287_v39 = vadd.f32 %v7939_v26, %v7907_v55  ;;  %v7940_v0 = vmul.f32 0.5, %v7924_v48 }
0x17a6   : > { %v18290_v15 = vadd.f32 %v7937_v61, %v7905_v14  ;;  %v7938_v51 = vmul.f32 0.5, %v7922_v8  ;;  %v20519_v8 = vld [vmem:[#allocation21_spill] sm:$0xff] }
0x17a7   : > { %20511 = vst [vmem:[#allocation112_spill] sm:$0xff] %v18287_v39  ;;  %v18293_v16 = vadd.f32 %v7940_v0, %v7908_v20  ;;  %v7911_v7 = vmul.f32 0.5, %v20519_v8 }
0x17a8   : > { %20513 = vst [vmem:[#allocation113_spill] sm:$0xff] %v18290_v15  ;;  %v18295_v41 = vadd.f32 %v7938_v51, %v7906_v11  ;;  %v7909_v51 = vmul.f32 0.5, %v20520_v29 }
0x17a9   : > { %20515 = vst [vmem:[#allocation115_spill] sm:$0xff] %v18293_v16  ;;  %v7967_v60 = vpack.c.bf16 %v18293_v16, %v18287_v39 }
0x17aa   : > { %20516 = vst [vmem:[#allocation114_spill] sm:$0xff] %v18295_v41  ;;  %v7966_v24 = vpack.c.bf16 %v18295_v41, %v18290_v15  ;;  %v20522_v41 = vld [vmem:[#allocation35_spill] sm:$0xff] }
0x17ac   : > { %14016 = vmatprep.mubr.msk.bf16.mxu1 %vm20517_vm5, %v7966_v24 }
0x17ad   : > { %14017 = vmatmul.mubr.msk.bf16.gmra.mrb[104].mxu1 %vm20518_vm8, %v7967_v60 }
0x17ae   : > { %v14004_v22 = vpop.f32.mrb[76].mxu0 }
0x17af   : > { %v7891_v62 = vadd.f32 %v14004_v22, %v18235_v36  ;;  %v7882_v28 = vpop.f32.mrb[77].mxu0 }
0x17b0   : > { %v7883_v55 = vadd.f32 %v7882_v28, %v18235_v36  ;;  %v14005_v26 = vpop.f32.mrb[78].mxu0  ;;  %v7912_v28 = vmul.f32 0.5, %v20522_v41  ;;  %v14877_v41 = vld [vmem:[%s19380_s3 + $0x78] ss:$0 sps:$4 sm:$0x33]  }
0x17b1   : > { %v7927_v48 = vmax.f32 %v7891_v62, 0.0  ;;  %v7894_v11 = vadd.f32 %v14005_v26, %v18235_v36  ;;  %v7885_v21 = vpop.f32.mrb[79].mxu0  ;;  %v20524_v26 = vld [vmem:[#allocation23_spill] sm:$0xff]  ;;  %8555 = vrot.lane.b32.xlu0 %v14877_v41, %s15093_s12 }
0x17b2   : > { %v7925_v14 = vmax.f32 %v7883_v55, 0.0  ;;  %v7886_v61 = vadd.f32 %v7885_v21, %v18235_v36  ;;  %v7910_v15 = vmul.f32 0.5, %v20524_v26 }
0x17b3   : > { %v7943_v20 = vmul.f32 0.5, %v7927_v48  ;;  %v7928_v0 = vmax.f32 %v7894_v11, 0.0 }
0x17b4   : > { %v7941_v60 = vmul.f32 0.5, %v7925_v14  ;;  %v7926_v24 = vmax.f32 %v7886_v61, 0.0 }
0x17b5   : > { %v18309_v22 = vadd.f32 %v7943_v20, %v7911_v7  ;;  %v7944_v16 = vmul.f32 0.5, %v7928_v0 }
0x17b6   : > { %v18312_v62 = vadd.f32 %v7941_v60, %v7909_v51  ;;  %v7942_v55 = vmul.f32 0.5, %v7926_v24 }
0x17b7   : > { %20521 = vst [vmem:[#allocation117_spill] sm:$0xff] %v18309_v22  ;;  %v18315_v39 = vadd.f32 %v7944_v16, %v7912_v28 }
0x17b8   : > { %20523 = vst [vmem:[#allocation116_spill] sm:$0xff] %v18312_v62  ;;  %v18317_v36 = vadd.f32 %v7942_v55, %v7910_v15 }
0x17b9   : > { %20525 = vst [vmem:[#allocation86_spill] sm:$0xff] %v18315_v39  ;;  %v7969_v48 = vpack.c.bf16 %v18315_v39, %v18309_v22  ;;  %v20555_v22 = vld [vmem:[#allocation53_spill] sm:$0xff] }
0x17ba   : > { %20526 = vst [vmem:[#allocation87_spill] sm:$0xff] %v18317_v36  ;;  %v7968_v11 = vpack.c.bf16 %v18317_v36, %v18312_v62  ;;  %v20563_v39 = vld [vmem:[#allocation57_spill] sm:$0xff]  ;;  %v20565_v62 = vld [vmem:[#allocation58_spill] sm:$0xff] }
0x17bc   : > { %14020 = vmatprep.mubr.msk.bf16.mxu1 %vm20527_vm7, %v7968_v11 }
0x17bd   : > { %14021 = vmatmul.mubr.msk.bf16.gmra.mrb[108].mxu1 %vm20528_vm3, %v7969_v48 }
0x1860   : > { %v18329_v16 = vpop.f32.mrb[96].mxu1 }
0x1861   : > { %20529 = vst [vmem:[#allocation88_spill] sm:$0xff] %v18329_v16  ;;  %v18331_v15 = vpop.f32.mrb[97].mxu1 }
0x1862   : > { %20530 = vst [vmem:[#allocation89_spill] sm:$0xff] %v18331_v15  ;;  %v18333_v21 = vpop.f32.mrb[98].mxu1 }
0x1863   : > { %20531 = vst [vmem:[#allocation90_spill] sm:$0xff] %v18333_v21  ;;  %v8095_v14 = vpack.c.bf16 %v18333_v21, %v18329_v16  ;;  %v18337_v61 = vpop.f32.mrb[99].mxu1 }
0x1864   : > { %20532 = vst [vmem:[#allocation91_spill] sm:$0xff] %v18337_v61  ;;  %v8094_v8 = vpack.c.bf16 %v18337_v61, %v18331_v15 }
0x1866   : > { %14024 = vmatprep.subr.bf16.mxu0 %v8094_v8 }
0x1867   : > { %14025 = vmatpush3.bf16.msra.mxu0 %v8094_v8 }
0x1868   : > { %14026 = vmatprep.subr.bf16.mxu0 %v8095_v14 }
0x186b   : > { %14027 = vmatpush3.bf16.msra.mxu0 %v8095_v14 }
0x1870   : > { %v18341_v7 = vpop.f32.mrb[100].mxu1 }
0x1871   : > { %20533 = vst [vmem:[#allocation92_spill] sm:$0xff] %v18341_v7  ;;  %v18343_v20 = vpop.f32.mrb[101].mxu1 }
0x1872   : > { %20534 = vst [vmem:[#allocation93_spill] sm:$0xff] %v18343_v20  ;;  %v18345_v0 = vpop.f32.mrb[102].mxu1 }
0x1873   : > { %20535 = vst [vmem:[#allocation94_spill] sm:$0xff] %v18345_v0  ;;  %v8097_v29 = vpack.c.bf16 %v18345_v0, %v18341_v7  ;;  %v18349_v51 = vpop.f32.mrb[103].mxu1 }
0x1874   : > { %20536 = vst [vmem:[#allocation95_spill] sm:$0xff] %v18349_v51  ;;  %v8096_v60 = vpack.c.bf16 %v18349_v51, %v18343_v20 }
0x1876   : > { %14028 = vmatprep.subr.bf16.mxu0 %v8096_v60 }
0x1877   : > { %14029 = vmatpush3.bf16.msra.mxu0 %v8096_v60 }
0x1878   : > { %14030 = vmatprep.subr.bf16.mxu0 %v8097_v29 }
0x187b   : > { %14031 = vmatpush3.bf16.msra.mxu0 %v8097_v29 }
0x1880   : > { %v18353_v24 = vpop.f32.mrb[104].mxu1 }
0x1881   : > { %20537 = vst [vmem:[#allocation96_spill] sm:$0xff] %v18353_v24  ;;  %v18355_v28 = vpop.f32.mrb[105].mxu1 }
0x1882   : > { %20538 = vst [vmem:[#allocation97_spill] sm:$0xff] %v18355_v28  ;;  %v18357_v26 = vpop.f32.mrb[106].mxu1 }
0x1883   : > { %20539 = vst [vmem:[#allocation98_spill] sm:$0xff] %v18357_v26  ;;  %v8099_v55 = vpack.c.bf16 %v18357_v26, %v18353_v24  ;;  %v18361_v48 = vpop.f32.mrb[107].mxu1 }
0x1884   : > { %20540 = vst [vmem:[#allocation99_spill] sm:$0xff] %v18361_v48  ;;  %v8098_v11 = vpack.c.bf16 %v18361_v48, %v18355_v28 }
0x1886   : > { %14032 = vmatprep.subr.bf16.mxu0 %v8098_v11 }
0x1887   : > { %14033 = vmatpush3.bf16.msra.mxu0 %v8098_v11  ;;  %v8556_v11 = vpop.permute.xlu0 %8555 }
0x1888   : > { %14034 = vmatprep.subr.bf16.mxu0 %v8099_v55 }
0x188b   : > { %14035 = vmatpush3.bf16.msra.mxu0 %v8099_v55  ;;  %v8606_v55 = vsel %vm20546_vm14, %v8556_v11, 0 }
0x1890   : > { %v18365_v41 = vpop.f32.mrb[108].mxu1 }
0x1891   : > { %20541 = vst [vmem:[#allocation100_spill] sm:$0xff] %v18365_v41  ;;  %v18367_v14 = vpop.f32.mrb[109].mxu1 }
0x1892   : > { %20542 = vst [vmem:[#allocation101_spill] sm:$0xff] %v18367_v14  ;;  %v18369_v8 = vpop.f32.mrb[110].mxu1 }
0x1893   : > { %20543 = vst [vmem:[#allocation118_spill] sm:$0xff] %v18369_v8  ;;  %v8101_v29 = vpack.c.bf16 %v18369_v8, %v18365_v41  ;;  %v18373_v60 = vpop.f32.mrb[111].mxu1 }
0x1894   : > { %20544 = vst [vmem:[#allocation15_spill] sm:$0xff] %v18373_v60  ;;  %v8100_v36 = vpack.c.bf16 %v18373_v60, %v18367_v14 }
0x1896   : > { %14036 = vmatprep.subr.bf16.mxu0 %v8100_v36 }
0x1897   : > { %14037 = vmatpush3.bf16.msra.mxu0 %v8100_v36  ;;  %v20559_v36 = vld [vmem:[#allocation55_spill] sm:$0xff] }
0x1898   : > { %14038 = vmatprep.subr.bf16.mxu0 %v8101_v29 }
0x189b   : > { %14039 = vmatpush3.bf16.msra.mxu0 %v8101_v29  ;;  %v20561_v29 = vld [vmem:[#allocation56_spill] sm:$0xff] }
0x189c   : > { %14646 = vmatprep.subr.msk.bf16.mxu0 %vm20545_vm6, %v8556_v11  ;;  %v20567_v11 = vld [vmem:[#allocation59_spill] sm:$0xff] }
0x189e   : > { %14041 = vmatmul.mubr.msk.bf16.vlgmr.msra.gmra.mrb[80].mxu0 %vm15356_vm11, %v20486_v58  ;;  %vm20556_vm11 = vnez %v20555_v22  ;;  %v20569_v22 = vld [vmem:[#allocation60_spill] sm:$0xff] }
0x189f   : > { %14044 = vmatprep.mubr.msk.bf16.mxu0 %vm15366_vm12, %v20486_v58  ;;  %14105 = vmatpush3.bf16.msra.mxu0 %v8606_v55  ;;  %v20557_v55 = vld [vmem:[#allocation54_spill] sm:$0xff]  ;;  %vm20562_vm12 = vnez %v20561_v29  ;;  %v20575_v29 = vld [vmem:[#allocation63_spill] sm:$0xff] }
0x18a0   : > { %vm20576_vm5 = vnez %v20575_v29  ;;  %v20589_v29 = vld [vmem:[#allocation70_spill] sm:$0xff] }
0x18a6   : > { %14045 = vmatmul.mubr.msk.bf16.gmra.mrb[84].mxu0 %vm15394_vm1, %v20486_v58  ;;  %vm20564_vm1 = vnez %v20563_v39  ;;  %v20577_v39 = vld [vmem:[#allocation64_spill] sm:$0xff] }
0x18a7   : > { %14048 = vmatprep.mubr.msk.bf16.mxu0 %vm15404_vm10, %v20486_v58  ;;  %vm20558_vm10 = vnez %v20557_v55  ;;  %v20571_v55 = vld [vmem:[#allocation61_spill] sm:$0xff]  ;;  %vm20578_vm8 = vnez %v20577_v39  ;;  %v20591_v39 = vld [vmem:[#allocation71_spill] sm:$0xff] }
0x18a8   : > { %vm20572_vm2 = vnez %v20571_v55  ;;  %v20585_v55 = vld [vmem:[#allocation68_spill] sm:$0xff] }
0x18a9   : > { %vm20586_vm14 = vnez %v20585_v55  ;;  %v20599_v55 = vld [vmem:[#allocation75_spill] sm:$0xff] }
0x18ae   : > { %14049 = vmatmul.mubr.msk.bf16.gmra.mrb[88].mxu0 %vm15432_vm9, %v20486_v58  ;;  %vm20560_vm9 = vnez %v20559_v36  ;;  %v20573_v36 = vld [vmem:[#allocation62_spill] sm:$0xff] }
0x18af   : > { %14052 = vmatprep.mubr.msk.bf16.mxu0 %vm20346_vm13, %v20486_v58  ;;  %vm20566_vm13 = vnez %v20565_v62  ;;  %vm20574_vm4 = vnez %v20573_v36  ;;  %v20579_v62 = vld [vmem:[#allocation65_spill] sm:$0xff] }
0x18b0   : > { %vm20580_vm7 = vnez %v20579_v62  ;;  %v20587_v36 = vld [vmem:[#allocation69_spill] sm:$0xff]  ;;  %v20593_v62 = vld [vmem:[#allocation72_spill] sm:$0xff] }
0x18b6   : > { %14053 = vmatmul.mubr.msk.bf16.gmra.mrb[92].mxu0 %vm20348_vm15, %v20486_v58  ;;  %vm20568_vm15 = vnez %v20567_v11  ;;  %v20581_v11 = vld [vmem:[#allocation66_spill] sm:$0xff] }
0x18b7   : > { %14056 = vmatprep.mubr.msk.bf16.mxu0 %vm20350_vm0, %v20486_v58  ;;  %vm20570_vm0 = vnez %v20569_v22  ;;  %vm20582_vm3 = vnez %v20581_v11  ;;  %v20583_v22 = vld [vmem:[#allocation67_spill] sm:$0xff]  ;;  %v20595_v11 = vld [vmem:[#allocation73_spill] sm:$0xff] }
0x18b8   : > { %vm20584_vm6 = vnez %v20583_v22  ;;  %v20597_v22 = vld [vmem:[#allocation74_spill] sm:$0xff] }
0x18be   : > { %14057 = vmatmul.mubr.msk.bf16.gmra.mrb[96].mxu0 %vm20556_vm11, %v20486_v58  ;;  %vm20588_vm11 = vnez %v20587_v36 }
0x18bf   : > { %14060 = vmatprep.mubr.msk.bf16.mxu0 %vm20558_vm10, %v20486_v58  ;;  %vm20590_vm10 = vnez %v20589_v29 }
0x18c6   : > { %14061 = vmatmul.mubr.msk.bf16.gmra.mrb[100].mxu0 %vm20560_vm9, %v20486_v58  ;;  %vm20592_vm9 = vnez %v20591_v39 }
0x18c7   : > { %14064 = vmatprep.mubr.msk.bf16.mxu0 %vm20562_vm12, %v20486_v58  ;;  %vm20594_vm12 = vnez %v20593_v62 }
0x18ce   : > { %14065 = vmatmul.mubr.msk.bf16.gmra.mrb[104].mxu0 %vm20564_vm1, %v20486_v58  ;;  %vm20596_vm1 = vnez %v20595_v11 }
0x18cf   : > { %14068 = vmatprep.mubr.msk.bf16.mxu0 %vm20566_vm13, %v20486_v58  ;;  %vm20598_vm13 = vnez %v20597_v22 }
0x18d6   : > { %14069 = vmatmul.mubr.msk.bf16.gmra.mrb[108].mxu0 %vm20568_vm15, %v20486_v58  ;;  %vm20600_vm15 = vnez %v20599_v55 }
0x18d7   : > { %14072 = vmatprep.mubr.msk.bf16.mxu0 %vm20570_vm0, %v20486_v58  ;;  %vm20601_vm0 = vcmask 31744  }
0x18de   : > { %14073 = vmatmul.mubr.msk.bf16.gmra.mrb[112].mxu0 %vm20572_vm2, %v20486_v58  ;;  %vm20602_vm2 = vmmov %vm20601_vm0 }
0x18df   : > { %14076 = vmatprep.mubr.msk.bf16.mxu0 %vm20574_vm4, %v20486_v58  ;;  %vm20603_vm4 = vmmov %vm20601_vm0 }
0x18e6   : > { %14077 = vmatmul.mubr.msk.bf16.gmra.mrb[116].mxu0 %vm20576_vm5, %v20486_v58  ;;  %vm20604_vm5 = vmmov %vm20601_vm0 }
0x18e7   : > { %14080 = vmatprep.mubr.msk.bf16.mxu0 %vm20578_vm8, %v20486_v58  ;;  %vm20605_vm8 = vmmov %vm20601_vm0 }
0x18ee   : > { %14081 = vmatmul.mubr.msk.bf16.gmra.mrb[120].mxu0 %vm20580_vm7, %v20486_v58  ;;  %vm20606_vm7 = vmmov %vm20601_vm0 }
0x18ef   : > { %14084 = vmatprep.mubr.msk.bf16.mxu0 %vm20582_vm3, %v20486_v58  ;;  %vm20607_vm3 = vmmov %vm20601_vm0 }
0x18f6   : > { %14085 = vmatmul.mubr.msk.bf16.gmra.mrb[124].mxu0 %vm20584_vm6, %v20486_v58  ;;  %vm20608_vm6 = vmmov %vm20601_vm0 }
0x18f7   : > { %14088 = vmatprep.mubr.msk.bf16.mxu0 %vm20586_vm14, %v20486_v58  ;;  %vm20609_vm14 = vmmov %vm20601_vm0 }
0x18fe   : > { %14089 = vmatmul.mubr.msk.bf16.gmra.mrb[128].mxu0 %vm20588_vm11, %v20486_v58  ;;  %vm20610_vm11 = vmmov %vm20601_vm0 }
0x18ff   : > { %14092 = vmatprep.mubr.msk.bf16.mxu0 %vm20590_vm10, %v20486_v58  ;;  %vm20611_vm10 = vmmov %vm20601_vm0 }
0x1906   : > { %14093 = vmatmul.mubr.msk.bf16.gmra.mrb[132].mxu0 %vm20592_vm9, %v20486_v58  ;;  %vm20612_vm9 = vmmov %vm20601_vm0 }
0x1907   : > { %14096 = vmatprep.mubr.msk.bf16.mxu0 %vm20594_vm12, %v20486_v58  ;;  %vm20613_vm12 = vmmov %vm20601_vm0 }
0x190e   : > { %14097 = vmatmul.mubr.msk.bf16.gmra.mrb[136].mxu0 %vm20596_vm1, %v20486_v58  ;;  %vm20614_vm1 = vmmov %vm20601_vm0 }
0x190f   : > { %14100 = vmatprep.mubr.msk.bf16.mxu0 %vm20598_vm13, %v20486_v58  ;;  %vm20615_vm13 = vmmov %vm20601_vm0 }
0x1916   : > { %14101 = vmatmul.mubr.msk.bf16.gmra.mrb[140].mxu0 %vm20600_vm15, %v20486_v58  ;;  %vm20616_vm15 = vmmov %vm20601_vm0 }
0x1917   : > { %14106 = vmatprep.mubr.msk.bf16.mxu0 %vm20601_vm0, %v18026_v27  ;;  %v8801_v27 = vld [vmem:[%s19380_s3 + $0x78] sm:$0x1]  ;;  %vm20617_vm0 = vcmask 261120  }
0x191e   : > { %14107 = vmatmul.mubr.msk.bf16.vlgmr.msra.gmra.mrb[80].mxu0 %vm20602_vm2, %v18024_v17  ;;  %v18507_v17 = vld [vmem:[%s19380_s3 + $0x80] sm:$0xff]   ;;  %vm20618_vm2 = vmmov %vm20617_vm0 }
0x191f   : > { %14110 = vmatprep.mubr.msk.bf16.mxu0 %vm20603_vm4, %v18034_v9  ;;  %14138 = vmatprep.subr.bf16.mxu1 %v18507_v17  ;;  %vm20619_vm4 = vmmov %vm20617_vm0 }
0x1920   : > { %14139 = vmatpush3.bf16.msra.mxu1 %v18507_v17 }
0x1926   : > { %14111 = vmatmul.mubr.msk.bf16.gmra.mrb[84].mxu0 %vm20604_vm5, %v18032_v47  ;;  %vm20620_vm5 = vmmov %vm20617_vm0 }
0x1927   : > { %14114 = vmatprep.mubr.msk.bf16.mxu0 %vm20605_vm8, %v18042_v35  ;;  %vm20621_vm8 = vmmov %vm20617_vm0 }
0x192e   : > { %14115 = vmatmul.mubr.msk.bf16.gmra.mrb[88].mxu0 %vm20606_vm7, %v18040_v31  ;;  %v8802_v31 = vunpack.c.l.bf16 %v8801_v27  ;;  %vm20622_vm7 = vmmov %vm20617_vm0 }
0x192f   : > { %14118 = vmatprep.mubr.msk.bf16.mxu0 %vm20607_vm3, %v18050_v45  ;;  %v18518_v45 = vld [vmem:[%s19380_s3 + $0x88] sm:$0xff]   ;;  %vm20623_vm3 = vmmov %vm20617_vm0 }
0x1930   : > { %14140 = vmatprep.subr.bf16.mxu1 %v18518_v45 }
0x1931   : > { %14141 = vmatpush3.bf16.msra.mxu1 %v18518_v45 }
0x1936   : > { %14119 = vmatmul.mubr.msk.bf16.gmra.mrb[92].mxu0 %vm20608_vm6, %v18048_v4  ;;  %vm20624_vm6 = vmmov %vm20617_vm0 }
0x1937   : > { %14122 = vmatprep.mubr.msk.bf16.mxu0 %vm20609_vm14, %v18058_v44  ;;  %vm20625_vm14 = vmmov %vm20617_vm0 }
0x193e   : > { %14123 = vmatmul.mubr.msk.bf16.gmra.mrb[96].mxu0 %vm20610_vm11, %v18056_v6  ;;  %v8806_v6 = vrot.slane %v8802_v31, %v20454_v18  ;;  %vm20626_vm11 = vmmov %vm20617_vm0 }
0x193f   : > { %14126 = vmatprep.mubr.msk.bf16.mxu0 %vm20611_vm10, %v18070_v40  ;;  %vm20627_vm10 = vmmov %vm20617_vm0 }
0x1946   : > { %14127 = vmatmul.mubr.msk.bf16.gmra.mrb[100].mxu0 %vm20612_vm9, %v18067_v59  ;;  %vm20628_vm9 = vmmov %vm20617_vm0 }
0x1947   : > { %14130 = vmatprep.mubr.msk.bf16.mxu0 %vm20613_vm12, %v18082_v34  ;;  %vm20629_vm12 = vmmov %vm20617_vm0 }
0x194e   : > { %14131 = vmatmul.mubr.msk.bf16.gmra.mrb[104].mxu0 %vm20614_vm1, %v18079_v23  ;;  %vm20630_vm1 = vmmov %vm20617_vm0 }
0x194f   : > { %14134 = vmatprep.mubr.msk.bf16.mxu0 %vm20615_vm13, %v18094_v42  ;;  %vm20631_vm13 = vmmov %vm20617_vm0 }
0x1956   : > { %14135 = vmatmul.mubr.msk.bf16.gmra.mrb[108].mxu0 %vm20616_vm15, %v18091_v12  ;;  %vm20632_vm15 = vmmov %vm20617_vm0 }
0x19b1   : > { %v14074_v47 = vpop.f32.mrb[112].mxu0 }
0x19b2   : > { %8427 = vrot.lane.b32.xlu1 %v14074_v47, %s15093_s12  ;;  %v8264_v9 = vpop.f32.mrb[113].mxu0 }
0x19b3   : > { %v14075_v35 = vpop.f32.mrb[114].mxu0 }
0x19b4   : > { %v8267_v4 = vpop.f32.mrb[115].mxu0 }
0x19b5   : > { %8425 = vrot.lane.b32.xlu0 %v8267_v4, %s15093_s12 }
0x19b6   : > { %8423 = vrot.lane.b32.xlu1 %v8264_v9, %s15093_s12 }
0x19b9   : > { %8429 = vrot.lane.b32.xlu0 %v14075_v35, %s15093_s12  ;;  %v14078_v44 = vpop.f32.mrb[116].mxu0 }
0x19ba   : > { %8808 = vrot.lane.b32.xlu1 %v8806_v6, %s15094_s19  ;;  %v8280_v59 = vpop.f32.mrb[117].mxu0 }
0x19bb   : > { %v14079_v40 = vpop.f32.mrb[118].mxu0 }
0x19bc   : > { %v8283_v23 = vpop.f32.mrb[119].mxu0 }
0x19bd   : > { %8431 = vrot.lane.b32.xlu0 %v8280_v59, %s15093_s12 }
0x19be   : > { %8433 = vrot.lane.b32.xlu1 %v8283_v23, %s15093_s12 }
0x19c1   : > { %8435 = vrot.lane.b32.xlu0 %v14078_v44, %s15093_s12  ;;  %v14082_v34 = vpop.f32.mrb[120].mxu0 }
0x19c2   : > { %8437 = vrot.lane.b32.xlu1 %v14079_v40, %s15093_s12  ;;  %v8296_v12 = vpop.f32.mrb[121].mxu0 }
0x19c3   : > { %v14083_v42 = vpop.f32.mrb[122].mxu0 }
0x19c4   : > { %v8299_v58 = vpop.f32.mrb[123].mxu0 }
0x19c5   : > { %8439 = vrot.lane.b32.xlu0 %v8296_v12, %s15093_s12 }
0x19c6   : > { %8441 = vrot.lane.b32.xlu1 %v8299_v58, %s15093_s12 }
0x19c9   : > { %8443 = vrot.lane.b32.xlu0 %v14082_v34, %s15093_s12  ;;  %v14086_v36 = vpop.f32.mrb[124].mxu0 }
0x19ca   : > { %8445 = vrot.lane.b32.xlu1 %v14083_v42, %s15093_s12  ;;  %v8312_v29 = vpop.f32.mrb[125].mxu0  ;;  %v8895_v42 = vld [vmem:[%s19380_s3 + $0x80] sm:$0x1] }
0x19cb   : > { %v14087_v39 = vpop.f32.mrb[126].mxu0  ;;  %v8896_v58 = vunpack.c.l.bf16 %v8895_v42 }
0x19cc   : > { %v8315_v62 = vpop.f32.mrb[127].mxu0 }
0x19cd   : > { %8447 = vrot.lane.b32.xlu0 %v8312_v29, %s15093_s12 }
0x19ce   : > { %8449 = vrot.lane.b32.xlu1 %v8315_v62, %s15093_s12 }
0x19d1   : > { %8451 = vrot.lane.b32.xlu0 %v14086_v36, %s15093_s12  ;;  %v14090_v11 = vpop.f32.mrb[128].mxu0 }
0x19d2   : > { %8453 = vrot.lane.b32.xlu1 %v14087_v39, %s15093_s12  ;;  %v8328_v22 = vpop.f32.mrb[129].mxu0  ;;  %v8900_v39 = vrot.slane %v8896_v58, %v20454_v18 }
0x19d3   : > { %v14091_v55 = vpop.f32.mrb[130].mxu0 }
0x19d4   : > { %v8331_v27 = vpop.f32.mrb[131].mxu0 }
0x19d5   : > { %8455 = vrot.lane.b32.xlu0 %v8328_v22, %s15093_s12 }
0x19d6   : > { %8457 = vrot.lane.b32.xlu1 %v8331_v27, %s15093_s12 }
0x19d9   : > { %8459 = vrot.lane.b32.xlu0 %v14090_v11, %s15093_s12  ;;  %v14094_v47 = vpop.f32.mrb[132].mxu0 }
0x19da   : > { %8461 = vrot.lane.b32.xlu1 %v14091_v55, %s15093_s12  ;;  %v8344_v9 = vpop.f32.mrb[133].mxu0 }
0x19db   : > { %v14095_v31 = vpop.f32.mrb[134].mxu0 }
0x19dc   : > { %v8347_v35 = vpop.f32.mrb[135].mxu0 }
0x19dd   : > { %8463 = vrot.lane.b32.xlu0 %v8344_v9, %s15093_s12 }
0x19de   : > { %8465 = vrot.lane.b32.xlu1 %v8347_v35, %s15093_s12 }
0x19e1   : > { %8467 = vrot.lane.b32.xlu0 %v14094_v47, %s15093_s12  ;;  %v14098_v4 = vpop.f32.mrb[136].mxu0 }
0x19e2   : > { %8469 = vrot.lane.b32.xlu1 %v14095_v31, %s15093_s12  ;;  %v8360_v6 = vpop.f32.mrb[137].mxu0 }
0x19e3   : > { %v14099_v44 = vpop.f32.mrb[138].mxu0 }
0x19e4   : > { %v8363_v59 = vpop.f32.mrb[139].mxu0 }
0x19e5   : > { %8471 = vrot.lane.b32.xlu0 %v8360_v6, %s15093_s12 }
0x19e6   : > { %8473 = vrot.lane.b32.xlu1 %v8363_v59, %s15093_s12 }
0x19e9   : > { %8475 = vrot.lane.b32.xlu0 %v14098_v4, %s15093_s12  ;;  %v14102_v40 = vpop.f32.mrb[140].mxu0 }
0x19ea   : > { %8477 = vrot.lane.b32.xlu1 %v14099_v44, %s15093_s12  ;;  %v8376_v23 = vpop.f32.mrb[141].mxu0 }
0x19eb   : > { %v14103_v34 = vpop.f32.mrb[142].mxu0 }
0x19ec   : > { %v8379_v12 = vpop.f32.mrb[143].mxu0 }
0x19ed   : > { %8479 = vrot.lane.b32.xlu0 %v8376_v23, %s15093_s12 }
0x19ee   : > { %8481 = vrot.lane.b32.xlu1 %v8379_v12, %s15093_s12 }
0x19f1   : > { %8483 = vrot.lane.b32.xlu0 %v14102_v40, %s15093_s12  ;;  %v14108_v36 = vpop.f32.mrb[80].mxu0 }
0x19f2   : > { %8485 = vrot.lane.b32.xlu1 %v14103_v34, %s15093_s12  ;;  %v8642_v29 = vpop.f32.mrb[81].mxu0 }
0x19f3   : > { %v14109_v62 = vpop.f32.mrb[82].mxu0 }
0x19f4   : > { %v8645_v11 = vpop.f32.mrb[83].mxu0 }
0x19f5   : > { %9174 = vrot.lane.b32.xlu0 %v18507_v17, %s15092_s5 }
0x19f6   : > { %8914 = vrot.lane.b32.xlu1 %v8900_v39, %s15093_s12 }
0x19f9   : > { %v14112_v22 = vpop.f32.mrb[84].mxu0  ;;  %9176 = vrot.lane.b32.xlu0 %v18518_v45, %s15092_s5 }
0x19fa   : > { %v8658_v55 = vpop.f32.mrb[85].mxu0  ;;  %9180 = vrot.lane.b32.xlu1 %v8900_v39, %s15094_s19 }
0x19fb   : > { %v14113_v27 = vpop.f32.mrb[86].mxu0 }
0x19fc   : > { %v8661_v47 = vpop.f32.mrb[87].mxu0 }
0x1a01   : > { %v18565_v9 = vpop.f32.mrb[88].mxu0 }
0x1a02   : > { %v8674_v31 = vpop.f32.mrb[89].mxu0 }
0x1a03   : > { %v18567_v35 = vpop.f32.mrb[90].mxu0 }
0x1a04   : > { %v8677_v4 = vpop.f32.mrb[91].mxu0 }
0x1a09   : > { %v18569_v6 = vpop.f32.mrb[92].mxu0 }
0x1a0a   : > { %v18571_v17 = vpop.f32.mrb[93].mxu0 }
0x1a0b   : > { %v18573_v44 = vpop.f32.mrb[94].mxu0 }
0x1a0c   : > { %v18575_v59 = vpop.f32.mrb[95].mxu0 }
0x1a11   : > { %v18577_v45 = vpop.f32.mrb[96].mxu0 }
0x1a12   : > { %v18579_v40 = vpop.f32.mrb[97].mxu0 }
0x1a13   : > { %v18581_v23 = vpop.f32.mrb[98].mxu0 }
0x1a14   : > { %v18583_v34 = vpop.f32.mrb[99].mxu0 }
0x1a19   : > { %v18585_v12 = vpop.f32.mrb[100].mxu0 }
0x1a1a   : > { %v18587_v42 = vpop.f32.mrb[101].mxu0 }
0x1a1b   : > { %v18589_v58 = vpop.f32.mrb[102].mxu0 }
0x1a1c   : > { %v18591_v39 = vpop.f32.mrb[103].mxu0 }
0x1a21   : > { %v18593_v43 = vpop.f32.mrb[104].mxu0 }
0x1a22   : > { %v18595_v37 = vpop.f32.mrb[105].mxu0 }
0x1a23   : > { %v18597_v53 = vpop.f32.mrb[106].mxu0 }
0x1a24   : > { %v8428_v30 = vpop.permute.xlu1 %8427  ;;  %v18599_v13 = vpop.f32.mrb[107].mxu0 }
0x1a25   : > { %v14480_v60 = vadd.f32 %v14108_v36, %v8428_v30 }
0x1a27   : > { %v8426_v46 = vpop.permute.xlu0 %8425 }
0x1a28   : > { %v8424_v57 = vpop.permute.xlu1 %8423  ;;  %v14483_v14 = vadd.f32 %v8645_v11, %v8426_v46 }
0x1a29   : > { %v18601_v8 = vpop.f32.mrb[108].mxu0  ;;  %v14481_v26 = vadd.f32 %v8642_v29, %v8424_v57 }
0x1a2a   : > { %v18603_v41 = vpop.f32.mrb[109].mxu0 }
0x1a2b   : > { %v8430_v24 = vpop.permute.xlu0 %8429  ;;  %v18605_v48 = vpop.f32.mrb[110].mxu0 }
0x1a2c   : > { %v14482_v28 = vadd.f32 %v14109_v62, %v8430_v24  ;;  %v18607_v0 = vpop.permute.xlu1 %8808  ;;  %v18609_v7 = vpop.f32.mrb[111].mxu0 }
0x1a2d   : > { %v8811_v51 = vadd.f32 %v14481_v26, %v18607_v0  ;;  %v8812_v20 = vadd.f32 %v14483_v14, %v18607_v0  ;;  %v8813_v21 = vadd.f32 %v14480_v60, %v18607_v0 }
0x1a2e   : > { %v8814_v15 = vadd.f32 %v14482_v28, %v18607_v0 }
0x1a2f   : > { %v8432_v61 = vpop.permute.xlu0 %8431  ;;  %v8843_v30 = vmax.f32 %v8811_v51, 0.0  ;;  %v8844_v46 = vmax.f32 %v8812_v20, 0.0  ;;  %v8845_v57 = vmax.f32 %v8813_v21, 0.0 }
0x1a30   : > { %v14485_v36 = vadd.f32 %v8658_v55, %v8432_v61  ;;  %v8434_v29 = vpop.permute.xlu1 %8433  ;;  %v8846_v11 = vmax.f32 %v8814_v15, 0.0 }
0x1a31   : > { %v14487_v24 = vadd.f32 %v8661_v47, %v8434_v29  ;;  %v8879_v62 = vpack.c.bf16 %v8844_v46, %v8843_v30 }
0x1a32   : > { %v8815_v16 = vadd.f32 %v14485_v36, %v18607_v0  ;;  %v8880_v18 = vpack.c.bf16 %v8846_v11, %v8845_v57 }
0x1a33   : > { %v8816_v26 = vadd.f32 %v14487_v24, %v18607_v0  ;;  %v8436_v49 = vpop.permute.xlu0 %8435  ;;  %14142 = vmatprep.mubr.msk.bf16.mxu1 %vm20617_vm0, %v8879_v62 }
0x1a34   : > { %v8847_v14 = vmax.f32 %v8815_v16, 0.0  ;;  %v14484_v60 = vadd.f32 %v14112_v22, %v8436_v49  ;;  %v8438_v28 = vpop.permute.xlu1 %8437  ;;  %14143 = vmatmul.mubr.msk.bf16.vlgmr.msra.gmra.mrb[112].mxu1 %vm20618_vm2, %v8880_v18  ;;  %vm20633_vm2 = vmmov %vm20617_vm0 }
0x1a35   : > { %v8848_v20 = vmax.f32 %v8816_v26, 0.0  ;;  %v14486_v21 = vadd.f32 %v14113_v27, %v8438_v28 }
0x1a36   : > { %v8817_v61 = vadd.f32 %v14484_v60, %v18607_v0 }
0x1a37   : > { %v8881_v15 = vpack.c.bf16 %v8848_v20, %v8847_v14  ;;  %v8818_v51 = vadd.f32 %v14486_v21, %v18607_v0  ;;  %v8440_v55 = vpop.permute.xlu0 %8439 }
0x1a38   : > { %v8849_v47 = vmax.f32 %v8817_v61, 0.0  ;;  %v14489_v30 = vadd.f32 %v8674_v31, %v8440_v55  ;;  %v8442_v46 = vpop.permute.xlu1 %8441 }
0x1a39   : > { %v8850_v57 = vmax.f32 %v8818_v51, 0.0  ;;  %v14491_v36 = vadd.f32 %v8677_v4, %v8442_v46  ;;  %14146 = vmatprep.mubr.msk.bf16.mxu1 %vm20619_vm4, %v8881_v15  ;;  %vm20634_vm4 = vmmov %vm20617_vm0 }
0x1a3a   : > { %v8819_v49 = vadd.f32 %v14489_v30, %v18607_v0 }
0x1a3b   : > { %v8882_v16 = vpack.c.bf16 %v8850_v57, %v8849_v47  ;;  %v8820_v18 = vadd.f32 %v14491_v36, %v18607_v0  ;;  %v8444_v22 = vpop.permute.xlu0 %8443 }
0x1a3c   : > { %v8851_v27 = vmax.f32 %v8819_v49, 0.0  ;;  %v14488_v29 = vadd.f32 %v18565_v9, %v8444_v22  ;;  %v8446_v11 = vpop.permute.xlu1 %8445 }
0x1a3d   : > { %v8852_v24 = vmax.f32 %v8820_v18, 0.0  ;;  %v14490_v62 = vadd.f32 %v18567_v35, %v8446_v11  ;;  %14147 = vmatmul.mubr.msk.bf16.gmra.mrb[116].mxu1 %vm20620_vm5, %v8882_v16  ;;  %vm20635_vm5 = vmmov %vm20617_vm0 }
0x1a3e   : > { %v8821_v31 = vadd.f32 %v14488_v29, %v18607_v0 }
0x1a3f   : > { %v8883_v4 = vpack.c.bf16 %v8852_v24, %v8851_v27  ;;  %v8822_v26 = vadd.f32 %v14490_v62, %v18607_v0  ;;  %v8448_v14 = vpop.permute.xlu0 %8447 }
0x1a40   : > { %v8853_v60 = vmax.f32 %v8821_v31, 0.0  ;;  %v14493_v28 = vadd.f32 %v18571_v17, %v8448_v14  ;;  %v8450_v20 = vpop.permute.xlu1 %8449 }
0x1a41   : > { %v8854_v21 = vmax.f32 %v8822_v26, 0.0  ;;  %v14495_v61 = vadd.f32 %v18575_v59, %v8450_v20  ;;  %14150 = vmatprep.mubr.msk.bf16.mxu1 %vm20621_vm8, %v8883_v4  ;;  %vm20636_vm8 = vmmov %vm20617_vm0 }
0x1a42   : > { %v8823_v9 = vadd.f32 %v14493_v28, %v18607_v0 }
0x1a43   : > { %v8884_v35 = vpack.c.bf16 %v8854_v21, %v8853_v60  ;;  %v8824_v15 = vadd.f32 %v14495_v61, %v18607_v0  ;;  %v8452_v51 = vpop.permute.xlu0 %8451 }
0x1a44   : > { %v8855_v55 = vmax.f32 %v8823_v9, 0.0  ;;  %v14492_v47 = vadd.f32 %v18569_v6, %v8452_v51  ;;  %v8454_v30 = vpop.permute.xlu1 %8453 }
0x1a45   : > { %v8856_v46 = vmax.f32 %v8824_v15, 0.0  ;;  %v14494_v57 = vadd.f32 %v18573_v44, %v8454_v30  ;;  %14151 = vmatmul.mubr.msk.bf16.gmra.mrb[120].mxu1 %vm20622_vm7, %v8884_v35  ;;  %vm20637_vm7 = vmmov %vm20617_vm0 }
0x1a46   : > { %v8825_v17 = vadd.f32 %v14492_v47, %v18607_v0 }
0x1a47   : > { %v8885_v59 = vpack.c.bf16 %v8856_v46, %v8855_v55  ;;  %v8826_v36 = vadd.f32 %v14494_v57, %v18607_v0  ;;  %v8456_v49 = vpop.permute.xlu0 %8455 }
0x1a48   : > { %v8857_v16 = vmax.f32 %v8825_v17, 0.0  ;;  %v14497_v18 = vadd.f32 %v18579_v40, %v8456_v49  ;;  %v8458_v22 = vpop.permute.xlu1 %8457 }
0x1a49   : > { %v8858_v27 = vmax.f32 %v8826_v36, 0.0  ;;  %v14499_v29 = vadd.f32 %v18583_v34, %v8458_v22  ;;  %14154 = vmatprep.mubr.msk.bf16.mxu1 %vm20623_vm3, %v8885_v59  ;;  %vm20638_vm3 = vmmov %vm20617_vm0 }
0x1a4a   : > { %v8827_v6 = vadd.f32 %v14497_v18, %v18607_v0 }
0x1a4b   : > { %v8886_v44 = vpack.c.bf16 %v8858_v27, %v8857_v16  ;;  %v8828_v11 = vadd.f32 %v14499_v29, %v18607_v0  ;;  %v8460_v24 = vpop.permute.xlu0 %8459 }
0x1a4c   : > { %v8859_v62 = vmax.f32 %v8827_v6, 0.0  ;;  %v14496_v31 = vadd.f32 %v18577_v45, %v8460_v24  ;;  %v8462_v4 = vpop.permute.xlu1 %8461 }
0x1a4d   : > { %v8860_v26 = vmax.f32 %v8828_v11, 0.0  ;;  %v14498_v14 = vadd.f32 %v18581_v23, %v8462_v4  ;;  %14155 = vmatmul.mubr.msk.bf16.gmra.mrb[124].mxu1 %vm20624_vm6, %v8886_v44  ;;  %vm20639_vm6 = vmmov %vm20617_vm0 }
0x1a4e   : > { %v8829_v40 = vadd.f32 %v14496_v31, %v18607_v0 }
0x1a4f   : > { %v8887_v34 = vpack.c.bf16 %v8860_v26, %v8859_v62  ;;  %v8830_v60 = vadd.f32 %v14498_v14, %v18607_v0  ;;  %v8464_v28 = vpop.permute.xlu0 %8463 }
0x1a50   : > { %v8861_v20 = vmax.f32 %v8829_v40, 0.0  ;;  %v14501_v21 = vadd.f32 %v18587_v42, %v8464_v28  ;;  %v8466_v61 = vpop.permute.xlu1 %8465 }
0x1a51   : > { %v8862_v9 = vmax.f32 %v8830_v60, 0.0  ;;  %v14503_v35 = vadd.f32 %v18591_v39, %v8466_v61  ;;  %14158 = vmatprep.mubr.msk.bf16.mxu1 %vm20625_vm14, %v8887_v34  ;;  %vm20640_vm14 = vmmov %vm20617_vm0 }
0x1a52   : > { %v8831_v45 = vadd.f32 %v14501_v21, %v18607_v0 }
0x1a53   : > { %v8888_v23 = vpack.c.bf16 %v8862_v9, %v8861_v20  ;;  %v8832_v15 = vadd.f32 %v14503_v35, %v18607_v0  ;;  %v8468_v51 = vpop.permute.xlu0 %8467 }
0x1a54   : > { %v8863_v55 = vmax.f32 %v8831_v45, 0.0  ;;  %v14500_v47 = vadd.f32 %v18585_v12, %v8468_v51  ;;  %v8470_v30 = vpop.permute.xlu1 %8469 }
0x1a55   : > { %v8864_v46 = vmax.f32 %v8832_v15, 0.0  ;;  %v14502_v57 = vadd.f32 %v18589_v58, %v8470_v30  ;;  %14159 = vmatmul.mubr.msk.bf16.gmra.mrb[128].mxu1 %vm20626_vm11, %v8888_v23  ;;  %vm20641_vm11 = vmmov %vm20617_vm0 }
0x1a56   : > { %v8833_v42 = vadd.f32 %v14500_v47, %v18607_v0 }
0x1a57   : > { %v8889_v39 = vpack.c.bf16 %v8864_v46, %v8863_v55  ;;  %v8834_v17 = vadd.f32 %v14502_v57, %v18607_v0  ;;  %v8472_v59 = vpop.permute.xlu0 %8471 }
0x1a58   : > { %v8865_v36 = vmax.f32 %v8833_v42, 0.0  ;;  %v14505_v49 = vadd.f32 %v18595_v37, %v8472_v59  ;;  %v8474_v16 = vpop.permute.xlu1 %8473 }
0x1a59   : > { %v8866_v18 = vmax.f32 %v8834_v17, 0.0  ;;  %v14507_v22 = vadd.f32 %v18599_v13, %v8474_v16  ;;  %14162 = vmatprep.mubr.msk.bf16.mxu1 %vm20627_vm10, %v8889_v39  ;;  %vm20642_vm10 = vmmov %vm20617_vm0 }
0x1a5a   : > { %v8835_v12 = vadd.f32 %v14505_v49, %v18607_v0 }
0x1a5b   : > { %v8890_v58 = vpack.c.bf16 %v8866_v18, %v8865_v36  ;;  %v8836_v27 = vadd.f32 %v14507_v22, %v18607_v0  ;;  %v8476_v29 = vpop.permute.xlu0 %8475 }
0x1a5c   : > { %v8867_v6 = vmax.f32 %v8835_v12, 0.0  ;;  %v14504_v44 = vadd.f32 %v18593_v43, %v8476_v29  ;;  %v8478_v11 = vpop.permute.xlu1 %8477 }
0x1a5d   : > { %v8868_v24 = vmax.f32 %v8836_v27, 0.0  ;;  %v14506_v62 = vadd.f32 %v18597_v53, %v8478_v11  ;;  %14163 = vmatmul.mubr.msk.bf16.gmra.mrb[132].mxu1 %vm20628_vm9, %v8890_v58  ;;  %vm20643_vm9 = vmmov %vm20617_vm0 }
0x1a5e   : > { %v8837_v37 = vadd.f32 %v14504_v44, %v18607_v0 }
0x1a5f   : > { %v8891_v13 = vpack.c.bf16 %v8868_v24, %v8867_v6  ;;  %v8838_v31 = vadd.f32 %v14506_v62, %v18607_v0  ;;  %v8480_v4 = vpop.permute.xlu0 %8479 }
0x1a60   : > { %v8869_v26 = vmax.f32 %v8837_v37, 0.0  ;;  %v14509_v14 = vadd.f32 %v18603_v41, %v8480_v4  ;;  %v8482_v40 = vpop.permute.xlu1 %8481 }
0x1a61   : > { %v8870_v34 = vmax.f32 %v8838_v31, 0.0  ;;  %v14511_v60 = vadd.f32 %v18609_v7, %v8482_v40  ;;  %14166 = vmatprep.mubr.msk.bf16.mxu1 %vm20629_vm12, %v8891_v13  ;;  %vm20644_vm12 = vmmov %vm20617_vm0 }
0x1a62   : > { %v8839_v43 = vadd.f32 %v14509_v14, %v18607_v0 }
0x1a63   : > { %v8892_v53 = vpack.c.bf16 %v8870_v34, %v8869_v26  ;;  %v8840_v28 = vadd.f32 %v14511_v60, %v18607_v0  ;;  %v8484_v20 = vpop.permute.xlu0 %8483 }
0x1a64   : > { %v8871_v21 = vmax.f32 %v8839_v43, 0.0  ;;  %v14508_v61 = vadd.f32 %v18601_v8, %v8484_v20  ;;  %v8486_v9 = vpop.permute.xlu1 %8485 }
0x1a65   : > { %v8872_v35 = vmax.f32 %v8840_v28, 0.0  ;;  %v14510_v45 = vadd.f32 %v18605_v48, %v8486_v9  ;;  %14167 = vmatmul.mubr.msk.bf16.gmra.mrb[136].mxu1 %vm20630_vm1, %v8892_v53  ;;  %vm20645_vm1 = vmmov %vm20617_vm0 }
0x1a66   : > { %v8841_v41 = vadd.f32 %v14508_v61, %v18607_v0 }
0x1a67   : > { %v8893_v7 = vpack.c.bf16 %v8872_v35, %v8871_v21  ;;  %v8842_v23 = vadd.f32 %v14510_v45, %v18607_v0  ;;  %v9175_v15 = vpop.permute.xlu0 %9174 }
0x1a68   : > { %v8873_v51 = vmax.f32 %v8841_v41, 0.0  ;;  %14174 = vmatprep.subr.bf16.mxu1 %v9175_v15  ;;  %v18681_v48 = vpop.permute.xlu1 %8914 }
0x1a69   : > { %v8874_v55 = vmax.f32 %v8842_v23, 0.0  ;;  %14170 = vmatprep.mubr.msk.bf16.mxu1 %vm20631_vm13, %v8893_v7  ;;  %14175 = vmatpush3.bf16.msra.mxu1 %v9175_v15  ;;  %vm20646_vm13 = vmmov %vm20617_vm0 }
0x1a6b   : > { %v8894_v47 = vpack.c.bf16 %v8874_v55, %v8873_v51  ;;  %v9177_v8 = vpop.permute.xlu0 %9176 }
0x1a6c   : > { %14176 = vmatprep.subr.bf16.mxu1 %v9177_v8 }
0x1a6d   : > { %14171 = vmatmul.mubr.msk.bf16.gmra.mrb[140].mxu1 %vm20632_vm15, %v8894_v47  ;;  %vm20647_vm15 = vmmov %vm20617_vm0 }
0x1a6e   : > { %14177 = vmatpush3.bf16.msra.mxu1 %v9177_v8 }
0x1b07   : > { %v14144_v30 = vpop.f32.mrb[112].mxu1 }
0x1b08   : > { %v9008_v46 = vadd.f32 %v14144_v30, %v18681_v48  ;;  %v8999_v57 = vpop.f32.mrb[113].mxu1 }
0x1b09   : > { %v9000_v0 = vadd.f32 %v8999_v57, %v18681_v48  ;;  %v14145_v42 = vpop.f32.mrb[114].mxu1 }
0x1b0a   : > { %v9011_v39 = vadd.f32 %v14145_v42, %v18681_v48  ;;  %v9002_v17 = vpop.f32.mrb[115].mxu1  ;;  %v9128_v36 = vmax.f32 %v9008_v46, 0.0 }
0x1b0b   : > { %v9003_v59 = vadd.f32 %v9002_v17, %v18681_v48  ;;  %v9126_v16 = vmax.f32 %v9000_v0, 0.0 }
0x1b0c   : > { %v9129_v49 = vmax.f32 %v9011_v39, 0.0 }
0x1b0d   : > { %v9127_v18 = vmax.f32 %v9003_v59, 0.0 }
0x1b0e   : > { %v9159_v22 = vpack.c.bf16 %v9129_v49, %v9128_v36 }
0x1b0f   : > { %v9158_v12 = vpack.c.bf16 %v9127_v18, %v9126_v16 }
0x1b10   : > { %v14148_v58 = vpop.f32.mrb[116].mxu1 }
0x1b11   : > { %v9024_v27 = vadd.f32 %v14148_v58, %v18681_v48  ;;  %v9015_v29 = vpop.f32.mrb[117].mxu1  ;;  %14178 = vmatprep.mubr.msk.bf16.mxu1 %vm20617_vm0, %v9158_v12  ;;  %vm20649_vm0 = vcmask 1041408  }
0x1b12   : > { %v9016_v6 = vadd.f32 %v9015_v29, %v18681_v48  ;;  %v14149_v44 = vpop.f32.mrb[118].mxu1  ;;  %14179 = vmatmul.mubr.msk.bf16.vlgmr.msra.gmra.mrb[144].mxu1 %vm20633_vm2, %v9159_v22  ;;  %vm20650_vm2 = vmmov %vm20649_vm0 }
0x1b13   : > { %v9027_v11 = vadd.f32 %v14149_v44, %v18681_v48  ;;  %v9018_v24 = vpop.f32.mrb[119].mxu1  ;;  %v9132_v37 = vmax.f32 %v9024_v27, 0.0 }
0x1b14   : > { %v9019_v62 = vadd.f32 %v9018_v24, %v18681_v48  ;;  %v9130_v31 = vmax.f32 %v9016_v6, 0.0 }
0x1b15   : > { %v9133_v13 = vmax.f32 %v9027_v11, 0.0 }
0x1b16   : > { %v9131_v4 = vmax.f32 %v9019_v62, 0.0 }
0x1b17   : > { %v9161_v26 = vpack.c.bf16 %v9133_v13, %v9132_v37 }
0x1b18   : > { %v9160_v14 = vpack.c.bf16 %v9131_v4, %v9130_v31  ;;  %v14152_v40 = vpop.f32.mrb[120].mxu1 }
0x1b19   : > { %v9040_v34 = vadd.f32 %v14152_v40, %v18681_v48  ;;  %v9031_v60 = vpop.f32.mrb[121].mxu1 }
0x1b1a   : > { %v9032_v43 = vadd.f32 %v9031_v60, %v18681_v48  ;;  %v14153_v53 = vpop.f32.mrb[122].mxu1  ;;  %14182 = vmatprep.mubr.msk.bf16.mxu1 %vm20634_vm4, %v9160_v14  ;;  %vm20651_vm4 = vcmask 31744  }
0x1b1b   : > { %v9043_v28 = vadd.f32 %v14153_v53, %v18681_v48  ;;  %v9034_v20 = vpop.f32.mrb[123].mxu1  ;;  %14183 = vmatmul.mubr.msk.bf16.gmra.mrb[148].mxu1 %vm20635_vm5, %v9161_v26  ;;  %v9136_v61 = vmax.f32 %v9040_v34, 0.0  ;;  %vm20652_vm5 = vmmov %vm20651_vm4 }
0x1b1c   : > { %v9035_v21 = vadd.f32 %v9034_v20, %v18681_v48  ;;  %v9134_v35 = vmax.f32 %v9032_v43, 0.0 }
0x1b1d   : > { %v9137_v9 = vmax.f32 %v9043_v28, 0.0 }
0x1b1e   : > { %v9135_v45 = vmax.f32 %v9035_v21, 0.0 }
0x1b1f   : > { %v9163_v41 = vpack.c.bf16 %v9137_v9, %v9136_v61 }
0x1b20   : > { %v9162_v7 = vpack.c.bf16 %v9135_v45, %v9134_v35  ;;  %v14156_v23 = vpop.f32.mrb[124].mxu1 }
0x1b21   : > { %v9056_v15 = vadd.f32 %v14156_v23, %v18681_v48  ;;  %v9047_v51 = vpop.f32.mrb[125].mxu1 }
0x1b22   : > { %v9048_v55 = vadd.f32 %v9047_v51, %v18681_v48  ;;  %v14157_v47 = vpop.f32.mrb[126].mxu1  ;;  %14186 = vmatprep.mubr.msk.bf16.mxu1 %vm20636_vm8, %v9162_v7  ;;  %vm20653_vm8 = vmmov %vm20651_vm4 }
0x1b23   : > { %v9059_v8 = vadd.f32 %v14157_v47, %v18681_v48  ;;  %v9050_v30 = vpop.f32.mrb[127].mxu1  ;;  %14187 = vmatmul.mubr.msk.bf16.gmra.mrb[152].mxu1 %vm20637_vm7, %v9163_v41  ;;  %v9140_v57 = vmax.f32 %v9056_v15, 0.0  ;;  %vm20654_vm7 = vmmov %vm20651_vm4 }
0x1b24   : > { %v9051_v46 = vadd.f32 %v9050_v30, %v18681_v48  ;;  %v9138_v42 = vmax.f32 %v9048_v55, 0.0 }
0x1b25   : > { %v9141_v0 = vmax.f32 %v9059_v8, 0.0 }
0x1b26   : > { %v9139_v39 = vmax.f32 %v9051_v46, 0.0 }
0x1b27   : > { %v9165_v17 = vpack.c.bf16 %v9141_v0, %v9140_v57 }
0x1b28   : > { %v9164_v59 = vpack.c.bf16 %v9139_v39, %v9138_v42  ;;  %v14160_v36 = vpop.f32.mrb[128].mxu1 }
0x1b29   : > { %v9072_v49 = vadd.f32 %v14160_v36, %v18681_v48  ;;  %v9063_v16 = vpop.f32.mrb[129].mxu1 }
0x1b2a   : > { %v9064_v18 = vadd.f32 %v9063_v16, %v18681_v48  ;;  %v14161_v22 = vpop.f32.mrb[130].mxu1  ;;  %14190 = vmatprep.mubr.msk.bf16.mxu1 %vm20638_vm3, %v9164_v59  ;;  %vm20655_vm3 = vmmov %vm20651_vm4 }
0x1b2b   : > { %v9075_v12 = vadd.f32 %v14161_v22, %v18681_v48  ;;  %v9066_v58 = vpop.f32.mrb[131].mxu1  ;;  %14191 = vmatmul.mubr.msk.bf16.gmra.mrb[156].mxu1 %vm20639_vm6, %v9165_v17  ;;  %v9144_v29 = vmax.f32 %v9072_v49, 0.0  ;;  %vm20656_vm6 = vmmov %vm20655_vm3 }
0x1b2c   : > { %v9067_v27 = vadd.f32 %v9066_v58, %v18681_v48  ;;  %v9142_v44 = vmax.f32 %v9064_v18, 0.0 }
0x1b2d   : > { %v9145_v6 = vmax.f32 %v9075_v12, 0.0 }
0x1b2e   : > { %v9143_v11 = vmax.f32 %v9067_v27, 0.0 }
0x1b2f   : > { %v9167_v24 = vpack.c.bf16 %v9145_v6, %v9144_v29  ;;  %v18732_v29 = vpop.permute.xlu1 %9180 }
0x1b30   : > { %v9166_v62 = vpack.c.bf16 %v9143_v11, %v9142_v44  ;;  %v14164_v37 = vpop.f32.mrb[132].mxu1 }
0x1b31   : > { %v9088_v13 = vadd.f32 %v14164_v37, %v18681_v48  ;;  %v9079_v31 = vpop.f32.mrb[133].mxu1 }
0x1b32   : > { %v9080_v4 = vadd.f32 %v9079_v31, %v18681_v48  ;;  %v14165_v26 = vpop.f32.mrb[134].mxu1  ;;  %14194 = vmatprep.mubr.msk.bf16.mxu1 %vm20640_vm14, %v9166_v62  ;;  %vm20657_vm14 = vmmov %vm20655_vm3 }
0x1b33   : > { %v9091_v14 = vadd.f32 %v14165_v26, %v18681_v48  ;;  %v9082_v40 = vpop.f32.mrb[135].mxu1  ;;  %14195 = vmatmul.mubr.msk.bf16.gmra.mrb[160].mxu1 %vm20641_vm11, %v9167_v24  ;;  %v9148_v60 = vmax.f32 %v9088_v13, 0.0  ;;  %vm20658_vm11 = vmmov %vm20655_vm3 }
0x1b34   : > { %v9083_v34 = vadd.f32 %v9082_v40, %v18681_v48  ;;  %v9146_v53 = vmax.f32 %v9080_v4, 0.0 }
0x1b35   : > { %v9149_v43 = vmax.f32 %v9091_v14, 0.0 }
0x1b36   : > { %v9147_v28 = vmax.f32 %v9083_v34, 0.0 }
0x1b37   : > { %v9169_v20 = vpack.c.bf16 %v9149_v43, %v9148_v60 }
0x1b38   : > { %v9168_v21 = vpack.c.bf16 %v9147_v28, %v9146_v53  ;;  %v14168_v61 = vpop.f32.mrb[136].mxu1 }
0x1b39   : > { %v9104_v9 = vadd.f32 %v14168_v61, %v18681_v48  ;;  %v9095_v35 = vpop.f32.mrb[137].mxu1 }
0x1b3a   : > { %v9096_v45 = vadd.f32 %v9095_v35, %v18681_v48  ;;  %v14169_v41 = vpop.f32.mrb[138].mxu1  ;;  %14198 = vmatprep.mubr.msk.bf16.mxu1 %vm20642_vm10, %v9168_v21  ;;  %vm20676_vm10 = vmmov %vm20645_vm1 }
0x1b3b   : > { %v9107_v7 = vadd.f32 %v14169_v41, %v18681_v48  ;;  %v9098_v23 = vpop.f32.mrb[139].mxu1  ;;  %14199 = vmatmul.mubr.msk.bf16.gmra.mrb[164].mxu1 %vm20643_vm9, %v9169_v20  ;;  %v9152_v51 = vmax.f32 %v9104_v9, 0.0  ;;  %vm20677_vm9 = vmmov %vm20645_vm1 }
0x1b3c   : > { %v9099_v15 = vadd.f32 %v9098_v23, %v18681_v48  ;;  %v9150_v47 = vmax.f32 %v9096_v45, 0.0 }
0x1b3d   : > { %v9153_v55 = vmax.f32 %v9107_v7, 0.0 }
0x1b3e   : > { %v9151_v8 = vmax.f32 %v9099_v15, 0.0 }
0x1b3f   : > { %v9171_v30 = vpack.c.bf16 %v9153_v55, %v9152_v51 }
0x1b40   : > { %v9170_v46 = vpack.c.bf16 %v9151_v8, %v9150_v47  ;;  %v14172_v57 = vpop.f32.mrb[140].mxu1 }
0x1b41   : > { %v9120_v0 = vadd.f32 %v14172_v57, %v18681_v48  ;;  %v9111_v42 = vpop.f32.mrb[141].mxu1 }
0x1b42   : > { %v9112_v39 = vadd.f32 %v9111_v42, %v18681_v48  ;;  %v14173_v17 = vpop.f32.mrb[142].mxu1  ;;  %14202 = vmatprep.mubr.msk.bf16.mxu1 %vm20644_vm12, %v9170_v46  ;;  %vm20678_vm12 = vmmov %vm20645_vm1 }
0x1b43   : > { %v9123_v59 = vadd.f32 %v14173_v17, %v18681_v48  ;;  %v9114_v36 = vpop.f32.mrb[143].mxu1  ;;  %14203 = vmatmul.mubr.msk.bf16.gmra.mrb[168].mxu1 %vm20645_vm1, %v9171_v30  ;;  %v9156_v16 = vmax.f32 %v9120_v0, 0.0 }
0x1b44   : > { %v9115_v49 = vadd.f32 %v9114_v36, %v18681_v48  ;;  %v9154_v22 = vmax.f32 %v9112_v39, 0.0  ;;  %v14880_v48 = vld [vmem:[%s19380_s3 + $0x88] ss:$0 sps:$4 sm:$0x33]  }
0x1b45   : > { %v9157_v18 = vmax.f32 %v9123_v59, 0.0  ;;  %9517 = vrot.lane.b32.xlu0 %v14880_v48, %s15093_s12 }
0x1b46   : > { %v9155_v12 = vmax.f32 %v9115_v49, 0.0 }
0x1b47   : > { %v9173_v58 = vpack.c.bf16 %v9157_v18, %v9156_v16 }
0x1b48   : > { %v9172_v27 = vpack.c.bf16 %v9155_v12, %v9154_v22 }
0x1b4a   : > { %14206 = vmatprep.mubr.msk.bf16.mxu1 %vm20646_vm13, %v9172_v27  ;;  %vm20679_vm13 = vmmov %vm20645_vm1 }
0x1b4b   : > { %14207 = vmatmul.mubr.msk.bf16.gmra.mrb[172].mxu1 %vm20647_vm15, %v9173_v58  ;;  %vm20680_vm15 = vmmov %vm20645_vm1 }
0x1b4c   : > { %9440 = vmatprep.mubr.bf16.mxu1 %v17188_v3 }
0x1be5   : > { %v14180_v6 = vpop.f32.mrb[144].mxu1 }
0x1be6   : > { %v9265_v44 = vpop.f32.mrb[145].mxu1  ;;  %v9274_v24 = vadd.f32 %v14180_v6, %v18732_v29 }
0x1be7   : > { %v14181_v11 = vpop.f32.mrb[146].mxu1  ;;  %v9266_v13 = vadd.f32 %v9265_v44, %v18732_v29 }
0x1be8   : > { %v9277_v62 = vadd.f32 %v14181_v11, %v18732_v29  ;;  %v9268_v37 = vpop.f32.mrb[147].mxu1 }
0x1be9   : > { %v9269_v3 = vadd.f32 %v9268_v37, %v18732_v29 }
0x1bea   : > { %v9393_v31 = vpack.c.bf16 %v9277_v62, %v9274_v24 }
0x1beb   : > { %v9392_v4 = vpack.c.bf16 %v9269_v3, %v9266_v13 }
0x1bee   : > { %v14184_v26 = vpop.f32.mrb[148].mxu1 }
0x1bef   : > { %v9281_v14 = vpop.f32.mrb[149].mxu1  ;;  %v18743_v34 = vadd.f32 %v14184_v26, %v18732_v29 }
0x1bf0   : > { %v14185_v40 = vpop.f32.mrb[150].mxu1  ;;  %v9282_v53 = vadd.f32 %v9281_v14, %v18732_v29 }
0x1bf1   : > { %v9293_v60 = vadd.f32 %v14185_v40, %v18732_v29  ;;  %v9284_v43 = vpop.f32.mrb[151].mxu1 }
0x1bf2   : > { %v9285_v28 = vadd.f32 %v9284_v43, %v18732_v29 }
0x1bf3   : > { %v9395_v20 = vpack.c.bf16 %v9293_v60, %v18743_v34 }
0x1bf4   : > { %v9394_v21 = vpack.c.bf16 %v9285_v28, %v9282_v53 }
0x1bf6   : > { %v14188_v61 = vpop.f32.mrb[152].mxu1 }
0x1bf7   : > { %v9297_v9 = vpop.f32.mrb[153].mxu1  ;;  %v18750_v45 = vadd.f32 %v14188_v61, %v18732_v29 }
0x1bf8   : > { %v14189_v35 = vpop.f32.mrb[154].mxu1  ;;  %v9298_v23 = vadd.f32 %v9297_v9, %v18732_v29 }
0x1bf9   : > { %v18753_v41 = vadd.f32 %v14189_v35, %v18732_v29  ;;  %v9300_v7 = vpop.f32.mrb[155].mxu1 }
0x1bfa   : > { %v9301_v15 = vadd.f32 %v9300_v7, %v18732_v29 }
0x1bfb   : > { %v9397_v51 = vpack.c.bf16 %v18753_v41, %v18750_v45 }
0x1bfc   : > { %v9396_v55 = vpack.c.bf16 %v9301_v15, %v9298_v23 }
0x1bfe   : > { %v14192_v47 = vpop.f32.mrb[156].mxu1 }
0x1bff   : > { %v9313_v8 = vpop.f32.mrb[157].mxu1  ;;  %v9322_v46 = vadd.f32 %v14192_v47, %v18732_v29 }
0x1c00   : > { %v14193_v30 = vpop.f32.mrb[158].mxu1  ;;  %v9314_v42 = vadd.f32 %v9313_v8, %v18732_v29 }
0x1c01   : > { %v9325_v57 = vadd.f32 %v14193_v30, %v18732_v29  ;;  %v9316_v0 = vpop.f32.mrb[159].mxu1 }
0x1c02   : > { %v9317_v39 = vadd.f32 %v9316_v0, %v18732_v29 }
0x1c03   : > { %v9399_v17 = vpack.c.bf16 %v9325_v57, %v9322_v46 }
0x1c04   : > { %v9398_v59 = vpack.c.bf16 %v9317_v39, %v9314_v42 }
0x1c06   : > { %v14196_v36 = vpop.f32.mrb[160].mxu1 }
0x1c07   : > { %v9329_v49 = vpop.f32.mrb[161].mxu1  ;;  %v9338_v18 = vadd.f32 %v14196_v36, %v18732_v29 }
0x1c08   : > { %v14197_v16 = vpop.f32.mrb[162].mxu1  ;;  %v9330_v58 = vadd.f32 %v9329_v49, %v18732_v29 }
0x1c09   : > { %v9341_v22 = vadd.f32 %v14197_v16, %v18732_v29  ;;  %v9332_v12 = vpop.f32.mrb[163].mxu1 }
0x1c0a   : > { %v9333_v27 = vadd.f32 %v9332_v12, %v18732_v29 }
0x1c0b   : > { %v9401_v6 = vpack.c.bf16 %v9341_v22, %v9338_v18 }
0x1c0c   : > { %v9400_v44 = vpack.c.bf16 %v9333_v27, %v9330_v58 }
0x1c0e   : > { %v14200_v48 = vpop.f32.mrb[164].mxu1  ;;  %13019 = vmatprep.subr.bf16.mxu1 %v9400_v44 }
0x1c0f   : > { %v9345_v11 = vpop.f32.mrb[165].mxu1  ;;  %13020 = vmatpush3.bf16.msra.mxu1 %v9392_v4  ;;  %v9354_v62 = vadd.f32 %v14200_v48, %v18732_v29 }
0x1c10   : > { %v14201_v24 = vpop.f32.mrb[166].mxu1  ;;  %13021 = vmatprep.subr.bf16.mxu1 %v9401_v6  ;;  %v9346_v3 = vadd.f32 %v9345_v11, %v18732_v29 }
0x1c11   : > { %v9357_v37 = vadd.f32 %v14201_v24, %v18732_v29  ;;  %v9348_v13 = vpop.f32.mrb[167].mxu1 }
0x1c12   : > { %v9349_v26 = vadd.f32 %v9348_v13, %v18732_v29 }
0x1c13   : > { %v9403_v14 = vpack.c.bf16 %v9357_v37, %v9354_v62  ;;  %13022 = vmatpush3.bf16.msra.mxu1 %v9393_v31 }
0x1c14   : > { %v9402_v40 = vpack.c.bf16 %v9349_v26, %v9346_v3 }
0x1c16   : > { %v14204_v34 = vpop.f32.mrb[168].mxu1  ;;  %13023 = vmatprep.subr.bf16.mxu1 %v9402_v40 }
0x1c17   : > { %v9361_v60 = vpop.f32.mrb[169].mxu1  ;;  %13024 = vmatpush3.bf16.msra.mxu1 %v9394_v21  ;;  %v9370_v4 = vadd.f32 %v14204_v34, %v18732_v29 }
0x1c18   : > { %v14205_v43 = vpop.f32.mrb[170].mxu1  ;;  %13025 = vmatprep.subr.bf16.mxu1 %v9403_v14  ;;  %v9362_v61 = vadd.f32 %v9361_v60, %v18732_v29 }
0x1c19   : > { %v9373_v53 = vadd.f32 %v14205_v43, %v18732_v29  ;;  %v9364_v28 = vpop.f32.mrb[171].mxu1 }
0x1c1a   : > { %v9365_v9 = vadd.f32 %v9364_v28, %v18732_v29 }
0x1c1b   : > { %v9405_v35 = vpack.c.bf16 %v9373_v53, %v9370_v4  ;;  %13026 = vmatpush3.bf16.msra.mxu1 %v9395_v20 }
0x1c1c   : > { %v9404_v45 = vpack.c.bf16 %v9365_v9, %v9362_v61 }
0x1c1e   : > { %v14208_v31 = vpop.f32.mrb[172].mxu1  ;;  %13027 = vmatprep.subr.bf16.mxu1 %v9404_v45 }
0x1c1f   : > { %v9377_v41 = vpop.f32.mrb[173].mxu1  ;;  %13028 = vmatpush3.bf16.msra.mxu1 %v9396_v55  ;;  %v9386_v21 = vadd.f32 %v14208_v31, %v18732_v29 }
0x1c20   : > { %v14209_v7 = vpop.f32.mrb[174].mxu1  ;;  %13029 = vmatprep.subr.bf16.mxu1 %v9405_v35  ;;  %v9378_v47 = vadd.f32 %v9377_v41, %v18732_v29 }
0x1c21   : > { %v9389_v23 = vadd.f32 %v14209_v7, %v18732_v29  ;;  %v9380_v15 = vpop.f32.mrb[175].mxu1 }
0x1c22   : > { %v9381_v8 = vadd.f32 %v9380_v15, %v18732_v29  ;;  %v9723_v15 = vld [vmem:[%s19380_s3 + $0x88] sm:$0x1] }
0x1c23   : > { %v9407_v30 = vpack.c.bf16 %v9389_v23, %v9386_v21  ;;  %13030 = vmatpush3.bf16.msra.mxu1 %v9397_v51 }
0x1c24   : > { %v9406_v46 = vpack.c.bf16 %v9381_v8, %v9378_v47 }
0x1c26   : > { %13031 = vmatprep.subr.bf16.mxu1 %v9406_v46 }
0x1c27   : > { %13032 = vmatpush3.bf16.msra.mxu1 %v9398_v59 }
0x1c28   : > { %13033 = vmatprep.subr.bf16.mxu1 %v9407_v30  ;;  %v9724_v30 = vunpack.c.l.bf16 %v9723_v15 }
0x1c2b   : > { %13034 = vmatpush3.bf16.msra.mxu1 %v9399_v17 }
0x1c2e   : > { %9441 = vmatmul.mubr.bf16.vlgmr.msra.gmra.mrb[176].mxu1 %v17309_v33  ;;  %v9518_v33 = vpop.permute.xlu0 %9517 }
0x1c2f   : > { %9448 = vmatprep.mubr.bf16.mxu1 %v17307_v5  ;;  %v20648_v5 = vld [vmem:[#allocation12_spill] sm:$0xff]  ;;  %14647 = vmatprep.subr.msk.bf16.mxu0 %vm20650_vm2, %v9518_v33 }
0x1c36   : > { %9449 = vmatmul.mubr.bf16.gmra.mrb[180].mxu1 %v17319_v10 }
0x1c37   : > { %9456 = vmatprep.mubr.bf16.mxu1 %v17317_v1 }
0x1c3e   : > { %9457 = vmatmul.mubr.bf16.gmra.mrb[184].mxu1 %v17329_v56 }
0x1c3f   : > { %9464 = vmatprep.mubr.bf16.mxu1 %v17327_v32  ;;  %v9544_v32 = vsel %vm20649_vm0, %v9518_v33, 0  ;;  %v20659_v33 = vld [vmem:[#allocation79_spill] sm:$0xff]  ;;  %vm20681_vm0 = vmmov %vm20645_vm1 }
0x1c40   : > { %14211 = vmatpush3.bf16.msra.mxu0 %v9544_v32  ;;  %v9728_v32 = vrot.slane %v9724_v30, %v20659_v33  ;;  %vm20682_vm2 = vmmov %vm20681_vm0 }
0x1c46   : > { %9465 = vmatmul.mubr.bf16.gmra.mrb[188].mxu1 %v17339_v63 }
0x1c47   : > { %9472 = vmatprep.mubr.bf16.mxu1 %v17337_v54 }
0x1c4e   : > { %9473 = vmatmul.mubr.bf16.gmra.mrb[192].mxu1 %v17349_v19 }
0x1c4f   : > { %9480 = vmatprep.mubr.bf16.mxu1 %v17347_v2 }
0x1c56   : > { %9481 = vmatmul.mubr.bf16.gmra.mrb[196].mxu1 %v17359_v52 }
0x1c57   : > { %9488 = vmatprep.mubr.bf16.mxu1 %v20440_v50 }
0x1c5e   : > { %9489 = vmatmul.mubr.bf16.gmra.mrb[200].mxu1 %v20441_v38 }
0x1c5f   : > { %9496 = vmatprep.mubr.bf16.mxu1 %v20442_v25 }
0x1c66   : > { %9497 = vmatmul.mubr.bf16.gmra.mrb[204].mxu1 %v20648_v5 }
0x1d01   : > { %v13035_v1 = vpop.f32.mrb[176].mxu1 }
0x1d02   : > { %v13036_v10 = vpop.f32.mrb[177].mxu1 }
0x1d03   : > { %v13037_v56 = vadd.f32 %v13036_v10, %v13035_v1  ;;  %v13038_v54 = vpop.f32.mrb[178].mxu1 }
0x1d04   : > { %v13039_v63 = vpop.f32.mrb[179].mxu1 }
0x1d05   : > { %v13040_v2 = vadd.f32 %v13039_v63, %v13038_v54 }
0x1d07   : > { %v9506_v19 = vpack.c.bf16 %v13040_v2, %v13037_v56 }
0x1d09   : > { %v13041_v52 = vpop.f32.mrb[180].mxu1  ;;  %14212 = vmatprep.mubr.msk.bf16.mxu0 %vm20651_vm4, %v9506_v19  ;;  %vm20683_vm4 = vmmov %vm20681_vm0 }
0x1d0a   : > { %v13042_v50 = vpop.f32.mrb[181].mxu1 }
0x1d0b   : > { %v13043_v38 = vadd.f32 %v13042_v50, %v13041_v52  ;;  %v13044_v25 = vpop.f32.mrb[182].mxu1 }
0x1d0c   : > { %v13045_v29 = vpop.f32.mrb[183].mxu1 }
0x1d0d   : > { %v13046_v20 = vadd.f32 %v13045_v29, %v13044_v25 }
0x1d0f   : > { %v9507_v51 = vpack.c.bf16 %v13046_v20, %v13043_v38  ;;  %v18825_v20 = vld [vmem:[%s19380_s3 + $0x90] sm:$0xff]  }
0x1d10   : > { %14228 = vmatprep.subr.bf16.mxu1 %v18825_v20 }
0x1d11   : > { %v13047_v55 = vpop.f32.mrb[184].mxu1  ;;  %14213 = vmatmul.mubr.msk.bf16.vlgmr.msra.gmra.mrb[176].mxu0 %vm20652_vm5, %v9507_v51  ;;  %v18830_v51 = vld [vmem:[%s19380_s3 + $0x98] sm:$0xff]   ;;  %14229 = vmatpush3.bf16.msra.mxu1 %v18825_v20  ;;  %vm20684_vm5 = vmmov %vm20681_vm0 }
0x1d12   : > { %v13048_v57 = vpop.f32.mrb[185].mxu1  ;;  %14230 = vmatprep.subr.bf16.mxu1 %v18830_v51 }
0x1d13   : > { %v13049_v0 = vadd.f32 %v13048_v57, %v13047_v55  ;;  %v13050_v42 = vpop.f32.mrb[186].mxu1 }
0x1d14   : > { %v13051_v39 = vpop.f32.mrb[187].mxu1 }
0x1d15   : > { %v13052_v17 = vadd.f32 %v13051_v39, %v13050_v42  ;;  %14231 = vmatpush3.bf16.msra.mxu1 %v18830_v51  ;;  %v20660_v42 = vld [vmem:[#allocation88_spill] sm:$0xff] }
0x1d17   : > { %v9508_v59 = vpack.c.bf16 %v13052_v17, %v13049_v0  ;;  %v20661_v17 = vld [vmem:[#allocation91_spill] sm:$0xff] }
0x1d19   : > { %v13053_v36 = vpop.f32.mrb[188].mxu1  ;;  %14216 = vmatprep.mubr.msk.bf16.mxu0 %vm20653_vm8, %v9508_v59  ;;  %vm20685_vm8 = vmmov %vm20681_vm0 }
0x1d1a   : > { %v13054_v49 = vpop.f32.mrb[189].mxu1 }
0x1d1b   : > { %v13055_v16 = vadd.f32 %v13054_v49, %v13053_v36  ;;  %v13056_v18 = vpop.f32.mrb[190].mxu1  ;;  %v20662_v36 = vld [vmem:[#allocation89_spill] sm:$0xff] }
0x1d1c   : > { %v13057_v22 = vpop.f32.mrb[191].mxu1 }
0x1d1d   : > { %v13058_v12 = vadd.f32 %v13057_v22, %v13056_v18  ;;  %v20663_v18 = vld [vmem:[#allocation90_spill] sm:$0xff] }
0x1d1f   : > { %v9509_v58 = vpack.c.bf16 %v13058_v12, %v13055_v16 }
0x1d21   : > { %v13059_v27 = vpop.f32.mrb[192].mxu1  ;;  %14217 = vmatmul.mubr.msk.bf16.gmra.mrb[180].mxu0 %vm20654_vm7, %v9509_v58  ;;  %vm20686_vm7 = vmmov %vm20681_vm0 }
0x1d22   : > { %v13060_v6 = vpop.f32.mrb[193].mxu1 }
0x1d23   : > { %v13061_v44 = vadd.f32 %v13060_v6, %v13059_v27  ;;  %v13062_v48 = vpop.f32.mrb[194].mxu1 }
0x1d24   : > { %v13063_v11 = vpop.f32.mrb[195].mxu1 }
0x1d25   : > { %v13064_v24 = vadd.f32 %v13063_v11, %v13062_v48 }
0x1d27   : > { %v9510_v62 = vpack.c.bf16 %v13064_v24, %v13061_v44 }
0x1d29   : > { %v13065_v37 = vpop.f32.mrb[196].mxu1  ;;  %14220 = vmatprep.mubr.msk.bf16.mxu0 %vm20655_vm3, %v9510_v62  ;;  %vm20687_vm3 = vmmov %vm20681_vm0 }
0x1d2a   : > { %v13066_v13 = vpop.f32.mrb[197].mxu1 }
0x1d2b   : > { %v13067_v3 = vadd.f32 %v13066_v13, %v13065_v37  ;;  %v13068_v26 = vpop.f32.mrb[198].mxu1 }
0x1d2c   : > { %v13069_v14 = vpop.f32.mrb[199].mxu1 }
0x1d2d   : > { %v13070_v40 = vadd.f32 %v13069_v14, %v13068_v26  ;;  %v20664_v26 = vld [vmem:[#allocation93_spill] sm:$0xff] }
0x1d2f   : > { %v9511_v34 = vpack.c.bf16 %v13070_v40, %v13067_v3 }
0x1d31   : > { %v13071_v60 = vpop.f32.mrb[200].mxu1  ;;  %14221 = vmatmul.mubr.msk.bf16.gmra.mrb[184].mxu0 %vm20656_vm6, %v9511_v34  ;;  %vm20688_vm6 = vmmov %vm20681_vm0 }
0x1d32   : > { %v13072_v43 = vpop.f32.mrb[201].mxu1 }
0x1d33   : > { %v13073_v4 = vadd.f32 %v13072_v43, %v13071_v60  ;;  %v13074_v53 = vpop.f32.mrb[202].mxu1  ;;  %v20665_v60 = vld [vmem:[#allocation95_spill] sm:$0xff] }
0x1d34   : > { %v13075_v28 = vpop.f32.mrb[203].mxu1 }
0x1d35   : > { %v13076_v61 = vadd.f32 %v13075_v28, %v13074_v53  ;;  %v20666_v28 = vld [vmem:[#allocation92_spill] sm:$0xff] }
0x1d37   : > { %v9512_v9 = vpack.c.bf16 %v13076_v61, %v13073_v4 }
0x1d39   : > { %v13077_v35 = vpop.f32.mrb[204].mxu1  ;;  %14224 = vmatprep.mubr.msk.bf16.mxu0 %vm20657_vm14, %v9512_v9  ;;  %vm20689_vm14 = vmmov %vm20681_vm0 }
0x1d3a   : > { %v13078_v45 = vpop.f32.mrb[205].mxu1 }
0x1d3b   : > { %v13079_v31 = vadd.f32 %v13078_v45, %v13077_v35  ;;  %v13080_v41 = vpop.f32.mrb[206].mxu1 }
0x1d3c   : > { %v13081_v7 = vpop.f32.mrb[207].mxu1 }
0x1d3d   : > { %v13082_v21 = vadd.f32 %v13081_v7, %v13080_v41  ;;  %v20667_v41 = vld [vmem:[#allocation94_spill] sm:$0xff] }
0x1d3f   : > { %v9513_v23 = vpack.c.bf16 %v13082_v21, %v13079_v31 }
0x1d41   : > { %14225 = vmatmul.mubr.msk.bf16.gmra.mrb[188].mxu0 %vm20658_vm11, %v9513_v23  ;;  %vm20690_vm11 = vmmov %vm20681_vm0 }
0x1de4   : > { %v14214_v47 = vpop.f32.mrb[176].mxu0 }
0x1de5   : > { %9663 = vrot.lane.b32.xlu1 %v14214_v47, %s15092_s5  ;;  %v9580_v8 = vpop.f32.mrb[177].mxu0 }
0x1de6   : > { %v14215_v46 = vpop.f32.mrb[178].mxu0 }
0x1de7   : > { %v9583_v5 = vpop.f32.mrb[179].mxu0 }
0x1de8   : > { %9661 = vrot.lane.b32.xlu0 %v9583_v5, %s15092_s5 }
0x1de9   : > { %9659 = vrot.lane.b32.xlu1 %v9580_v8, %s15092_s5 }
0x1dec   : > { %9665 = vrot.lane.b32.xlu0 %v14215_v46, %s15092_s5  ;;  %v20668_v46 = vld [vmem:[#allocation97_spill] sm:$0xff] }
0x1ded   : > { %9730 = vrot.lane.b32.xlu1 %v9728_v32, %s15093_s12 }
0x1df4   : > { %v14218_v1 = vpop.f32.mrb[180].mxu0 }
0x1df5   : > { %v9596_v10 = vpop.f32.mrb[181].mxu0 }
0x1df6   : > { %9667 = vrot.lane.b32.xlu0 %v9596_v10, %s15092_s5  ;;  %v14219_v56 = vpop.f32.mrb[182].mxu0  ;;  %v20669_v10 = vld [vmem:[#allocation99_spill] sm:$0xff] }
0x1df7   : > { %v9599_v54 = vpop.f32.mrb[183].mxu0 }
0x1df8   : > { %9669 = vrot.lane.b32.xlu1 %v9599_v54, %s15092_s5 }
0x1dfa   : > { %9671 = vrot.lane.b32.xlu0 %v14218_v1, %s15092_s5 }
0x1dfc   : > { %9673 = vrot.lane.b32.xlu1 %v14219_v56, %s15092_s5 }
0x1e04   : > { %v14222_v63 = vpop.f32.mrb[184].mxu0 }
0x1e05   : > { %v9612_v2 = vpop.f32.mrb[185].mxu0 }
0x1e06   : > { %9675 = vrot.lane.b32.xlu0 %v9612_v2, %s15092_s5  ;;  %v14223_v19 = vpop.f32.mrb[186].mxu0  ;;  %v20670_v2 = vld [vmem:[#allocation96_spill] sm:$0xff] }
0x1e07   : > { %v9615_v52 = vpop.f32.mrb[187].mxu0 }
0x1e08   : > { %9677 = vrot.lane.b32.xlu1 %v9615_v52, %s15092_s5 }
0x1e0a   : > { %9679 = vrot.lane.b32.xlu0 %v14222_v63, %s15092_s5 }
0x1e0c   : > { %9681 = vrot.lane.b32.xlu1 %v14223_v19, %s15092_s5 }
0x1e14   : > { %v14226_v50 = vpop.f32.mrb[188].mxu0 }
0x1e15   : > { %v9628_v38 = vpop.f32.mrb[189].mxu0 }
0x1e16   : > { %9683 = vrot.lane.b32.xlu0 %v9628_v38, %s15092_s5  ;;  %v14227_v25 = vpop.f32.mrb[190].mxu0 }
0x1e17   : > { %v9631_v29 = vpop.f32.mrb[191].mxu0 }
0x1e18   : > { %9685 = vrot.lane.b32.xlu1 %v9631_v29, %s15092_s5  ;;  %v20671_v29 = vld [vmem:[#allocation98_spill] sm:$0xff] }
0x1e1a   : > { %9687 = vrot.lane.b32.xlu0 %v14226_v50, %s15092_s5 }
0x1e1c   : > { %9689 = vrot.lane.b32.xlu1 %v14227_v25, %s15092_s5 }
0x1e57   : > { %v9664_v55 = vpop.permute.xlu1 %9663 }
0x1e58   : > { %v9709_v39 = vadd.f32 %v20660_v42, %v9664_v55 }
0x1e5a   : > { %v9662_v57 = vpop.permute.xlu0 %9661 }
0x1e5b   : > { %v9660_v0 = vpop.permute.xlu1 %9659  ;;  %v9708_v59 = vadd.f32 %v9662_v57, %v20661_v17 }
0x1e5c   : > { %v9707_v49 = vadd.f32 %v9660_v0, %v20662_v36  ;;  %v20672_v36 = vld [vmem:[#allocation101_spill] sm:$0xff] }
0x1e5e   : > { %v9666_v16 = vpop.permute.xlu0 %9665 }
0x1e5f   : > { %v9710_v22 = vadd.f32 %v20663_v18, %v9666_v16  ;;  %v18843_v12 = vpop.permute.xlu1 %9730 }
0x1e60   : > { %v9733_v58 = vadd.f32 %v18843_v12, %v9707_v49  ;;  %v9734_v27 = vadd.f32 %v18843_v12, %v9708_v59  ;;  %v9735_v6 = vadd.f32 %v18843_v12, %v9709_v39 }
0x1e61   : > { %v9736_v44 = vadd.f32 %v18843_v12, %v9710_v22  ;;  %v20673_v22 = vld [vmem:[#allocation15_spill] sm:$0xff] }
0x1e62   : > { %v9749_v48 = vmax.f32 %v9733_v58, 0.0  ;;  %v9750_v11 = vmax.f32 %v9734_v27, 0.0  ;;  %v9751_v24 = vmax.f32 %v9735_v6, 0.0 }
0x1e63   : > { %v9752_v62 = vmax.f32 %v9736_v44, 0.0  ;;  %v20674_v44 = vld [vmem:[#allocation100_spill] sm:$0xff] }
0x1e64   : > { %v9769_v37 = vpack.c.bf16 %v9750_v11, %v9749_v48 }
0x1e65   : > { %v9770_v13 = vpack.c.bf16 %v9752_v62, %v9751_v24 }
0x1e66   : > { %9791 = vrot.lane.b32.xlu0 %v9769_v37, %s15092_s5 }
0x1e67   : > { %9793 = vrot.lane.b32.xlu1 %v9770_v13, %s15092_s5  ;;  %v20675_v13 = vld [vmem:[#allocation118_spill] sm:$0xff] }
0x1e68   : > { %v9668_v3 = vpop.permute.xlu0 %9667 }
0x1e69   : > { %v9711_v14 = vadd.f32 %v9668_v3, %v20664_v26  ;;  %v9777_v26 = vld [vmem:[%s19380_s3 + $0x90] sm:$0x1] }
0x1e6a   : > { %v9670_v40 = vpop.permute.xlu1 %9669 }
0x1e6b   : > { %v9737_v34 = vadd.f32 %v18843_v12, %v9711_v14  ;;  %v9712_v43 = vadd.f32 %v9670_v40, %v20665_v60 }
0x1e6c   : > { %v9672_v4 = vpop.permute.xlu0 %9671 }
0x1e6d   : > { %v9738_v53 = vadd.f32 %v18843_v12, %v9712_v43  ;;  %v9713_v61 = vadd.f32 %v20666_v28, %v9672_v4  ;;  %v9753_v35 = vmax.f32 %v9737_v34, 0.0  ;;  %v9778_v43 = vunpack.c.l.bf16 %v9777_v26 }
0x1e6e   : > { %v9674_v9 = vpop.permute.xlu1 %9673 }
0x1e6f   : > { %v9754_v45 = vmax.f32 %v9738_v53, 0.0  ;;  %v9739_v31 = vadd.f32 %v18843_v12, %v9713_v61  ;;  %v9714_v7 = vadd.f32 %v20667_v41, %v9674_v9  ;;  %v9782_v53 = vrot.slane %v9778_v43, %v20659_v33 }
0x1e71   : > { %v9771_v21 = vpack.c.bf16 %v9754_v45, %v9753_v35  ;;  %v9740_v23 = vadd.f32 %v18843_v12, %v9714_v7  ;;  %v9755_v15 = vmax.f32 %v9739_v31, 0.0  ;;  %v14883_v7 = vld [vmem:[%s19380_s3 + $0x98] ss:$0 sps:$4 sm:$0x77]  }
0x1e73   : > { %v9756_v47 = vmax.f32 %v9740_v23, 0.0  ;;  %9795 = vrot.lane.b32.xlu0 %v9771_v21, %s15092_s5 }
0x1e75   : > { %v9772_v8 = vpack.c.bf16 %v9756_v47, %v9755_v15 }
0x1e77   : > { %9797 = vrot.lane.b32.xlu1 %v9772_v8, %s15092_s5 }
0x1e78   : > { %v9676_v30 = vpop.permute.xlu0 %9675 }
0x1e79   : > { %v9715_v5 = vadd.f32 %v9676_v30, %v20668_v46 }
0x1e7a   : > { %v9678_v32 = vpop.permute.xlu1 %9677 }
0x1e7b   : > { %v9741_v1 = vadd.f32 %v18843_v12, %v9715_v5  ;;  %v9716_v56 = vadd.f32 %v9678_v32, %v20669_v10 }
0x1e7c   : > { %v9680_v54 = vpop.permute.xlu0 %9679 }
0x1e7d   : > { %v9742_v63 = vadd.f32 %v18843_v12, %v9716_v56  ;;  %v9717_v19 = vadd.f32 %v20670_v2, %v9680_v54  ;;  %v9757_v50 = vmax.f32 %v9741_v1, 0.0 }
0x1e7e   : > { %v9682_v52 = vpop.permute.xlu1 %9681 }
0x1e7f   : > { %v9758_v38 = vmax.f32 %v9742_v63, 0.0  ;;  %v9743_v25 = vadd.f32 %v18843_v12, %v9717_v19  ;;  %v9718_v55 = vadd.f32 %v20671_v29, %v9682_v52 }
0x1e81   : > { %v9773_v57 = vpack.c.bf16 %v9758_v38, %v9757_v50  ;;  %v9744_v0 = vadd.f32 %v18843_v12, %v9718_v55  ;;  %v9759_v42 = vmax.f32 %v9743_v25, 0.0 }
0x1e83   : > { %v9760_v39 = vmax.f32 %v9744_v0, 0.0  ;;  %9799 = vrot.lane.b32.xlu0 %v9773_v57, %s15092_s5 }
0x1e85   : > { %v9774_v17 = vpack.c.bf16 %v9760_v39, %v9759_v42 }
0x1e87   : > { %9801 = vrot.lane.b32.xlu1 %v9774_v17, %s15092_s5 }
0x1e88   : > { %v9684_v59 = vpop.permute.xlu0 %9683 }
0x1e89   : > { %v9719_v49 = vadd.f32 %v9684_v59, %v20672_v36 }
0x1e8a   : > { %v9686_v16 = vpop.permute.xlu1 %9685 }
0x1e8b   : > { %v9745_v18 = vadd.f32 %v18843_v12, %v9719_v49  ;;  %v9720_v58 = vadd.f32 %v9686_v16, %v20673_v22 }
0x1e8c   : > { %v9688_v27 = vpop.permute.xlu0 %9687 }
0x1e8d   : > { %v9746_v6 = vadd.f32 %v18843_v12, %v9720_v58  ;;  %v9721_v48 = vadd.f32 %v20674_v44, %v9688_v27  ;;  %v9761_v24 = vmax.f32 %v9745_v18, 0.0 }
0x1e8e   : > { %v9690_v11 = vpop.permute.xlu1 %9689 }
0x1e8f   : > { %v9762_v62 = vmax.f32 %v9746_v6, 0.0  ;;  %v9747_v37 = vadd.f32 %v18843_v12, %v9721_v48  ;;  %v9722_v3 = vadd.f32 %v20675_v13, %v9690_v11 }
0x1e91   : > { %v9775_v14 = vpack.c.bf16 %v9762_v62, %v9761_v24  ;;  %v9748_v40 = vadd.f32 %v18843_v12, %v9722_v3  ;;  %v9763_v34 = vmax.f32 %v9747_v37, 0.0 }
0x1e93   : > { %v9764_v60 = vmax.f32 %v9748_v40, 0.0  ;;  %9803 = vrot.lane.b32.xlu0 %v9775_v14, %s15092_s5 }
0x1e95   : > { %v9776_v4 = vpack.c.bf16 %v9764_v60, %v9763_v34 }
0x1e97   : > { %9805 = vrot.lane.b32.xlu1 %v9776_v4, %s15092_s5  ;;  %9968 = vrot.lane.b32.xlu0 %v18825_v20, %s15092_s5 }
0x1e9b   : > { %9820 = vrot.lane.b32.xlu1 %v9782_v53, %s15093_s12  ;;  %9970 = vrot.lane.b32.xlu0 %v18830_v51, %s15092_s5 }
0x1e9f   : > { %9974 = vrot.lane.b32.xlu1 %v9782_v53, %s15094_s19  ;;  %10180 = vrot.lane.b32.xlu0 %v14883_v7, %s15093_s12 }
0x1ed8   : > { %v9792_v12 = vpop.permute.xlu0 %9791 }
0x1ed9   : > { %14232 = vmatprep.mubr.msk.bf16.mxu1 %vm20676_vm10, %v9792_v12  ;;  %v9794_v28 = vpop.permute.xlu1 %9793  ;;  %vm20696_vm10 = vcmask 39936  }
0x1eda   : > { %14233 = vmatmul.mubr.msk.bf16.vlgmr.msra.gmra.mrb[208].mxu1 %vm20677_vm9, %v9794_v28  ;;  %vm20697_vm9 = vmmov %vm20696_vm10 }
0x1ee5   : > { %v9796_v61 = vpop.permute.xlu0 %9795 }
0x1ee6   : > { %14236 = vmatprep.mubr.msk.bf16.mxu1 %vm20678_vm12, %v9796_v61  ;;  %vm20702_vm12 = vmmov %vm20697_vm9 }
0x1ee9   : > { %v9798_v9 = vpop.permute.xlu1 %9797 }
0x1eea   : > { %14237 = vmatmul.mubr.msk.bf16.gmra.mrb[212].mxu1 %vm20645_vm1, %v9798_v9  ;;  %vm20703_vm1 = vmmov %vm20697_vm9 }
0x1ef5   : > { %v9800_v20 = vpop.permute.xlu0 %9799 }
0x1ef6   : > { %14240 = vmatprep.mubr.msk.bf16.mxu1 %vm20679_vm13, %v9800_v20  ;;  %vm20708_vm13 = vmmov %vm20703_vm1 }
0x1ef9   : > { %v9802_v35 = vpop.permute.xlu1 %9801 }
0x1efa   : > { %14241 = vmatmul.mubr.msk.bf16.gmra.mrb[216].mxu1 %vm20680_vm15, %v9802_v35  ;;  %vm20709_vm15 = vmmov %vm20703_vm1 }
0x1f05   : > { %v9804_v51 = vpop.permute.xlu0 %9803 }
0x1f06   : > { %14244 = vmatprep.mubr.msk.bf16.mxu1 %vm20681_vm0, %v9804_v51  ;;  %v20691_v51 = vld [vmem:[#allocation2_spill] sm:$0xff]  ;;  %vm20714_vm0 = vmmov %vm20703_vm1 }
0x1f09   : > { %v9806_v45 = vpop.permute.xlu1 %9805  ;;  %v9969_v31 = vpop.permute.xlu0 %9968 }
0x1f0a   : > { %14245 = vmatmul.mubr.msk.bf16.gmra.mrb[220].mxu1 %vm20682_vm2, %v9806_v45  ;;  %14248 = vmatprep.subr.bf16.mxu0 %v9969_v31  ;;  %vm20715_vm2 = vmmov %vm20714_vm0 }
0x1f0b   : > { %14249 = vmatpush3.bf16.msra.mxu0 %v9969_v31  ;;  %v10171_v31 = vld [vmem:[%s19380_s3 + $0x98] sm:$0x1] }
0x1f0c   : > { %v10172_v7 = vunpack.c.l.bf16 %v10171_v31 }
0x1f0d   : > { %v9971_v41 = vpop.permute.xlu0 %9970  ;;  %v9821_v21 = vpop.permute.xlu1 %9820 }
0x1f0e   : > { %14250 = vmatprep.subr.bf16.mxu0 %v9971_v41 }
0x1f0f   : > { %14251 = vmatpush3.bf16.msra.mxu0 %v9971_v41  ;;  %v14884_v41 = vld [vmem:[%s19380_s3 + $0xa8] ss:$0 sps:$4 sm:$0x77]  }
0x1f10   : > { %10773 = vrot.lane.b32.xlu0 %v14884_v41, %s15093_s12 }
0x1f11   : > { %v10181_v35 = vpop.permute.xlu0 %10180 }
0x1f12   : > { %v10211_v45 = vand.u32 %v10181_v35, %v20691_v51 }
0x1f14   : > { %14268 = vmatprep.subr.bf16.mxu1 %v10211_v45 }
0x1f15   : > { %14269 = vmatpush3.bf16.msra.mxu1 %v10211_v45 }
0x1fad   : > { %v14234_v23 = vpop.f32.mrb[208].mxu1 }
0x1fae   : > { %v9881_v15 = vpop.f32.mrb[209].mxu1  ;;  %v9890_v47 = vadd.f32 %v14234_v23, %v9821_v21  ;;  %v18921_v23 = vpop.permute.xlu1 %9974 }
0x1faf   : > { %v9882_v8 = vadd.f32 %v9881_v15, %v9821_v21  ;;  %v14235_v30 = vpop.f32.mrb[210].mxu1 }
0x1fb0   : > { %v9893_v46 = vadd.f32 %v14235_v30, %v9821_v21  ;;  %v9884_v5 = vpop.f32.mrb[211].mxu1  ;;  %v9946_v1 = vmax.f32 %v9890_v47, 0.0 }
0x1fb1   : > { %v9885_v32 = vadd.f32 %v9884_v5, %v9821_v21  ;;  %v9944_v56 = vmax.f32 %v9882_v8, 0.0 }
0x1fb2   : > { %v9947_v10 = vmax.f32 %v9893_v46, 0.0 }
0x1fb3   : > { %v9945_v54 = vmax.f32 %v9885_v32, 0.0 }
0x1fb4   : > { %v9961_v63 = vpack.c.bf16 %v9947_v10, %v9946_v1 }
0x1fb5   : > { %v9960_v2 = vpack.c.bf16 %v9945_v54, %v9944_v56  ;;  %v20692_v54 = vld [vmem:[#allocation104_spill] sm:$0xff] }
0x1fb7   : > { %14252 = vmatprep.mubr.msk.bf16.mxu0 %vm20683_vm4, %v9960_v2  ;;  %vm20716_vm4 = vmmov %vm20687_vm3 }
0x1fb8   : > { %14253 = vmatmul.mubr.msk.bf16.vlgmr.msra.gmra.mrb[192].mxu0 %vm20684_vm5, %v9961_v63  ;;  %v10100_v63 = vmul.f32 0.5, %v20692_v54  ;;  %vm20717_vm5 = vmmov %vm20687_vm3 }
0x1fbd   : > { %v14238_v19 = vpop.f32.mrb[212].mxu1 }
0x1fbe   : > { %v9906_v52 = vadd.f32 %v14238_v19, %v9821_v21  ;;  %v9897_v50 = vpop.f32.mrb[213].mxu1 }
0x1fbf   : > { %v9898_v38 = vadd.f32 %v9897_v50, %v9821_v21  ;;  %v14239_v25 = vpop.f32.mrb[214].mxu1 }
0x1fc0   : > { %v9909_v29 = vadd.f32 %v14239_v25, %v9821_v21  ;;  %v9900_v55 = vpop.f32.mrb[215].mxu1  ;;  %v9950_v0 = vmax.f32 %v9906_v52, 0.0  ;;  %v20693_v52 = vld [vmem:[#allocation105_spill] sm:$0xff] }
0x1fc1   : > { %v9901_v57 = vadd.f32 %v9900_v55, %v9821_v21  ;;  %v9948_v39 = vmax.f32 %v9898_v38, 0.0  ;;  %v10098_v50 = vmul.f32 0.5, %v20693_v52 }
0x1fc2   : > { %v9951_v42 = vmax.f32 %v9909_v29, 0.0  ;;  %v20694_v29 = vld [vmem:[#allocation106_spill] sm:$0xff] }
0x1fc3   : > { %v9949_v17 = vmax.f32 %v9901_v57, 0.0  ;;  %v10101_v55 = vmul.f32 0.5, %v20694_v29  ;;  %v20706_v29 = vld [vmem:[#allocation115_spill] sm:$0xff] }
0x1fc4   : > { %v9963_v59 = vpack.c.bf16 %v9951_v42, %v9950_v0 }
0x1fc5   : > { %v9962_v36 = vpack.c.bf16 %v9949_v17, %v9948_v39  ;;  %v20695_v39 = vld [vmem:[#allocation107_spill] sm:$0xff] }
0x1fc6   : > { %v10099_v17 = vmul.f32 0.5, %v20695_v39 }
0x1fc7   : > { %14256 = vmatprep.mubr.msk.bf16.mxu0 %vm20685_vm8, %v9962_v36  ;;  %vm20718_vm8 = vmmov %vm20687_vm3 }
0x1fc8   : > { %14257 = vmatmul.mubr.msk.bf16.gmra.mrb[196].mxu0 %vm20686_vm7, %v9963_v59  ;;  %vm20719_vm7 = vmmov %vm20687_vm3 }
0x1fcd   : > { %v14242_v49 = vpop.f32.mrb[216].mxu1 }
0x1fce   : > { %v9922_v16 = vadd.f32 %v14242_v49, %v9821_v21  ;;  %v9913_v18 = vpop.f32.mrb[217].mxu1 }
0x1fcf   : > { %v9914_v22 = vadd.f32 %v9913_v18, %v9821_v21  ;;  %v14243_v58 = vpop.f32.mrb[218].mxu1 }
0x1fd0   : > { %v9925_v27 = vadd.f32 %v14243_v58, %v9821_v21  ;;  %v9916_v6 = vpop.f32.mrb[219].mxu1  ;;  %v9954_v48 = vmax.f32 %v9922_v16, 0.0 }
0x1fd1   : > { %v9917_v44 = vadd.f32 %v9916_v6, %v9821_v21  ;;  %v9952_v24 = vmax.f32 %v9914_v22, 0.0 }
0x1fd2   : > { %v9955_v11 = vmax.f32 %v9925_v27, 0.0 }
0x1fd3   : > { %v9953_v62 = vmax.f32 %v9917_v44, 0.0 }
0x1fd4   : > { %v9965_v37 = vpack.c.bf16 %v9955_v11, %v9954_v48 }
0x1fd5   : > { %v9964_v13 = vpack.c.bf16 %v9953_v62, %v9952_v24 }
0x1fd7   : > { %14260 = vmatprep.mubr.msk.bf16.mxu0 %vm20687_vm3, %v9964_v13  ;;  %v20698_v13 = vld [vmem:[#allocation108_spill] sm:$0xff] }
0x1fd8   : > { %14261 = vmatmul.mubr.msk.bf16.gmra.mrb[200].mxu0 %vm20688_vm6, %v9965_v37  ;;  %vm20720_vm6 = vmmov %vm20687_vm3 }
0x1fdd   : > { %v14246_v3 = vpop.f32.mrb[220].mxu1 }
0x1fde   : > { %v9938_v26 = vadd.f32 %v14246_v3, %v9821_v21  ;;  %v9929_v14 = vpop.f32.mrb[221].mxu1  ;;  %v10104_v3 = vmul.f32 0.5, %v20698_v13 }
0x1fdf   : > { %v9930_v40 = vadd.f32 %v9929_v14, %v9821_v21  ;;  %v14247_v34 = vpop.f32.mrb[222].mxu1 }
0x1fe0   : > { %v9941_v60 = vadd.f32 %v14247_v34, %v9821_v21  ;;  %v9932_v43 = vpop.f32.mrb[223].mxu1  ;;  %v9958_v53 = vmax.f32 %v9938_v26, 0.0 }
0x1fe1   : > { %v9933_v4 = vadd.f32 %v9932_v43, %v9821_v21  ;;  %v9956_v28 = vmax.f32 %v9930_v40, 0.0  ;;  %v10176_v21 = vrot.slane %v10172_v7, %v20659_v33  ;;  %v20699_v40 = vld [vmem:[#allocation109_spill] sm:$0xff] }
0x1fe2   : > { %v9959_v12 = vmax.f32 %v9941_v60, 0.0  ;;  %v10102_v34 = vmul.f32 0.5, %v20699_v40 }
0x1fe3   : > { %v9957_v61 = vmax.f32 %v9933_v4, 0.0  ;;  %10183 = vrot.lane.b32.xlu1 %v10176_v21, %s15094_s19 }
0x1fe4   : > { %v9967_v9 = vpack.c.bf16 %v9959_v12, %v9958_v53  ;;  %v20700_v53 = vld [vmem:[#allocation110_spill] sm:$0xff] }
0x1fe5   : > { %v9966_v20 = vpack.c.bf16 %v9957_v61, %v9956_v28  ;;  %v10105_v12 = vmul.f32 0.5, %v20700_v53 }
0x1fe7   : > { %14264 = vmatprep.mubr.msk.bf16.mxu0 %vm20689_vm14, %v9966_v20  ;;  %vm20721_vm14 = vmmov %vm20687_vm3 }
0x1fe8   : > { %14265 = vmatmul.mubr.msk.bf16.gmra.mrb[204].mxu0 %vm20690_vm11, %v9967_v9  ;;  %v20701_v9 = vld [vmem:[#allocation111_spill] sm:$0xff]  ;;  %vm20722_vm11 = vmmov %vm20687_vm3 }
0x1fe9   : > { %v10103_v20 = vmul.f32 0.5, %v20701_v9 }
0x208b   : > { %v14254_v15 = vpop.f32.mrb[192].mxu0 }
0x208c   : > { %v10035_v47 = vpop.f32.mrb[193].mxu0  ;;  %v10044_v8 = vadd.f32 %v14254_v15, %v18921_v23 }
0x208d   : > { %v10036_v30 = vadd.f32 %v10035_v47, %v18921_v23  ;;  %v14255_v46 = vpop.f32.mrb[194].mxu0 }
0x208e   : > { %v10047_v5 = vadd.f32 %v14255_v46, %v18921_v23  ;;  %v10116_v32 = vmax.f32 %v10044_v8, 0.0  ;;  %v10038_v1 = vpop.f32.mrb[195].mxu0 }
0x208f   : > { %v10114_v10 = vmax.f32 %v10036_v30, 0.0  ;;  %v10039_v56 = vadd.f32 %v10038_v1, %v18921_v23 }
0x2090   : > { %v10117_v2 = vmax.f32 %v10047_v5, 0.0  ;;  %v10132_v19 = vmul.f32 0.5, %v10116_v32 }
0x2091   : > { %v10130_v38 = vmul.f32 0.5, %v10114_v10  ;;  %v10115_v25 = vmax.f32 %v10039_v56, 0.0  ;;  %v20704_v56 = vld [vmem:[#allocation112_spill] sm:$0xff] }
0x2092   : > { %v10133_v57 = vmul.f32 0.5, %v10117_v2  ;;  %v10148_v0 = vadd.f32 %v10132_v19, %v10100_v63  ;;  %v10108_v54 = vmul.f32 0.5, %v20704_v56  ;;  %v20705_v19 = vld [vmem:[#allocation113_spill] sm:$0xff] }
0x2093   : > { %v10146_v42 = vadd.f32 %v10130_v38, %v10098_v50  ;;  %v10131_v59 = vmul.f32 0.5, %v10115_v25  ;;  %v10106_v52 = vmul.f32 0.5, %v20705_v19 }
0x2094   : > { %v10149_v36 = vadd.f32 %v10133_v57, %v10101_v55  ;;  %v10109_v55 = vmul.f32 0.5, %v20706_v29 }
0x2095   : > { %v10147_v49 = vadd.f32 %v10131_v59, %v10099_v17 }
0x2096   : > { %v18931_v16 = vpack.c.bf16 %v10149_v36, %v10148_v0 }
0x2097   : > { %v18933_v18 = vpack.c.bf16 %v10147_v49, %v10146_v42  ;;  %v20707_v42 = vld [vmem:[#allocation114_spill] sm:$0xff] }
0x2098   : > { %v10107_v39 = vmul.f32 0.5, %v20707_v42 }
0x2099   : > { %14270 = vmatprep.mubr.msk.bf16.mxu1 %vm20696_vm10, %v18933_v18  ;;  %vm20723_vm10 = vmmov %vm20714_vm0 }
0x209a   : > { %14271 = vmatmul.mubr.msk.bf16.vlgmr.msra.gmra.mrb[224].mxu1 %vm20697_vm9, %v18931_v16  ;;  %vm20724_vm9 = vmmov %vm20714_vm0 }
0x209b   : > { %v14258_v22 = vpop.f32.mrb[196].mxu0 }
0x209c   : > { %v10060_v58 = vadd.f32 %v14258_v22, %v18921_v23  ;;  %v10051_v27 = vpop.f32.mrb[197].mxu0 }
0x209d   : > { %v10052_v6 = vadd.f32 %v10051_v27, %v18921_v23  ;;  %v14259_v44 = vpop.f32.mrb[198].mxu0 }
0x209e   : > { %v10120_v48 = vmax.f32 %v10060_v58, 0.0  ;;  %v10063_v11 = vadd.f32 %v14259_v44, %v18921_v23  ;;  %v10054_v24 = vpop.f32.mrb[199].mxu0 }
0x209f   : > { %v10118_v62 = vmax.f32 %v10052_v6, 0.0  ;;  %v10055_v37 = vadd.f32 %v10054_v24, %v18921_v23 }
0x20a0   : > { %v10136_v26 = vmul.f32 0.5, %v10120_v48  ;;  %v10121_v14 = vmax.f32 %v10063_v11, 0.0 }
0x20a1   : > { %v10134_v60 = vmul.f32 0.5, %v10118_v62  ;;  %v10119_v43 = vmax.f32 %v10055_v37, 0.0 }
0x20a2   : > { %v10152_v4 = vadd.f32 %v10136_v26, %v10104_v3  ;;  %v10137_v28 = vmul.f32 0.5, %v10121_v14  ;;  %v20710_v3 = vld [vmem:[#allocation117_spill] sm:$0xff] }
0x20a3   : > { %v10150_v61 = vadd.f32 %v10134_v60, %v10102_v34  ;;  %v10135_v35 = vmul.f32 0.5, %v10119_v43  ;;  %v10112_v26 = vmul.f32 0.5, %v20710_v3  ;;  %v20711_v34 = vld [vmem:[#allocation116_spill] sm:$0xff] }
0x20a4   : > { %v10153_v45 = vadd.f32 %v10137_v28, %v10105_v12  ;;  %v10110_v60 = vmul.f32 0.5, %v20711_v34  ;;  %v20712_v12 = vld [vmem:[#allocation86_spill] sm:$0xff] }
0x20a5   : > { %v10151_v31 = vadd.f32 %v10135_v35, %v10103_v20  ;;  %v10113_v28 = vmul.f32 0.5, %v20712_v12  ;;  %v20713_v20 = vld [vmem:[#allocation87_spill] sm:$0xff] }
0x20a6   : > { %v18947_v41 = vpack.c.bf16 %v10153_v45, %v10152_v4  ;;  %v10111_v35 = vmul.f32 0.5, %v20713_v20 }
0x20a7   : > { %v18949_v7 = vpack.c.bf16 %v10151_v31, %v10150_v61 }
0x20a9   : > { %14274 = vmatprep.mubr.msk.bf16.mxu1 %vm20702_vm12, %v18949_v7  ;;  %vm20725_vm12 = vmmov %vm20714_vm0 }
0x20aa   : > { %14275 = vmatmul.mubr.msk.bf16.gmra.mrb[228].mxu1 %vm20703_vm1, %v18947_v41  ;;  %vm20726_vm1 = vmmov %vm20714_vm0 }
0x20ab   : > { %v14262_v21 = vpop.f32.mrb[200].mxu0 }
0x20ac   : > { %v10076_v15 = vadd.f32 %v14262_v21, %v18921_v23  ;;  %v10067_v47 = vpop.f32.mrb[201].mxu0 }
0x20ad   : > { %v10068_v8 = vadd.f32 %v10067_v47, %v18921_v23  ;;  %v14263_v30 = vpop.f32.mrb[202].mxu0  ;;  %v14885_v47 = vld [vmem:[%s19380_s3 + $0xa0] sm:$0xff]  }
0x20ae   : > { %v10124_v46 = vmax.f32 %v10076_v15, 0.0  ;;  %v10079_v5 = vadd.f32 %v14263_v30, %v18921_v23  ;;  %v10070_v32 = vpop.f32.mrb[203].mxu0  ;;  %14286 = vmatprep.subr.bf16.mxu0 %v14885_v47  ;;  %10505 = vrot.lane.b32.xlu1 %v14885_v47, %s15092_s5  ;;  %v10774_v30 = vpop.permute.xlu0 %10773 }
0x20af   : > { %v10122_v1 = vmax.f32 %v10068_v8, 0.0  ;;  %v10071_v10 = vadd.f32 %v10070_v32, %v18921_v23  ;;  %v14886_v8 = vld [vmem:[%s19380_s3 + $0xa8] sm:$0xff]   ;;  %14287 = vmatpush3.bf16.msra.mxu0 %v14885_v47 }
0x20b0   : > { %v10140_v63 = vmul.f32 0.5, %v10124_v46  ;;  %v10125_v2 = vmax.f32 %v10079_v5, 0.0  ;;  %14288 = vmatprep.subr.bf16.mxu0 %v14886_v8  ;;  %v10780_v46 = vand.u32 %v10774_v30, %v20691_v51  ;;  %v10338_v5 = vld [vmem:[%s19380_s3 + $0xa0] sm:$0x1]  ;;  %v10764_v32 = vld [vmem:[%s19380_s3 + $0xa8] sm:$0x1]  ;;  %v10184_v51 = vpop.permute.xlu1 %10183 }
0x20b1   : > { %v10138_v50 = vmul.f32 0.5, %v10122_v1  ;;  %v10123_v38 = vmax.f32 %v10071_v10, 0.0  ;;  %v10339_v1 = vunpack.c.l.bf16 %v10338_v5  ;;  %v10765_v10 = vunpack.c.l.bf16 %v10764_v32 }
0x20b2   : > { %v10156_v25 = vadd.f32 %v10140_v63, %v10108_v54  ;;  %v10141_v57 = vmul.f32 0.5, %v10125_v2  ;;  %10507 = vrot.lane.b32.xlu1 %v14886_v8, %s15092_s5 }
0x20b3   : > { %v10154_v0 = vadd.f32 %v10138_v50, %v10106_v52  ;;  %v10139_v17 = vmul.f32 0.5, %v10123_v38  ;;  %14289 = vmatpush3.bf16.msra.mxu0 %v14886_v8  ;;  %v19003_v56 = vrot.slane %v10339_v1, %v20659_v33  ;;  %v10769_v54 = vrot.slane %v10765_v10, %v20659_v33 }
0x20b4   : > { %v10157_v59 = vadd.f32 %v10141_v57, %v10109_v55  ;;  %14326 = vmatprep.subr.bf16.mxu0 %v10780_v46 }
0x20b5   : > { %v10155_v36 = vadd.f32 %v10139_v17, %v10107_v39  ;;  %10357 = vrot.lane.b32.xlu0 %v19003_v56, %s15093_s12 }
0x20b6   : > { %v18963_v49 = vpack.c.bf16 %v10157_v59, %v10156_v25 }
0x20b7   : > { %v18965_v22 = vpack.c.bf16 %v10155_v36, %v10154_v0 }
0x20b9   : > { %14278 = vmatprep.mubr.msk.bf16.mxu1 %vm20708_vm13, %v18965_v22  ;;  %10776 = vrot.lane.b32.xlu0 %v10769_v54, %s15094_s19  ;;  %vm20727_vm13 = vmmov %vm20714_vm0 }
0x20ba   : > { %14279 = vmatmul.mubr.msk.bf16.gmra.mrb[232].mxu1 %vm20709_vm15, %v18963_v49  ;;  %vm20728_vm15 = vmmov %vm20714_vm0 }
0x20bb   : > { %v14266_v58 = vpop.f32.mrb[204].mxu0 }
0x20bc   : > { %v10092_v27 = vadd.f32 %v14266_v58, %v18921_v23  ;;  %v10083_v6 = vpop.f32.mrb[205].mxu0 }
0x20bd   : > { %v10084_v44 = vadd.f32 %v10083_v6, %v18921_v23  ;;  %v14267_v48 = vpop.f32.mrb[206].mxu0 }
0x20be   : > { %v10128_v11 = vmax.f32 %v10092_v27, 0.0  ;;  %v10095_v24 = vadd.f32 %v14267_v48, %v18921_v23  ;;  %v10086_v62 = vpop.f32.mrb[207].mxu0 }
0x20bf   : > { %v10126_v37 = vmax.f32 %v10084_v44, 0.0  ;;  %v10087_v13 = vadd.f32 %v10086_v62, %v18921_v23 }
0x20c0   : > { %v10144_v14 = vmul.f32 0.5, %v10128_v11  ;;  %v10129_v40 = vmax.f32 %v10095_v24, 0.0 }
0x20c1   : > { %v10142_v43 = vmul.f32 0.5, %v10126_v37  ;;  %v10127_v4 = vmax.f32 %v10087_v13, 0.0 }
0x20c2   : > { %v10160_v53 = vadd.f32 %v10144_v14, %v10112_v26  ;;  %v10145_v61 = vmul.f32 0.5, %v10129_v40 }
0x20c3   : > { %v10158_v9 = vadd.f32 %v10142_v43, %v10110_v60  ;;  %v10143_v45 = vmul.f32 0.5, %v10127_v4 }
0x20c4   : > { %v10161_v31 = vadd.f32 %v10145_v61, %v10113_v28 }
0x20c5   : > { %v10159_v21 = vadd.f32 %v10143_v45, %v10111_v35 }
0x20c6   : > { %v18979_v15 = vpack.c.bf16 %v10161_v31, %v10160_v53 }
0x20c7   : > { %v18981_v23 = vpack.c.bf16 %v10159_v21, %v10158_v9 }
0x20c9   : > { %14282 = vmatprep.mubr.msk.bf16.mxu1 %vm20714_vm0, %v18981_v23 }
0x20ca   : > { %14283 = vmatmul.mubr.msk.bf16.gmra.mrb[236].mxu1 %vm20715_vm2, %v18979_v15  ;;  %vm20729_vm2 = vmmov %vm20714_vm0 }
0x216d   : > { %v14272_v63 = vpop.f32.mrb[224].mxu1 }
0x216e   : > { %v10247_v2 = vpop.f32.mrb[225].mxu1  ;;  %v10256_v19 = vadd.f32 %v14272_v63, %v10184_v51 }
0x216f   : > { %v10248_v52 = vadd.f32 %v10247_v2, %v10184_v51  ;;  %v14273_v50 = vpop.f32.mrb[226].mxu1 }
0x2170   : > { %v10259_v38 = vadd.f32 %v14273_v50, %v10184_v51  ;;  %v10250_v25 = vpop.f32.mrb[227].mxu1  ;;  %v10312_v55 = vmax.f32 %v10256_v19, 0.0 }
0x2171   : > { %v10251_v29 = vadd.f32 %v10250_v25, %v10184_v51  ;;  %v10310_v0 = vmax.f32 %v10248_v52, 0.0 }
0x2172   : > { %v10313_v57 = vmax.f32 %v10259_v38, 0.0 }
0x2173   : > { %v10311_v42 = vmax.f32 %v10251_v29, 0.0 }
0x2174   : > { %v10331_v39 = vpack.c.bf16 %v10313_v57, %v10312_v55 }
0x2175   : > { %v10330_v17 = vpack.c.bf16 %v10311_v42, %v10310_v0 }
0x2177   : > { %14290 = vmatprep.mubr.msk.bf16.mxu0 %vm20716_vm4, %v10330_v17  ;;  %vm20730_vm4 = vmmov %vm20687_vm3 }
0x2178   : > { %14291 = vmatmul.mubr.msk.bf16.vlgmr.msra.gmra.mrb[144].mxu0 %vm20717_vm5, %v10331_v39  ;;  %vm20731_vm5 = vmmov %vm20687_vm3 }
0x2179   : > { %14327 = vmatpush3.bf16.msra.mxu0 %v10780_v46 }
0x217d   : > { %v14276_v59 = vpop.f32.mrb[228].mxu1 }
0x217e   : > { %v10272_v36 = vadd.f32 %v14276_v59, %v10184_v51  ;;  %v10263_v58 = vpop.f32.mrb[229].mxu1 }
0x217f   : > { %v10264_v27 = vadd.f32 %v10263_v58, %v10184_v51  ;;  %v14277_v6 = vpop.f32.mrb[230].mxu1 }
0x2180   : > { %v10275_v44 = vadd.f32 %v14277_v6, %v10184_v51  ;;  %v10266_v48 = vpop.f32.mrb[231].mxu1  ;;  %v10316_v24 = vmax.f32 %v10272_v36, 0.0 }
0x2181   : > { %v10267_v11 = vadd.f32 %v10266_v48, %v10184_v51  ;;  %v10314_v37 = vmax.f32 %v10264_v27, 0.0 }
0x2182   : > { %v10317_v62 = vmax.f32 %v10275_v44, 0.0 }
0x2183   : > { %v10315_v13 = vmax.f32 %v10267_v11, 0.0 }
0x2184   : > { %v10333_v3 = vpack.c.bf16 %v10317_v62, %v10316_v24 }
0x2185   : > { %v10332_v26 = vpack.c.bf16 %v10315_v13, %v10314_v37 }
0x2187   : > { %14294 = vmatprep.mubr.msk.bf16.mxu0 %vm20718_vm8, %v10332_v26  ;;  %vm20732_vm8 = vmmov %vm20687_vm3 }
0x2188   : > { %14295 = vmatmul.mubr.msk.bf16.gmra.mrb[148].mxu0 %vm20719_vm7, %v10333_v3  ;;  %vm20733_vm7 = vmmov %vm20687_vm3 }
0x218d   : > { %v14280_v14 = vpop.f32.mrb[232].mxu1 }
0x218e   : > { %v10288_v40 = vadd.f32 %v14280_v14, %v10184_v51  ;;  %v10279_v34 = vpop.f32.mrb[233].mxu1 }
0x218f   : > { %v10280_v60 = vadd.f32 %v10279_v34, %v10184_v51  ;;  %v14281_v43 = vpop.f32.mrb[234].mxu1 }
0x2190   : > { %v10291_v4 = vadd.f32 %v14281_v43, %v10184_v51  ;;  %v10282_v53 = vpop.f32.mrb[235].mxu1  ;;  %v10320_v28 = vmax.f32 %v10288_v40, 0.0 }
0x2191   : > { %v10283_v12 = vadd.f32 %v10282_v53, %v10184_v51  ;;  %v10318_v9 = vmax.f32 %v10280_v60, 0.0 }
0x2192   : > { %v10321_v61 = vmax.f32 %v10291_v4, 0.0 }
0x2193   : > { %v10319_v20 = vmax.f32 %v10283_v12, 0.0 }
0x2194   : > { %v10335_v35 = vpack.c.bf16 %v10321_v61, %v10320_v28 }
0x2195   : > { %v10334_v45 = vpack.c.bf16 %v10319_v20, %v10318_v9 }
0x2197   : > { %14298 = vmatprep.mubr.msk.bf16.mxu0 %vm20687_vm3, %v10334_v45 }
0x2198   : > { %14299 = vmatmul.mubr.msk.bf16.gmra.mrb[152].mxu0 %vm20720_vm6, %v10335_v35  ;;  %vm20734_vm6 = vmmov %vm20687_vm3 }
0x219d   : > { %v14284_v31 = vpop.f32.mrb[236].mxu1 }
0x219e   : > { %v10304_v21 = vadd.f32 %v14284_v31, %v10184_v51  ;;  %v10295_v47 = vpop.f32.mrb[237].mxu1 }
0x219f   : > { %v10296_v8 = vadd.f32 %v10295_v47, %v10184_v51  ;;  %v14285_v30 = vpop.f32.mrb[238].mxu1 }
0x21a0   : > { %v10307_v46 = vadd.f32 %v14285_v30, %v10184_v51  ;;  %v10298_v5 = vpop.f32.mrb[239].mxu1  ;;  %v10324_v1 = vmax.f32 %v10304_v21, 0.0 }
0x21a1   : > { %v10299_v32 = vadd.f32 %v10298_v5, %v10184_v51  ;;  %v10322_v54 = vmax.f32 %v10296_v8, 0.0 }
0x21a2   : > { %v10325_v10 = vmax.f32 %v10307_v46, 0.0 }
0x21a3   : > { %v10323_v63 = vmax.f32 %v10299_v32, 0.0 }
0x21a4   : > { %v10337_v2 = vpack.c.bf16 %v10325_v10, %v10324_v1 }
0x21a5   : > { %v10336_v19 = vpack.c.bf16 %v10323_v63, %v10322_v54 }
0x21a7   : > { %14302 = vmatprep.mubr.msk.bf16.mxu0 %vm20721_vm14, %v10336_v19  ;;  %vm20735_vm14 = vmmov %vm20687_vm3 }
0x21a8   : > { %14303 = vmatmul.mubr.msk.bf16.gmra.mrb[156].mxu0 %vm20722_vm11, %v10337_v2  ;;  %vm20736_vm11 = vmmov %vm20687_vm3 }
0x21a9   : > { %14328 = vmatprep.mubr.msk.bf16.mxu0 %vm20723_vm10, %v18933_v18  ;;  %v10506_v18 = vpop.permute.xlu1 %10505  ;;  %vm20737_vm10 = vmmov %vm20687_vm3 }
0x21aa   : > { %14306 = vmatprep.subr.bf16.mxu1 %v10506_v18 }
0x21ab   : > { %14307 = vmatpush3.bf16.msra.mxu1 %v10506_v18 }
0x21b0   : > { %14329 = vmatmul.mubr.msk.bf16.vlgmr.msra.gmra.mrb[160].mxu0 %vm20724_vm9, %v18931_v16  ;;  %v10508_v16 = vpop.permute.xlu1 %10507  ;;  %vm20738_vm9 = vmmov %vm20687_vm3 }
0x21b1   : > { %14332 = vmatprep.mubr.msk.bf16.mxu0 %vm20725_vm12, %v18949_v7  ;;  %14308 = vmatprep.subr.bf16.mxu1 %v10508_v16  ;;  %v14888_v7 = vld [vmem:[%s19380_s3 + $0xb8] sm:$0xff]   ;;  %vm20739_vm12 = vmmov %vm20687_vm3 }
0x21b2   : > { %14309 = vmatpush3.bf16.msra.mxu1 %v10508_v16 }
0x21b8   : > { %14333 = vmatmul.mubr.msk.bf16.gmra.mrb[164].mxu0 %vm20726_vm1, %v18947_v41  ;;  %v14887_v41 = vld [vmem:[%s19380_s3 + $0xb0] sm:$0xff]   ;;  %vm20740_vm1 = vmmov %vm20687_vm3 }
0x21b9   : > { %14336 = vmatprep.mubr.msk.bf16.mxu0 %vm20727_vm13, %v18965_v22  ;;  %14344 = vmatprep.subr.bf16.mxu1 %v14887_v41  ;;  %vm20741_vm13 = vmmov %vm20740_vm1 }
0x21ba   : > { %11074 = vrot.lane.b32.xlu1 %v14887_v41, %s15092_s5 }
0x21be   : > { %11076 = vrot.lane.b32.xlu1 %v14888_v7, %s15092_s5  ;;  %s15096_s5 = smov 1  }
0x21c0   : > { %14337 = vmatmul.mubr.msk.bf16.gmra.mrb[168].mxu0 %vm20728_vm15, %v18963_v49  ;;  %v10907_v49 = vld [vmem:[%s19380_s3 + $0xb0] sm:$0x1]  ;;  %vm20742_vm15 = vmmov %vm20740_vm1 }
0x21c1   : > { %14340 = vmatprep.mubr.msk.bf16.mxu0 %vm20714_vm0, %v18981_v23  ;;  %v10908_v22 = vunpack.c.l.bf16 %v10907_v49  ;;  %v10358_v23 = vpop.permute.xlu0 %10357  ;;  %vm20743_vm0 = vmmov %vm20740_vm1 }
0x21c2   : > { %10511 = vrot.lane.b32.xlu1 %v19003_v56, %s15094_s19 }
0x21c5   : > { %v19055_v19 = vpop.permute.xlu0 %10776 }
0x21c8   : > { %14341 = vmatmul.mubr.msk.bf16.gmra.mrb[172].mxu0 %vm20729_vm2, %v18979_v15  ;;  %v10912_v15 = vrot.slane %v10908_v22, %v20659_v33  ;;  %vm20744_vm2 = vmmov %vm20743_vm0 }
0x21ca   : > { %10926 = vrot.lane.b32.xlu0 %v10912_v15, %s15093_s12 }
0x21ce   : > { %11080 = vrot.lane.b32.xlu0 %v10912_v15, %s15094_s19 }
0x222c   : > { %v11075_v1 = vpop.permute.xlu1 %11074 }
0x222d   : > { %14364 = vmatprep.subr.bf16.mxu0 %v11075_v1 }
0x222e   : > { %14365 = vmatpush3.bf16.msra.mxu0 %v11075_v1 }
0x224b   : > { %v14292_v51 = vpop.f32.mrb[144].mxu0 }
0x224c   : > { %v10427_v52 = vadd.f32 %v14292_v51, %v10358_v23  ;;  %v10418_v50 = vpop.f32.mrb[145].mxu0 }
0x224d   : > { %v10419_v38 = vadd.f32 %v10418_v50, %v10358_v23  ;;  %v14293_v25 = vpop.f32.mrb[146].mxu0 }
0x224e   : > { %v10430_v29 = vadd.f32 %v14293_v25, %v10358_v23  ;;  %v10421_v55 = vpop.f32.mrb[147].mxu0  ;;  %v10483_v57 = vmax.f32 %v10427_v52, 0.0 }
0x224f   : > { %v10422_v56 = vadd.f32 %v10421_v55, %v10358_v23  ;;  %v10481_v42 = vmax.f32 %v10419_v38, 0.0 }
0x2250   : > { %v10484_v0 = vmax.f32 %v10430_v29, 0.0 }
0x2251   : > { %v10482_v39 = vmax.f32 %v10422_v56, 0.0 }
0x2252   : > { %v10498_v17 = vpack.c.bf16 %v10484_v0, %v10483_v57 }
0x2253   : > { %v10497_v59 = vpack.c.bf16 %v10482_v39, %v10481_v42 }
0x2255   : > { %14310 = vmatprep.mubr.msk.bf16.mxu1 %vm20730_vm4, %v10497_v59  ;;  %vm20745_vm4 = vmmov %vm20743_vm0 }
0x2256   : > { %14311 = vmatmul.mubr.msk.bf16.vlgmr.msra.gmra.mrb[240].mxu1 %vm20731_vm5, %v10498_v17  ;;  %vm20746_vm5 = vmmov %vm20743_vm0 }
0x2257   : > { %14345 = vmatpush3.bf16.msra.mxu1 %v14887_v41 }
0x2258   : > { %14346 = vmatprep.subr.bf16.mxu1 %v14888_v7 }
0x225b   : > { %v14296_v33 = vpop.f32.mrb[148].mxu0  ;;  %14347 = vmatpush3.bf16.msra.mxu1 %v14888_v7  ;;  %v11077_v7 = vpop.permute.xlu1 %11076 }
0x225c   : > { %v10443_v36 = vadd.f32 %v14296_v33, %v10358_v23  ;;  %v10434_v58 = vpop.f32.mrb[149].mxu0  ;;  %14366 = vmatprep.subr.bf16.mxu0 %v11077_v7 }
0x225d   : > { %v10435_v27 = vadd.f32 %v10434_v58, %v10358_v23  ;;  %v14297_v6 = vpop.f32.mrb[150].mxu0  ;;  %14367 = vmatpush3.bf16.msra.mxu0 %v11077_v7 }
0x225e   : > { %v10446_v44 = vadd.f32 %v14297_v6, %v10358_v23  ;;  %v10437_v48 = vpop.f32.mrb[151].mxu0  ;;  %v10487_v24 = vmax.f32 %v10443_v36, 0.0 }
0x225f   : > { %v10438_v11 = vadd.f32 %v10437_v48, %v10358_v23  ;;  %v10485_v37 = vmax.f32 %v10435_v27, 0.0 }
0x2260   : > { %v10488_v62 = vmax.f32 %v10446_v44, 0.0 }
0x2261   : > { %v10486_v13 = vmax.f32 %v10438_v11, 0.0 }
0x2262   : > { %v10500_v3 = vpack.c.bf16 %v10488_v62, %v10487_v24 }
0x2263   : > { %v10499_v26 = vpack.c.bf16 %v10486_v13, %v10485_v37 }
0x2265   : > { %14314 = vmatprep.mubr.msk.bf16.mxu1 %vm20732_vm8, %v10499_v26  ;;  %vm20747_vm8 = vmmov %vm20743_vm0 }
0x2266   : > { %14315 = vmatmul.mubr.msk.bf16.gmra.mrb[244].mxu1 %vm20733_vm7, %v10500_v3  ;;  %vm20748_vm7 = vmmov %vm20743_vm0 }
0x226b   : > { %v14300_v14 = vpop.f32.mrb[152].mxu0 }
0x226c   : > { %v10459_v40 = vadd.f32 %v14300_v14, %v10358_v23  ;;  %v10450_v34 = vpop.f32.mrb[153].mxu0 }
0x226d   : > { %v10451_v60 = vadd.f32 %v10450_v34, %v10358_v23  ;;  %v14301_v43 = vpop.f32.mrb[154].mxu0 }
0x226e   : > { %v10462_v4 = vadd.f32 %v14301_v43, %v10358_v23  ;;  %v10453_v53 = vpop.f32.mrb[155].mxu0  ;;  %v10491_v28 = vmax.f32 %v10459_v40, 0.0 }
0x226f   : > { %v10454_v12 = vadd.f32 %v10453_v53, %v10358_v23  ;;  %v10489_v9 = vmax.f32 %v10451_v60, 0.0 }
0x2270   : > { %v10492_v61 = vmax.f32 %v10462_v4, 0.0 }
0x2271   : > { %v10490_v20 = vmax.f32 %v10454_v12, 0.0 }
0x2272   : > { %v10502_v35 = vpack.c.bf16 %v10492_v61, %v10491_v28 }
0x2273   : > { %v10501_v45 = vpack.c.bf16 %v10490_v20, %v10489_v9 }
0x2275   : > { %14318 = vmatprep.mubr.msk.bf16.mxu1 %vm20687_vm3, %v10501_v45  ;;  %vm20749_vm3 = vmmov %vm20743_vm0 }
0x2276   : > { %14319 = vmatmul.mubr.msk.bf16.gmra.mrb[248].mxu1 %vm20734_vm6, %v10502_v35  ;;  %vm20750_vm6 = vmmov %vm20743_vm0 }
0x227b   : > { %v14304_v31 = vpop.f32.mrb[156].mxu0 }
0x227c   : > { %v10475_v21 = vadd.f32 %v14304_v31, %v10358_v23  ;;  %v10466_v47 = vpop.f32.mrb[157].mxu0 }
0x227d   : > { %v10467_v8 = vadd.f32 %v10466_v47, %v10358_v23  ;;  %v14305_v30 = vpop.f32.mrb[158].mxu0 }
0x227e   : > { %v10478_v46 = vadd.f32 %v14305_v30, %v10358_v23  ;;  %v10469_v5 = vpop.f32.mrb[159].mxu0  ;;  %v10495_v10 = vmax.f32 %v10475_v21, 0.0 }
0x227f   : > { %v10470_v32 = vadd.f32 %v10469_v5, %v10358_v23  ;;  %v10493_v63 = vmax.f32 %v10467_v8, 0.0 }
0x2280   : > { %v10496_v54 = vmax.f32 %v10478_v46, 0.0 }
0x2281   : > { %v10494_v2 = vmax.f32 %v10470_v32, 0.0 }
0x2282   : > { %v10504_v18 = vpack.c.bf16 %v10496_v54, %v10495_v10 }
0x2283   : > { %v10503_v16 = vpack.c.bf16 %v10494_v2, %v10493_v63  ;;  %v14330_v41 = vpop.f32.mrb[160].mxu0 }
0x2284   : > { %v10825_v49 = vadd.f32 %v14330_v41, %v19055_v19  ;;  %v10816_v22 = vpop.f32.mrb[161].mxu0 }
0x2285   : > { %v10817_v15 = vadd.f32 %v10816_v22, %v19055_v19  ;;  %14322 = vmatprep.mubr.msk.bf16.mxu1 %vm20735_vm14, %v10503_v16  ;;  %v14331_v23 = vpop.f32.mrb[162].mxu0  ;;  %vm20751_vm14 = vmmov %vm20743_vm0 }
0x2286   : > { %v10828_v51 = vadd.f32 %v14331_v23, %v19055_v19  ;;  %14323 = vmatmul.mubr.msk.bf16.gmra.mrb[252].mxu1 %vm20736_vm11, %v10504_v18  ;;  %v10819_v52 = vpop.f32.mrb[163].mxu0  ;;  %v10881_v38 = vmax.f32 %v10825_v49, 0.0  ;;  %vm20752_vm11 = vmmov %vm20743_vm0 }
0x2287   : > { %v10820_v50 = vadd.f32 %v10819_v52, %v19055_v19  ;;  %v10879_v29 = vmax.f32 %v10817_v15, 0.0 }
0x2288   : > { %v10882_v25 = vmax.f32 %v10828_v51, 0.0 }
0x2289   : > { %v10880_v55 = vmax.f32 %v10820_v50, 0.0 }
0x228a   : > { %v10900_v56 = vpack.c.bf16 %v10882_v25, %v10881_v38  ;;  %v10927_v38 = vpop.permute.xlu0 %10926 }
0x228b   : > { %v10899_v57 = vpack.c.bf16 %v10880_v55, %v10879_v29  ;;  %v14334_v0 = vpop.f32.mrb[164].mxu0 }
0x228c   : > { %v10841_v42 = vadd.f32 %v14334_v0, %v19055_v19  ;;  %v10832_v39 = vpop.f32.mrb[165].mxu0 }
0x228d   : > { %v10833_v17 = vadd.f32 %v10832_v39, %v19055_v19  ;;  %v14335_v59 = vpop.f32.mrb[166].mxu0  ;;  %14348 = vmatprep.mubr.msk.bf16.mxu1 %vm20737_vm10, %v10899_v57  ;;  %vm11268_vm10 = vcmask 7168  }
0x228e   : > { %v10844_v33 = vadd.f32 %v14335_v59, %v19055_v19  ;;  %v10835_v36 = vpop.f32.mrb[167].mxu0  ;;  %14349 = vmatmul.mubr.msk.bf16.vlgmr.msra.gmra.mrb[32].mxu1 %vm20738_vm9, %v10900_v56  ;;  %v10885_v27 = vmax.f32 %v10841_v42, 0.0  ;;  %vm11417_vm9 = vcmask 64512  }
0x228f   : > { %v10836_v58 = vadd.f32 %v10835_v36, %v19055_v19  ;;  %v10883_v44 = vmax.f32 %v10833_v17, 0.0 }
0x2290   : > { %v10886_v6 = vmax.f32 %v10844_v33, 0.0 }
0x2291   : > { %v10884_v48 = vmax.f32 %v10836_v58, 0.0 }
0x2292   : > { %v10902_v11 = vpack.c.bf16 %v10886_v6, %v10885_v27 }
0x2293   : > { %v10901_v24 = vpack.c.bf16 %v10884_v48, %v10883_v44  ;;  %v14338_v62 = vpop.f32.mrb[168].mxu0 }
0x2294   : > { %v10857_v37 = vadd.f32 %v14338_v62, %v19055_v19  ;;  %v10848_v13 = vpop.f32.mrb[169].mxu0 }
0x2295   : > { %v10849_v3 = vadd.f32 %v10848_v13, %v19055_v19  ;;  %v14339_v26 = vpop.f32.mrb[170].mxu0  ;;  %14352 = vmatprep.mubr.msk.bf16.mxu1 %vm20739_vm12, %v10901_v24  ;;  %vm20755_vm12 = vcmask 31744  }
0x2296   : > { %v10860_v14 = vadd.f32 %v14339_v26, %v19055_v19  ;;  %v10851_v40 = vpop.f32.mrb[171].mxu0  ;;  %14353 = vmatmul.mubr.msk.bf16.gmra.mrb[36].mxu1 %vm20740_vm1, %v10902_v11  ;;  %v10889_v60 = vmax.f32 %v10857_v37, 0.0  ;;  %vm20757_vm1 = vmmov %vm20755_vm12 }
0x2297   : > { %v10852_v34 = vadd.f32 %v10851_v40, %v19055_v19  ;;  %v10887_v4 = vmax.f32 %v10849_v3, 0.0 }
0x2298   : > { %v10890_v43 = vmax.f32 %v10860_v14, 0.0 }
0x2299   : > { %v10888_v53 = vmax.f32 %v10852_v34, 0.0 }
0x229a   : > { %v10904_v12 = vpack.c.bf16 %v10890_v43, %v10889_v60 }
0x229b   : > { %v10903_v28 = vpack.c.bf16 %v10888_v53, %v10887_v4  ;;  %v14342_v61 = vpop.f32.mrb[172].mxu0 }
0x229c   : > { %v10873_v9 = vadd.f32 %v14342_v61, %v19055_v19  ;;  %v10864_v20 = vpop.f32.mrb[173].mxu0 }
0x229d   : > { %v10865_v35 = vadd.f32 %v10864_v20, %v19055_v19  ;;  %v14343_v45 = vpop.f32.mrb[174].mxu0  ;;  %14356 = vmatprep.mubr.msk.bf16.mxu1 %vm20741_vm13, %v10903_v28  ;;  %vm20759_vm13 = vmmov %vm20757_vm1 }
0x229e   : > { %v10876_v31 = vadd.f32 %v14343_v45, %v19055_v19  ;;  %v10867_v21 = vpop.f32.mrb[175].mxu0  ;;  %14357 = vmatmul.mubr.msk.bf16.gmra.mrb[40].mxu1 %vm20742_vm15, %v10904_v12  ;;  %v10893_v8 = vmax.f32 %v10873_v9, 0.0  ;;  %vm20761_vm15 = vmmov %vm20757_vm1 }
0x229f   : > { %v10868_v47 = vadd.f32 %v10867_v21, %v19055_v19  ;;  %v10891_v46 = vmax.f32 %v10865_v35, 0.0 }
0x22a0   : > { %v10894_v30 = vmax.f32 %v10876_v31, 0.0 }
0x22a1   : > { %v10892_v5 = vmax.f32 %v10868_v47, 0.0 }
0x22a2   : > { %v10906_v32 = vpack.c.bf16 %v10894_v30, %v10893_v8 }
0x22a3   : > { %v10905_v1 = vpack.c.bf16 %v10892_v5, %v10891_v46 }
0x22a5   : > { %14360 = vmatprep.mubr.msk.bf16.mxu1 %vm20743_vm0, %v10905_v1  ;;  %vm20763_vm0 = vmmov %vm20757_vm1 }
0x22a6   : > { %14361 = vmatmul.mubr.msk.bf16.gmra.mrb[44].mxu1 %vm20744_vm2, %v10906_v32  ;;  %vm20765_vm2 = vmmov %vm20763_vm0 }
0x2329   : > { %v19083_v10 = vpop.f32.mrb[240].mxu1 }
0x232a   : > { %v19085_v54 = vpop.f32.mrb[241].mxu1 }
0x232b   : > { %v19087_v63 = vpop.f32.mrb[242].mxu1 }
0x232c   : > { %v19089_v2 = vpop.f32.mrb[243].mxu1 }
0x2339   : > { %v19091_v18 = vpop.f32.mrb[244].mxu1 }
0x233a   : > { %v19093_v19 = vpop.f32.mrb[245].mxu1 }
0x233b   : > { %v19095_v16 = vpop.f32.mrb[246].mxu1 }
0x233c   : > { %v19097_v41 = vpop.f32.mrb[247].mxu1 }
0x2349   : > { %v19099_v7 = vpop.f32.mrb[248].mxu1 }
0x234a   : > { %v19101_v49 = vpop.f32.mrb[249].mxu1 }
0x234b   : > { %v19103_v22 = vpop.f32.mrb[250].mxu1 }
0x234c   : > { %v19105_v15 = vpop.f32.mrb[251].mxu1 }
0x2359   : > { %v19107_v23 = vpop.f32.mrb[252].mxu1 }
0x235a   : > { %v19109_v51 = vpop.f32.mrb[253].mxu1 }
0x235b   : > { %v19111_v52 = vpop.f32.mrb[254].mxu1 }
0x235c   : > { %v19113_v50 = vpop.f32.mrb[255].mxu1 }
0x2361   : > { %v14350_v25 = vpop.f32.mrb[32].mxu1 }
0x2362   : > { %v10996_v29 = vadd.f32 %v14350_v25, %v10927_v38  ;;  %v10987_v55 = vpop.f32.mrb[33].mxu1 }
0x2363   : > { %v10988_v56 = vadd.f32 %v10987_v55, %v10927_v38  ;;  %v14351_v57 = vpop.f32.mrb[34].mxu1 }
0x2364   : > { %v10999_v0 = vadd.f32 %v14351_v57, %v10927_v38  ;;  %v10990_v42 = vpop.f32.mrb[35].mxu1  ;;  %v11052_v17 = vmax.f32 %v10996_v29, 0.0 }
0x2365   : > { %v10991_v39 = vadd.f32 %v10990_v42, %v10927_v38  ;;  %v11050_v33 = vmax.f32 %v10988_v56, 0.0 }
0x2366   : > { %v11053_v59 = vmax.f32 %v10999_v0, 0.0 }
0x2367   : > { %v11051_v36 = vmax.f32 %v10991_v39, 0.0 }
0x2368   : > { %v11067_v58 = vpack.c.bf16 %v11053_v59, %v11052_v17  ;;  %v11081_v59 = vpop.permute.xlu0 %11080 }
0x2369   : > { %v11066_v27 = vpack.c.bf16 %v11051_v36, %v11050_v33  ;;  %v14354_v6 = vpop.f32.mrb[36].mxu1 }
0x236a   : > { %v11012_v44 = vadd.f32 %v14354_v6, %v10927_v38  ;;  %v11003_v48 = vpop.f32.mrb[37].mxu1 }
0x236b   : > { %v11004_v11 = vadd.f32 %v11003_v48, %v10927_v38  ;;  %v14355_v24 = vpop.f32.mrb[38].mxu1  ;;  %14368 = vmatprep.mubr.msk.bf16.mxu0 %vm20745_vm4, %v11066_v27  ;;  %vm20767_vm4 = vmmov %vm20763_vm0 }
0x236c   : > { %v11015_v62 = vadd.f32 %v14355_v24, %v10927_v38  ;;  %v11006_v37 = vpop.f32.mrb[39].mxu1  ;;  %14369 = vmatmul.mubr.msk.bf16.vlgmr.msra.gmra.mrb[208].mxu0 %vm20746_vm5, %v11067_v58  ;;  %v11056_v3 = vmax.f32 %v11012_v44, 0.0  ;;  %vm20769_vm5 = vmmov %vm20763_vm0 }
0x236d   : > { %v11007_v13 = vadd.f32 %v11006_v37, %v10927_v38  ;;  %v11054_v14 = vmax.f32 %v11004_v11, 0.0 }
0x236e   : > { %v11057_v26 = vmax.f32 %v11015_v62, 0.0 }
0x236f   : > { %v11055_v40 = vmax.f32 %v11007_v13, 0.0 }
0x2370   : > { %v11069_v34 = vpack.c.bf16 %v11057_v26, %v11056_v3 }
0x2371   : > { %v11068_v60 = vpack.c.bf16 %v11055_v40, %v11054_v14  ;;  %v14358_v43 = vpop.f32.mrb[40].mxu1 }
0x2372   : > { %v11028_v4 = vadd.f32 %v14358_v43, %v10927_v38  ;;  %v11019_v53 = vpop.f32.mrb[41].mxu1 }
0x2373   : > { %v11020_v12 = vadd.f32 %v11019_v53, %v10927_v38  ;;  %v14359_v28 = vpop.f32.mrb[42].mxu1  ;;  %14372 = vmatprep.mubr.msk.bf16.mxu0 %vm20747_vm8, %v11068_v60  ;;  %vm20771_vm8 = vmmov %vm20763_vm0 }
0x2374   : > { %v11031_v61 = vadd.f32 %v14359_v28, %v10927_v38  ;;  %v11022_v9 = vpop.f32.mrb[43].mxu1  ;;  %14373 = vmatmul.mubr.msk.bf16.gmra.mrb[212].mxu0 %vm20748_vm7, %v11069_v34  ;;  %v11060_v35 = vmax.f32 %v11028_v4, 0.0  ;;  %vm20773_vm7 = vmmov %vm20763_vm0 }
0x2375   : > { %v11023_v20 = vadd.f32 %v11022_v9, %v10927_v38  ;;  %v11058_v31 = vmax.f32 %v11020_v12, 0.0 }
0x2376   : > { %v11061_v45 = vmax.f32 %v11031_v61, 0.0 }
0x2377   : > { %v11059_v21 = vmax.f32 %v11023_v20, 0.0 }
0x2378   : > { %v11071_v47 = vpack.c.bf16 %v11061_v45, %v11060_v35 }
0x2379   : > { %v11070_v8 = vpack.c.bf16 %v11059_v21, %v11058_v31  ;;  %v14362_v30 = vpop.f32.mrb[44].mxu1 }
0x237a   : > { %v11044_v46 = vadd.f32 %v14362_v30, %v10927_v38  ;;  %v11035_v5 = vpop.f32.mrb[45].mxu1 }
0x237b   : > { %v11036_v32 = vadd.f32 %v11035_v5, %v10927_v38  ;;  %v14363_v1 = vpop.f32.mrb[46].mxu1  ;;  %14376 = vmatprep.mubr.msk.bf16.mxu0 %vm20749_vm3, %v11070_v8  ;;  %v19139_v8 = vpop.permute.xlu1 %10511  ;;  %vm20775_vm3 = vmmov %vm20763_vm0 }
0x237c   : > { %v11047_v25 = vadd.f32 %v14363_v1, %v10927_v38  ;;  %v11038_v29 = vpop.f32.mrb[47].mxu1  ;;  %14377 = vmatmul.mubr.msk.bf16.gmra.mrb[216].mxu0 %vm20750_vm6, %v11071_v47  ;;  %v11064_v56 = vmax.f32 %v11044_v46, 0.0  ;;  %v10581_v30 = vadd.f32 %v19083_v10, %v19139_v8  ;;  %v10584_v46 = vadd.f32 %v19087_v63, %v19139_v8  ;;  %vm20777_vm6 = vmmov %vm20763_vm0 }
0x237d   : > { %v11039_v55 = vadd.f32 %v11038_v29, %v10927_v38  ;;  %v11062_v0 = vmax.f32 %v11036_v32, 0.0  ;;  %v10573_v5 = vadd.f32 %v19085_v54, %v19139_v8  ;;  %v10589_v63 = vadd.f32 %v19093_v19, %v19139_v8 }
0x237e   : > { %v11065_v57 = vmax.f32 %v11047_v25, 0.0  ;;  %v12324_v32 = vmul.f32 -1.442695, %v10581_v30  ;;  %v12325_v1 = vmul.f32 -1.442695, %v10584_v46  ;;  %v10576_v25 = vadd.f32 %v19089_v2, %v19139_v8 }
0x237f   : > { %v11063_v42 = vmax.f32 %v11039_v55, 0.0  ;;  %v12322_v29 = vmul.f32 -1.442695, %v10573_v5  ;;  %v10597_v55 = vadd.f32 %v19091_v18, %v19139_v8  ;;  %v12326_v2 = vmul.f32 -1.442695, %v10589_v63 }
0x2380   : > { %v11073_v39 = vpack.c.bf16 %v11065_v57, %v11064_v56  ;;  %15017 = vpow2.f32 %v12324_v32  ;;  %v10600_v56 = vadd.f32 %v19095_v16, %v19139_v8  ;;  %v12323_v10 = vmul.f32 -1.442695, %v10576_v25 }
0x2381   : > { %v11072_v17 = vpack.c.bf16 %v11063_v42, %v11062_v0  ;;  %15019 = vpow2.f32 %v12325_v1  ;;  %v12328_v54 = vmul.f32 -1.442695, %v10597_v55  ;;  %v10592_v0 = vadd.f32 %v19097_v41, %v19139_v8 }
0x2382   : > { %15021 = vpow2.f32 %v12322_v29  ;;  %v12329_v57 = vmul.f32 -1.442695, %v10600_v56  ;;  %v10613_v18 = vadd.f32 %v19099_v7, %v19139_v8  ;;  %v10608_v7 = vadd.f32 %v19105_v15, %v19139_v8 }
0x2383   : > { %14380 = vmatprep.mubr.msk.bf16.mxu0 %vm20751_vm14, %v11072_v17  ;;  %15023 = vpow2.f32 %v12323_v10  ;;  %v12327_v42 = vmul.f32 -1.442695, %v10592_v0  ;;  %v10629_v15 = vadd.f32 %v19107_v23, %v19139_v8  ;;  %vm20779_vm14 = vmmov %vm20763_vm0 }
0x2384   : > { %14381 = vmatmul.mubr.msk.bf16.gmra.mrb[220].mxu0 %vm20752_vm11, %v11073_v39  ;;  %15025 = vpow2.f32 %v12328_v54  ;;  %v10616_v39 = vadd.f32 %v19103_v22, %v19139_v8  ;;  %v12332_v19 = vmul.f32 -1.442695, %v10613_v18  ;;  %vm20781_vm11 = vmmov %vm20763_vm0 }
0x2385   : > { %15027 = vpow2.f32 %v12329_v57 }
0x2386   : > { %15029 = vpow2.f32 %v12326_v2 }
0x2387   : > { %15031 = vpow2.f32 %v12327_v42 }
0x2388   : > { %15033 = vpow2.f32 %v12332_v19 }
0x238a   : > { %v15018_v16 = vpop.eup %15017 }
0x238b   : > { %v15020_v17 = vpop.eup %15019  ;;  %v10685_v41 = vadd.f32 1.0, %v15018_v16 }
0x238d   : > { %15035 = vrcp.f32 %v10685_v41 }
0x243f   : > { %v14370_v33 = vpop.f32.mrb[208].mxu0 }
0x2440   : > { %v11150_v36 = vadd.f32 %v14370_v33, %v11081_v59  ;;  %v11141_v58 = vpop.f32.mrb[209].mxu0  ;;  %v15022_v33 = vpop.eup %15021 }
0x2441   : > { %v14371_v27 = vpop.f32.mrb[210].mxu0  ;;  %v11142_v44 = vadd.f32 %v11141_v58, %v11081_v59  ;;  %v10686_v58 = vadd.f32 1.0, %v15020_v17 }
0x2442   : > { %v11153_v6 = vadd.f32 %v14371_v27, %v11081_v59  ;;  %11224 = vrot.lane.b32.xlu0 %v11150_v36, %s15096_s5  ;;  %v11144_v38 = vpop.f32.mrb[211].mxu0  ;;  %v12333_v36 = vmul.f32 -1.442695, %v10616_v39  ;;  %v15024_v27 = vpop.eup %15023 }
0x2443   : > { %v11145_v48 = vadd.f32 %v11144_v38, %v11081_v59  ;;  %v10683_v38 = vadd.f32 1.0, %v15022_v33  ;;  %v15026_v22 = vpop.eup %15025 }
0x2444   : > { %11226 = vrot.lane.b32.xlu1 %v11153_v6, %s15096_s5  ;;  %15037 = vpow2.f32 %v12333_v36 }
0x2445   : > { %15039 = vrcp.f32 %v10686_v58 }
0x2446   : > { %11220 = vrot.lane.b32.xlu0 %v11142_v44, %s15096_s5  ;;  %v12331_v44 = vmul.f32 -1.442695, %v10608_v7 }
0x2447   : > { %v14374_v11 = vpop.f32.mrb[212].mxu0 }
0x2448   : > { %v11166_v24 = vadd.f32 %v14374_v11, %v11081_v59  ;;  %v11157_v62 = vpop.f32.mrb[213].mxu0  ;;  %11222 = vrot.lane.b32.xlu1 %v11145_v48, %s15096_s5  ;;  %v15028_v48 = vpop.eup %15027  ;;  %v10684_v11 = vadd.f32 1.0, %v15024_v27 }
0x2449   : > { %v14375_v37 = vpop.f32.mrb[214].mxu0  ;;  %v11158_v26 = vadd.f32 %v11157_v62, %v11081_v59  ;;  %v10689_v62 = vadd.f32 1.0, %v15026_v22 }
0x244a   : > { %v11169_v13 = vadd.f32 %v14375_v37, %v11081_v59  ;;  %v11160_v3 = vpop.f32.mrb[215].mxu0  ;;  %11232 = vrot.lane.b32.xlu0 %v11166_v24, %s15096_s5  ;;  %v15030_v24 = vpop.eup %15029  ;;  %v10690_v37 = vadd.f32 1.0, %v15028_v48 }
0x244b   : > { %v11161_v14 = vadd.f32 %v11160_v3, %v11081_v59  ;;  %v10632_v3 = vadd.f32 %v19111_v52, %v19139_v8 }
0x244c   : > { %11234 = vrot.lane.b32.xlu1 %v11169_v13, %s15096_s5  ;;  %v15032_v13 = vpop.eup %15031 }
0x244e   : > { %11228 = vrot.lane.b32.xlu0 %v11158_v26, %s15096_s5 }
0x244f   : > { %v14378_v40 = vpop.f32.mrb[216].mxu0 }
0x2450   : > { %v11182_v34 = vadd.f32 %v14378_v40, %v11081_v59  ;;  %v11173_v60 = vpop.f32.mrb[217].mxu0  ;;  %11230 = vrot.lane.b32.xlu1 %v11161_v14, %s15096_s5  ;;  %v10687_v14 = vadd.f32 1.0, %v15030_v24  ;;  %v15034_v40 = vpop.eup %15033 }
0x2451   : > { %v14379_v43 = vpop.f32.mrb[218].mxu0  ;;  %v11174_v12 = vadd.f32 %v11173_v60, %v11081_v59  ;;  %v10688_v60 = vadd.f32 1.0, %v15032_v13 }
0x2452   : > { %v11185_v4 = vadd.f32 %v14379_v43, %v11081_v59  ;;  %v11176_v53 = vpop.f32.mrb[219].mxu0  ;;  %11240 = vrot.lane.b32.xlu0 %v11182_v34, %s15096_s5  ;;  %v12336_v34 = vmul.f32 -1.442695, %v10629_v15  ;;  %v15036_v43 = vpop.eup %15035 }
0x2453   : > { %v11177_v28 = vadd.f32 %v11176_v53, %v11081_v59  ;;  %v15038_v23 = vpop.eup %15037  ;;  %v10693_v53 = vadd.f32 1.0, %v15034_v40 }
0x2454   : > { %11242 = vrot.lane.b32.xlu1 %v11185_v4, %s15096_s5  ;;  %v12337_v4 = vmul.f32 -1.442695, %v10632_v3 }
0x2456   : > { %11236 = vrot.lane.b32.xlu0 %v11174_v12, %s15096_s5  ;;  %v15040_v12 = vpop.eup %15039 }
0x2457   : > { %v14382_v61 = vpop.f32.mrb[220].mxu0 }
0x2458   : > { %v11189_v9 = vpop.f32.mrb[221].mxu0  ;;  %11238 = vrot.lane.b32.xlu1 %v11177_v28, %s15096_s5  ;;  %v11198_v21 = vadd.f32 %v14382_v61, %v11081_v59  ;;  %v10733_v61 = vmul.f32 0.999998, %v15036_v43 }
0x2459   : > { %v11190_v20 = vadd.f32 %v11189_v9, %v11081_v59  ;;  %v14383_v35 = vpop.f32.mrb[222].mxu0 }
0x245a   : > { %v11192_v45 = vpop.f32.mrb[223].mxu0  ;;  %v11201_v47 = vadd.f32 %v14383_v35, %v11081_v59 }
0x245b   : > { %v11193_v31 = vadd.f32 %v11192_v45, %v11081_v59  ;;  %11244 = vrot.lane.b32.xlu0 %v11190_v20, %s15096_s5  ;;  %v10605_v59 = vadd.f32 %v19101_v49, %v19139_v8  ;;  %v10624_v49 = vadd.f32 %v19113_v50, %v19139_v8  ;;  %v10621_v50 = vadd.f32 %v19109_v51, %v19139_v8 }
0x245c   : > { %v10694_v20 = vadd.f32 1.0, %v15038_v23  ;;  %v10734_v51 = vmul.f32 0.999998, %v15040_v12 }
0x245d   : > { %11246 = vrot.lane.b32.xlu1 %v11193_v31, %s15096_s5  ;;  %v12330_v6 = vmul.f32 -1.442695, %v10605_v59  ;;  %v12335_v26 = vmul.f32 -1.442695, %v10624_v49  ;;  %v12334_v28 = vmul.f32 -1.442695, %v10621_v50 }
0x245e   : > { %v10750_v1 = vadd.f32 1e-06, %v10734_v51 }
0x245f   : > { %11248 = vrot.lane.b32.xlu0 %v11198_v21, %s15096_s5  ;;  %15041 = vpow2.f32 %v12330_v6  ;;  %v10749_v21 = vadd.f32 1e-06, %v10733_v61 }
0x2460   : > { %15043 = vrcp.f32 %v10683_v38 }
0x2461   : > { %11250 = vrot.lane.b32.xlu1 %v11201_v47, %s15096_s5  ;;  %15045 = vpow2.f32 %v12331_v44 }
0x2462   : > { %15047 = vrcp.f32 %v10684_v11 }
0x2463   : > { %15049 = vrcp.f32 %v10689_v62 }
0x2464   : > { %15051 = vrcp.f32 %v10690_v37 }
0x2465   : > { %15053 = vpow2.f32 %v12335_v26 }
0x2466   : > { %15055 = vrcp.f32 %v10687_v14 }
0x2467   : > { %15057 = vpow2.f32 %v12336_v34 }
0x2468   : > { %15059 = vrcp.f32 %v10688_v60 }
0x2469   : > { %v15042_v52 = vpop.eup %15041  ;;  %15061 = vpow2.f32 %v12337_v4 }
0x246a   : > { %v15044_v9 = vpop.eup %15043  ;;  %15063 = vrcp.f32 %v10693_v53  ;;  %v10691_v31 = vadd.f32 1.0, %v15042_v52 }
0x246b   : > { %v15046_v35 = vpop.eup %15045  ;;  %15065 = vpow2.f32 %v12334_v28  ;;  %v10731_v47 = vmul.f32 0.999998, %v15044_v9 }
0x246c   : > { %v15048_v45 = vpop.eup %15047  ;;  %15067 = vrcp.f32 %v10694_v20  ;;  %v10692_v30 = vadd.f32 1.0, %v15046_v35 }
0x246d   : > { %v15050_v8 = vpop.eup %15049  ;;  %v10732_v25 = vmul.f32 0.999998, %v15048_v45  ;;  %15069 = vrcp.f32 %v10691_v31  ;;  %v10747_v63 = vadd.f32 1e-06, %v10731_v47 }
0x246e   : > { %v15052_v5 = vpop.eup %15051  ;;  %v10737_v54 = vmul.f32 0.999998, %v15050_v8  ;;  %15071 = vrcp.f32 %v10692_v30 }
0x246f   : > { %v15054_v29 = vpop.eup %15053  ;;  %v10748_v16 = vadd.f32 1e-06, %v10732_v25  ;;  %v10738_v39 = vmul.f32 0.999998, %v15052_v5 }
0x2470   : > { %v15056_v56 = vpop.eup %15055  ;;  %v10696_v18 = vadd.f32 1.0, %v15054_v29  ;;  %v10753_v7 = vadd.f32 1e-06, %v10737_v54 }
0x2471   : > { %v15058_v57 = vpop.eup %15057  ;;  %v10735_v59 = vmul.f32 0.999998, %v15056_v56  ;;  %v10754_v44 = vadd.f32 1e-06, %v10738_v39  ;;  %v20754_v39 = vld [vmem:[#allocation80_spill] sm:$0xff] }
0x2472   : > { %v15060_v2 = vpop.eup %15059  ;;  %v10697_v33 = vadd.f32 1.0, %v15058_v57  ;;  %15073 = vrcp.f32 %v10696_v18 }
0x2473   : > { %v15062_v19 = vpop.eup %15061  ;;  %v10736_v6 = vmul.f32 0.999998, %v15060_v2  ;;  %v10751_v49 = vadd.f32 1e-06, %v10735_v59 }
0x2474   : > { %v15064_v41 = vpop.eup %15063  ;;  %v10698_v38 = vadd.f32 1.0, %v15062_v19  ;;  %15075 = vrcp.f32 %v10697_v33 }
0x2475   : > { %v15066_v58 = vpop.eup %15065  ;;  %v10741_v15 = vmul.f32 0.999998, %v15064_v41  ;;  %v10752_v26 = vadd.f32 1e-06, %v10736_v6  ;;  %v20756_v41 = vld [vmem:[#allocation10_spill] sm:$0xff] }
0x2476   : > { %v15068_v48 = vpop.eup %15067  ;;  %v10695_v24 = vadd.f32 1.0, %v15066_v58  ;;  %15077 = vrcp.f32 %v10698_v38  ;;  %v20758_v58 = vld [vmem:[#allocation81_spill] sm:$0xff] }
0x2477   : > { %v15070_v37 = vpop.eup %15069  ;;  %v10742_v14 = vmul.f32 0.999998, %v15068_v48  ;;  %v10757_v60 = vadd.f32 1e-06, %v10741_v15 }
0x2478   : > { %v15072_v40 = vpop.eup %15071  ;;  %15079 = vrcp.f32 %v10695_v24  ;;  %v10739_v43 = vmul.f32 0.999998, %v15070_v37  ;;  %v20764_v37 = vld [vmem:[#allocation120_spill] sm:$0xff] }
0x2479   : > { %v10758_v53 = vadd.f32 1e-06, %v10742_v14  ;;  %v10740_v12 = vmul.f32 0.999998, %v15072_v40  ;;  %v20766_v14 = vld [vmem:[#allocation85_spill] sm:$0xff] }
0x247a   : > { %v10755_v9 = vadd.f32 1e-06, %v10739_v43 }
0x247b   : > { %v10756_v45 = vadd.f32 1e-06, %v10740_v12 }
0x247c   : > { %v15074_v52 = vpop.eup %15073 }
0x247e   : > { %v15076_v35 = vpop.eup %15075 }
0x247f   : > { %v10745_v30 = vmul.f32 0.999998, %v15076_v35 }
0x2480   : > { %v15078_v47 = vpop.eup %15077 }
0x2481   : > { %v10761_v56 = vadd.f32 1e-06, %v10745_v30 }
0x24b4   : > { %v11225_v46 = vpop.permute.xlu0 %11224 }
0x24b5   : > { %v11271_v32 = vsel %vm11268_vm10, %v10749_v21, %v11225_v46  ;;  %v10744_v21 = vmul.f32 0.999998, %v15074_v52  ;;  %v15080_v46 = vpop.eup %15079 }
0x24b6   : > { %11306 = vrot.lane.b32.xlu0 %v11271_v32, %s15096_s5  ;;  %v11227_v55 = vpop.permute.xlu1 %11226  ;;  %v10743_v29 = vmul.f32 0.999998, %v15080_v46 }
0x24b7   : > { %v11272_v10 = vsel %vm11268_vm10, %v10750_v1, %v11227_v55  ;;  %v10760_v32 = vadd.f32 1e-06, %v10744_v21  ;;  %v10746_v1 = vmul.f32 0.999998, %v15078_v47  ;;  %v20776_v47 = vld [vmem:[#allocation84_spill] sm:$0xff] }
0x24b8   : > { %v11221_v0 = vpop.permute.xlu0 %11220  ;;  %11308 = vrot.lane.b32.xlu1 %v11272_v10, %s15096_s5 }
0x24b9   : > { %v11269_v42 = vsel %vm11268_vm10, %v10747_v63, %v11221_v0  ;;  %v10762_v54 = vadd.f32 1e-06, %v10746_v1  ;;  %v10759_v0 = vadd.f32 1e-06, %v10743_v29  ;;  %v20780_v29 = vld [vmem:[#allocation132_spill] sm:$0xff] }
0x24ba   : > { %11302 = vrot.lane.b32.xlu0 %v11269_v42, %s15096_s5  ;;  %v11223_v17 = vpop.permute.xlu1 %11222  ;;  %v20753_v42 = vmov 0.0  }
0x24bb   : > { %v11270_v36 = vsel %vm11268_vm10, %v10748_v16, %v11223_v17 }
0x24bc   : > { %v11233_v27 = vpop.permute.xlu0 %11232  ;;  %11304 = vrot.lane.b32.xlu1 %v11270_v36, %s15096_s5 }
0x24bd   : > { %v11275_v22 = vsel %vm11268_vm10, %v10753_v7, %v11233_v27 }
0x24be   : > { %11314 = vrot.lane.b32.xlu0 %v11275_v22, %s15096_s5  ;;  %v11235_v11 = vpop.permute.xlu1 %11234  ;;  %v20760_v22 = vld [vmem:[#allocation8_spill] sm:$0xff] }
0x24bf   : > { %v11276_v62 = vsel %vm11268_vm10, %v10754_v44, %v11235_v11 }
0x24c0   : > { %v11229_v13 = vpop.permute.xlu0 %11228  ;;  %11316 = vrot.lane.b32.xlu1 %v11276_v62, %s15096_s5 }
0x24c1   : > { %v11273_v3 = vsel %vm11268_vm10, %v10751_v49, %v11229_v13  ;;  %v20762_v49 = vld [vmem:[#allocation83_spill] sm:$0xff] }
0x24c2   : > { %11310 = vrot.lane.b32.xlu0 %v11273_v3, %s15096_s5  ;;  %v11231_v34 = vpop.permute.xlu1 %11230 }
0x24c3   : > { %v11274_v50 = vsel %vm11268_vm10, %v10752_v26, %v11231_v34 }
0x24c4   : > { %v11241_v4 = vpop.permute.xlu0 %11240  ;;  %11312 = vrot.lane.b32.xlu1 %v11274_v50, %s15096_s5 }
0x24c5   : > { %v11279_v23 = vsel %vm11268_vm10, %v10757_v60, %v11241_v4  ;;  %v20768_v60 = vld [vmem:[#allocation9_spill] sm:$0xff] }
0x24c6   : > { %11322 = vrot.lane.b32.xlu0 %v11279_v23, %s15096_s5  ;;  %v11243_v28 = vpop.permute.xlu1 %11242 }
0x24c7   : > { %v11280_v61 = vsel %vm11268_vm10, %v10758_v53, %v11243_v28  ;;  %v20770_v53 = vld [vmem:[#allocation124_spill] sm:$0xff] }
0x24c8   : > { %v11237_v20 = vpop.permute.xlu0 %11236  ;;  %11324 = vrot.lane.b32.xlu1 %v11280_v61, %s15096_s5  ;;  %v20772_v61 = vld [vmem:[#allocation122_spill] sm:$0xff] }
0x24c9   : > { %v11277_v51 = vsel %vm11268_vm10, %v10755_v9, %v11237_v20 }
0x24ca   : > { %11318 = vrot.lane.b32.xlu0 %v11277_v51, %s15096_s5  ;;  %v11239_v31 = vpop.permute.xlu1 %11238  ;;  %v20774_v51 = vld [vmem:[#allocation82_spill] sm:$0xff] }
0x24cb   : > { %v11278_v8 = vsel %vm11268_vm10, %v10756_v45, %v11239_v31 }
0x24cc   : > { %11320 = vrot.lane.b32.xlu1 %v11278_v8, %s15096_s5 }
0x24cd   : > { %v11245_v5 = vpop.permute.xlu0 %11244 }
0x24ce   : > { %v11281_v18 = vsel %vm11268_vm10, %v10759_v0, %v11245_v5  ;;  %v20778_v5 = vld [vmem:[#allocation126_spill] sm:$0xff] }
0x24cf   : > { %v11247_v25 = vpop.permute.xlu1 %11246 }
0x24d0   : > { %v11282_v55 = vsel %vm11268_vm10, %v10760_v32, %v11247_v25 }
0x24d1   : > { %v11249_v10 = vpop.permute.xlu0 %11248  ;;  %11328 = vrot.lane.b32.xlu1 %v11282_v55, %s15096_s5 }
0x24d2   : > { %v11283_v63 = vsel %vm11268_vm10, %v10761_v56, %v11249_v10 }
0x24d3   : > { %11330 = vrot.lane.b32.xlu0 %v11283_v63, %s15096_s5  ;;  %v11251_v57 = vpop.permute.xlu1 %11250  ;;  %v20782_v63 = vld [vmem:[#allocation130_spill] sm:$0xff] }
0x24d4   : > { %v11284_v2 = vsel %vm11268_vm10, %v10762_v54, %v11251_v57 }
0x24d5   : > { %11332 = vrot.lane.b32.xlu1 %v11284_v2, %s15096_s5  ;;  %v20784_v2 = vld [vmem:[#allocation128_spill] sm:$0xff] }
0x24d7   : > { %11326 = vrot.lane.b32.xlu0 %v11281_v18, %s15096_s5 }
0x24db   : > { %11334 = vrot.lane.b32.xlu0 %v20753_v42, %s15096_s5 }
0x2528   : > { %v11307_v16 = vpop.permute.xlu0 %11306 }
0x2529   : > { %v11355_v19 = vsel %vm11268_vm10, %v20754_v39, %v11307_v16  ;;  %v20786_v39 = vld [vmem:[#allocation77_spill] sm:$0xff] }
0x252a   : > { %v11387_v17 = vsel %vm20755_vm12, %v11355_v19, 0.0  ;;  %v11309_v59 = vpop.permute.xlu1 %11308  ;;  %vm20783_vm12 = vmmov %vm20763_vm0 }
0x252b   : > { %11420 = vst.msk [vmem:[%s19212_s17 + $0x10] sm:$0xff] %vm11417_vm9, %v11387_v17  ;;  %v11356_v33 = vsel %vm11268_vm10, %v20756_v41, %v11309_v59  ;;  %v20787_v17 = vld [vmem:[#allocation3_spill] sm:$0xff]  ;;  %v20788_v41 = vld [vmem:[#allocation76_spill] sm:$0xff] }
0x252c   : > { %v11388_v36 = vsel %vm20757_vm1, %v11356_v33, 0.0  ;;  %v11303_v7 = vpop.permute.xlu0 %11302  ;;  %vm20785_vm1 = vmmov %vm20763_vm0 }
0x252d   : > { %11421 = vst.msk [vmem:[%s19212_s17 + $0x18] sm:$0xff] %vm11417_vm9, %v11388_v36  ;;  %v11353_v27 = vsel %vm11268_vm10, %v20758_v58, %v11303_v7  ;;  %v20789_v36 = vld [vmem:[#allocation78_spill] sm:$0xff]  ;;  %v20790_v58 = vld [vmem:[#allocation119_spill] sm:$0xff] }
0x252e   : > { %v11385_v6 = vsel %vm20759_vm13, %v11353_v27, 0.0  ;;  %v11305_v38 = vpop.permute.xlu1 %11304  ;;  %vm20802_vm13 = vmmov %vm20763_vm0 }
0x252f   : > { %11418 = vst.msk [vmem:[%s19212_s17] sm:$0xff] %vm11417_vm9, %v11385_v6  ;;  %v11354_v44 = vsel %vm11268_vm10, %v20760_v22, %v11305_v38  ;;  %v20791_v6 = vld [vmem:[#allocation7_spill] sm:$0xff]  ;;  %v20792_v22 = vld [vmem:[#allocation6_spill] sm:$0xff] }
0x2530   : > { %v11386_v48 = vsel %vm20761_vm15, %v11354_v44, 0.0  ;;  %v11315_v11 = vpop.permute.xlu0 %11314  ;;  %vm20803_vm15 = vmmov %vm20763_vm0 }
0x2531   : > { %11419 = vst.msk [vmem:[%s19212_s17 + $0x8] sm:$0xff] %vm11417_vm9, %v11386_v48  ;;  %v11359_v24 = vsel %vm11268_vm10, %v20762_v49, %v11315_v11  ;;  %v20793_v48 = vld [vmem:[#allocation5_spill] sm:$0xff] }
0x2532   : > { %v11391_v62 = vsel %vm20763_vm0, %v11359_v24, 0.0  ;;  %v11317_v15 = vpop.permute.xlu1 %11316  ;;  %v20794_v49 = vld [vmem:[#allocation121_spill] sm:$0xff] }
0x2533   : > { %11424 = vst.msk [vmem:[%s19212_s17 + $0x30] sm:$0xff] %vm11417_vm9, %v11391_v62  ;;  %v11360_v13 = vsel %vm11268_vm10, %v20764_v37, %v11317_v15  ;;  %v20795_v62 = vld [vmem:[#allocation4_spill] sm:$0xff]  ;;  %v20796_v37 = vld [vmem:[#allocation125_spill] sm:$0xff] }
0x2534   : > { %v11392_v3 = vsel %vm20765_vm2, %v11360_v13, 0.0  ;;  %v11311_v26 = vpop.permute.xlu0 %11310  ;;  %vm20804_vm2 = vmmov %vm20763_vm0 }
0x2535   : > { %11425 = vst.msk [vmem:[%s19212_s17 + $0x38] sm:$0xff] %vm11417_vm9, %v11392_v3  ;;  %v11357_v40 = vsel %vm11268_vm10, %v20766_v14, %v11311_v26  ;;  %v20797_v3 = vld [vmem:[#allocation123_spill] sm:$0xff]  ;;  %v20798_v14 = vld [vmem:[#allocation129_spill] sm:$0xff] }
0x2536   : > { %v11389_v34 = vsel %vm20767_vm4, %v11357_v40, 0.0  ;;  %v11313_v50 = vpop.permute.xlu1 %11312  ;;  %vm20805_vm4 = vmmov %vm20763_vm0 }
0x2537   : > { %11422 = vst.msk [vmem:[%s19212_s17 + $0x20] sm:$0xff] %vm11417_vm9, %v11389_v34  ;;  %v11358_v43 = vsel %vm11268_vm10, %v20768_v60, %v11313_v50  ;;  %v20799_v34 = vld [vmem:[#allocation127_spill] sm:$0xff]  ;;  %v20800_v60 = vld [vmem:[#allocation133_spill] sm:$0xff] }
0x2538   : > { %v11390_v4 = vsel %vm20769_vm5, %v11358_v43, 0.0  ;;  %v11323_v23 = vpop.permute.xlu0 %11322  ;;  %vm20806_vm5 = vmmov %vm20763_vm0 }
0x2539   : > { %11423 = vst.msk [vmem:[%s19212_s17 + $0x28] sm:$0xff] %vm11417_vm9, %v11390_v4  ;;  %v11363_v12 = vsel %vm11268_vm10, %v20770_v53, %v11323_v23  ;;  %v20801_v4 = vld [vmem:[#allocation131_spill] sm:$0xff] }
0x253a   : > { %v11395_v28 = vsel %vm20771_vm8, %v11363_v12, 0.0  ;;  %v11325_v52 = vpop.permute.xlu1 %11324  ;;  %vm20807_vm8 = vmmov %vm20763_vm0 }
0x253b   : > { %11428 = vst.msk [vmem:[%s19212_s17 + $0x50] sm:$0xff] %vm11417_vm9, %v11395_v28  ;;  %v11364_v9 = vsel %vm11268_vm10, %v20772_v61, %v11325_v52 }
0x253c   : > { %v11396_v20 = vsel %vm20773_vm7, %v11364_v9, 0.0  ;;  %v11319_v35 = vpop.permute.xlu0 %11318  ;;  %vm20808_vm7 = vmmov %vm20763_vm0 }
0x253d   : > { %11429 = vst.msk [vmem:[%s19212_s17 + $0x58] sm:$0xff] %vm11417_vm9, %v11396_v20  ;;  %v11361_v45 = vsel %vm11268_vm10, %v20774_v51, %v11319_v35 }
0x253e   : > { %v11393_v31 = vsel %vm20775_vm3, %v11361_v45, 0.0  ;;  %v11321_v21 = vpop.permute.xlu1 %11320  ;;  %vm20810_vm3 = vmmov %vm20763_vm0 }
0x253f   : > { %11426 = vst.msk [vmem:[%s19212_s17 + $0x40] sm:$0xff] %vm11417_vm9, %v11393_v31  ;;  %v11362_v8 = vsel %vm11268_vm10, %v20776_v47, %v11321_v21 }
0x2540   : > { %v11394_v30 = vsel %vm20777_vm6, %v11362_v8, 0.0  ;;  %vm20811_vm6 = vmmov %vm20763_vm0 }
0x2541   : > { %11427 = vst.msk [vmem:[%s19212_s17 + $0x48] sm:$0xff] %vm11417_vm9, %v11394_v30 }
0x2543   : > { %v11329_v46 = vpop.permute.xlu1 %11328 }
0x2544   : > { %v11366_v32 = vsel %vm11268_vm10, %v20778_v5, %v11329_v46 }
0x2545   : > { %v11398_v1 = vsel %vm20779_vm14, %v11366_v32, 0.0  ;;  %v11331_v25 = vpop.permute.xlu0 %11330  ;;  %vm20812_vm14 = vmmov %vm20763_vm0 }
0x2546   : > { %11431 = vst.msk [vmem:[%s19212_s17 + $0x68] sm:$0xff] %vm11417_vm9, %v11398_v1  ;;  %v11367_v55 = vsel %vm11268_vm10, %v20780_v29, %v11331_v25 }
0x2547   : > { %v11399_v56 = vsel %vm20781_vm11, %v11367_v55, 0.0  ;;  %v11333_v10 = vpop.permute.xlu1 %11332  ;;  %vm20813_vm11 = vmmov %vm20763_vm0 }
0x2548   : > { %11432 = vst.msk [vmem:[%s19212_s17 + $0x70] sm:$0xff] %vm11417_vm9, %v11399_v56  ;;  %v11368_v54 = vsel %vm11268_vm10, %v20782_v63, %v11333_v10 }
0x2549   : > { %v11400_v57 = vsel %vm20783_vm12, %v11368_v54, 0.0  ;;  %v11327_v0 = vpop.permute.xlu0 %11326  ;;  %vm20814_vm12 = vmmov %vm20763_vm0 }
0x254a   : > { %11433 = vst.msk [vmem:[%s19212_s17 + $0x78] sm:$0xff] %vm11417_vm9, %v11400_v57  ;;  %v11365_v18 = vsel %vm11268_vm10, %v20784_v2, %v11327_v0 }
0x254b   : > { %v11397_v42 = vsel %vm20785_vm1, %v11365_v18, 0.0  ;;  %vm20815_vm1 = vmmov %vm20763_vm0 }
0x254c   : > { %11430 = vst.msk [vmem:[%s19212_s17 + $0x60] sm:$0xff] %vm11417_vm9, %v11397_v42 }
0x254d   : > { %v11335_v16 = vpop.permute.xlu0 %11334 }
0x254e   : > { %v11369_v19 = vsel %vm11268_vm10, %v20786_v39, %v11335_v16  ;;  %v11370_v59 = vsel %vm11268_vm10, %v20787_v17, %v11335_v16  ;;  %v11371_v33 = vsel %vm11268_vm10, %v20788_v41, %v11335_v16  ;;  %v11372_v7 = vsel %vm11268_vm10, %v20789_v36, %v11335_v16 }
0x254f   : > { %v11373_v27 = vsel %vm11268_vm10, %v20790_v58, %v11335_v16  ;;  %v11374_v38 = vsel %vm11268_vm10, %v20791_v6, %v11335_v16  ;;  %v11375_v44 = vsel %vm11268_vm10, %v20792_v22, %v11335_v16  ;;  %v11376_v11 = vsel %vm11268_vm10, %v20793_v48, %v11335_v16 }
0x2550   : > { %v11377_v24 = vsel %vm11268_vm10, %v20794_v49, %v11335_v16  ;;  %v11378_v15 = vsel %vm11268_vm10, %v20795_v62, %v11335_v16  ;;  %v11379_v13 = vsel %vm11268_vm10, %v20796_v37, %v11335_v16  ;;  %v11380_v26 = vsel %vm11268_vm10, %v20797_v3, %v11335_v16 }
0x2551   : > { %v11381_v40 = vsel %vm11268_vm10, %v20798_v14, %v11335_v16  ;;  %v11382_v50 = vsel %vm11268_vm10, %v20799_v34, %v11335_v16  ;;  %v11383_v43 = vsel %vm11268_vm10, %v20800_v60, %v11335_v16  ;;  %v11384_v23 = vsel %vm11268_vm10, %v20801_v4, %v11335_v16  ;;  %vm20809_vm10 = vmmov %vm20763_vm0 }
0x2552   : > { %v11401_v53 = vsel %vm20802_vm13, %v11369_v19, 0.0  ;;  %v11402_v12 = vsel %vm20803_vm15, %v11370_v59, 0.0  ;;  %v11403_v28 = vsel %vm20763_vm0, %v11371_v33, 0.0  ;;  %v11404_v52 = vsel %vm20804_vm2, %v11372_v7, 0.0  ;;  %vm20816_vm13 = vmmov %vm20763_vm0 }
0x2553   : > { %v11405_v61 = vsel %vm20805_vm4, %v11373_v27, 0.0  ;;  %v11406_v9 = vsel %vm20806_vm5, %v11374_v38, 0.0  ;;  %v11407_v20 = vsel %vm20807_vm8, %v11375_v44, 0.0  ;;  %v11408_v35 = vsel %vm20808_vm7, %v11376_v11, 0.0  ;;  %11434 = vst.msk [vmem:[%s19212_s17 + $0x80] sm:$0xff] %vm11417_vm9, %v11401_v53  ;;  %11435 = vst.msk [vmem:[%s19212_s17 + $0x88] sm:$0xff] %vm11417_vm9, %v11402_v12 }
0x2554   : > { %11436 = vst.msk [vmem:[%s19212_s17 + $0x90] sm:$0xff] %vm11417_vm9, %v11403_v28  ;;  %11437 = vst.msk [vmem:[%s19212_s17 + $0x98] sm:$0xff] %vm11417_vm9, %v11404_v52  ;;  %v11409_v51 = vsel %vm20809_vm10, %v11377_v24, 0.0  ;;  %v11410_v45 = vsel %vm20810_vm3, %v11378_v15, 0.0  ;;  %v11411_v31 = vsel %vm20811_vm6, %v11379_v13, 0.0  ;;  %v11412_v21 = vsel %vm20812_vm14, %v11380_v26, 0.0 }
0x2555   : > { %11438 = vst.msk [vmem:[%s19212_s17 + $0xa0] sm:$0xff] %vm11417_vm9, %v11405_v61  ;;  %11439 = vst.msk [vmem:[%s19212_s17 + $0xa8] sm:$0xff] %vm11417_vm9, %v11406_v9  ;;  %v11413_v47 = vsel %vm20813_vm11, %v11381_v40, 0.0  ;;  %v11414_v8 = vsel %vm20814_vm12, %v11382_v50, 0.0  ;;  %v11415_v30 = vsel %vm20815_vm1, %v11383_v43, 0.0  ;;  %v11416_v46 = vsel %vm20816_vm13, %v11384_v23, 0.0 }
0x2556   : > { %11440 = vst.msk [vmem:[%s19212_s17 + $0xb0] sm:$0xff] %vm11417_vm9, %v11407_v20  ;;  %11441 = vst.msk [vmem:[%s19212_s17 + $0xb8] sm:$0xff] %vm11417_vm9, %v11408_v35 }
0x2557   : > { %11442 = vst.msk [vmem:[%s19212_s17 + $0xc0] sm:$0xff] %vm11417_vm9, %v11409_v51  ;;  %11443 = vst.msk [vmem:[%s19212_s17 + $0xc8] sm:$0xff] %vm11417_vm9, %v11410_v45 }
0x2558   : > { %11444 = vst.msk [vmem:[%s19212_s17 + $0xd0] sm:$0xff] %vm11417_vm9, %v11411_v31  ;;  %11445 = vst.msk [vmem:[%s19212_s17 + $0xd8] sm:$0xff] %vm11417_vm9, %v11412_v21 }
0x2559   : > { %11446 = vst.msk [vmem:[%s19212_s17 + $0xe0] sm:$0xff] %vm11417_vm9, %v11413_v47  ;;  %11447 = vst.msk [vmem:[%s19212_s17 + $0xe8] sm:$0xff] %vm11417_vm9, %v11414_v8 }
0x255a   : > { %11448 = vst.msk [vmem:[%s19212_s17 + $0xf0] sm:$0xff] %vm11417_vm9, %v11415_v30  ;;  %11449 = vst.msk [vmem:[%s19212_s17 + $0xf8] sm:$0xff] %vm11417_vm9, %v11416_v46 }
0x255b PF: > { %s14_s15 = sadd.s32 1, %s15087_s15  }
0x255c   : > { %p11_p4 = scmp.ge.s32.totalorder %s14_s15, 4  }
0x255e   :  { %13 = sbr.rel (!%p11_p4) target bundleno = 1 (0x1), region = 72 }

</bundles_post_ra>
